<compile_context>
chip_gen: v6e
topology: v6e:2x2x1
jax: 0.10.0
libtpu: 0.0.40
codegen_flags: <defaults>
</compile_context>

<pallas_src>
import math
import jax
import jax.numpy as jnp
from jax import lax
from jax.experimental import pallas as pl
from jax.experimental.pallas import tpu as pltpu

# ---------------- model hyper-parameters ----------------
HIDDEN = 32                  # torch default is 128; 32 keeps the demo small (divisible by nhead=4)
NHEAD = 4
HEAD_DIM = HIDDEN // NHEAD
FF = HIDDEN * 4
NUM_LAYERS = 5
MAX_LEN = 500                # fixed by ICTransformer.__init__ (pe has 500+1 rows)
SEQ = MAX_LEN + 1            # 501 = CLS + 500 tokens
OUT_DIM = 720
OUT_PAD = 768                # 720 padded to a lane-dense multiple of 128
T_PAD = 512                  # 501 padded to an (8,128)-friendly length
LN_EPS = 1e-5
LEAKY_SLOPE = 0.01
ATTN_SCALE = 1.0 / math.sqrt(HEAD_DIM)
NEG_MASK = -1e30             # finite "minus infinity" for the additive key mask

QT = 64                      # attention query-tile rows (score tile QTx512 stays register resident)
RT = 128                     # row tile for the LN/QKV and feed-forward passes
assert T_PAD % QT == 0 and T_PAD % RT == 0

_STACK_NAMES = ("ln1g", "ln1b", "wqkv", "bqkv", "wo", "bo",
                "ln2g", "ln2b", "w1", "b1", "w2", "b2")


# ----------------------------- Pallas kernel ----------------------------------
def _layer_norm(x, g, b):
    mu = jnp.mean(x, axis=-1, keepdims=True)
    xc = x - mu
    var = jnp.mean(xc * xc, axis=-1, keepdims=True)
    return xc * lax.rsqrt(var + LN_EPS) * g + b


def fused_transformer_kernel(h0_ref, madd_ref,
                             ln1g_ref, ln1b_ref, wqkv_ref, bqkv_ref, wo_ref, bo_ref,
                             ln2g_ref, ln2b_ref, w1_ref, b1_ref, w2_ref, b2_ref,
                             fcw_ref, fcb_ref,
                             o_ref,
                             h_ref, qkv_ref):
    """All 5 pre-LN encoder layers + classification head for one batch element.

    h0_ref:   (1, T_PAD, H)  initial activations (CLS | proj(x)) + pe, zero padded
    madd_ref: (1, 1, T_PAD)  additive key mask (0 = attend, NEG_MASK = padded)
    weights:  stacked over layers, pre-transposed to (in, out)
    scratch:  h_ref (T_PAD, H) residual stream, qkv_ref (T_PAD, 3H)
    """
    # activations stay resident in VMEM for all 5 layers
    h_ref[...] = h0_ref[0]

    @pl.loop(0, NUM_LAYERS)
    def _layer(l):
        # ---- pass 1: pre-LN + fused QKV projection (row tiled) ----
        @pl.loop(0, T_PAD // RT)
        def _qkv(rt):
            r0 = pl.multiple_of(rt * RT, RT)
            xt = h_ref[pl.ds(r0, RT), :]
            xn = _layer_norm(xt, ln1g_ref[l], ln1b_ref[l])
            qkv_ref[pl.ds(r0, RT), :] = (
                jnp.dot(xn, wqkv_ref[l], preferred_element_type=jnp.float32)
                + bqkv_ref[l])

        # ---- pass 2: attention (query-row tiled, W_o fused per head) ----
        @pl.loop(0, T_PAD // QT)
        def _attn(qt):
            r0 = pl.multiple_of(qt * QT, QT)
            madd = madd_ref[0]                       # (1, T_PAD) additive key mask
            wo = wo_ref[l]                           # (H, H), pre-transposed (in, out)
            q_rows = qkv_ref[pl.ds(r0, QT), :]       # (QT, 3H)
            acc = jnp.zeros((QT, HIDDEN), jnp.float32)
            for h in range(NHEAD):                   # tiny static unroll; each score tile dies before next
                q = q_rows[:, h * HEAD_DIM:(h + 1) * HEAD_DIM]                     # (QT, hd)
                k = qkv_ref[:, HIDDEN + h * HEAD_DIM:HIDDEN + (h + 1) * HEAD_DIM]  # (T, hd)
                v = qkv_ref[:, 2 * HIDDEN + h * HEAD_DIM:
                            2 * HIDDEN + (h + 1) * HEAD_DIM]                        # (T, hd)
                s = lax.dot_general(q, k, (((1,), (1,)), ((), ())),
                                    preferred_element_type=jnp.float32)            # (QT, T)
                s = s * ATTN_SCALE + madd
                s = s - jnp.max(s, axis=-1, keepdims=True)
                e = jnp.exp(s)
                p = e * pl.reciprocal(jnp.sum(e, axis=-1, keepdims=True), approx=True)
                oh = jnp.dot(p, v, preferred_element_type=jnp.float32)              # (QT, hd)
                acc = acc + jnp.dot(oh, wo[h * HEAD_DIM:(h + 1) * HEAD_DIM, :],
                                    preferred_element_type=jnp.float32)             # (QT, H)
            # residual add (each row of h_ref written exactly once this pass)
            h_ref[pl.ds(r0, QT), :] = h_ref[pl.ds(r0, QT), :] + acc + bo_ref[l]

        # ---- pass 3: pre-LN + feed-forward, ReLU (row tiled) ----
        @pl.loop(0, T_PAD // RT)
        def _ff(rt):
            r0 = pl.multiple_of(rt * RT, RT)
            xt = h_ref[pl.ds(r0, RT), :]
            xn = _layer_norm(xt, ln2g_ref[l], ln2b_ref[l])
            mid = jnp.maximum(
                jnp.dot(xn, w1_ref[l], preferred_element_type=jnp.float32) + b1_ref[l],
                0.0)
            ff = jnp.dot(mid, w2_ref[l], preferred_element_type=jnp.float32) + b2_ref[l]
            h_ref[pl.ds(r0, RT), :] = xt + ff

    # ---- head: fc(LeakyReLU(cls)) ----
    cls = h_ref[0:1, :]                                      # (1, H)
    act = jnp.where(cls > 0, cls, LEAKY_SLOPE * cls)
    o_ref[0] = (jnp.dot(act, fcw_ref[...], preferred_element_type=jnp.float32)
                + fcb_ref[...])


# ----------------------------- kernel wrapper ----------------------------------
def _fused_call(h0, madd, params):
    B = h0.shape[0]
    stk = params["stacked"]
    weights = [stk[n] for n in _STACK_NAMES] + [params["fc_w_pad"], params["fc_b_pad"]]

    def full_spec(a):
        nd = a.ndim
        return pl.BlockSpec(a.shape, lambda b, _nd=nd: (0,) * _nd)

    in_specs = ([pl.BlockSpec((1, T_PAD, HIDDEN), lambda b: (b, 0, 0)),
                 pl.BlockSpec((1, 1, T_PAD), lambda b: (b, 0, 0))]
                + [full_spec(w) for w in weights])

    return pl.pallas_call(
        fused_transformer_kernel,
        out_shape=jax.ShapeDtypeStruct((B, 1, OUT_PAD), jnp.float32),
        grid=(B,),
        in_specs=in_specs,
        out_specs=pl.BlockSpec((1, 1, OUT_PAD), lambda b: (b, 0, 0)),
        scratch_shapes=[pltpu.VMEM((T_PAD, HIDDEN), jnp.float32),
                        pltpu.VMEM((T_PAD, 3 * HIDDEN), jnp.float32)],
        compiler_params=pltpu.CompilerParams(
            dimension_semantics=("parallel",)),   # v7x: 2 TCs each take one batch element
    )(h0, madd, *weights)


@jax.jit
def ic_transformer_forward(x, mask, params):
    """x: (B, S) float32, mask: (B, S) in {0,1} (1 == valid token), S == MAX_LEN."""
    B, S = x.shape
    T = S + 1
    # trivial glue (proj(Linear(1,H)), CLS embed, +pe) — one fused XLA elementwise op
    proj = x[:, :, None] * params["proj_w"] + params["proj_b"]            # (B, S, H)
    cls_tok = jnp.broadcast_to(params["cls_emb"][0], (B, 1, HIDDEN))
    h0 = jnp.concatenate([cls_tok, proj], axis=1) + params["pe"][None]    # (B, T, H)
    h0 = jnp.pad(h0, ((0, 0), (0, T_PAD - T), (0, 0)))                    # (B, T_PAD, H)
    # additive key-padding mask; CLS key (col 0) never masked, pad columns always masked
    key_ok = jnp.concatenate([jnp.ones((B, 1), mask.dtype), mask], axis=1)
    key_ok = jnp.pad(key_ok, ((0, 0), (0, T_PAD - T)))
    madd = jnp.where(key_ok > 0.5, 0.0, NEG_MASK).astype(jnp.float32)[:, None, :]
    out = _fused_call(h0, madd, params)                                   # (B, 1, OUT_PAD)
    return out[:, 0, :OUT_DIM]


# ----------------------------- parameters --------------------------------------
def make_pe(max_len, hidden):
    position = jnp.arange(0, max_len + 1, dtype=jnp.float32)[:, None]
    div_term = jnp.exp(jnp.arange(0, hidden, 2, dtype=jnp.float32)
                       * (-math.log(10000.0) / hidden))
    ang = position * div_term
    pe = jnp.zeros((max_len + 1, hidden), jnp.float32)
    pe = pe.at[:, 0::2].set(jnp.sin(ang))
    pe = pe.at[:, 1::2].set(jnp.cos(ang))
    return pe                                            # (501, H)


def make_layer_params(key, w_scale=0.05):
    """Random encoder-layer weights, already in (in, out) layout."""
    ks = jax.random.split(key, 6)
    return dict(
        ln1g=jnp.ones((HIDDEN,), jnp.float32),
        ln1b=jnp.zeros((HIDDEN,), jnp.float32),
        wqkv=w_scale * jax.random.normal(ks[0], (HIDDEN, 3 * HIDDEN), jnp.float32),
        bqkv=w_scale * jax.random.normal(ks[1], (3 * HIDDEN,), jnp.float32),
        wo=w_scale * jax.random.normal(ks[2], (HIDDEN, HIDDEN), jnp.float32),
        bo=jnp.zeros((HIDDEN,), jnp.float32),
        ln2g=jnp.ones((HIDDEN,), jnp.float32),
        ln2b=jnp.zeros((HIDDEN,), jnp.float32),
        w1=w_scale * jax.random.normal(ks[3], (HIDDEN, FF), jnp.float32),
        b1=w_scale * jax.random.normal(ks[4], (FF,), jnp.float32),
        w2=w_scale * jax.random.normal(ks[5], (FF, HIDDEN), jnp.float32),
        b2=jnp.zeros((HIDDEN,), jnp.float32),
    )


def make_params(key, w_scale=0.05):
    keys = jax.random.split(key, 4 + NUM_LAYERS)
    layers = [make_layer_params(keys[4 + i], w_scale) for i in range(NUM_LAYERS)]

    def stack(name):
        s = jnp.stack([lp[name] for lp in layers], axis=0)
        if s.ndim == 2:                    # (L, D) -> (L, 1, D) for in-kernel broadcast
            s = s[:, None, :]
        return s

    stacked = {n: stack(n) for n in _STACK_NAMES}

    fc_w = w_scale * jax.random.normal(keys[3], (HIDDEN, OUT_DIM), jnp.float32)  # (in, out)
    fc_b = jnp.zeros((OUT_DIM,), jnp.float32)
    return dict(
        proj_w=w_scale * jax.random.normal(keys[0], (HIDDEN,), jnp.float32),  # Linear(1,H).weight[:,0]
        proj_b=w_scale * jax.random.normal(keys[1], (HIDDEN,), jnp.float32),
        cls_emb=w_scale * jax.random.normal(keys[2], (2, HIDDEN), jnp.float32),  # nn.Embedding(2,H)
        pe=make_pe(MAX_LEN, HIDDEN),
        stacked=stacked,
        fc_w_pad=jnp.pad(fc_w, ((0, 0), (0, OUT_PAD - OUT_DIM))),
        fc_b_pad=jnp.pad(fc_b, (0, OUT_PAD - OUT_DIM))[None, :],
    )


# ----------------------------- pure-jnp reference -------------------------------
def _layer_norm_ref(x, g, b):
    mu = jnp.mean(x, axis=-1, keepdims=True)
    var = jnp.mean(jnp.square(x - mu), axis=-1, keepdims=True)
    return (x - mu) / jnp.sqrt(var + LN_EPS) * g + b


def reference_forward(x, mask, params):
    B, S = x.shape
    T = S + 1
    proj = x[:, :, None] * params["proj_w"] + params["proj_b"]
    cls_tok = jnp.broadcast_to(params["cls_emb"][0], (B, 1, HIDDEN))
    h = jnp.concatenate([cls_tok, proj], axis=1) + params["pe"][None]
    key_ok = jnp.concatenate([jnp.ones((B, 1), mask.dtype), mask], axis=1)
    madd = jnp.where(key_ok > 0.5, 0.0, NEG_MASK)
    stk = params["stacked"]
    for l in range(NUM_LAYERS):
        xn = _layer_norm_ref(h, stk["ln1g"][l, 0], stk["ln1b"][l, 0])
        qkv = xn @ stk["wqkv"][l] + stk["bqkv"][l, 0]
        q = qkv[..., :HIDDEN].reshape(B, T, NHEAD, HEAD_DIM)
        k = qkv[..., HIDDEN:2 * HIDDEN].reshape(B, T, NHEAD, HEAD_DIM)
        v = qkv[..., 2 * HIDDEN:].reshape(B, T, NHEAD, HEAD_DIM)
        s = jnp.einsum("bqhd,bkhd->bhqk", q, k) * ATTN_SCALE + madd[:, None, None, :]
        s = s - jnp.max(s, axis=-1, keepdims=True)
        e = jnp.exp(s)
        p = e / jnp.sum(e, axis=-1, keepdims=True)
        attn = jnp.einsum("bhqk,bkhd->bqhd", p, v).reshape(B, T, HIDDEN)
        h = h + attn @ stk["wo"][l] + stk["bo"][l, 0]
        xn2 = _layer_norm_ref(h, stk["ln2g"][l, 0], stk["ln2b"][l, 0])
        mid = jnp.maximum(xn2 @ stk["w1"][l] + stk["b1"][l, 0], 0.0)
        h = h + mid @ stk["w2"][l] + stk["b2"][l, 0]
    cls = h[:, 0, :]
    act = jnp.where(cls > 0, cls, LEAKY_SLOPE * cls)
    return act @ params["fc_w_pad"][:, :OUT_DIM] + params["fc_b_pad"][0, :OUT_DIM]


# ----------------------------- main ---------------------------------------------
if __name__ == "__main__":
    key = jax.random.PRNGKey(0)
    k_par, k_x = jax.random.split(key, 2)

    B, S = 2, MAX_LEN
    params = make_params(k_par)

    x = jax.random.normal(k_x, (B, S), jnp.float32)
    lengths = jnp.array([S, 237], jnp.int32)   # deterministic valid lengths
    mask = (jnp.arange(S)[None, :] < lengths[:, None]).astype(jnp.float32)

    out = jax.block_until_ready(ic_transformer_forward(x, mask, params))

    assert out.shape == (B, OUT_DIM), out.shape
    assert bool(jnp.all(jnp.isfinite(out)))

    ref = reference_forward(x, mask, params)
    err = float(jnp.max(jnp.abs(out - ref)))
    assert err < 2e-2, f"max|out - ref| = {err}"
    print("KERNEL_OK")
</pallas_src>

<mosaic_0001>
module attributes {stable_mosaic.version = 11 : i64} {
  func.func @fused_transformer_kernel(%arg0: i32, %arg1: memref<1x512x32xf32, #tpu.memory_space<vmem>>, %arg2: memref<1x1x512xf32, #tpu.memory_space<vmem>>, %arg3: memref<5x1x32xf32, #tpu.memory_space<vmem>>, %arg4: memref<5x1x32xf32, #tpu.memory_space<vmem>>, %arg5: memref<5x32x96xf32, #tpu.memory_space<vmem>>, %arg6: memref<5x1x96xf32, #tpu.memory_space<vmem>>, %arg7: memref<5x32x32xf32, #tpu.memory_space<vmem>>, %arg8: memref<5x1x32xf32, #tpu.memory_space<vmem>>, %arg9: memref<5x1x32xf32, #tpu.memory_space<vmem>>, %arg10: memref<5x1x32xf32, #tpu.memory_space<vmem>>, %arg11: memref<5x32x128xf32, #tpu.memory_space<vmem>>, %arg12: memref<5x1x128xf32, #tpu.memory_space<vmem>>, %arg13: memref<5x128x32xf32, #tpu.memory_space<vmem>>, %arg14: memref<5x1x32xf32, #tpu.memory_space<vmem>>, %arg15: memref<32x768xf32, #tpu.memory_space<vmem>>, %arg16: memref<1x768xf32, #tpu.memory_space<vmem>>, %arg17: memref<1x1x768xf32, #tpu.memory_space<vmem>>, %arg18: memref<512x32xf32, #tpu.memory_space<vmem>>, %arg19: memref<512x96xf32, #tpu.memory_space<vmem>>) attributes {dimension_semantics = [#tpu.dimension_semantics<parallel>], iteration_bounds = array<i64: 2>, scalar_prefetch = 0 : i64, scratch_operands = 2 : i64, tpu.core_type = #tpu.core_type<tc>, window_params = [{transform_indices = @transform_0, window_bounds = array<i64: 1, 512, 32>}, {transform_indices = @transform_1, window_bounds = array<i64: 1, 1, 512>}, {pipeline_mode = #tpu.pipeline_mode<synchronous>, transform_indices = @transform_2, window_bounds = array<i64: 5, 1, 32>}, {pipeline_mode = #tpu.pipeline_mode<synchronous>, transform_indices = @transform_3, window_bounds = array<i64: 5, 1, 32>}, {pipeline_mode = #tpu.pipeline_mode<synchronous>, transform_indices = @transform_4, window_bounds = array<i64: 5, 32, 96>}, {pipeline_mode = #tpu.pipeline_mode<synchronous>, transform_indices = @transform_5, window_bounds = array<i64: 5, 1, 96>}, {pipeline_mode = #tpu.pipeline_mode<synchronous>, transform_indices = @transform_6, window_bounds = array<i64: 5, 32, 32>}, {pipeline_mode = #tpu.pipeline_mode<synchronous>, transform_indices = @transform_7, window_bounds = array<i64: 5, 1, 32>}, {pipeline_mode = #tpu.pipeline_mode<synchronous>, transform_indices = @transform_8, window_bounds = array<i64: 5, 1, 32>}, {pipeline_mode = #tpu.pipeline_mode<synchronous>, transform_indices = @transform_9, window_bounds = array<i64: 5, 1, 32>}, {pipeline_mode = #tpu.pipeline_mode<synchronous>, transform_indices = @transform_10, window_bounds = array<i64: 5, 32, 128>}, {pipeline_mode = #tpu.pipeline_mode<synchronous>, transform_indices = @transform_11, window_bounds = array<i64: 5, 1, 128>}, {pipeline_mode = #tpu.pipeline_mode<synchronous>, transform_indices = @transform_12, window_bounds = array<i64: 5, 128, 32>}, {pipeline_mode = #tpu.pipeline_mode<synchronous>, transform_indices = @transform_13, window_bounds = array<i64: 5, 1, 32>}, {pipeline_mode = #tpu.pipeline_mode<synchronous>, transform_indices = @transform_14, window_bounds = array<i64: 32, 768>}, {pipeline_mode = #tpu.pipeline_mode<synchronous>, transform_indices = @transform_15, window_bounds = array<i64: 1, 768>}, {transform_indices = @transform_16, window_bounds = array<i64: 1, 1, 768>}]} {
    %c0 = arith.constant 0 : index
    %c0_0 = arith.constant 0 : index
    %c0_1 = arith.constant 0 : index
    %0 = vector.load %arg1[%c0, %c0_0, %c0_1] : memref<1x512x32xf32, #tpu.memory_space<vmem>>, vector<1x512x32xf32>
    %1 = vector.shape_cast %0 : vector<1x512x32xf32> to vector<512x32xf32>
    %c0_2 = arith.constant 0 : index
    %c0_3 = arith.constant 0 : index
    %2 = vector.load %arg18[%c0_2, %c0_3] : memref<512x32xf32, #tpu.memory_space<vmem>>, vector<512x32xf32>
    tpu.vector_store %arg18[%c0_2, %c0_3], %1 {strides = array<i32>} : memref<512x32xf32, #tpu.memory_space<vmem>>, vector<512x32xf32>,
    %c0_i32 = arith.constant 0 : i32
    %c5_i32 = arith.constant 5 : i32
    %3 = arith.addi %c0_i32, %c5_i32 : i32
    %c1_i32 = arith.constant 1 : i32
    scf.for %arg20 = %c0_i32 to %3 step %c1_i32  : i32 {
      %c1_i32_16 = arith.constant 1 : i32
      %17 = arith.muli %arg20, %c1_i32_16 : i32
      %c0_i32_17 = arith.constant 0 : i32
      %18 = arith.addi %c0_i32_17, %17 : i32
      %c0_i32_18 = arith.constant 0 : i32
      %c4_i32 = arith.constant 4 : i32
      %19 = arith.addi %c0_i32_18, %c4_i32 : i32
      %c1_i32_19 = arith.constant 1 : i32
      scf.for %arg21 = %c0_i32_18 to %19 step %c1_i32_19  : i32 {
        %c1_i32_28 = arith.constant 1 : i32
        %22 = arith.muli %arg21, %c1_i32_28 : i32
        %c0_i32_29 = arith.constant 0 : i32
        %23 = arith.addi %c0_i32_29, %22 : i32
        %c128_i32 = arith.constant 128 : i32
        %24 = arith.muli %23, %c128_i32 : i32
        %25 = tpu.assume_multiple %24, 128 : i32
        %26 = arith.index_cast %25 : i32 to index
        %c0_30 = arith.constant 0 : index
        %27 = vector.load %arg18[%26, %c0_30] : memref<512x32xf32, #tpu.memory_space<vmem>>, vector<128x32xf32>
        %28 = arith.index_cast %18 : i32 to index
        %c0_31 = arith.constant 0 : index
        %c0_32 = arith.constant 0 : index
        %29 = vector.load %arg3[%28, %c0_31, %c0_32] : memref<5x1x32xf32, #tpu.memory_space<vmem>>, vector<1x1x32xf32>
        %30 = vector.shape_cast %29 : vector<1x1x32xf32> to vector<1x32xf32>
        %31 = arith.index_cast %18 : i32 to index
        %c0_33 = arith.constant 0 : index
        %c0_34 = arith.constant 0 : index
        %32 = vector.load %arg4[%31, %c0_33, %c0_34] : memref<5x1x32xf32, #tpu.memory_space<vmem>>, vector<1x1x32xf32>
        %33 = vector.shape_cast %32 : vector<1x1x32xf32> to vector<1x32xf32>
        %cst_35 = arith.constant dense<0.000000e+00> : vector<128xf32>
        %34 = vector.multi_reduction <add>, %27, %cst_35 [1] : vector<128x32xf32> to vector<128xf32>
        %35 = vector.shape_cast %34 : vector<128xf32> to vector<128x1xf32>
        %cst_36 = arith.constant 3.200000e+01 : f32
        %36 = vector.broadcast %cst_36 : f32 to vector<128x1xf32>
        %37 = arith.divf %35, %36 : vector<128x1xf32>
        %38 = vector.broadcast %37 : vector<128x1xf32> to vector<128x32xf32>
        %39 = arith.subf %27, %38 : vector<128x32xf32>
        %40 = arith.mulf %39, %39 : vector<128x32xf32>
        %cst_37 = arith.constant dense<0.000000e+00> : vector<128xf32>
        %41 = vector.multi_reduction <add>, %40, %cst_37 [1] : vector<128x32xf32> to vector<128xf32>
        %42 = vector.shape_cast %41 : vector<128xf32> to vector<128x1xf32>
        %cst_38 = arith.constant 3.200000e+01 : f32
        %43 = vector.broadcast %cst_38 : f32 to vector<128x1xf32>
        %44 = arith.divf %42, %43 : vector<128x1xf32>
        %cst_39 = arith.constant 9.99999974E-6 : f32
        %45 = vector.broadcast %cst_39 : f32 to vector<128x1xf32>
        %46 = arith.addf %44, %45 : vector<128x1xf32>
        %47 = math.rsqrt %46 : vector<128x1xf32>
        %48 = vector.broadcast %47 : vector<128x1xf32> to vector<128x32xf32>
        %49 = arith.mulf %39, %48 : vector<128x32xf32>
        %50 = vector.broadcast %30 : vector<1x32xf32> to vector<128x32xf32>
        %51 = arith.mulf %49, %50 : vector<128x32xf32>
        %52 = vector.broadcast %33 : vector<1x32xf32> to vector<128x32xf32>
        %53 = arith.addf %51, %52 : vector<128x32xf32>
        %54 = arith.index_cast %18 : i32 to index
        %c0_40 = arith.constant 0 : index
        %c0_41 = arith.constant 0 : index
        %55 = vector.load %arg5[%54, %c0_40, %c0_41] : memref<5x32x96xf32, #tpu.memory_space<vmem>>, vector<1x32x96xf32>
        %56 = vector.shape_cast %55 : vector<1x32x96xf32> to vector<32x96xf32>
        %cst_42 = arith.constant dense<0.000000e+00> : vector<128x96xf32>
        %57 = tpu.matmul %53, %56, %cst_42 {dimension_numbers = #tpu.dot_dimension_numbers<[1], [0], [0], [1], [0, 0, 1, 1], [], []>} : vector<128x32xf32>, vector<32x96xf32>, vector<128x96xf32> -> vector<128x96xf32>
        %58 = arith.index_cast %18 : i32 to index
        %c0_43 = arith.constant 0 : index
        %c0_44 = arith.constant 0 : index
        %59 = vector.load %arg6[%58, %c0_43, %c0_44] : memref<5x1x96xf32, #tpu.memory_space<vmem>>, vector<1x1x96xf32>
        %60 = vector.shape_cast %59 : vector<1x1x96xf32> to vector<1x96xf32>
        %61 = vector.broadcast %60 : vector<1x96xf32> to vector<128x96xf32>
        %62 = arith.addf %57, %61 : vector<128x96xf32>
        %63 = arith.index_cast %25 : i32 to index
        %c0_45 = arith.constant 0 : index
        %64 = vector.load %arg19[%63, %c0_45] : memref<512x96xf32, #tpu.memory_space<vmem>>, vector<128x96xf32>
        tpu.vector_store %arg19[%63, %c0_45], %62 {strides = array<i32>} : memref<512x96xf32, #tpu.memory_space<vmem>>, vector<128x96xf32>,
      }
      %c4_i32_20 = arith.constant 4 : i32
      %c0_i32_21 = arith.constant 0 : i32
      %c8_i32 = arith.constant 8 : i32
      %20 = arith.addi %c0_i32_21, %c8_i32 : i32
      %c1_i32_22 = arith.constant 1 : i32
      scf.for %arg21 = %c0_i32_21 to %20 step %c1_i32_22  : i32 {
        %c1_i32_28 = arith.constant 1 : i32
        %22 = arith.muli %arg21, %c1_i32_28 : i32
        %c0_i32_29 = arith.constant 0 : i32
        %23 = arith.addi %c0_i32_29, %22 : i32
        %c64_i32 = arith.constant 64 : i32
        %24 = arith.muli %23, %c64_i32 : i32
        %25 = tpu.assume_multiple %24, 64 : i32
        %c0_30 = arith.constant 0 : index
        %c0_31 = arith.constant 0 : index
        %c0_32 = arith.constant 0 : index
        %26 = vector.load %arg2[%c0_30, %c0_31, %c0_32] : memref<1x1x512xf32, #tpu.memory_space<vmem>>, vector<1x1x512xf32>
        %27 = vector.shape_cast %26 : vector<1x1x512xf32> to vector<1x512xf32>
        %28 = arith.index_cast %18 : i32 to index
        %c0_33 = arith.constant 0 : index
        %c0_34 = arith.constant 0 : index
        %29 = vector.load %arg7[%28, %c0_33, %c0_34] : memref<5x32x32xf32, #tpu.memory_space<vmem>>, vector<1x32x32xf32>
        %30 = vector.shape_cast %29 : vector<1x32x32xf32> to vector<32x32xf32>
        %31 = arith.index_cast %25 : i32 to index
        %c0_35 = arith.constant 0 : index
        %32 = vector.load %arg19[%31, %c0_35] : memref<512x96xf32, #tpu.memory_space<vmem>>, vector<64x96xf32>
        %cst_36 = arith.constant 0.000000e+00 : f32
        %33 = vector.broadcast %cst_36 : f32 to vector<64x32xf32>
        %34 = vector.extract_strided_slice %32 {offsets = [0, 0], sizes = [64, 8], strides = [1, 1]} : vector<64x96xf32> to vector<64x8xf32>
        %c0_37 = arith.constant 0 : index
        %c32 = arith.constant 32 : index
        %35 = vector.load %arg19[%c0_37, %c32] : memref<512x96xf32, #tpu.memory_space<vmem>>, vector<512x8xf32>
        %c0_38 = arith.constant 0 : index
        %c64 = arith.constant 64 : index
        %36 = vector.load %arg19[%c0_38, %c64] : memref<512x96xf32, #tpu.memory_space<vmem>>, vector<512x8xf32>
        %cst_39 = arith.constant dense<0.000000e+00> : vector<64x512xf32>
        %37 = tpu.matmul %34, %35, %cst_39 {dimension_numbers = #tpu.dot_dimension_numbers<[1], [1], [0], [0], [0, 0, 1, 0], [], []>} : vector<64x8xf32>, vector<512x8xf32>, vector<64x512xf32> -> vector<64x512xf32>
        %cst_40 = arith.constant 0.353553385 : f32
        %38 = vector.broadcast %cst_40 : f32 to vector<64x512xf32>
        %39 = arith.mulf %37, %38 : vector<64x512xf32>
        %40 = vector.broadcast %27 : vector<1x512xf32> to vector<64x512xf32>
        %41 = arith.addf %39, %40 : vector<64x512xf32>
        %cst_41 = arith.constant dense<0xFF800000> : vector<64xf32>
        %42 = vector.multi_reduction <maximumf>, %41, %cst_41 [1] : vector<64x512xf32> to vector<64xf32>
        %43 = vector.shape_cast %42 : vector<64xf32> to vector<64x1xf32>
        %44 = vector.broadcast %43 : vector<64x1xf32> to vector<64x512xf32>
        %45 = arith.subf %41, %44 : vector<64x512xf32>
        %46 = math.exp %45 : vector<64x512xf32>
        %cst_42 = arith.constant dense<0.000000e+00> : vector<64xf32>
        %47 = vector.multi_reduction <add>, %46, %cst_42 [1] : vector<64x512xf32> to vector<64xf32>
        %48 = vector.shape_cast %47 : vector<64xf32> to vector<64x1xf32>
        %49 = tpu.reciprocal %48 {approx = true} : vector<64x1xf32> -> vector<64x1xf32>
        %50 = vector.broadcast %49 : vector<64x1xf32> to vector<64x512xf32>
        %51 = arith.mulf %46, %50 : vector<64x512xf32>
        %cst_43 = arith.constant dense<0.000000e+00> : vector<64x8xf32>
        %52 = tpu.matmul %51, %36, %cst_43 {dimension_numbers = #tpu.dot_dimension_numbers<[1], [0], [0], [1], [0, 0, 1, 1], [], []>} : vector<64x512xf32>, vector<512x8xf32>, vector<64x8xf32> -> vector<64x8xf32>
        %53 = vector.extract_strided_slice %30 {offsets = [0, 0], sizes = [8, 32], strides = [1, 1]} : vector<32x32xf32> to vector<8x32xf32>
        %cst_44 = arith.constant dense<0.000000e+00> : vector<64x32xf32>
        %54 = tpu.matmul %52, %53, %cst_44 {dimension_numbers = #tpu.dot_dimension_numbers<[1], [0], [0], [1], [0, 0, 1, 1], [], []>} : vector<64x8xf32>, vector<8x32xf32>, vector<64x32xf32> -> vector<64x32xf32>
        %55 = arith.addf %33, %54 : vector<64x32xf32>
        %56 = vector.extract_strided_slice %32 {offsets = [0, 8], sizes = [64, 8], strides = [1, 1]} : vector<64x96xf32> to vector<64x8xf32>
        %c0_45 = arith.constant 0 : index
        %c40 = arith.constant 40 : index
        %57 = vector.load %arg19[%c0_45, %c40] : memref<512x96xf32, #tpu.memory_space<vmem>>, vector<512x8xf32>
        %c0_46 = arith.constant 0 : index
        %c72 = arith.constant 72 : index
        %58 = vector.load %arg19[%c0_46, %c72] : memref<512x96xf32, #tpu.memory_space<vmem>>, vector<512x8xf32>
        %cst_47 = arith.constant dense<0.000000e+00> : vector<64x512xf32>
        %59 = tpu.matmul %56, %57, %cst_47 {dimension_numbers = #tpu.dot_dimension_numbers<[1], [1], [0], [0], [0, 0, 1, 0], [], []>} : vector<64x8xf32>, vector<512x8xf32>, vector<64x512xf32> -> vector<64x512xf32>
        %cst_48 = arith.constant 0.353553385 : f32
        %60 = vector.broadcast %cst_48 : f32 to vector<64x512xf32>
        %61 = arith.mulf %59, %60 : vector<64x512xf32>
        %62 = vector.broadcast %27 : vector<1x512xf32> to vector<64x512xf32>
        %63 = arith.addf %61, %62 : vector<64x512xf32>
        %cst_49 = arith.constant dense<0xFF800000> : vector<64xf32>
        %64 = vector.multi_reduction <maximumf>, %63, %cst_49 [1] : vector<64x512xf32> to vector<64xf32>
        %65 = vector.shape_cast %64 : vector<64xf32> to vector<64x1xf32>
        %66 = vector.broadcast %65 : vector<64x1xf32> to vector<64x512xf32>
        %67 = arith.subf %63, %66 : vector<64x512xf32>
        %68 = math.exp %67 : vector<64x512xf32>
        %cst_50 = arith.constant dense<0.000000e+00> : vector<64xf32>
        %69 = vector.multi_reduction <add>, %68, %cst_50 [1] : vector<64x512xf32> to vector<64xf32>
        %70 = vector.shape_cast %69 : vector<64xf32> to vector<64x1xf32>
        %71 = tpu.reciprocal %70 {approx = true} : vector<64x1xf32> -> vector<64x1xf32>
        %72 = vector.broadcast %71 : vector<64x1xf32> to vector<64x512xf32>
        %73 = arith.mulf %68, %72 : vector<64x512xf32>
        %cst_51 = arith.constant dense<0.000000e+00> : vector<64x8xf32>
        %74 = tpu.matmul %73, %58, %cst_51 {dimension_numbers = #tpu.dot_dimension_numbers<[1], [0], [0], [1], [0, 0, 1, 1], [], []>} : vector<64x512xf32>, vector<512x8xf32>, vector<64x8xf32> -> vector<64x8xf32>
        %75 = vector.extract_strided_slice %30 {offsets = [8, 0], sizes = [8, 32], strides = [1, 1]} : vector<32x32xf32> to vector<8x32xf32>
        %cst_52 = arith.constant dense<0.000000e+00> : vector<64x32xf32>
        %76 = tpu.matmul %74, %75, %cst_52 {dimension_numbers = #tpu.dot_dimension_numbers<[1], [0], [0], [1], [0, 0, 1, 1], [], []>} : vector<64x8xf32>, vector<8x32xf32>, vector<64x32xf32> -> vector<64x32xf32>
        %77 = arith.addf %55, %76 : vector<64x32xf32>
        %78 = vector.extract_strided_slice %32 {offsets = [0, 16], sizes = [64, 8], strides = [1, 1]} : vector<64x96xf32> to vector<64x8xf32>
        %c0_53 = arith.constant 0 : index
        %c48 = arith.constant 48 : index
        %79 = vector.load %arg19[%c0_53, %c48] : memref<512x96xf32, #tpu.memory_space<vmem>>, vector<512x8xf32>
        %c0_54 = arith.constant 0 : index
        %c80 = arith.constant 80 : index
        %80 = vector.load %arg19[%c0_54, %c80] : memref<512x96xf32, #tpu.memory_space<vmem>>, vector<512x8xf32>
        %cst_55 = arith.constant dense<0.000000e+00> : vector<64x512xf32>
        %81 = tpu.matmul %78, %79, %cst_55 {dimension_numbers = #tpu.dot_dimension_numbers<[1], [1], [0], [0], [0, 0, 1, 0], [], []>} : vector<64x8xf32>, vector<512x8xf32>, vector<64x512xf32> -> vector<64x512xf32>
        %cst_56 = arith.constant 0.353553385 : f32
        %82 = vector.broadcast %cst_56 : f32 to vector<64x512xf32>
        %83 = arith.mulf %81, %82 : vector<64x512xf32>
        %84 = vector.broadcast %27 : vector<1x512xf32> to vector<64x512xf32>
        %85 = arith.addf %83, %84 : vector<64x512xf32>
        %cst_57 = arith.constant dense<0xFF800000> : vector<64xf32>
        %86 = vector.multi_reduction <maximumf>, %85, %cst_57 [1] : vector<64x512xf32> to vector<64xf32>
        %87 = vector.shape_cast %86 : vector<64xf32> to vector<64x1xf32>
        %88 = vector.broadcast %87 : vector<64x1xf32> to vector<64x512xf32>
        %89 = arith.subf %85, %88 : vector<64x512xf32>
        %90 = math.exp %89 : vector<64x512xf32>
        %cst_58 = arith.constant dense<0.000000e+00> : vector<64xf32>
        %91 = vector.multi_reduction <add>, %90, %cst_58 [1] : vector<64x512xf32> to vector<64xf32>
        %92 = vector.shape_cast %91 : vector<64xf32> to vector<64x1xf32>
        %93 = tpu.reciprocal %92 {approx = true} : vector<64x1xf32> -> vector<64x1xf32>
        %94 = vector.broadcast %93 : vector<64x1xf32> to vector<64x512xf32>
        %95 = arith.mulf %90, %94 : vector<64x512xf32>
        %cst_59 = arith.constant dense<0.000000e+00> : vector<64x8xf32>
        %96 = tpu.matmul %95, %80, %cst_59 {dimension_numbers = #tpu.dot_dimension_numbers<[1], [0], [0], [1], [0, 0, 1, 1], [], []>} : vector<64x512xf32>, vector<512x8xf32>, vector<64x8xf32> -> vector<64x8xf32>
        %97 = vector.extract_strided_slice %30 {offsets = [16, 0], sizes = [8, 32], strides = [1, 1]} : vector<32x32xf32> to vector<8x32xf32>
        %cst_60 = arith.constant dense<0.000000e+00> : vector<64x32xf32>
        %98 = tpu.matmul %96, %97, %cst_60 {dimension_numbers = #tpu.dot_dimension_numbers<[1], [0], [0], [1], [0, 0, 1, 1], [], []>} : vector<64x8xf32>, vector<8x32xf32>, vector<64x32xf32> -> vector<64x32xf32>
        %99 = arith.addf %77, %98 : vector<64x32xf32>
        %100 = vector.extract_strided_slice %32 {offsets = [0, 24], sizes = [64, 8], strides = [1, 1]} : vector<64x96xf32> to vector<64x8xf32>
        %c0_61 = arith.constant 0 : index
        %c56 = arith.constant 56 : index
        %101 = vector.load %arg19[%c0_61, %c56] : memref<512x96xf32, #tpu.memory_space<vmem>>, vector<512x8xf32>
        %c0_62 = arith.constant 0 : index
        %c88 = arith.constant 88 : index
        %102 = vector.load %arg19[%c0_62, %c88] : memref<512x96xf32, #tpu.memory_space<vmem>>, vector<512x8xf32>
        %cst_63 = arith.constant dense<0.000000e+00> : vector<64x512xf32>
        %103 = tpu.matmul %100, %101, %cst_63 {dimension_numbers = #tpu.dot_dimension_numbers<[1], [1], [0], [0], [0, 0, 1, 0], [], []>} : vector<64x8xf32>, vector<512x8xf32>, vector<64x512xf32> -> vector<64x512xf32>
        %cst_64 = arith.constant 0.353553385 : f32
        %104 = vector.broadcast %cst_64 : f32 to vector<64x512xf32>
        %105 = arith.mulf %103, %104 : vector<64x512xf32>
        %106 = vector.broadcast %27 : vector<1x512xf32> to vector<64x512xf32>
        %107 = arith.addf %105, %106 : vector<64x512xf32>
        %cst_65 = arith.constant dense<0xFF800000> : vector<64xf32>
        %108 = vector.multi_reduction <maximumf>, %107, %cst_65 [1] : vector<64x512xf32> to vector<64xf32>
        %109 = vector.shape_cast %108 : vector<64xf32> to vector<64x1xf32>
        %110 = vector.broadcast %109 : vector<64x1xf32> to vector<64x512xf32>
        %111 = arith.subf %107, %110 : vector<64x512xf32>
        %112 = math.exp %111 : vector<64x512xf32>
        %cst_66 = arith.constant dense<0.000000e+00> : vector<64xf32>
        %113 = vector.multi_reduction <add>, %112, %cst_66 [1] : vector<64x512xf32> to vector<64xf32>
        %114 = vector.shape_cast %113 : vector<64xf32> to vector<64x1xf32>
        %115 = tpu.reciprocal %114 {approx = true} : vector<64x1xf32> -> vector<64x1xf32>
        %116 = vector.broadcast %115 : vector<64x1xf32> to vector<64x512xf32>
        %117 = arith.mulf %112, %116 : vector<64x512xf32>
        %cst_67 = arith.constant dense<0.000000e+00> : vector<64x8xf32>
        %118 = tpu.matmul %117, %102, %cst_67 {dimension_numbers = #tpu.dot_dimension_numbers<[1], [0], [0], [1], [0, 0, 1, 1], [], []>} : vector<64x512xf32>, vector<512x8xf32>, vector<64x8xf32> -> vector<64x8xf32>
        %119 = vector.extract_strided_slice %30 {offsets = [24, 0], sizes = [8, 32], strides = [1, 1]} : vector<32x32xf32> to vector<8x32xf32>
        %cst_68 = arith.constant dense<0.000000e+00> : vector<64x32xf32>
        %120 = tpu.matmul %118, %119, %cst_68 {dimension_numbers = #tpu.dot_dimension_numbers<[1], [0], [0], [1], [0, 0, 1, 1], [], []>} : vector<64x8xf32>, vector<8x32xf32>, vector<64x32xf32> -> vector<64x32xf32>
        %121 = arith.addf %99, %120 : vector<64x32xf32>
        %122 = arith.index_cast %25 : i32 to index
        %c0_69 = arith.constant 0 : index
        %123 = vector.load %arg18[%122, %c0_69] : memref<512x32xf32, #tpu.memory_space<vmem>>, vector<64x32xf32>
        %124 = arith.addf %123, %121 : vector<64x32xf32>
        %125 = arith.index_cast %18 : i32 to index
        %c0_70 = arith.constant 0 : index
        %c0_71 = arith.constant 0 : index
        %126 = vector.load %arg8[%125, %c0_70, %c0_71] : memref<5x1x32xf32, #tpu.memory_space<vmem>>, vector<1x1x32xf32>
        %127 = vector.shape_cast %126 : vector<1x1x32xf32> to vector<1x32xf32>
        %128 = vector.broadcast %127 : vector<1x32xf32> to vector<64x32xf32>
        %129 = arith.addf %124, %128 : vector<64x32xf32>
        %130 = arith.index_cast %25 : i32 to index
        %c0_72 = arith.constant 0 : index
        %131 = vector.load %arg18[%130, %c0_72] : memref<512x32xf32, #tpu.memory_space<vmem>>, vector<64x32xf32>
        tpu.vector_store %arg18[%130, %c0_72], %129 {strides = array<i32>} : memref<512x32xf32, #tpu.memory_space<vmem>>, vector<64x32xf32>,
      }
      %c8_i32_23 = arith.constant 8 : i32
      %c0_i32_24 = arith.constant 0 : i32
      %c4_i32_25 = arith.constant 4 : i32
      %21 = arith.addi %c0_i32_24, %c4_i32_25 : i32
      %c1_i32_26 = arith.constant 1 : i32
      scf.for %arg21 = %c0_i32_24 to %21 step %c1_i32_26  : i32 {
        %c1_i32_28 = arith.constant 1 : i32
        %22 = arith.muli %arg21, %c1_i32_28 : i32
        %c0_i32_29 = arith.constant 0 : i32
        %23 = arith.addi %c0_i32_29, %22 : i32
        %c128_i32 = arith.constant 128 : i32
        %24 = arith.muli %23, %c128_i32 : i32
        %25 = tpu.assume_multiple %24, 128 : i32
        %26 = arith.index_cast %25 : i32 to index
        %c0_30 = arith.constant 0 : index
        %27 = vector.load %arg18[%26, %c0_30] : memref<512x32xf32, #tpu.memory_space<vmem>>, vector<128x32xf32>
        %28 = arith.index_cast %18 : i32 to index
        %c0_31 = arith.constant 0 : index
        %c0_32 = arith.constant 0 : index
        %29 = vector.load %arg9[%28, %c0_31, %c0_32] : memref<5x1x32xf32, #tpu.memory_space<vmem>>, vector<1x1x32xf32>
        %30 = vector.shape_cast %29 : vector<1x1x32xf32> to vector<1x32xf32>
        %31 = arith.index_cast %18 : i32 to index
        %c0_33 = arith.constant 0 : index
        %c0_34 = arith.constant 0 : index
        %32 = vector.load %arg10[%31, %c0_33, %c0_34] : memref<5x1x32xf32, #tpu.memory_space<vmem>>, vector<1x1x32xf32>
        %33 = vector.shape_cast %32 : vector<1x1x32xf32> to vector<1x32xf32>
        %cst_35 = arith.constant dense<0.000000e+00> : vector<128xf32>
        %34 = vector.multi_reduction <add>, %27, %cst_35 [1] : vector<128x32xf32> to vector<128xf32>
        %35 = vector.shape_cast %34 : vector<128xf32> to vector<128x1xf32>
        %cst_36 = arith.constant 3.200000e+01 : f32
        %36 = vector.broadcast %cst_36 : f32 to vector<128x1xf32>
        %37 = arith.divf %35, %36 : vector<128x1xf32>
        %38 = vector.broadcast %37 : vector<128x1xf32> to vector<128x32xf32>
        %39 = arith.subf %27, %38 : vector<128x32xf32>
        %40 = arith.mulf %39, %39 : vector<128x32xf32>
        %cst_37 = arith.constant dense<0.000000e+00> : vector<128xf32>
        %41 = vector.multi_reduction <add>, %40, %cst_37 [1] : vector<128x32xf32> to vector<128xf32>
        %42 = vector.shape_cast %41 : vector<128xf32> to vector<128x1xf32>
        %cst_38 = arith.constant 3.200000e+01 : f32
        %43 = vector.broadcast %cst_38 : f32 to vector<128x1xf32>
        %44 = arith.divf %42, %43 : vector<128x1xf32>
        %cst_39 = arith.constant 9.99999974E-6 : f32
        %45 = vector.broadcast %cst_39 : f32 to vector<128x1xf32>
        %46 = arith.addf %44, %45 : vector<128x1xf32>
        %47 = math.rsqrt %46 : vector<128x1xf32>
        %48 = vector.broadcast %47 : vector<128x1xf32> to vector<128x32xf32>
        %49 = arith.mulf %39, %48 : vector<128x32xf32>
        %50 = vector.broadcast %30 : vector<1x32xf32> to vector<128x32xf32>
        %51 = arith.mulf %49, %50 : vector<128x32xf32>
        %52 = vector.broadcast %33 : vector<1x32xf32> to vector<128x32xf32>
        %53 = arith.addf %51, %52 : vector<128x32xf32>
        %54 = arith.index_cast %18 : i32 to index
        %c0_40 = arith.constant 0 : index
        %c0_41 = arith.constant 0 : index
        %55 = vector.load %arg11[%54, %c0_40, %c0_41] : memref<5x32x128xf32, #tpu.memory_space<vmem>>, vector<1x32x128xf32>
        %56 = vector.shape_cast %55 : vector<1x32x128xf32> to vector<32x128xf32>
        %cst_42 = arith.constant dense<0.000000e+00> : vector<128x128xf32>
        %57 = tpu.matmul %53, %56, %cst_42 {dimension_numbers = #tpu.dot_dimension_numbers<[1], [0], [0], [1], [0, 0, 1, 1], [], []>} : vector<128x32xf32>, vector<32x128xf32>, vector<128x128xf32> -> vector<128x128xf32>
        %58 = arith.index_cast %18 : i32 to index
        %c0_43 = arith.constant 0 : index
        %c0_44 = arith.constant 0 : index
        %59 = vector.load %arg12[%58, %c0_43, %c0_44] : memref<5x1x128xf32, #tpu.memory_space<vmem>>, vector<1x1x128xf32>
        %60 = vector.shape_cast %59 : vector<1x1x128xf32> to vector<1x128xf32>
        %61 = vector.broadcast %60 : vector<1x128xf32> to vector<128x128xf32>
        %62 = arith.addf %57, %61 : vector<128x128xf32>
        %cst_45 = arith.constant 0.000000e+00 : f32
        %63 = vector.broadcast %cst_45 : f32 to vector<128x128xf32>
        %64 = arith.maximumf %62, %63 : vector<128x128xf32>
        %65 = arith.index_cast %18 : i32 to index
        %c0_46 = arith.constant 0 : index
        %c0_47 = arith.constant 0 : index
        %66 = vector.load %arg13[%65, %c0_46, %c0_47] : memref<5x128x32xf32, #tpu.memory_space<vmem>>, vector<1x128x32xf32>
        %67 = vector.shape_cast %66 : vector<1x128x32xf32> to vector<128x32xf32>
        %cst_48 = arith.constant dense<0.000000e+00> : vector<128x32xf32>
        %68 = tpu.matmul %64, %67, %cst_48 {dimension_numbers = #tpu.dot_dimension_numbers<[1], [0], [0], [1], [0, 0, 1, 1], [], []>} : vector<128x128xf32>, vector<128x32xf32>, vector<128x32xf32> -> vector<128x32xf32>
        %69 = arith.index_cast %18 : i32 to index
        %c0_49 = arith.constant 0 : index
        %c0_50 = arith.constant 0 : index
        %70 = vector.load %arg14[%69, %c0_49, %c0_50] : memref<5x1x32xf32, #tpu.memory_space<vmem>>, vector<1x1x32xf32>
        %71 = vector.shape_cast %70 : vector<1x1x32xf32> to vector<1x32xf32>
        %72 = vector.broadcast %71 : vector<1x32xf32> to vector<128x32xf32>
        %73 = arith.addf %68, %72 : vector<128x32xf32>
        %74 = arith.addf %27, %73 : vector<128x32xf32>
        %75 = arith.index_cast %25 : i32 to index
        %c0_51 = arith.constant 0 : index
        %76 = vector.load %arg18[%75, %c0_51] : memref<512x32xf32, #tpu.memory_space<vmem>>, vector<128x32xf32>
        tpu.vector_store %arg18[%75, %c0_51], %74 {strides = array<i32>} : memref<512x32xf32, #tpu.memory_space<vmem>>, vector<128x32xf32>,
      }
      %c4_i32_27 = arith.constant 4 : i32
    }
    %c5_i32_4 = arith.constant 5 : i32
    %c0_5 = arith.constant 0 : index
    %c0_6 = arith.constant 0 : index
    %4 = vector.load %arg18[%c0_5, %c0_6] : memref<512x32xf32, #tpu.memory_space<vmem>>, vector<1x32xf32>
    %cst = arith.constant 0.000000e+00 : f32
    %5 = vector.broadcast %cst : f32 to vector<1x32xf32>
    %6 = arith.cmpf ogt, %4, %5 : vector<1x32xf32>
    %cst_7 = arith.constant 0.00999999977 : f32
    %7 = vector.broadcast %cst_7 : f32 to vector<1x32xf32>
    %8 = arith.mulf %7, %4 : vector<1x32xf32>
    %9 = arith.select %6, %4, %8 : vector<1x32xi1>, vector<1x32xf32>
    %c0_8 = arith.constant 0 : index
    %c0_9 = arith.constant 0 : index
    %10 = vector.load %arg15[%c0_8, %c0_9] : memref<32x768xf32, #tpu.memory_space<vmem>>, vector<32x768xf32>
    %cst_10 = arith.constant dense<0.000000e+00> : vector<1x768xf32>
    %11 = tpu.matmul %9, %10, %cst_10 {dimension_numbers = #tpu.dot_dimension_numbers<[1], [0], [0], [1], [0, 0, 1, 1], [], []>} : vector<1x32xf32>, vector<32x768xf32>, vector<1x768xf32> -> vector<1x768xf32>
    %c0_11 = arith.constant 0 : index
    %c0_12 = arith.constant 0 : index
    %12 = vector.load %arg16[%c0_11, %c0_12] : memref<1x768xf32, #tpu.memory_space<vmem>>, vector<1x768xf32>
    %13 = arith.addf %11, %12 : vector<1x768xf32>
    %c0_13 = arith.constant 0 : index
    %c0_14 = arith.constant 0 : index
    %c0_15 = arith.constant 0 : index
    %14 = vector.load %arg17[%c0_13, %c0_14, %c0_15] : memref<1x1x768xf32, #tpu.memory_space<vmem>>, vector<1x1x768xf32>
    %15 = vector.shape_cast %14 : vector<1x1x768xf32> to vector<1x768xf32>
    %16 = vector.shape_cast %13 : vector<1x768xf32> to vector<1x1x768xf32>
    tpu.vector_store %arg17[%c0_13, %c0_14, %c0_15], %16 {strides = array<i32>} : memref<1x1x768xf32, #tpu.memory_space<vmem>>, vector<1x1x768xf32>,
    return
  }
  func.func @transform_0(%arg0: i32) -> (i32, i32, i32) {
    %c0_i32 = arith.constant 0 : i32
    %c0_i32_0 = arith.constant 0 : i32
    %c0_i32_1 = arith.constant 0 : i32
    return %arg0, %c0_i32, %c0_i32_0 : i32, i32, i32
  }
  func.func @transform_1(%arg0: i32) -> (i32, i32, i32) {
    %c0_i32 = arith.constant 0 : i32
    %c0_i32_0 = arith.constant 0 : i32
    %c0_i32_1 = arith.constant 0 : i32
    return %arg0, %c0_i32, %c0_i32_0 : i32, i32, i32
  }
  func.func @transform_2(%arg0: i32) -> (i32, i32, i32) {
    %c0_i32 = arith.constant 0 : i32
    %c0_i32_0 = arith.constant 0 : i32
    %c0_i32_1 = arith.constant 0 : i32
    %c0_i32_2 = arith.constant 0 : i32
    return %c0_i32, %c0_i32_0, %c0_i32_1 : i32, i32, i32
  }
  func.func @transform_3(%arg0: i32) -> (i32, i32, i32) {
    %c0_i32 = arith.constant 0 : i32
    %c0_i32_0 = arith.constant 0 : i32
    %c0_i32_1 = arith.constant 0 : i32
    %c0_i32_2 = arith.constant 0 : i32
    return %c0_i32, %c0_i32_0, %c0_i32_1 : i32, i32, i32
  }
  func.func @transform_4(%arg0: i32) -> (i32, i32, i32) {
    %c0_i32 = arith.constant 0 : i32
    %c0_i32_0 = arith.constant 0 : i32
    %c0_i32_1 = arith.constant 0 : i32
    %c0_i32_2 = arith.constant 0 : i32
    return %c0_i32, %c0_i32_0, %c0_i32_1 : i32, i32, i32
  }
  func.func @transform_5(%arg0: i32) -> (i32, i32, i32) {
    %c0_i32 = arith.constant 0 : i32
    %c0_i32_0 = arith.constant 0 : i32
    %c0_i32_1 = arith.constant 0 : i32
    %c0_i32_2 = arith.constant 0 : i32
    return %c0_i32, %c0_i32_0, %c0_i32_1 : i32, i32, i32
  }
  func.func @transform_6(%arg0: i32) -> (i32, i32, i32) {
    %c0_i32 = arith.constant 0 : i32
    %c0_i32_0 = arith.constant 0 : i32
    %c0_i32_1 = arith.constant 0 : i32
    %c0_i32_2 = arith.constant 0 : i32
    return %c0_i32, %c0_i32_0, %c0_i32_1 : i32, i32, i32
  }
  func.func @transform_7(%arg0: i32) -> (i32, i32, i32) {
    %c0_i32 = arith.constant 0 : i32
    %c0_i32_0 = arith.constant 0 : i32
    %c0_i32_1 = arith.constant 0 : i32
    %c0_i32_2 = arith.constant 0 : i32
    return %c0_i32, %c0_i32_0, %c0_i32_1 : i32, i32, i32
  }
  func.func @transform_8(%arg0: i32) -> (i32, i32, i32) {
    %c0_i32 = arith.constant 0 : i32
    %c0_i32_0 = arith.constant 0 : i32
    %c0_i32_1 = arith.constant 0 : i32
    %c0_i32_2 = arith.constant 0 : i32
    return %c0_i32, %c0_i32_0, %c0_i32_1 : i32, i32, i32
  }
  func.func @transform_9(%arg0: i32) -> (i32, i32, i32) {
    %c0_i32 = arith.constant 0 : i32
    %c0_i32_0 = arith.constant 0 : i32
    %c0_i32_1 = arith.constant 0 : i32
    %c0_i32_2 = arith.constant 0 : i32
    return %c0_i32, %c0_i32_0, %c0_i32_1 : i32, i32, i32
  }
  func.func @transform_10(%arg0: i32) -> (i32, i32, i32) {
    %c0_i32 = arith.constant 0 : i32
    %c0_i32_0 = arith.constant 0 : i32
    %c0_i32_1 = arith.constant 0 : i32
    %c0_i32_2 = arith.constant 0 : i32
    return %c0_i32, %c0_i32_0, %c0_i32_1 : i32, i32, i32
  }
  func.func @transform_11(%arg0: i32) -> (i32, i32, i32) {
    %c0_i32 = arith.constant 0 : i32
    %c0_i32_0 = arith.constant 0 : i32
    %c0_i32_1 = arith.constant 0 : i32
    %c0_i32_2 = arith.constant 0 : i32
    return %c0_i32, %c0_i32_0, %c0_i32_1 : i32, i32, i32
  }
  func.func @transform_12(%arg0: i32) -> (i32, i32, i32) {
    %c0_i32 = arith.constant 0 : i32
    %c0_i32_0 = arith.constant 0 : i32
    %c0_i32_1 = arith.constant 0 : i32
    %c0_i32_2 = arith.constant 0 : i32
    return %c0_i32, %c0_i32_0, %c0_i32_1 : i32, i32, i32
  }
  func.func @transform_13(%arg0: i32) -> (i32, i32, i32) {
    %c0_i32 = arith.constant 0 : i32
    %c0_i32_0 = arith.constant 0 : i32
    %c0_i32_1 = arith.constant 0 : i32
    %c0_i32_2 = arith.constant 0 : i32
    return %c0_i32, %c0_i32_0, %c0_i32_1 : i32, i32, i32
  }
  func.func @transform_14(%arg0: i32) -> (i32, i32) {
    %c0_i32 = arith.constant 0 : i32
    %c0_i32_0 = arith.constant 0 : i32
    %c0_i32_1 = arith.constant 0 : i32
    return %c0_i32, %c0_i32_0 : i32, i32
  }
  func.func @transform_15(%arg0: i32) -> (i32, i32) {
    %c0_i32 = arith.constant 0 : i32
    %c0_i32_0 = arith.constant 0 : i32
    %c0_i32_1 = arith.constant 0 : i32
    return %c0_i32, %c0_i32_0 : i32, i32
  }
  func.func @transform_16(%arg0: i32) -> (i32, i32, i32) {
    %c0_i32 = arith.constant 0 : i32
    %c0_i32_0 = arith.constant 0 : i32
    %c0_i32_1 = arith.constant 0 : i32
    return %arg0, %c0_i32, %c0_i32_0 : i32, i32, i32
  }
}

</mosaic_0001>

<bundles_post_ra>
// kernel: ic_transformer_forward.1
= control target key start
LH: loop header
LB: loop body
LE: loop exit
PB: predicated region body
PF: predicated region fallthrough
CT: control target
= control target key end

     0   :  { %s10257_s21 = smov 0   ;;  %s15009_s0 = inlined_call_operand.vmem [shape: f32[2,512,32], index: 0, kind: input, shape index: {}]   ;;  %s15010_s1 = inlined_call_operand.vmem [shape: f32[2,1,512], index: 1, kind: input, shape index: {}]   ;;  %s15011_s2 = inlined_call_operand.vmem [shape: f32[5,1,32], index: 2, kind: input, shape index: {}]   ;;  %s15012_s3 = inlined_call_operand.vmem [shape: f32[5,1,32], index: 3, kind: input, shape index: {}]   ;;  %s15013_s4 = inlined_call_operand.vmem [shape: f32[5,32,96], index: 4, kind: input, shape index: {}]   ;;  %s15014_s5 = inlined_call_operand.vmem [shape: f32[5,1,96], index: 5, kind: input, shape index: {}]   ;;  %s15015_s6 = inlined_call_operand.vmem [shape: f32[5,32,32], index: 6, kind: input, shape index: {}]   ;;  %s15016_s7 = inlined_call_operand.vmem [shape: f32[5,1,32], index: 7, kind: input, shape index: {}]   ;;  %s15017_s8 = inlined_call_operand.vmem [shape: f32[5,1,32], index: 8, kind: input, shape index: {}]   ;;  %s15018_s9 = inlined_call_operand.vmem [shape: f32[5,1,32], index: 9, kind: input, shape index: {}]   ;;  %s15019_s10 = inlined_call_operand.vmem [shape: f32[5,32,128], index: 10, kind: input, shape index: {}]   ;;  %s15020_s11 = inlined_call_operand.vmem [shape: f32[5,1,128], index: 11, kind: input, shape index: {}]   ;;  %s15021_s12 = inlined_call_operand.vmem [shape: f32[5,128,32], index: 12, kind: input, shape index: {}]   ;;  %s15022_s13 = inlined_call_operand.vmem [shape: f32[5,1,32], index: 13, kind: input, shape index: {}]   ;;  %s15023_s14 = inlined_call_operand.vmem [shape: f32[32,768], index: 14, kind: input, shape index: {}]   ;;  %s15024_s15 = inlined_call_operand.vmem [shape: f32[1,768], index: 15, kind: input, shape index: {}]   ;;  %s15025_s16 = inlined_call_operand.vmem [shape: f32[2,1,768], index: 16, kind: output, shape index: {}]  }
   0x1   :  { %15168 = sst [smem:[#allocation59_spill]] %s15009_s0 }
   0x2 LB: > { %s7846_s22 = sadd.s32 4294967295, %s10141_s21   ;;  %p7850_p0 = scmp.ge.s32.totalorder %s10141_s21, 1  ;;  %s10141_s21 = sphi %s10257_s21, %s26_s21  }
   0x3   : > { %p471_p1 = scmp.lt.s32.totalorder %s10141_s21, 3 }
   0x5   : > { %p472_p2 = pnand %p7850_p0, %p471_p1 }
   0x7   : > { %475 = sbr.rel (%p472_p2) target bundleno = 5163 (0x142b), region = 84 }
   0xc   : > { %p524_p3 = scmp.lt.s32.totalorder %s7846_s22, 1  ;;  %vm601_vm0 = vcmask 261120   ;;  %s15169_s27 = sld [smem:[#allocation59_spill]] }
   0xe   : > { %s15490_s22 = smov (!%p524_p3, %s7846_s22), 1 }
   0xf   : > { %s8258_s23 = sshll.u32 %s15490_s22, 9  ;;  %s7853_s24 = sshll.u32 %s15490_s22, 2 }
  0x10   : > { %s10273_s0 = scalar_lea.vmem %s15010_s1, %s7853_s24  ;;  %s9447_s17 = smul.u32 6, %s15490_s22 }
  0x11   : > { %s10408_s22 = smov 0  }
  0x12   : > { %s10268_s28 = scalar_lea.vmem %s15169_s27, %s8258_s23  ;;  %s10287_s20 = scalar_lea.vmem %s15025_s16, %s9447_s17 }
  0x13   : > { %v537_v0 = vld [vmem:[%s10268_s28] sm:$0xff]  ;;  %v538_v1 = vld [vmem:[%s10268_s28 + $0x8] sm:$0xff]  ;;  %v539_v2 = vld [vmem:[%s10268_s28 + $0x10] sm:$0xff] }
  0x14   : > { %602 = vst.msk [vmem:[#allocation2] sm:$0xff] %vm601_vm0, %v537_v0  ;;  %603 = vst.msk [vmem:[#allocation2 + $0x8] sm:$0xff] %vm601_vm0, %v538_v1  ;;  %v540_v3 = vld [vmem:[%s10268_s28 + $0x18] sm:$0xff]  ;;  %v541_v4 = vld [vmem:[%s10268_s28 + $0x20] sm:$0xff] }
  0x15   : > { %604 = vst.msk [vmem:[#allocation2 + $0x10] sm:$0xff] %vm601_vm0, %v539_v2  ;;  %v542_v5 = vld [vmem:[%s10268_s28 + $0x28] sm:$0xff]  ;;  %605 = vst.msk [vmem:[#allocation2 + $0x18] sm:$0xff] %vm601_vm0, %v540_v3  ;;  %v543_v6 = vld [vmem:[%s10268_s28 + $0x30] sm:$0xff] }
  0x16   : > { %606 = vst.msk [vmem:[#allocation2 + $0x20] sm:$0xff] %vm601_vm0, %v541_v4  ;;  %607 = vst.msk [vmem:[#allocation2 + $0x28] sm:$0xff] %vm601_vm0, %v542_v5  ;;  %v544_v7 = vld [vmem:[%s10268_s28 + $0x38] sm:$0xff]  ;;  %v545_v8 = vld [vmem:[%s10268_s28 + $0x40] sm:$0xff] }
  0x17   : > { %608 = vst.msk [vmem:[#allocation2 + $0x30] sm:$0xff] %vm601_vm0, %v543_v6  ;;  %609 = vst.msk [vmem:[#allocation2 + $0x38] sm:$0xff] %vm601_vm0, %v544_v7  ;;  %v546_v9 = vld [vmem:[%s10268_s28 + $0x48] sm:$0xff]  ;;  %v547_v10 = vld [vmem:[%s10268_s28 + $0x50] sm:$0xff] }
  0x18   : > { %610 = vst.msk [vmem:[#allocation2 + $0x40] sm:$0xff] %vm601_vm0, %v545_v8  ;;  %v548_v11 = vld [vmem:[%s10268_s28 + $0x58] sm:$0xff]  ;;  %611 = vst.msk [vmem:[#allocation2 + $0x48] sm:$0xff] %vm601_vm0, %v546_v9  ;;  %v549_v12 = vld [vmem:[%s10268_s28 + $0x60] sm:$0xff] }
  0x19   : > { %612 = vst.msk [vmem:[#allocation2 + $0x50] sm:$0xff] %vm601_vm0, %v547_v10  ;;  %613 = vst.msk [vmem:[#allocation2 + $0x58] sm:$0xff] %vm601_vm0, %v548_v11  ;;  %v550_v13 = vld [vmem:[%s10268_s28 + $0x68] sm:$0xff]  ;;  %v551_v14 = vld [vmem:[%s10268_s28 + $0x70] sm:$0xff] }
  0x1a   : > { %614 = vst.msk [vmem:[#allocation2 + $0x60] sm:$0xff] %vm601_vm0, %v549_v12  ;;  %615 = vst.msk [vmem:[#allocation2 + $0x68] sm:$0xff] %vm601_vm0, %v550_v13  ;;  %v552_v15 = vld [vmem:[%s10268_s28 + $0x78] sm:$0xff]  ;;  %v553_v16 = vld [vmem:[%s10268_s28 + $0x80] sm:$0xff] }
  0x1b   : > { %616 = vst.msk [vmem:[#allocation2 + $0x70] sm:$0xff] %vm601_vm0, %v551_v14  ;;  %v554_v17 = vld [vmem:[%s10268_s28 + $0x88] sm:$0xff]  ;;  %617 = vst.msk [vmem:[#allocation2 + $0x78] sm:$0xff] %vm601_vm0, %v552_v15  ;;  %v555_v18 = vld [vmem:[%s10268_s28 + $0x90] sm:$0xff] }
  0x1c   : > { %618 = vst.msk [vmem:[#allocation2 + $0x80] sm:$0xff] %vm601_vm0, %v553_v16  ;;  %619 = vst.msk [vmem:[#allocation2 + $0x88] sm:$0xff] %vm601_vm0, %v554_v17  ;;  %v556_v19 = vld [vmem:[%s10268_s28 + $0x98] sm:$0xff]  ;;  %v557_v20 = vld [vmem:[%s10268_s28 + $0xa0] sm:$0xff] }
  0x1d   : > { %620 = vst.msk [vmem:[#allocation2 + $0x90] sm:$0xff] %vm601_vm0, %v555_v18  ;;  %621 = vst.msk [vmem:[#allocation2 + $0x98] sm:$0xff] %vm601_vm0, %v556_v19  ;;  %v558_v21 = vld [vmem:[%s10268_s28 + $0xa8] sm:$0xff]  ;;  %v559_v22 = vld [vmem:[%s10268_s28 + $0xb0] sm:$0xff] }
  0x1e   : > { %622 = vst.msk [vmem:[#allocation2 + $0xa0] sm:$0xff] %vm601_vm0, %v557_v20  ;;  %v560_v23 = vld [vmem:[%s10268_s28 + $0xb8] sm:$0xff]  ;;  %623 = vst.msk [vmem:[#allocation2 + $0xa8] sm:$0xff] %vm601_vm0, %v558_v21  ;;  %v561_v24 = vld [vmem:[%s10268_s28 + $0xc0] sm:$0xff] }
  0x1f   : > { %624 = vst.msk [vmem:[#allocation2 + $0xb0] sm:$0xff] %vm601_vm0, %v559_v22  ;;  %625 = vst.msk [vmem:[#allocation2 + $0xb8] sm:$0xff] %vm601_vm0, %v560_v23  ;;  %v562_v25 = vld [vmem:[%s10268_s28 + $0xc8] sm:$0xff]  ;;  %v563_v26 = vld [vmem:[%s10268_s28 + $0xd0] sm:$0xff] }
  0x20   : > { %626 = vst.msk [vmem:[#allocation2 + $0xc0] sm:$0xff] %vm601_vm0, %v561_v24  ;;  %627 = vst.msk [vmem:[#allocation2 + $0xc8] sm:$0xff] %vm601_vm0, %v562_v25  ;;  %v564_v27 = vld [vmem:[%s10268_s28 + $0xd8] sm:$0xff]  ;;  %v565_v28 = vld [vmem:[%s10268_s28 + $0xe0] sm:$0xff] }
  0x21   : > { %628 = vst.msk [vmem:[#allocation2 + $0xd0] sm:$0xff] %vm601_vm0, %v563_v26  ;;  %v566_v29 = vld [vmem:[%s10268_s28 + $0xe8] sm:$0xff]  ;;  %629 = vst.msk [vmem:[#allocation2 + $0xd8] sm:$0xff] %vm601_vm0, %v564_v27  ;;  %v567_v30 = vld [vmem:[%s10268_s28 + $0xf0] sm:$0xff] }
  0x22   : > { %630 = vst.msk [vmem:[#allocation2 + $0xe0] sm:$0xff] %vm601_vm0, %v565_v28  ;;  %631 = vst.msk [vmem:[#allocation2 + $0xe8] sm:$0xff] %vm601_vm0, %v566_v29  ;;  %v568_v31 = vld [vmem:[%s10268_s28 + $0xf8] sm:$0xff]  ;;  %v569_v32 = vld [vmem:[%s10268_s28 + $0x100] sm:$0xff] }
  0x23   : > { %632 = vst.msk [vmem:[#allocation2 + $0xf0] sm:$0xff] %vm601_vm0, %v567_v30  ;;  %633 = vst.msk [vmem:[#allocation2 + $0xf8] sm:$0xff] %vm601_vm0, %v568_v31  ;;  %v570_v33 = vld [vmem:[%s10268_s28 + $0x108] sm:$0xff]  ;;  %v571_v34 = vld [vmem:[%s10268_s28 + $0x110] sm:$0xff] }
  0x24   : > { %634 = vst.msk [vmem:[#allocation2 + $0x100] sm:$0xff] %vm601_vm0, %v569_v32  ;;  %v572_v35 = vld [vmem:[%s10268_s28 + $0x118] sm:$0xff]  ;;  %635 = vst.msk [vmem:[#allocation2 + $0x108] sm:$0xff] %vm601_vm0, %v570_v33  ;;  %v573_v36 = vld [vmem:[%s10268_s28 + $0x120] sm:$0xff] }
  0x25   : > { %636 = vst.msk [vmem:[#allocation2 + $0x110] sm:$0xff] %vm601_vm0, %v571_v34  ;;  %637 = vst.msk [vmem:[#allocation2 + $0x118] sm:$0xff] %vm601_vm0, %v572_v35  ;;  %v574_v37 = vld [vmem:[%s10268_s28 + $0x128] sm:$0xff]  ;;  %v575_v38 = vld [vmem:[%s10268_s28 + $0x130] sm:$0xff] }
  0x26   : > { %638 = vst.msk [vmem:[#allocation2 + $0x120] sm:$0xff] %vm601_vm0, %v573_v36  ;;  %639 = vst.msk [vmem:[#allocation2 + $0x128] sm:$0xff] %vm601_vm0, %v574_v37  ;;  %v576_v39 = vld [vmem:[%s10268_s28 + $0x138] sm:$0xff]  ;;  %v577_v40 = vld [vmem:[%s10268_s28 + $0x140] sm:$0xff] }
  0x27   : > { %640 = vst.msk [vmem:[#allocation2 + $0x130] sm:$0xff] %vm601_vm0, %v575_v38  ;;  %v578_v41 = vld [vmem:[%s10268_s28 + $0x148] sm:$0xff]  ;;  %641 = vst.msk [vmem:[#allocation2 + $0x138] sm:$0xff] %vm601_vm0, %v576_v39  ;;  %v579_v42 = vld [vmem:[%s10268_s28 + $0x150] sm:$0xff] }
  0x28   : > { %642 = vst.msk [vmem:[#allocation2 + $0x140] sm:$0xff] %vm601_vm0, %v577_v40  ;;  %643 = vst.msk [vmem:[#allocation2 + $0x148] sm:$0xff] %vm601_vm0, %v578_v41  ;;  %v580_v43 = vld [vmem:[%s10268_s28 + $0x158] sm:$0xff]  ;;  %v581_v44 = vld [vmem:[%s10268_s28 + $0x160] sm:$0xff] }
  0x29   : > { %644 = vst.msk [vmem:[#allocation2 + $0x150] sm:$0xff] %vm601_vm0, %v579_v42  ;;  %645 = vst.msk [vmem:[#allocation2 + $0x158] sm:$0xff] %vm601_vm0, %v580_v43  ;;  %v582_v45 = vld [vmem:[%s10268_s28 + $0x168] sm:$0xff]  ;;  %v583_v46 = vld [vmem:[%s10268_s28 + $0x170] sm:$0xff] }
  0x2a   : > { %646 = vst.msk [vmem:[#allocation2 + $0x160] sm:$0xff] %vm601_vm0, %v581_v44  ;;  %v584_v47 = vld [vmem:[%s10268_s28 + $0x178] sm:$0xff]  ;;  %647 = vst.msk [vmem:[#allocation2 + $0x168] sm:$0xff] %vm601_vm0, %v582_v45  ;;  %v585_v48 = vld [vmem:[%s10268_s28 + $0x180] sm:$0xff] }
  0x2b   : > { %648 = vst.msk [vmem:[#allocation2 + $0x170] sm:$0xff] %vm601_vm0, %v583_v46  ;;  %649 = vst.msk [vmem:[#allocation2 + $0x178] sm:$0xff] %vm601_vm0, %v584_v47  ;;  %v586_v49 = vld [vmem:[%s10268_s28 + $0x188] sm:$0xff]  ;;  %v587_v50 = vld [vmem:[%s10268_s28 + $0x190] sm:$0xff] }
  0x2c   : > { %650 = vst.msk [vmem:[#allocation2 + $0x180] sm:$0xff] %vm601_vm0, %v585_v48  ;;  %651 = vst.msk [vmem:[#allocation2 + $0x188] sm:$0xff] %vm601_vm0, %v586_v49  ;;  %v588_v51 = vld [vmem:[%s10268_s28 + $0x198] sm:$0xff]  ;;  %v589_v52 = vld [vmem:[%s10268_s28 + $0x1a0] sm:$0xff] }
  0x2d   : > { %652 = vst.msk [vmem:[#allocation2 + $0x190] sm:$0xff] %vm601_vm0, %v587_v50  ;;  %v590_v53 = vld [vmem:[%s10268_s28 + $0x1a8] sm:$0xff]  ;;  %653 = vst.msk [vmem:[#allocation2 + $0x198] sm:$0xff] %vm601_vm0, %v588_v51  ;;  %v591_v54 = vld [vmem:[%s10268_s28 + $0x1b0] sm:$0xff] }
  0x2e   : > { %654 = vst.msk [vmem:[#allocation2 + $0x1a0] sm:$0xff] %vm601_vm0, %v589_v52  ;;  %655 = vst.msk [vmem:[#allocation2 + $0x1a8] sm:$0xff] %vm601_vm0, %v590_v53  ;;  %v592_v55 = vld [vmem:[%s10268_s28 + $0x1b8] sm:$0xff]  ;;  %v593_v56 = vld [vmem:[%s10268_s28 + $0x1c0] sm:$0xff] }
  0x2f   : > { %656 = vst.msk [vmem:[#allocation2 + $0x1b0] sm:$0xff] %vm601_vm0, %v591_v54  ;;  %657 = vst.msk [vmem:[#allocation2 + $0x1b8] sm:$0xff] %vm601_vm0, %v592_v55  ;;  %v594_v57 = vld [vmem:[%s10268_s28 + $0x1c8] sm:$0xff]  ;;  %v595_v58 = vld [vmem:[%s10268_s28 + $0x1d0] sm:$0xff] }
  0x30   : > { %658 = vst.msk [vmem:[#allocation2 + $0x1c0] sm:$0xff] %vm601_vm0, %v593_v56  ;;  %v596_v59 = vld [vmem:[%s10268_s28 + $0x1d8] sm:$0xff]  ;;  %659 = vst.msk [vmem:[#allocation2 + $0x1c8] sm:$0xff] %vm601_vm0, %v594_v57  ;;  %v597_v60 = vld [vmem:[%s10268_s28 + $0x1e0] sm:$0xff] }
  0x31   : > { %660 = vst.msk [vmem:[#allocation2 + $0x1d0] sm:$0xff] %vm601_vm0, %v595_v58  ;;  %661 = vst.msk [vmem:[#allocation2 + $0x1d8] sm:$0xff] %vm601_vm0, %v596_v59  ;;  %v598_v61 = vld [vmem:[%s10268_s28 + $0x1e8] sm:$0xff]  ;;  %v599_v62 = vld [vmem:[%s10268_s28 + $0x1f0] sm:$0xff] }
  0x32   : > { %662 = vst.msk [vmem:[#allocation2 + $0x1e0] sm:$0xff] %vm601_vm0, %v597_v60  ;;  %663 = vst.msk [vmem:[#allocation2 + $0x1e8] sm:$0xff] %vm601_vm0, %v598_v61  ;;  %v600_v63 = vld [vmem:[%s10268_s28 + $0x1f8] sm:$0xff] }
  0x33   : > { %664 = vst.msk [vmem:[#allocation2 + $0x1f0] sm:$0xff] %vm601_vm0, %v599_v62  ;;  %665 = vst.msk [vmem:[#allocation2 + $0x1f8] sm:$0xff] %vm601_vm0, %v600_v63 }
  0x34 LB: >> { %s10413_s23 = smov 0   ;;  %s10145_s22 = sphi %s10408_s22, %s671_s22  }
  0x35 LB: >>> { %s7854_s24 = sshll.u32 %s10149_s23, 7  ;;  %s10575_s26 = sshll.u32 %s10145_s22, 5  ;;  %vm1161_vm1 = vcmask 785408   ;;  %s10149_s23 = sphi %s10413_s23, %s677_s23  }
  0x36   : >>> { %s10421_s25 = scalar_lea.vmem [#allocation2], %s7854_s24  ;;  %s954_s29 = scalar_lea.vmem %s15013_s4, %s10575_s26 }
  0x37   : >>> { %s696_s18 = scalar_lea.vmem %s15011_s2, %s10145_s22  ;;  %s698_s27 = scalar_lea.vmem %s15012_s3, %s10145_s22 }
  0x38   : >>> { %s959_s30 = scalar_lea.vmem %s15014_s5, %s10145_s22  ;;  %s10664_s17 = scalar_lea.vmem [#allocation3], %s7854_s24 }
  0x39   : >>> { %s677_s23 = sadd.s32 1, %s10149_s23  }
  0x3a   : >>> { %v680_v0 = vld [vmem:[%s10421_s25] sm:$0xff]  ;;  %v681_v1 = vld [vmem:[%s10421_s25 + $0x8] sm:$0xff]  ;;  %v682_v8 = vld [vmem:[%s10421_s25 + $0x10] sm:$0xff]  ;;  %p674_p4 = scmp.ge.s32.totalorder %s677_s23, 4  }
  0x3b   : >>> { %v688_v2 = vld [vmem:[%s10421_s25 + $0x40] sm:$0xff]  ;;  %v700_v3 = vsel %vm601_vm0, %v680_v0, 0.0  ;;  %v703_v4 = vsel %vm601_vm0, %v681_v1, 0.0  ;;  %v689_v5 = vld [vmem:[%s10421_s25 + $0x48] sm:$0xff]  ;;  %v690_v9 = vld [vmem:[%s10421_s25 + $0x50] sm:$0xff]  ;;  %v706_v10 = vsel %vm601_vm0, %v682_v8, 0.0 }
  0x3c   : >>> { %701 = vadd.xlane.f32.xlu0 %v700_v3  ;;  %704 = vadd.xlane.f32.xlu1 %v703_v4  ;;  %v724_v6 = vsel %vm601_vm0, %v688_v2, 0.0  ;;  %v727_v7 = vsel %vm601_vm0, %v689_v5, 0.0  ;;  %v730_v11 = vsel %vm601_vm0, %v690_v9, 0.0  ;;  %v10436_v12 = vld [vmem:[%s10421_s25 + $0x18] sm:$0xff]  ;;  %v10446_v16 = vld [vmem:[%s10421_s25 + $0x20] sm:$0xff]  ;;  %v10456_v20 = vld [vmem:[%s10421_s25 + $0x28] sm:$0xff] }
  0x3d   : >>> { %v10439_v13 = vld [vmem:[%s10421_s25 + $0x58] sm:$0xff]  ;;  %v709_v14 = vsel %vm601_vm0, %v10436_v12, 0.0  ;;  %v10449_v17 = vld [vmem:[%s10421_s25 + $0x60] sm:$0xff]  ;;  %v712_v18 = vsel %vm601_vm0, %v10446_v16, 0.0  ;;  %v10459_v21 = vld [vmem:[%s10421_s25 + $0x68] sm:$0xff]  ;;  %v715_v22 = vsel %vm601_vm0, %v10456_v20, 0.0 }
  0x3e   : >>> { %v733_v15 = vsel %vm601_vm0, %v10439_v13, 0.0  ;;  %v736_v19 = vsel %vm601_vm0, %v10449_v17, 0.0  ;;  %v739_v23 = vsel %vm601_vm0, %v10459_v21, 0.0  ;;  %v10466_v24 = vld [vmem:[%s10421_s25 + $0x30] sm:$0xff]  ;;  %v10476_v28 = vld [vmem:[%s10421_s25 + $0x38] sm:$0xff]  ;;  %s10701_s24 = smov (%p674_p4), 0  }
  0x3f   : >>> { %v10469_v25 = vld [vmem:[%s10421_s25 + $0x70] sm:$0xff]  ;;  %v718_v26 = vsel %vm601_vm0, %v10466_v24, 0.0  ;;  %v10479_v29 = vld [vmem:[%s10421_s25 + $0x78] sm:$0xff]  ;;  %v721_v30 = vsel %vm601_vm0, %v10476_v28, 0.0 }
  0x40   : >>> { %725 = vadd.xlane.f32.xlu0 %v724_v6  ;;  %728 = vadd.xlane.f32.xlu1 %v727_v7  ;;  %v742_v27 = vsel %vm601_vm0, %v10469_v25, 0.0  ;;  %v745_v31 = vsel %vm601_vm0, %v10479_v29, 0.0 }
  0x44   : >>> { %707 = vadd.xlane.f32.xlu0 %v706_v10  ;;  %731 = vadd.xlane.f32.xlu1 %v730_v11 }
  0x48   : >>> { %710 = vadd.xlane.f32.xlu0 %v709_v14  ;;  %734 = vadd.xlane.f32.xlu1 %v733_v15 }
  0x4c   : >>> { %713 = vadd.xlane.f32.xlu0 %v712_v18  ;;  %737 = vadd.xlane.f32.xlu1 %v736_v19 }
  0x50   : >>> { %716 = vadd.xlane.f32.xlu0 %v715_v22  ;;  %740 = vadd.xlane.f32.xlu1 %v739_v23 }
  0x54   : >>> { %719 = vadd.xlane.f32.xlu0 %v718_v26  ;;  %743 = vadd.xlane.f32.xlu1 %v742_v27 }
  0x58   : >>> { %722 = vadd.xlane.f32.xlu0 %v721_v30  ;;  %746 = vadd.xlane.f32.xlu1 %v745_v31 }
  0xc5   : >>> { %v702_v32 = vpop.xlane.xlu0 %701  ;;  %v705_v33 = vpop.xlane.xlu1 %704 }
  0xc6   : >>> { %v749_v34 = vmul.f32 0.03125, %v702_v32  ;;  %v750_v35 = vmul.f32 0.03125, %v705_v33 }
  0xc8   : >>> { %v10485_v36 = vsub.f32 %v680_v0, %v749_v34  ;;  %v10487_v37 = vsub.f32 %v681_v1, %v750_v35 }
  0xc9   : >>> { %v726_v38 = vpop.xlane.xlu0 %725  ;;  %v729_v39 = vpop.xlane.xlu1 %728 }
  0xca   : >>> { %v757_v40 = vmul.f32 0.03125, %v726_v38  ;;  %v758_v41 = vmul.f32 0.03125, %v729_v39  ;;  %v781_v42 = vmul.f32 %v10485_v36, %v10485_v36  ;;  %v782_v43 = vmul.f32 %v10487_v37, %v10487_v37 }
  0xcc   : >>> { %v10493_v44 = vsub.f32 %v688_v2, %v757_v40  ;;  %v10495_v45 = vsub.f32 %v689_v5, %v758_v41  ;;  %v797_v46 = vsel %vm601_vm0, %v781_v42, 0.0  ;;  %v800_v49 = vsel %vm601_vm0, %v782_v43, 0.0 }
  0xcd   : >>> { %798 = vadd.xlane.f32.xlu0 %v797_v46  ;;  %v708_v47 = vpop.xlane.xlu0 %707  ;;  %v732_v48 = vpop.xlane.xlu1 %731 }
  0xce   : >>> { %v751_v50 = vmul.f32 0.03125, %v708_v47  ;;  %v759_v51 = vmul.f32 0.03125, %v732_v48  ;;  %v789_v52 = vmul.f32 %v10493_v44, %v10493_v44  ;;  %v790_v53 = vmul.f32 %v10495_v45, %v10495_v45 }
  0xd0   : >>> { %v10503_v54 = vsub.f32 %v682_v8, %v751_v50  ;;  %v10505_v55 = vsub.f32 %v690_v9, %v759_v51  ;;  %v821_v56 = vsel %vm601_vm0, %v789_v52, 0.0  ;;  %v824_v59 = vsel %vm601_vm0, %v790_v53, 0.0  ;;  %v957_v53 = vld [vmem:[%s954_s29 + $0x10] sm:$0xff] }
  0xd1   : >>> { %801 = vadd.xlane.f32.xlu0 %v800_v49  ;;  %822 = vadd.xlane.f32.xlu1 %v821_v56  ;;  %v711_v57 = vpop.xlane.xlu0 %710  ;;  %v735_v58 = vpop.xlane.xlu1 %734  ;;  %v956_v56 = vld [vmem:[%s954_s29 + $0x8] sm:$0xff] }
  0xd2   : >>> { %v752_v60 = vmul.f32 0.03125, %v711_v57  ;;  %v760_v61 = vmul.f32 0.03125, %v735_v58  ;;  %v783_v62 = vmul.f32 %v10503_v54, %v10503_v54  ;;  %v791_v63 = vmul.f32 %v10505_v55, %v10505_v55  ;;  %v955_v57 = vld [vmem:[%s954_s29] sm:$0xff] }
  0xd4   : >>> { %v10514_v0 = vsub.f32 %v10436_v12, %v752_v60  ;;  %v10517_v1 = vsub.f32 %v10439_v13, %v760_v61  ;;  %v803_v2 = vsel %vm601_vm0, %v783_v62, 0.0  ;;  %v827_v5 = vsel %vm601_vm0, %v791_v63, 0.0 }
  0xd5   : >>> { %825 = vadd.xlane.f32.xlu1 %v824_v59  ;;  %804 = vadd.xlane.f32.xlu0 %v803_v2  ;;  %v714_v3 = vpop.xlane.xlu0 %713  ;;  %v738_v4 = vpop.xlane.xlu1 %737 }
  0xd6   : >>> { %v753_v6 = vmul.f32 0.03125, %v714_v3  ;;  %v761_v7 = vmul.f32 0.03125, %v738_v4  ;;  %v784_v8 = vmul.f32 %v10514_v0, %v10514_v0  ;;  %v792_v9 = vmul.f32 %v10517_v1, %v10517_v1 }
  0xd8   : >>> { %v10526_v10 = vsub.f32 %v10446_v16, %v753_v6  ;;  %v10529_v11 = vsub.f32 %v10449_v17, %v761_v7  ;;  %v806_v12 = vsel %vm601_vm0, %v784_v8, 0.0  ;;  %v830_v15 = vsel %vm601_vm0, %v792_v9, 0.0 }
  0xd9   : >>> { %828 = vadd.xlane.f32.xlu1 %v827_v5  ;;  %807 = vadd.xlane.f32.xlu0 %v806_v12  ;;  %v717_v13 = vpop.xlane.xlu0 %716  ;;  %v741_v14 = vpop.xlane.xlu1 %740 }
  0xda   : >>> { %v754_v18 = vmul.f32 0.03125, %v717_v13  ;;  %v762_v19 = vmul.f32 0.03125, %v741_v14  ;;  %v785_v22 = vmul.f32 %v10526_v10, %v10526_v10  ;;  %v793_v16 = vmul.f32 %v10529_v11, %v10529_v11 }
  0xdc   : >>> { %v10538_v23 = vsub.f32 %v10456_v20, %v754_v18  ;;  %v10541_v17 = vsub.f32 %v10459_v21, %v762_v19  ;;  %v809_v26 = vsel %vm601_vm0, %v785_v22, 0.0  ;;  %v833_v31 = vsel %vm601_vm0, %v793_v16, 0.0 }
  0xdd   : >>> { %831 = vadd.xlane.f32.xlu1 %v830_v15  ;;  %810 = vadd.xlane.f32.xlu0 %v809_v26  ;;  %v720_v27 = vpop.xlane.xlu0 %719  ;;  %v744_v30 = vpop.xlane.xlu1 %743 }
  0xde   : >>> { %v755_v32 = vmul.f32 0.03125, %v720_v27  ;;  %v763_v33 = vmul.f32 0.03125, %v744_v30  ;;  %v786_v34 = vmul.f32 %v10538_v23, %v10538_v23  ;;  %v794_v20 = vmul.f32 %v10541_v17, %v10541_v17 }
  0xe0   : >>> { %v10550_v35 = vsub.f32 %v10466_v24, %v755_v32  ;;  %v10553_v21 = vsub.f32 %v10469_v25, %v763_v33  ;;  %v812_v38 = vsel %vm601_vm0, %v786_v34, 0.0  ;;  %v836_v41 = vsel %vm601_vm0, %v794_v20, 0.0  ;;  %v10590_v32 = vld [vmem:[%s696_s18] ss:$0 sm:$0xff] }
  0xe1   : >>> { %834 = vadd.xlane.f32.xlu1 %v833_v31  ;;  %813 = vadd.xlane.f32.xlu0 %v812_v38  ;;  %v723_v39 = vpop.xlane.xlu0 %722  ;;  %v747_v40 = vpop.xlane.xlu1 %746 }
  0xe2   : >>> { %v756_v42 = vmul.f32 0.03125, %v723_v39  ;;  %v764_v43 = vmul.f32 0.03125, %v747_v40  ;;  %v787_v46 = vmul.f32 %v10550_v35, %v10550_v35  ;;  %v795_v24 = vmul.f32 %v10553_v21, %v10553_v21  ;;  %v10593_v40 = vld [vmem:[%s698_s27] ss:$0 sm:$0xff] }
  0xe4   : >>> { %v10562_v25 = vsub.f32 %v10476_v28, %v756_v42  ;;  %v10565_v47 = vsub.f32 %v10479_v29, %v764_v43  ;;  %v815_v48 = vsel %vm601_vm0, %v787_v46, 0.0  ;;  %v839_v49 = vsel %vm601_vm0, %v795_v24, 0.0  ;;  %v958_v29 = vld [vmem:[%s954_s29 + $0x18] sm:$0xff] }
  0xe5   : >>> { %837 = vadd.xlane.f32.xlu1 %v836_v41  ;;  %816 = vadd.xlane.f32.xlu0 %v815_v48 }
  0xe6   : >>> { %v788_v50 = vmul.f32 %v10562_v25, %v10562_v25  ;;  %v796_v51 = vmul.f32 %v10565_v47, %v10565_v47  ;;  %9199 = vmatprep.subr.mxu0 %v958_v29  ;;  %9375 = vmatprep.subr.mxu1 %v958_v29 }
  0xe7   : >>> { %9200 = vmatpush3.msra.mxu0 %v958_v29  ;;  %9379 = vmatpush3.msra.mxu1 %v958_v29 }
  0xe8   : >>> { %v818_v52 = vsel %vm601_vm0, %v788_v50, 0.0  ;;  %v842_v28 = vsel %vm601_vm0, %v796_v51, 0.0  ;;  %9201 = vmatprep.subr.mxu0 %v957_v53  ;;  %9376 = vmatprep.subr.mxu1 %v957_v53 }
  0xe9   : >>> { %840 = vadd.xlane.f32.xlu1 %v839_v49  ;;  %819 = vadd.xlane.f32.xlu0 %v818_v52 }
  0xea   : >>> { %9202 = vmatpush3.msra.mxu0 %v957_v53  ;;  %9380 = vmatpush3.msra.mxu1 %v957_v53 }
  0xeb   : >>> { %9203 = vmatprep.subr.mxu0 %v956_v56  ;;  %9377 = vmatprep.subr.mxu1 %v956_v56 }
  0xec   : >>> { %9204 = vmatpush3.msra.mxu0 %v956_v56  ;;  %9381 = vmatpush3.msra.mxu1 %v956_v56 }
  0xed   : >>> { %843 = vadd.xlane.f32.xlu1 %v842_v28  ;;  %9205 = vmatprep.subr.mxu0 %v955_v57 }
  0xee   : >>> { %9206 = vmatpush3.msra.mxu0 %v955_v57  ;;  %9378 = vmatprep.subr.mxu1 %v955_v57 }
  0xef   : >>> { %9382 = vmatpush3.msra.mxu1 %v955_v57 }
 0x156   : >>> { %v799_v58 = vpop.xlane.xlu0 %798 }
 0x157   : >>> { %v845_v59 = vmul.f32 0.03125, %v799_v58 }
 0x159   : >>> { %v861_v60 = vadd.f32 1e-05, %v845_v59 }
 0x15a   : >>> { %v823_v61 = vpop.xlane.xlu1 %822  ;;  %v802_v62 = vpop.xlane.xlu0 %801 }
 0x15b   : >>> { %9501 = vrsqrt.f32 %v861_v60  ;;  %v853_v63 = vmul.f32 0.03125, %v823_v61  ;;  %v846_v2 = vmul.f32 0.03125, %v802_v62 }
 0x15d   : >>> { %v869_v3 = vadd.f32 1e-05, %v853_v63  ;;  %v862_v4 = vadd.f32 1e-05, %v846_v2 }
 0x15e   : >>> { %v826_v5 = vpop.xlane.xlu1 %825  ;;  %v805_v6 = vpop.xlane.xlu0 %804 }
 0x15f   : >>> { %9503 = vrsqrt.f32 %v869_v3  ;;  %v854_v7 = vmul.f32 0.03125, %v826_v5  ;;  %v847_v8 = vmul.f32 0.03125, %v805_v6 }
 0x160   : >>> { %9505 = vrsqrt.f32 %v862_v4 }
 0x161   : >>> { %v870_v9 = vadd.f32 1e-05, %v854_v7  ;;  %v863_v12 = vadd.f32 1e-05, %v847_v8 }
 0x162   : >>> { %v829_v13 = vpop.xlane.xlu1 %828  ;;  %v808_v14 = vpop.xlane.xlu0 %807 }
 0x163   : >>> { %9507 = vrsqrt.f32 %v870_v9  ;;  %v855_v15 = vmul.f32 0.03125, %v829_v13  ;;  %v848_v18 = vmul.f32 0.03125, %v808_v14 }
 0x164   : >>> { %9509 = vrsqrt.f32 %v863_v12 }
 0x165   : >>> { %v871_v19 = vadd.f32 1e-05, %v855_v15  ;;  %v864_v22 = vadd.f32 1e-05, %v848_v18 }
 0x166   : >>> { %v832_v16 = vpop.xlane.xlu1 %831  ;;  %v811_v26 = vpop.xlane.xlu0 %810 }
 0x167   : >>> { %9511 = vrsqrt.f32 %v871_v19  ;;  %v856_v27 = vmul.f32 0.03125, %v832_v16  ;;  %v849_v30 = vmul.f32 0.03125, %v811_v26 }
 0x168   : >>> { %v9502_v31 = vpop.eup %9501  ;;  %9513 = vrsqrt.f32 %v864_v22 }
 0x169   : >>> { %v872_v33 = vadd.f32 1e-05, %v856_v27  ;;  %v865_v34 = vadd.f32 1e-05, %v849_v30  ;;  %v893_v20 = vmul.f32 %v9502_v31, %v10485_v36 }
 0x16a   : >>> { %v835_v38 = vpop.xlane.xlu1 %834  ;;  %v814_v39 = vpop.xlane.xlu0 %813 }
 0x16b   : >>> { %9515 = vrsqrt.f32 %v872_v33  ;;  %v857_v41 = vmul.f32 0.03125, %v835_v38  ;;  %v850_v42 = vmul.f32 0.03125, %v814_v39  ;;  %v915_v43 = vmul.f32 %v10590_v32, %v893_v20 }
 0x16c   : >>> { %v9504_v46 = vpop.eup %9503  ;;  %9517 = vrsqrt.f32 %v865_v34 }
 0x16d   : >>> { %v9506_v24 = vpop.eup %9505  ;;  %v873_v48 = vadd.f32 1e-05, %v857_v41  ;;  %v866_v49 = vadd.f32 1e-05, %v850_v42  ;;  %v937_v50 = vadd.f32 %v10593_v40, %v915_v43  ;;  %v901_v51 = vmul.f32 %v9504_v46, %v10493_v44 }
 0x16e   : >>> { %v838_v52 = vpop.xlane.xlu1 %837  ;;  %v817_v36 = vpop.xlane.xlu0 %816  ;;  %v894_v28 = vmul.f32 %v9506_v24, %v10487_v37 }
 0x16f   : >>> { %9519 = vrsqrt.f32 %v873_v48  ;;  %v858_v29 = vmul.f32 0.03125, %v838_v52  ;;  %v851_v53 = vmul.f32 0.03125, %v817_v36  ;;  %9207 = vmatprep.mubr.msk.f32.mxu0 %vm601_vm0, %v937_v50  ;;  %v923_v56 = vmul.f32 %v10590_v32, %v901_v51 }
 0x170   : >>> { %v9508_v57 = vpop.eup %9507  ;;  %9521 = vrsqrt.f32 %v866_v49  ;;  %v916_v58 = vmul.f32 %v10590_v32, %v894_v28 }
 0x171   : >>> { %v9510_v59 = vpop.eup %9509  ;;  %v874_v60 = vadd.f32 1e-05, %v858_v29  ;;  %v867_v61 = vadd.f32 1e-05, %v851_v53  ;;  %v945_v44 = vadd.f32 %v10593_v40, %v923_v56  ;;  %v902_v62 = vmul.f32 %v9508_v57, %v10495_v45 }
 0x172   : >>> { %v841_v63 = vpop.xlane.xlu1 %840  ;;  %v820_v37 = vpop.xlane.xlu0 %819  ;;  %v938_v2 = vadd.f32 %v10593_v40, %v916_v58  ;;  %v895_v3 = vmul.f32 %v9510_v59, %v10503_v54 }
 0x173   : >>> { %9523 = vrsqrt.f32 %v874_v60  ;;  %v859_v4 = vmul.f32 0.03125, %v841_v63  ;;  %v852_v5 = vmul.f32 0.03125, %v820_v37  ;;  %9219 = vmatprep.mubr.msk.f32.mxu1 %vm601_vm0, %v945_v44  ;;  %v924_v6 = vmul.f32 %v10590_v32, %v902_v62  ;;  %v7858_v44 = vld [vmem:[%s959_s30] ss:$0 sm:$0xff] }
 0x174   : >>> { %v9512_v7 = vpop.eup %9511  ;;  %9525 = vrsqrt.f32 %v867_v61  ;;  %9208 = vmatmul.mubr.msk.f32.vlgmr.msra.gmra.mxu0 %vm601_vm0, %v938_v2  ;;  %v917_v8 = vmul.f32 %v10590_v32, %v895_v3 }
 0x175   : >>> { %v9514_v45 = vpop.eup %9513  ;;  %v875_v9 = vadd.f32 1e-05, %v859_v4  ;;  %v868_v12 = vadd.f32 1e-05, %v852_v5  ;;  %v946_v13 = vadd.f32 %v10593_v40, %v924_v6  ;;  %v903_v54 = vmul.f32 %v9512_v7, %v10505_v55 }
 0x176   : >>> { %v844_v14 = vpop.xlane.xlu1 %843  ;;  %v939_v15 = vadd.f32 %v10593_v40, %v917_v8  ;;  %v896_v18 = vmul.f32 %v9514_v45, %v10514_v0 }
 0x177   : >>> { %9527 = vrsqrt.f32 %v875_v9  ;;  %v860_v19 = vmul.f32 0.03125, %v844_v14  ;;  %9220 = vmatmul.mubr.msk.f32.vlgmr.msra.gmra.mxu1 %vm601_vm0, %v946_v13  ;;  %v925_v22 = vmul.f32 %v10590_v32, %v903_v54 }
 0x178   : >>> { %v9516_v16 = vpop.eup %9515  ;;  %9529 = vrsqrt.f32 %v868_v12  ;;  %9210 = vmatprep.mubr.msk.f32.mxu0 %vm601_vm0, %v939_v15  ;;  %v918_v26 = vmul.f32 %v10590_v32, %v896_v18 }
 0x179   : >>> { %v9518_v27 = vpop.eup %9517  ;;  %v876_v30 = vadd.f32 1e-05, %v860_v19  ;;  %v947_v55 = vadd.f32 %v10593_v40, %v925_v22  ;;  %v904_v31 = vmul.f32 %v9516_v16, %v10517_v1 }
 0x17a   : >>> { %v940_v0 = vadd.f32 %v10593_v40, %v918_v26  ;;  %v897_v33 = vmul.f32 %v9518_v27, %v10526_v10 }
 0x17b   : >>> { %9531 = vrsqrt.f32 %v876_v30  ;;  %9222 = vmatprep.mubr.msk.f32.mxu1 %vm601_vm0, %v947_v55  ;;  %v926_v34 = vmul.f32 %v10590_v32, %v904_v31 }
 0x17c   : >>> { %v9520_v20 = vpop.eup %9519  ;;  %9211 = vmatmul.mubr.msk.f32.gmra.mxu0 %vm601_vm0, %v940_v0  ;;  %v919_v38 = vmul.f32 %v10590_v32, %v897_v33 }
 0x17d   : >>> { %v9522_v39 = vpop.eup %9521  ;;  %v948_v41 = vadd.f32 %v10593_v40, %v926_v34  ;;  %v905_v42 = vmul.f32 %v9520_v20, %v10529_v11 }
 0x17e   : >>> { %v941_v1 = vadd.f32 %v10593_v40, %v919_v38  ;;  %v898_v43 = vmul.f32 %v9522_v39, %v10538_v23 }
 0x17f   : >>> { %9223 = vmatmul.mubr.msk.f32.gmra.mxu1 %vm601_vm0, %v948_v41  ;;  %v927_v10 = vmul.f32 %v10590_v32, %v905_v42 }
 0x180   : >>> { %v9524_v46 = vpop.eup %9523  ;;  %9213 = vmatprep.mubr.msk.f32.mxu0 %vm601_vm0, %v941_v1  ;;  %v920_v24 = vmul.f32 %v10590_v32, %v898_v43 }
 0x181   : >>> { %v9526_v48 = vpop.eup %9525  ;;  %v949_v49 = vadd.f32 %v10593_v40, %v927_v10  ;;  %v906_v50 = vmul.f32 %v9524_v46, %v10541_v17 }
 0x182   : >>> { %v942_v11 = vadd.f32 %v10593_v40, %v920_v24  ;;  %v899_v51 = vmul.f32 %v9526_v48, %v10550_v35 }
 0x183   : >>> { %9225 = vmatprep.mubr.msk.f32.mxu1 %vm601_vm0, %v949_v49  ;;  %v928_v23 = vmul.f32 %v10590_v32, %v906_v50 }
 0x184   : >>> { %v9528_v52 = vpop.eup %9527  ;;  %9214 = vmatmul.mubr.msk.f32.gmra.mxu0 %vm601_vm0, %v942_v11  ;;  %v921_v36 = vmul.f32 %v10590_v32, %v899_v51 }
 0x185   : >>> { %v9530_v28 = vpop.eup %9529  ;;  %v950_v29 = vadd.f32 %v10593_v40, %v928_v23  ;;  %v907_v53 = vmul.f32 %v9528_v52, %v10553_v21 }
 0x186   : >>> { %v943_v17 = vadd.f32 %v10593_v40, %v921_v36  ;;  %v900_v56 = vmul.f32 %v9530_v28, %v10562_v25 }
 0x187   : >>> { %9226 = vmatmul.mubr.msk.f32.gmra.mxu1 %vm601_vm0, %v950_v29  ;;  %v929_v35 = vmul.f32 %v10590_v32, %v907_v53 }
 0x188   : >>> { %v9532_v57 = vpop.eup %9531  ;;  %9216 = vmatprep.mubr.msk.f32.mxu0 %vm601_vm0, %v943_v17  ;;  %v922_v58 = vmul.f32 %v10590_v32, %v900_v56 }
 0x189   : >>> { %v951_v59 = vadd.f32 %v10593_v40, %v929_v35  ;;  %v908_v60 = vmul.f32 %v9532_v57, %v10565_v47 }
 0x18a   : >>> { %v944_v21 = vadd.f32 %v10593_v40, %v922_v58 }
 0x18b   : >>> { %9228 = vmatprep.mubr.msk.f32.mxu1 %vm601_vm0, %v951_v59  ;;  %v930_v25 = vmul.f32 %v10590_v32, %v908_v60 }
 0x18c   : >>> { %9217 = vmatmul.mubr.msk.f32.gmra.mxu0 %vm601_vm0, %v944_v21 }
 0x18d   : >>> { %v952_v61 = vadd.f32 %v10593_v40, %v930_v25 }
 0x18f   : >>> { %9229 = vmatmul.mubr.msk.f32.gmra.mxu1 %vm601_vm0, %v952_v61 }
 0x234   : >>> { %v9209_v62 = vpop.f32.mrf.mxu0 }
 0x235   : >>> { %v1087_v47 = vadd.f32 %v9209_v62, %v7858_v44 }
 0x236   : >>> { %v1081_v63 = vpop.f32.mrf.mxu0 }
 0x237   : >>> { %1163 = vst.msk [vmem:[%s10664_s17 + $0x8] sm:$0xff] %vm1161_vm1, %v1087_v47  ;;  %v1082_v32 = vadd.f32 %v7858_v44, %v1081_v63  ;;  %v9221_v40 = vpop.f32.mrf.mxu1 }
 0x238   : >>> { %v1127_v37 = vadd.f32 %v9221_v40, %v7858_v44 }
 0x239   : >>> { %1162 = vst.msk [vmem:[%s10664_s17] sm:$0xff] %vm1161_vm1, %v1082_v32  ;;  %v1121_v2 = vpop.f32.mrf.mxu1 }
 0x23a   : >>> { %1171 = vst.msk [vmem:[%s10664_s17 + $0x48] sm:$0xff] %vm1161_vm1, %v1127_v37  ;;  %v1122_v3 = vadd.f32 %v7858_v44, %v1121_v2 }
 0x23c   : >>> { %1170 = vst.msk [vmem:[%s10664_s17 + $0x40] sm:$0xff] %vm1161_vm1, %v1122_v3  ;;  %v9212_v4 = vpop.f32.mrf.mxu0 }
 0x23d   : >>> { %v1097_v5 = vadd.f32 %v9212_v4, %v7858_v44 }
 0x23e   : >>> { %v1091_v6 = vpop.f32.mrf.mxu0 }
 0x23f   : >>> { %1165 = vst.msk [vmem:[%s10664_s17 + $0x18] sm:$0xff] %vm1161_vm1, %v1097_v5  ;;  %v1092_v7 = vadd.f32 %v7858_v44, %v1091_v6  ;;  %v9224_v8 = vpop.f32.mrf.mxu1 }
 0x240   : >>> { %v1137_v45 = vadd.f32 %v9224_v8, %v7858_v44 }
 0x241   : >>> { %1164 = vst.msk [vmem:[%s10664_s17 + $0x10] sm:$0xff] %vm1161_vm1, %v1092_v7  ;;  %v1131_v9 = vpop.f32.mrf.mxu1 }
 0x242   : >>> { %1173 = vst.msk [vmem:[%s10664_s17 + $0x58] sm:$0xff] %vm1161_vm1, %v1137_v45  ;;  %v1132_v12 = vadd.f32 %v7858_v44, %v1131_v9 }
 0x244   : >>> { %1172 = vst.msk [vmem:[%s10664_s17 + $0x50] sm:$0xff] %vm1161_vm1, %v1132_v12  ;;  %v9215_v13 = vpop.f32.mrf.mxu0 }
 0x245   : >>> { %v1107_v54 = vadd.f32 %v9215_v13, %v7858_v44 }
 0x246   : >>> { %v1101_v14 = vpop.f32.mrf.mxu0 }
 0x247   : >>> { %1167 = vst.msk [vmem:[%s10664_s17 + $0x28] sm:$0xff] %vm1161_vm1, %v1107_v54  ;;  %v1102_v15 = vadd.f32 %v7858_v44, %v1101_v14  ;;  %v9227_v18 = vpop.f32.mrf.mxu1 }
 0x248   : >>> { %v1147_v19 = vadd.f32 %v9227_v18, %v7858_v44 }
 0x249   : >>> { %1166 = vst.msk [vmem:[%s10664_s17 + $0x20] sm:$0xff] %vm1161_vm1, %v1102_v15  ;;  %v1141_v22 = vpop.f32.mrf.mxu1 }
 0x24a   : >>> { %1175 = vst.msk [vmem:[%s10664_s17 + $0x68] sm:$0xff] %vm1161_vm1, %v1147_v19  ;;  %v1142_v16 = vadd.f32 %v7858_v44, %v1141_v22 }
 0x24c   : >>> { %1174 = vst.msk [vmem:[%s10664_s17 + $0x60] sm:$0xff] %vm1161_vm1, %v1142_v16  ;;  %v9218_v26 = vpop.f32.mrf.mxu0 }
 0x24d   : >>> { %v1117_v27 = vadd.f32 %v9218_v26, %v7858_v44 }
 0x24e   : >>> { %v1111_v30 = vpop.f32.mrf.mxu0 }
 0x24f   : >>> { %1169 = vst.msk [vmem:[%s10664_s17 + $0x38] sm:$0xff] %vm1161_vm1, %v1117_v27  ;;  %v1112_v55 = vadd.f32 %v7858_v44, %v1111_v30  ;;  %v9230_v31 = vpop.f32.mrf.mxu1 }
 0x250   : >>> { %v1157_v0 = vadd.f32 %v9230_v31, %v7858_v44  ;;  %676 = sbr.rel (!%p674_p4) target bundleno = 53 (0x35), region = 162 }
 0x251   : >>> { %1168 = vst.msk [vmem:[%s10664_s17 + $0x30] sm:$0xff] %vm1161_vm1, %v1112_v55  ;;  %v1151_v33 = vpop.f32.mrf.mxu1 }
 0x252   : >>> { %1177 = vst.msk [vmem:[%s10664_s17 + $0x78] sm:$0xff] %vm1161_vm1, %v1157_v0  ;;  %v1152_v34 = vadd.f32 %v7858_v44, %v1151_v33 }
 0x254   : >>> { %1176 = vst.msk [vmem:[%s10664_s17 + $0x70] sm:$0xff] %vm1161_vm1, %v1152_v34 }
 0x255 LB: >>> { %s10159_s18 = smov 96   ;;  %s7875_s23 = sshll.u32 %s10153_s24, 6  ;;  %vm1457_vm2 = vcmask 64512   ;;  %s10153_s24 = sphi %s10701_s24, %s1183_s24  }
 0x256   : >>> { %s10933_s19 = scalar_lea.vmem [#allocation3], %s7875_s23  ;;  %s10160_s25 = smov 64  }
 0x257   : >>> { %s10161_s27 = smov 88   ;;  %s10162_s28 = smov 120  }
 0x258   : >>> { %s10163_s29 = smov 56   ;;  %s10164_s30 = smov 80  }
 0x259   : >>> { %s1183_s24 = sadd.s32 1, %s10153_s24  }
 0x25a   : >>> { %p1180_p5 = scmp.ge.s32.totalorder %s1183_s24, 8  }
 0x25b   : >>> { %v10706_v20 = vld [vmem:[#allocation3 + $0xf8] sm:$0xff]  ;;  %v10708_v38 = vld [vmem:[#allocation3 + $0xf0] sm:$0xff]  ;;  %v10730_v43 = vld [vmem:[#allocation3 + $0xe8] sm:$0xff] }
 0x25c   : >>> { %1391 = vrot.lane.b32.xlu0 %v10706_v20, %s10159_s18  ;;  %1389 = vrot.lane.b32.xlu1 %v10708_v38, %s10159_s18  ;;  %v10714_v39 = vld [vmem:[#allocation3 + $0x78] sm:$0xff]  ;;  %v10722_v42 = vld [vmem:[#allocation3 + $0x70] sm:$0xff]  ;;  %v10738_v46 = vld [vmem:[#allocation3 + $0x68] sm:$0xff] }
 0x25d   : >>> { %v10716_v41 = vld [vmem:[#allocation3 + $0x1f8] sm:$0xff]  ;;  %v10732_v10 = vld [vmem:[#allocation3 + $0x1f0] sm:$0xff]  ;;  %v10746_v48 = vld [vmem:[#allocation3 + $0xe0] sm:$0xff] }
 0x25e   : >>> { %v10724_v1 = vld [vmem:[#allocation3 + $0x178] sm:$0xff]  ;;  %v10740_v24 = vld [vmem:[#allocation3 + $0x170] sm:$0xff]  ;;  %v10748_v49 = vld [vmem:[#allocation3 + $0x1e8] sm:$0xff] }
 0x25f   : >>> { %v10754_v50 = vld [vmem:[#allocation3 + $0x60] sm:$0xff]  ;;  %v10756_v11 = vld [vmem:[#allocation3 + $0x168] sm:$0xff]  ;;  %v10762_v51 = vld [vmem:[#allocation3 + $0xd8] sm:$0xff] }
 0x260   : >>> { %1359 = vrot.lane.b32.xlu0 %v10714_v39, %s10159_s18  ;;  %1455 = vrot.lane.b32.xlu1 %v10716_v41, %s10159_s18  ;;  %v10764_v23 = vld [vmem:[#allocation3 + $0x1e0] sm:$0xff]  ;;  %v10770_v52 = vld [vmem:[#allocation3 + $0x58] sm:$0xff]  ;;  %v10778_v28 = vld [vmem:[#allocation3 + $0xd0] sm:$0xff] }
 0x261   : >>> { %v10772_v36 = vld [vmem:[#allocation3 + $0x160] sm:$0xff]  ;;  %v10780_v29 = vld [vmem:[#allocation3 + $0x1d8] sm:$0xff]  ;;  %v10786_v53 = vld [vmem:[#allocation3 + $0x50] sm:$0xff] }
 0x262   : >>> { %v10788_v17 = vld [vmem:[#allocation3 + $0x158] sm:$0xff]  ;;  %v10794_v56 = vld [vmem:[#allocation3 + $0xc8] sm:$0xff]  ;;  %v10796_v35 = vld [vmem:[#allocation3 + $0x1d0] sm:$0xff] }
 0x263   : >>> { %v10802_v57 = vld [vmem:[#allocation3 + $0x48] sm:$0xff]  ;;  %v10804_v58 = vld [vmem:[#allocation3 + $0x150] sm:$0xff]  ;;  %v10810_v59 = vld [vmem:[#allocation3 + $0xc0] sm:$0xff] }
 0x264   : >>> { %1357 = vrot.lane.b32.xlu0 %v10722_v42, %s10159_s18  ;;  %1423 = vrot.lane.b32.xlu1 %v10724_v1, %s10159_s18  ;;  %v10812_v60 = vld [vmem:[#allocation3 + $0x1c8] sm:$0xff]  ;;  %v10818_v21 = vld [vmem:[#allocation3 + $0x40] sm:$0xff]  ;;  %v10826_v61 = vld [vmem:[#allocation3 + $0xb8] sm:$0xff] }
 0x265   : >>> { %v10820_v25 = vld [vmem:[#allocation3 + $0x148] sm:$0xff]  ;;  %v10828_v44 = vld [vmem:[#allocation3 + $0x1c0] sm:$0xff]  ;;  %v10834_v62 = vld [vmem:[#allocation3 + $0x38] sm:$0xff] }
 0x266   : >>> { %v10836_v47 = vld [vmem:[#allocation3 + $0x140] sm:$0xff]  ;;  %v10842_v63 = vld [vmem:[#allocation3 + $0xb0] sm:$0xff]  ;;  %v10844_v32 = vld [vmem:[#allocation3 + $0x1b8] sm:$0xff] }
 0x267   : >>> { %v10850_v40 = vld [vmem:[#allocation3 + $0x30] sm:$0xff]  ;;  %v10852_v37 = vld [vmem:[#allocation3 + $0x138] sm:$0xff]  ;;  %v10858_v2 = vld [vmem:[#allocation3 + $0xa8] sm:$0xff] }
 0x268   : >>> { %1387 = vrot.lane.b32.xlu0 %v10730_v43, %s10159_s18  ;;  %1453 = vrot.lane.b32.xlu1 %v10732_v10, %s10159_s18  ;;  %v10860_v3 = vld [vmem:[#allocation3 + $0x1b0] sm:$0xff]  ;;  %v10866_v4 = vld [vmem:[#allocation3 + $0x28] sm:$0xff]  ;;  %v10874_v6 = vld [vmem:[#allocation3 + $0xa0] sm:$0xff] }
 0x269   : >>> { %v10868_v5 = vld [vmem:[#allocation3 + $0x130] sm:$0xff]  ;;  %v10876_v7 = vld [vmem:[#allocation3 + $0x1a8] sm:$0xff]  ;;  %v10882_v8 = vld [vmem:[#allocation3 + $0x20] sm:$0xff] }
 0x26a   : >>> { %v10884_v45 = vld [vmem:[#allocation3 + $0x128] sm:$0xff]  ;;  %v10890_v9 = vld [vmem:[#allocation3 + $0x98] sm:$0xff]  ;;  %v10892_v12 = vld [vmem:[#allocation3 + $0x1a0] sm:$0xff] }
 0x26b   : >>> { %v10898_v13 = vld [vmem:[#allocation3 + $0x18] sm:$0xff]  ;;  %v10900_v54 = vld [vmem:[#allocation3 + $0x120] sm:$0xff]  ;;  %v10906_v14 = vld [vmem:[#allocation3 + $0x90] sm:$0xff] }
 0x26c   : >>> { %1355 = vrot.lane.b32.xlu0 %v10738_v46, %s10159_s18  ;;  %1421 = vrot.lane.b32.xlu1 %v10740_v24, %s10159_s18  ;;  %15170 = vst [vmem:[#allocation4_spill] sm:$0xff] %v10906_v14  ;;  %v10908_v15 = vld [vmem:[#allocation3 + $0x198] sm:$0xff]  ;;  %v10914_v18 = vld [vmem:[#allocation3 + $0x10] sm:$0xff]  ;;  %v10922_v22 = vld [vmem:[#allocation3 + $0x88] sm:$0xff] }
 0x26d   : >>> { %15171 = vst [vmem:[#allocation5_spill] sm:$0xff] %v10914_v18  ;;  %v10916_v19 = vld [vmem:[#allocation3 + $0x118] sm:$0xff]  ;;  %15172 = vst [vmem:[#allocation6_spill] sm:$0xff] %v10922_v22  ;;  %v10924_v16 = vld [vmem:[#allocation3 + $0x190] sm:$0xff] }
 0x26e   : >>> { %v10936_v26 = vld [vmem:[%s10933_s19] sm:$0xff]  ;;  %v10938_v27 = vld [vmem:[#allocation3 + $0x8] sm:$0xff]  ;;  %v10940_v30 = vld [vmem:[#allocation3 + $0x110] sm:$0xff] }
 0x26f   : >>> { %15173 = vst [vmem:[#allocation7_spill] sm:$0xff] %v10938_v27  ;;  %8311 = vmatprep.mubr.msk.f32.mxu0 %vm1457_vm2, %v10936_v26  ;;  %8359 = vmatprep.mubr.msk.f32.mxu1 %vm1457_vm2, %v10936_v26  ;;  %v10950_v55 = vld [vmem:[#allocation3 + $0x80] sm:$0xff]  ;;  %v10952_v31 = vld [vmem:[#allocation3 + $0x188] sm:$0xff] }
 0x270   : >>> { %1385 = vrot.lane.b32.xlu0 %v10746_v48, %s10159_s18  ;;  %1451 = vrot.lane.b32.xlu1 %v10748_v49, %s10159_s18  ;;  %15174 = vst [vmem:[#allocation8_spill] sm:$0xff] %v10950_v55  ;;  %15175 = vst [vmem:[#allocation9_spill] sm:$0xff] %v10952_v31  ;;  %v10959_v34 = vld [vmem:[#allocation3] sm:$0xff] }
 0x274   : >>> { %1353 = vrot.lane.b32.xlu0 %v10754_v50, %s10159_s18  ;;  %1419 = vrot.lane.b32.xlu1 %v10756_v11, %s10159_s18 }
 0x278   : >>> { %1383 = vrot.lane.b32.xlu0 %v10762_v51, %s10159_s18  ;;  %1449 = vrot.lane.b32.xlu1 %v10764_v23, %s10159_s18 }
 0x27c   : >>> { %1351 = vrot.lane.b32.xlu0 %v10770_v52, %s10159_s18  ;;  %1417 = vrot.lane.b32.xlu1 %v10772_v36, %s10159_s18 }
 0x280   : >>> { %1381 = vrot.lane.b32.xlu0 %v10778_v28, %s10159_s18  ;;  %1447 = vrot.lane.b32.xlu1 %v10780_v29, %s10159_s18 }
 0x284   : >>> { %1349 = vrot.lane.b32.xlu0 %v10786_v53, %s10159_s18  ;;  %1415 = vrot.lane.b32.xlu1 %v10788_v17, %s10159_s18 }
 0x288   : >>> { %1379 = vrot.lane.b32.xlu0 %v10794_v56, %s10159_s18  ;;  %1445 = vrot.lane.b32.xlu1 %v10796_v35, %s10159_s18 }
 0x28c   : >>> { %1347 = vrot.lane.b32.xlu0 %v10802_v57, %s10159_s18  ;;  %1413 = vrot.lane.b32.xlu1 %v10804_v58, %s10159_s18 }
 0x290   : >>> { %1377 = vrot.lane.b32.xlu0 %v10810_v59, %s10159_s18  ;;  %1443 = vrot.lane.b32.xlu1 %v10812_v60, %s10159_s18 }
 0x294   : >>> { %1345 = vrot.lane.b32.xlu0 %v10818_v21, %s10159_s18  ;;  %1411 = vrot.lane.b32.xlu1 %v10820_v25, %s10159_s18 }
 0x298   : >>> { %1375 = vrot.lane.b32.xlu0 %v10826_v61, %s10159_s18  ;;  %1441 = vrot.lane.b32.xlu1 %v10828_v44, %s10159_s18 }
 0x29c   : >>> { %1343 = vrot.lane.b32.xlu0 %v10834_v62, %s10159_s18  ;;  %1409 = vrot.lane.b32.xlu1 %v10836_v47, %s10159_s18 }
 0x2a0   : >>> { %1373 = vrot.lane.b32.xlu0 %v10842_v63, %s10159_s18  ;;  %1439 = vrot.lane.b32.xlu1 %v10844_v32, %s10159_s18 }
 0x2a4   : >>> { %1341 = vrot.lane.b32.xlu0 %v10850_v40, %s10159_s18  ;;  %1407 = vrot.lane.b32.xlu1 %v10852_v37, %s10159_s18 }
 0x2a8   : >>> { %1371 = vrot.lane.b32.xlu0 %v10858_v2, %s10159_s18  ;;  %1437 = vrot.lane.b32.xlu1 %v10860_v3, %s10159_s18 }
 0x2ac   : >>> { %1339 = vrot.lane.b32.xlu0 %v10866_v4, %s10159_s18  ;;  %1405 = vrot.lane.b32.xlu1 %v10868_v5, %s10159_s18 }
 0x2b0   : >>> { %1369 = vrot.lane.b32.xlu0 %v10874_v6, %s10159_s18  ;;  %1435 = vrot.lane.b32.xlu1 %v10876_v7, %s10159_s18 }
 0x2b4   : >>> { %1337 = vrot.lane.b32.xlu0 %v10882_v8, %s10159_s18  ;;  %1403 = vrot.lane.b32.xlu1 %v10884_v45, %s10159_s18 }
 0x2b8   : >>> { %1367 = vrot.lane.b32.xlu0 %v10890_v9, %s10159_s18  ;;  %1433 = vrot.lane.b32.xlu1 %v10892_v12, %s10159_s18 }
 0x2bc   : >>> { %1335 = vrot.lane.b32.xlu0 %v10898_v13, %s10159_s18  ;;  %1401 = vrot.lane.b32.xlu1 %v10900_v54, %s10159_s18 }
 0x2c0   : >>> { %1365 = vrot.lane.b32.xlu0 %v10906_v14, %s10159_s18  ;;  %1431 = vrot.lane.b32.xlu1 %v10908_v15, %s10159_s18  ;;  %v10972_v14 = vld [vmem:[#allocation3 + $0x100] sm:$0xff] }
 0x2c4   : >>> { %1333 = vrot.lane.b32.xlu0 %v10914_v18, %s10159_s18  ;;  %1399 = vrot.lane.b32.xlu1 %v10916_v19, %s10159_s18  ;;  %v10961_v18 = vld [vmem:[#allocation3 + $0x108] sm:$0xff] }
 0x2c8   : >>> { %1363 = vrot.lane.b32.xlu0 %v10922_v22, %s10159_s18  ;;  %1429 = vrot.lane.b32.xlu1 %v10924_v16, %s10159_s18 }
 0x2cc   : >>> { %1331 = vrot.lane.b32.xlu0 %v10938_v27, %s10159_s18  ;;  %1397 = vrot.lane.b32.xlu1 %v10940_v30, %s10159_s18 }
 0x2ce   : >>> { %v1392_v0 = vpop.permute.xlu0 %1391  ;;  %v1390_v33 = vpop.permute.xlu1 %1389 }
 0x2cf   : >>> { %8279 = vmatprep.subr.msk.mxu0 %vm1457_vm2, %v1392_v0  ;;  %v10970_v0 = vld [vmem:[#allocation3 + $0x180] sm:$0xff] }
 0x2d0   : >>> { %1361 = vrot.lane.b32.xlu0 %v10950_v55, %s10159_s18  ;;  %1427 = vrot.lane.b32.xlu1 %v10952_v31, %s10159_s18 }
 0x2d2   : >>> { %v1360_v27 = vpop.permute.xlu0 %1359  ;;  %v1456_v22 = vpop.permute.xlu1 %1455 }
 0x2d3   : >>> { %8280 = vmatpush3.xpose.msk.msra.mxu0 %vm1457_vm2, %v1360_v27  ;;  %8327 = vmatprep.subr.msk.mxu1 %vm1457_vm2, %v1456_v22 }
 0x2d4   : >>> { %8281 = vmatprep.subr.msk.mxu0 %vm1457_vm2, %v1390_v33  ;;  %1329 = vrot.lane.b32.xlu0 %v10959_v34, %s10159_s18 }
 0x2d5   : >>> { %1395 = vrot.lane.b32.xlu1 %v10961_v18, %s10159_s18 }
 0x2d6   : >>> { %v1358_v31 = vpop.permute.xlu0 %1357  ;;  %v1424_v55 = vpop.permute.xlu1 %1423 }
 0x2d7   : >>> { %8282 = vmatpush3.xpose.msk.msra.mxu0 %vm1457_vm2, %v1358_v31  ;;  %8328 = vmatpush3.xpose.msk.msra.mxu1 %vm1457_vm2, %v1424_v55 }
 0x2d8   : >>> { %1425 = vrot.lane.b32.xlu0 %v10970_v0, %s10159_s18 }
 0x2d9   : >>> { %1393 = vrot.lane.b32.xlu1 %v10972_v14, %s10159_s18 }
 0x2da   : >>> { %v1388_v22 = vpop.permute.xlu0 %1387  ;;  %v1454_v27 = vpop.permute.xlu1 %1453 }
 0x2db   : >>> { %8283 = vmatprep.subr.msk.mxu0 %vm1457_vm2, %v1388_v22  ;;  %8329 = vmatprep.subr.msk.mxu1 %vm1457_vm2, %v1454_v27 }
 0x2dc   : >>> { %2167 = vrot.lane.b32.xlu0 %v10714_v39, %s10160_s25 }
 0x2dd   : >>> { %2199 = vrot.lane.b32.xlu1 %v10706_v20, %s10160_s25 }
 0x2de   : >>> { %v1356_v55 = vpop.permute.xlu0 %1355  ;;  %v1422_v31 = vpop.permute.xlu1 %1421 }
 0x2df   : >>> { %8284 = vmatpush3.xpose.msk.msra.mxu0 %vm1457_vm2, %v1356_v55  ;;  %8330 = vmatpush3.xpose.msk.msra.mxu1 %vm1457_vm2, %v1422_v31 }
 0x2e0   : >>> { %2191 = vrot.lane.b32.xlu0 %v10762_v51, %s10160_s25 }
 0x2e1   : >>> { %2197 = vrot.lane.b32.xlu1 %v10708_v38, %s10160_s25 }
 0x2e2   : >>> { %v1386_v33 = vpop.permute.xlu0 %1385  ;;  %v1452_v22 = vpop.permute.xlu1 %1451 }
 0x2e3   : >>> { %8285 = vmatprep.subr.msk.mxu0 %vm1457_vm2, %v1386_v33  ;;  %8331 = vmatprep.subr.msk.mxu1 %vm1457_vm2, %v1452_v22 }
 0x2e4   : >>> { %2225 = vrot.lane.b32.xlu0 %v10772_v36, %s10160_s25 }
 0x2e5   : >>> { %2165 = vrot.lane.b32.xlu1 %v10722_v42, %s10160_s25 }
 0x2e6   : >>> { %v1354_v27 = vpop.permute.xlu0 %1353  ;;  %v1420_v55 = vpop.permute.xlu1 %1419 }
 0x2e7   : >>> { %8286 = vmatpush3.xpose.msk.msra.mxu0 %vm1457_vm2, %v1354_v27  ;;  %8332 = vmatpush3.xpose.msk.msra.mxu1 %vm1457_vm2, %v1420_v55 }
 0x2e8   : >>> { %2255 = vrot.lane.b32.xlu0 %v10780_v29, %s10160_s25 }
 0x2e9   : >>> { %2195 = vrot.lane.b32.xlu1 %v10730_v43, %s10160_s25 }
 0x2ea   : >>> { %v1384_v31 = vpop.permute.xlu0 %1383  ;;  %v1450_v33 = vpop.permute.xlu1 %1449 }
 0x2eb   : >>> { %8287 = vmatprep.subr.msk.mxu0 %vm1457_vm2, %v1384_v31  ;;  %8333 = vmatprep.subr.msk.mxu1 %vm1457_vm2, %v1450_v33 }
 0x2ec   : >>> { %2223 = vrot.lane.b32.xlu0 %v10788_v17, %s10160_s25 }
 0x2ed   : >>> { %2263 = vrot.lane.b32.xlu1 %v10716_v41, %s10160_s25 }
 0x2ee   : >>> { %v1352_v22 = vpop.permute.xlu0 %1351  ;;  %v1418_v27 = vpop.permute.xlu1 %1417 }
 0x2ef   : >>> { %8288 = vmatpush3.xpose.msk.msra.mxu0 %vm1457_vm2, %v1352_v22  ;;  %8334 = vmatpush3.xpose.msk.msra.mxu1 %vm1457_vm2, %v1418_v27 }
 0x2f0   : >>> { %2253 = vrot.lane.b32.xlu0 %v10796_v35, %s10160_s25 }
 0x2f1   : >>> { %2163 = vrot.lane.b32.xlu1 %v10738_v46, %s10160_s25 }
 0x2f2   : >>> { %v1382_v55 = vpop.permute.xlu0 %1381  ;;  %v1448_v31 = vpop.permute.xlu1 %1447 }
 0x2f3   : >>> { %8289 = vmatprep.subr.msk.mxu0 %vm1457_vm2, %v1382_v55  ;;  %8335 = vmatprep.subr.msk.mxu1 %vm1457_vm2, %v1448_v31 }
 0x2f4   : >>> { %2221 = vrot.lane.b32.xlu0 %v10804_v58, %s10160_s25 }
 0x2f5   : >>> { %2231 = vrot.lane.b32.xlu1 %v10724_v1, %s10160_s25 }
 0x2f6   : >>> { %v1350_v17 = vpop.permute.xlu0 %1349  ;;  %v1416_v33 = vpop.permute.xlu1 %1415 }
 0x2f7   : >>> { %8290 = vmatpush3.xpose.msk.msra.mxu0 %vm1457_vm2, %v1350_v17  ;;  %8336 = vmatpush3.xpose.msk.msra.mxu1 %vm1457_vm2, %v1416_v33 }
 0x2f8   : >>> { %2251 = vrot.lane.b32.xlu0 %v10812_v60, %s10160_s25 }
 0x2f9   : >>> { %2193 = vrot.lane.b32.xlu1 %v10746_v48, %s10160_s25 }
 0x2fa   : >>> { %v1380_v35 = vpop.permute.xlu0 %1379  ;;  %v1446_v22 = vpop.permute.xlu1 %1445 }
 0x2fb   : >>> { %8291 = vmatprep.subr.msk.mxu0 %vm1457_vm2, %v1380_v35  ;;  %8337 = vmatprep.subr.msk.mxu1 %vm1457_vm2, %v1446_v22 }
 0x2fc   : >>> { %2219 = vrot.lane.b32.xlu0 %v10820_v25, %s10160_s25 }
 0x2fd   : >>> { %2261 = vrot.lane.b32.xlu1 %v10732_v10, %s10160_s25 }
 0x2fe   : >>> { %v1348_v58 = vpop.permute.xlu0 %1347  ;;  %v1414_v27 = vpop.permute.xlu1 %1413 }
 0x2ff   : >>> { %8292 = vmatpush3.xpose.msk.msra.mxu0 %vm1457_vm2, %v1348_v58  ;;  %8338 = vmatpush3.xpose.msk.msra.mxu1 %vm1457_vm2, %v1414_v27 }
 0x300   : >>> { %2249 = vrot.lane.b32.xlu0 %v10828_v44, %s10160_s25 }
 0x301   : >>> { %2161 = vrot.lane.b32.xlu1 %v10754_v50, %s10160_s25 }
 0x302   : >>> { %v1378_v60 = vpop.permute.xlu0 %1377  ;;  %v1444_v55 = vpop.permute.xlu1 %1443 }
 0x303   : >>> { %8293 = vmatprep.subr.msk.mxu0 %vm1457_vm2, %v1378_v60  ;;  %8339 = vmatprep.subr.msk.mxu1 %vm1457_vm2, %v1444_v55 }
 0x304   : >>> { %2217 = vrot.lane.b32.xlu0 %v10836_v47, %s10160_s25 }
 0x305   : >>> { %2229 = vrot.lane.b32.xlu1 %v10740_v24, %s10160_s25 }
 0x306   : >>> { %v1346_v25 = vpop.permute.xlu0 %1345  ;;  %v1412_v31 = vpop.permute.xlu1 %1411 }
 0x307   : >>> { %8294 = vmatpush3.xpose.msk.msra.mxu0 %vm1457_vm2, %v1346_v25  ;;  %8340 = vmatpush3.xpose.msk.msra.mxu1 %vm1457_vm2, %v1412_v31  ;;  %v1196_v25 = vld [vmem:[%s10933_s19 + $0x18] sm:$0xff]  ;;  %v1198_v31 = vld [vmem:[%s10933_s19 + $0x28] sm:$0xff] }
 0x308   : >>> { %2247 = vrot.lane.b32.xlu0 %v10844_v32, %s10160_s25 }
 0x309   : >>> { %2259 = vrot.lane.b32.xlu1 %v10748_v49, %s10160_s25 }
 0x30a   : >>> { %v1376_v44 = vpop.permute.xlu0 %1375  ;;  %v1442_v17 = vpop.permute.xlu1 %1441 }
 0x30b   : >>> { %8295 = vmatprep.subr.msk.mxu0 %vm1457_vm2, %v1376_v44  ;;  %8341 = vmatprep.subr.msk.mxu1 %vm1457_vm2, %v1442_v17  ;;  %v15176_v44 = vld [vmem:[#allocation4_spill] sm:$0xff]  ;;  %v1199_v17 = vld [vmem:[%s10933_s19 + $0x30] sm:$0xff] }
 0x30c   : >>> { %2215 = vrot.lane.b32.xlu0 %v10852_v37, %s10160_s25 }
 0x30d   : >>> { %2159 = vrot.lane.b32.xlu1 %v10770_v52, %s10160_s25 }
 0x30e   : >>> { %v1344_v47 = vpop.permute.xlu0 %1343  ;;  %v1410_v33 = vpop.permute.xlu1 %1409 }
 0x30f   : >>> { %8296 = vmatpush3.xpose.msk.msra.mxu0 %vm1457_vm2, %v1344_v47  ;;  %8342 = vmatpush3.xpose.msk.msra.mxu1 %vm1457_vm2, %v1410_v33  ;;  %v15177_v47 = vld [vmem:[#allocation5_spill] sm:$0xff] }
 0x310   : >>> { %2245 = vrot.lane.b32.xlu0 %v10860_v3, %s10160_s25 }
 0x311   : >>> { %2227 = vrot.lane.b32.xlu1 %v10756_v11, %s10160_s25 }
 0x312   : >>> { %v1374_v32 = vpop.permute.xlu0 %1373  ;;  %v1440_v35 = vpop.permute.xlu1 %1439 }
 0x313   : >>> { %8297 = vmatprep.subr.msk.mxu0 %vm1457_vm2, %v1374_v32  ;;  %8343 = vmatprep.subr.msk.mxu1 %vm1457_vm2, %v1440_v35  ;;  %v1200_v32 = vld [vmem:[%s10933_s19 + $0x38] sm:$0xff] }
 0x314   : >>> { %2213 = vrot.lane.b32.xlu0 %v10868_v5, %s10160_s25  ;;  %v15178_v35 = vld [vmem:[#allocation6_spill] sm:$0xff] }
 0x315   : >>> { %2189 = vrot.lane.b32.xlu1 %v10778_v28, %s10160_s25 }
 0x316   : >>> { %v1342_v37 = vpop.permute.xlu0 %1341  ;;  %v1408_v22 = vpop.permute.xlu1 %1407 }
 0x317   : >>> { %8298 = vmatpush3.xpose.msk.msra.mxu0 %vm1457_vm2, %v1342_v37  ;;  %8344 = vmatpush3.xpose.msk.msra.mxu1 %vm1457_vm2, %v1408_v22  ;;  %v15179_v22 = vld [vmem:[#allocation7_spill] sm:$0xff] }
 0x318   : >>> { %2243 = vrot.lane.b32.xlu0 %v10876_v7, %s10160_s25 }
 0x319   : >>> { %2257 = vrot.lane.b32.xlu1 %v10764_v23, %s10160_s25 }
 0x31a   : >>> { %v1372_v3 = vpop.permute.xlu0 %1371  ;;  %v1438_v58 = vpop.permute.xlu1 %1437 }
 0x31b   : >>> { %8299 = vmatprep.subr.msk.mxu0 %vm1457_vm2, %v1372_v3  ;;  %8345 = vmatprep.subr.msk.mxu1 %vm1457_vm2, %v1438_v58  ;;  %v15180_v58 = vld [vmem:[#allocation8_spill] sm:$0xff] }
 0x31c   : >>> { %2211 = vrot.lane.b32.xlu0 %v10884_v45, %s10160_s25 }
 0x31d   : >>> { %2157 = vrot.lane.b32.xlu1 %v10786_v53, %s10160_s25 }
 0x31e   : >>> { %v1340_v5 = vpop.permute.xlu0 %1339  ;;  %v1406_v27 = vpop.permute.xlu1 %1405 }
 0x31f   : >>> { %8300 = vmatpush3.xpose.msk.msra.mxu0 %vm1457_vm2, %v1340_v5  ;;  %8346 = vmatpush3.xpose.msk.msra.mxu1 %vm1457_vm2, %v1406_v27 }
 0x320   : >>> { %2241 = vrot.lane.b32.xlu0 %v10892_v12, %s10160_s25 }
 0x321   : >>> { %2187 = vrot.lane.b32.xlu1 %v10794_v56, %s10160_s25 }
 0x322   : >>> { %v1370_v7 = vpop.permute.xlu0 %1369  ;;  %v1436_v60 = vpop.permute.xlu1 %1435 }
 0x323   : >>> { %8301 = vmatprep.subr.msk.mxu0 %vm1457_vm2, %v1370_v7  ;;  %8347 = vmatprep.subr.msk.mxu1 %vm1457_vm2, %v1436_v60  ;;  %v15181_v60 = vld [vmem:[#allocation9_spill] sm:$0xff] }
 0x324   : >>> { %2209 = vrot.lane.b32.xlu0 %v10900_v54, %s10160_s25 }
 0x325   : >>> { %2155 = vrot.lane.b32.xlu1 %v10802_v57, %s10160_s25 }
 0x326   : >>> { %v1338_v45 = vpop.permute.xlu0 %1337  ;;  %v1404_v55 = vpop.permute.xlu1 %1403 }
 0x327   : >>> { %8302 = vmatpush3.xpose.msk.msra.mxu0 %vm1457_vm2, %v1338_v45  ;;  %8348 = vmatpush3.xpose.msk.msra.mxu1 %vm1457_vm2, %v1404_v55 }
 0x328   : >>> { %2239 = vrot.lane.b32.xlu0 %v10908_v15, %s10160_s25 }
 0x329   : >>> { %2185 = vrot.lane.b32.xlu1 %v10810_v59, %s10160_s25 }
 0x32a   : >>> { %v1368_v56 = vpop.permute.xlu0 %1367  ;;  %v1434_v12 = vpop.permute.xlu1 %1433 }
 0x32b   : >>> { %8303 = vmatprep.subr.msk.mxu0 %vm1457_vm2, %v1368_v56  ;;  %8349 = vmatprep.subr.msk.mxu1 %vm1457_vm2, %v1434_v12 }
 0x32c   : >>> { %2207 = vrot.lane.b32.xlu0 %v10916_v19, %s10160_s25 }
 0x32d   : >>> { %2153 = vrot.lane.b32.xlu1 %v10818_v21, %s10160_s25 }
 0x32e   : >>> { %v1336_v57 = vpop.permute.xlu0 %1335  ;;  %v1402_v54 = vpop.permute.xlu1 %1401 }
 0x32f   : >>> { %8304 = vmatpush3.xpose.msk.msra.mxu0 %vm1457_vm2, %v1336_v57  ;;  %8350 = vmatpush3.xpose.msk.msra.mxu1 %vm1457_vm2, %v1402_v54 }
 0x330   : >>> { %2237 = vrot.lane.b32.xlu0 %v10924_v16, %s10160_s25 }
 0x331   : >>> { %2183 = vrot.lane.b32.xlu1 %v10826_v61, %s10160_s25 }
 0x332   : >>> { %v1366_v59 = vpop.permute.xlu0 %1365  ;;  %v1432_v15 = vpop.permute.xlu1 %1431 }
 0x333   : >>> { %8305 = vmatprep.subr.msk.mxu0 %vm1457_vm2, %v1366_v59  ;;  %8351 = vmatprep.subr.msk.mxu1 %vm1457_vm2, %v1432_v15 }
 0x334   : >>> { %2205 = vrot.lane.b32.xlu0 %v10940_v30, %s10160_s25 }
 0x335   : >>> { %2151 = vrot.lane.b32.xlu1 %v10834_v62, %s10160_s25 }
 0x336   : >>> { %v1334_v21 = vpop.permute.xlu0 %1333  ;;  %v1400_v19 = vpop.permute.xlu1 %1399 }
 0x337   : >>> { %8306 = vmatpush3.xpose.msk.msra.mxu0 %vm1457_vm2, %v1334_v21  ;;  %8352 = vmatpush3.xpose.msk.msra.mxu1 %vm1457_vm2, %v1400_v19 }
 0x338   : >>> { %2617 = vrot.lane.b32.xlu0 %v10706_v20, %s10161_s27 }
 0x339   : >>> { %2181 = vrot.lane.b32.xlu1 %v10842_v63, %s10160_s25 }
 0x33a   : >>> { %v1364_v61 = vpop.permute.xlu0 %1363  ;;  %v1430_v16 = vpop.permute.xlu1 %1429 }
 0x33b   : >>> { %8307 = vmatprep.subr.msk.mxu0 %vm1457_vm2, %v1364_v61  ;;  %8353 = vmatprep.subr.msk.mxu1 %vm1457_vm2, %v1430_v16 }
 0x33c   : >>> { %2585 = vrot.lane.b32.xlu0 %v10714_v39, %s10161_s27 }
 0x33d   : >>> { %2149 = vrot.lane.b32.xlu1 %v10850_v40, %s10160_s25 }
 0x33e   : >>> { %v1332_v62 = vpop.permute.xlu0 %1331  ;;  %v1398_v30 = vpop.permute.xlu1 %1397 }
 0x33f   : >>> { %8308 = vmatpush3.xpose.msk.msra.mxu0 %vm1457_vm2, %v1332_v62  ;;  %8354 = vmatpush3.xpose.msk.msra.mxu1 %vm1457_vm2, %v1398_v30 }
 0x340   : >>> { %2201 = vrot.lane.b32.xlu0 %v10972_v14, %s10160_s25 }
 0x341   : >>> { %2179 = vrot.lane.b32.xlu1 %v10858_v2, %s10160_s25  ;;  %v1194_v2 = vld [vmem:[%s10933_s19 + $0x8] sm:$0xff] }
 0x342   : >>> { %v1362_v20 = vpop.permute.xlu0 %1361  ;;  %v1428_v63 = vpop.permute.xlu1 %1427 }
 0x343   : >>> { %8309 = vmatprep.subr.msk.mxu0 %vm1457_vm2, %v1362_v20  ;;  %8355 = vmatprep.subr.msk.mxu1 %vm1457_vm2, %v1428_v63 }
 0x344   : >>> { %2681 = vrot.lane.b32.xlu0 %v10716_v41, %s10161_s27 }
 0x345   : >>> { %2147 = vrot.lane.b32.xlu1 %v10866_v4, %s10160_s25  ;;  %v1195_v4 = vld [vmem:[%s10933_s19 + $0x10] sm:$0xff] }
 0x346   : >>> { %v1330_v39 = vpop.permute.xlu0 %1329 }
 0x347   : >>> { %v1396_v40 = vpop.permute.xlu1 %1395  ;;  %8310 = vmatpush3.xpose.msk.msra.mxu0 %vm1457_vm2, %v1330_v39 }
 0x348   : >>> { %8356 = vmatpush3.xpose.msk.msra.mxu1 %vm1457_vm2, %v1396_v40  ;;  %2649 = vrot.lane.b32.xlu0 %v10724_v1, %s10161_s27 }
 0x349   : >>> { %2177 = vrot.lane.b32.xlu1 %v10874_v6, %s10160_s25 }
 0x34a   : >>> { %v1426_v14 = vpop.permute.xlu0 %1425  ;;  %8312 = vmatmul.mubr.msk.f32.vlgmr.msra.gmra.mxu0 %vm1457_vm2, %v10936_v26 }
 0x34b   : >>> { %v1394_v41 = vpop.permute.xlu1 %1393  ;;  %8357 = vmatprep.subr.msk.mxu1 %vm1457_vm2, %v1426_v14  ;;  %8313 = vmatprep.mubr.msk.f32.mxu0 %vm1457_vm2, %v1194_v2 }
 0x34c   : >>> { %8358 = vmatpush3.xpose.msk.msra.mxu1 %vm1457_vm2, %v1394_v41  ;;  %2613 = vrot.lane.b32.xlu0 %v10730_v43, %s10161_s27 }
 0x34d   : >>> { %2145 = vrot.lane.b32.xlu1 %v10882_v8, %s10160_s25 }
 0x34e   : >>> { %8314 = vmatmul.mubr.msk.f32.gmra.mxu0 %vm1457_vm2, %v1194_v2  ;;  %v2168_v1 = vpop.permute.xlu0 %2167 }
 0x34f   : >>> { %8360 = vmatmul.mubr.msk.f32.vlgmr.msra.gmra.mxu1 %vm1457_vm2, %v10936_v26  ;;  %8315 = vmatprep.mubr.msk.f32.mxu0 %vm1457_vm2, %v1195_v4  ;;  %v2200_v6 = vpop.permute.xlu1 %2199  ;;  %v1197_v26 = vld [vmem:[%s10933_s19 + $0x20] sm:$0xff] }
 0x350   : >>> { %8361 = vmatprep.mubr.msk.f32.mxu1 %vm1457_vm2, %v1194_v2  ;;  %8375 = vmatprep.subr.mxu0 %v2200_v6 }
 0x351   : >>> { %2175 = vrot.lane.b32.xlu1 %v10890_v9, %s10160_s25  ;;  %8376 = vmatpush3.msra.mxu0 %v2168_v1 }
 0x352   : >>> { %8316 = vmatmul.mubr.msk.f32.gmra.mxu0 %vm1457_vm2, %v1195_v4  ;;  %2679 = vrot.lane.b32.xlu0 %v10732_v10, %s10161_s27  ;;  %v11170_v43 = vpop.permute.xlu0 %2191 }
 0x353   : >>> { %8362 = vmatmul.mubr.msk.f32.gmra.mxu1 %vm1457_vm2, %v1194_v2  ;;  %8317 = vmatprep.mubr.msk.f32.mxu0 %vm1457_vm2, %v1196_v25  ;;  %v2198_v8 = vpop.permute.xlu1 %2197 }
 0x354   : >>> { %8363 = vmatprep.mubr.msk.f32.mxu1 %vm1457_vm2, %v1195_v4  ;;  %8377 = vmatprep.subr.mxu0 %v2198_v8 }
 0x355   : >>> { %2143 = vrot.lane.b32.xlu1 %v10898_v13, %s10160_s25 }
 0x356   : >>> { %8318 = vmatmul.mubr.msk.f32.gmra.mxu0 %vm1457_vm2, %v1196_v25  ;;  %2581 = vrot.lane.b32.xlu0 %v10738_v46, %s10161_s27  ;;  %v11181_v10 = vpop.permute.xlu0 %2225 }
 0x357   : >>> { %8364 = vmatmul.mubr.msk.f32.gmra.mxu1 %vm1457_vm2, %v1195_v4  ;;  %8319 = vmatprep.mubr.msk.f32.mxu0 %vm1457_vm2, %v1197_v26  ;;  %v2166_v9 = vpop.permute.xlu1 %2165 }
 0x358   : >>> { %8365 = vmatprep.mubr.msk.f32.mxu1 %vm1457_vm2, %v1196_v25  ;;  %8378 = vmatpush3.msra.mxu0 %v2166_v9 }
 0x359   : >>> { %2173 = vrot.lane.b32.xlu1 %v15176_v44, %s10160_s25 }
 0x35a   : >>> { %8320 = vmatmul.mubr.msk.f32.gmra.mxu0 %vm1457_vm2, %v1197_v26  ;;  %2647 = vrot.lane.b32.xlu0 %v10740_v24, %s10161_s27  ;;  %v11192_v46 = vpop.permute.xlu0 %2255 }
 0x35b   : >>> { %8366 = vmatmul.mubr.msk.f32.gmra.mxu1 %vm1457_vm2, %v1196_v25  ;;  %8321 = vmatprep.mubr.msk.f32.mxu0 %vm1457_vm2, %v1198_v31  ;;  %v2196_v13 = vpop.permute.xlu1 %2195 }
 0x35c   : >>> { %8367 = vmatprep.mubr.msk.f32.mxu1 %vm1457_vm2, %v1197_v26  ;;  %8379 = vmatprep.subr.mxu0 %v2196_v13 }
 0x35d   : >>> { %2141 = vrot.lane.b32.xlu1 %v15177_v47, %s10160_s25 }
 0x35e   : >>> { %8322 = vmatmul.mubr.msk.f32.gmra.mxu0 %vm1457_vm2, %v1198_v31  ;;  %2677 = vrot.lane.b32.xlu0 %v10748_v49, %s10161_s27  ;;  %v11203_v24 = vpop.permute.xlu0 %2223 }
 0x35f   : >>> { %8368 = vmatmul.mubr.msk.f32.gmra.mxu1 %vm1457_vm2, %v1197_v26  ;;  %8323 = vmatprep.mubr.msk.f32.mxu0 %vm1457_vm2, %v1199_v17  ;;  %v2264_v33 = vpop.permute.xlu1 %2263 }
 0x360   : >>> { %8369 = vmatprep.mubr.msk.f32.mxu1 %vm1457_vm2, %v1198_v31  ;;  %8431 = vmatprep.subr.mxu1 %v2264_v33 }
 0x361   : >>> { %2171 = vrot.lane.b32.xlu1 %v15178_v35, %s10160_s25  ;;  %v1185_v35 = vld [vmem:[%s10273_s0] sm:$0xf] }
 0x362   : >>> { %8324 = vmatmul.mubr.msk.f32.gmra.mxu0 %vm1457_vm2, %v1199_v17  ;;  %2609 = vrot.lane.b32.xlu0 %v10762_v51, %s10161_s27  ;;  %v2254_v49 = vpop.permute.xlu0 %2253 }
 0x363   : >>> { %8370 = vmatmul.mubr.msk.f32.gmra.mxu1 %vm1457_vm2, %v1198_v31  ;;  %v2164_v37 = vpop.permute.xlu1 %2163  ;;  %8325 = vmatprep.mubr.msk.f32.mxu0 %vm1457_vm2, %v1200_v32 }
 0x364   : >>> { %8371 = vmatprep.mubr.msk.f32.mxu1 %vm1457_vm2, %v1199_v17  ;;  %8380 = vmatpush3.msra.mxu0 %v2164_v37 }
 0x365   : >>> { %2139 = vrot.lane.b32.xlu1 %v15179_v22, %s10160_s25 }
 0x366   : >>> { %2675 = vrot.lane.b32.xlu0 %v10764_v23, %s10161_s27  ;;  %v2222_v3 = vpop.permute.xlu0 %2221  ;;  %8326 = vmatmul.mubr.msk.f32.gmra.mxu0 %vm1457_vm2, %v1200_v32 }
 0x367   : >>> { %8372 = vmatmul.mubr.msk.f32.gmra.mxu1 %vm1457_vm2, %v1199_v17  ;;  %v2232_v51 = vpop.permute.xlu1 %2231 }
 0x368   : >>> { %8432 = vmatpush3.msra.mxu1 %v2232_v51  ;;  %8373 = vmatprep.mubr.msk.f32.mxu1 %vm1457_vm2, %v1200_v32 }
 0x369   : >>> { %2169 = vrot.lane.b32.xlu1 %v15180_v58, %s10160_s25 }
 0x36a   : >>> { %2577 = vrot.lane.b32.xlu0 %v10770_v52, %s10161_s27  ;;  %v2252_v5 = vpop.permute.xlu0 %2251 }
 0x36b   : >>> { %v2194_v27 = vpop.permute.xlu1 %2193  ;;  %8374 = vmatmul.mubr.msk.f32.gmra.mxu1 %vm1457_vm2, %v1200_v32 }
 0x36c   : >>> { %8381 = vmatprep.subr.mxu0 %v2194_v27 }
 0x36d   : >>> { %2137 = vrot.lane.b32.xlu1 %v10959_v34, %s10160_s25 }
 0x36e   : >>> { %2643 = vrot.lane.b32.xlu0 %v10772_v36, %s10161_s27  ;;  %v2220_v23 = vpop.permute.xlu0 %2219 }
 0x36f   : >>> { %v2262_v7 = vpop.permute.xlu1 %2261 }
 0x370   : >>> { %8433 = vmatprep.subr.mxu1 %v2262_v7 }
 0x371   : >>> { %2235 = vrot.lane.b32.xlu1 %v15181_v60, %s10160_s25 }
 0x372   : >>> { %2575 = vrot.lane.b32.xlu0 %v10786_v53, %s10161_s27  ;;  %v2250_v45 = vpop.permute.xlu0 %2249 }
 0x373   : >>> { %v2162_v52 = vpop.permute.xlu1 %2161 }
 0x374   : >>> { %8382 = vmatpush3.msra.mxu0 %v2162_v52 }
 0x375   : >>> { %2203 = vrot.lane.b32.xlu1 %v10961_v18, %s10160_s25  ;;  %8383 = vmatprep.subr.mxu0 %v11170_v43 }
 0x376   : >>> { %v2218_v36 = vpop.permute.xlu0 %2217 }
 0x377   : >>> { %v2230_v34 = vpop.permute.xlu1 %2229 }
 0x378   : >>> { %8434 = vmatpush3.msra.mxu1 %v2230_v34 }
 0x379   : >>> { %2233 = vrot.lane.b32.xlu1 %v10970_v0, %s10160_s25  ;;  %s12462_s25 = scalar_lea.vmem %s15015_s6, %s10575_s26 }
 0x37a   : >>> { %v2248_v56 = vpop.permute.xlu0 %2247 }
 0x37b   : >>> { %v2260_v55 = vpop.permute.xlu1 %2259 }
 0x37c   : >>> { %8435 = vmatprep.subr.mxu1 %v2260_v55 }
 0x37d   : >>> { %2615 = vrot.lane.b32.xlu1 %v10708_v38, %s10161_s27 }
 0x37e   : >>> { %v2216_v12 = vpop.permute.xlu0 %2215 }
 0x37f   : >>> { %v2160_v53 = vpop.permute.xlu1 %2159 }
 0x380   : >>> { %8384 = vmatpush3.msra.mxu0 %v2160_v53 }
 0x381   : >>> { %2583 = vrot.lane.b32.xlu1 %v10722_v42, %s10161_s27 }
 0x382   : >>> { %v2246_v54 = vpop.permute.xlu0 %2245 }
 0x383   : >>> { %v2228_v18 = vpop.permute.xlu1 %2227 }
 0x384   : >>> { %8436 = vmatpush3.msra.mxu1 %v2228_v18 }
 0x385   : >>> { %2611 = vrot.lane.b32.xlu1 %v10746_v48, %s10161_s27 }
 0x386   : >>> { %v2214_v42 = vpop.permute.xlu0 %2213 }
 0x387   : >>> { %v2190_v57 = vpop.permute.xlu1 %2189 }
 0x388   : >>> { %8385 = vmatprep.subr.mxu0 %v2190_v57 }
 0x389   : >>> { %2579 = vrot.lane.b32.xlu1 %v10754_v50, %s10161_s27 }
 0x38a   : >>> { %v2244_v50 = vpop.permute.xlu0 %2243 }
 0x38b   : >>> { %v2258_v0 = vpop.permute.xlu1 %2257 }
 0x38c   : >>> { %8437 = vmatprep.subr.mxu1 %v2258_v0 }
 0x38d   : >>> { %8438 = vmatpush3.msra.mxu1 %v11181_v10  ;;  %2645 = vrot.lane.b32.xlu1 %v10756_v11, %s10161_s27 }
 0x38e   : >>> { %8439 = vmatprep.subr.mxu1 %v11192_v46  ;;  %v2212_v59 = vpop.permute.xlu0 %2211 }
 0x38f   : >>> { %v2158_v38 = vpop.permute.xlu1 %2157  ;;  %8440 = vmatpush3.msra.mxu1 %v11203_v24  ;;  %v15032_v24 = vlaneseq }
 0x390   : >>> { %8441 = vmatprep.subr.mxu1 %v2254_v49  ;;  %8386 = vmatpush3.msra.mxu0 %v2158_v38 }
 0x391   : >>> { %8442 = vmatpush3.msra.mxu1 %v2222_v3  ;;  %2607 = vrot.lane.b32.xlu1 %v10778_v28, %s10161_s27  ;;  %v11264_v33 = vshrl.u32 %v15032_v24, 7 }
 0x392   : >>> { %8443 = vmatprep.subr.mxu1 %v2252_v5  ;;  %v2242_v28 = vpop.permute.xlu0 %2241 }
 0x393   : >>> { %v2188_v48 = vpop.permute.xlu1 %2187  ;;  %8444 = vmatpush3.msra.mxu1 %v2220_v23  ;;  %15182 = vst [vmem:[#allocation10_spill] sm:$0xff] %v11264_v33  ;;  %v15036_v32 = vsub.s32 0, %v11264_v33  ;;  %v15034_v49 = vsub.s32 1, %v11264_v33  ;;  %v15035_v3 = vsub.s32 2, %v11264_v33  ;;  %v15033_v27 = vsub.s32 3, %v11264_v33 }
 0x394   : >>> { %8445 = vmatprep.subr.mxu1 %v2250_v45  ;;  %8387 = vmatprep.subr.mxu0 %v2188_v48 }
 0x395   : >>> { %2673 = vrot.lane.b32.xlu1 %v10780_v29, %s10161_s27  ;;  %8446 = vmatpush3.msra.mxu1 %v2218_v36  ;;  %v11271_v37 = vrot.slane %v1185_v35, %v15036_v32  ;;  %v11276_v58 = vrot.slane %v1185_v35, %v15034_v49  ;;  %v11284_v52 = vrot.slane %v1185_v35, %v15035_v3 }
 0x396   : >>> { %8447 = vmatprep.subr.mxu1 %v2248_v56  ;;  %v2210_v19 = vpop.permute.xlu0 %2209  ;;  %v11291_v56 = vrot.slane %v1185_v35, %v15033_v27 }
 0x397   : >>> { %v2156_v11 = vpop.permute.xlu1 %2155  ;;  %8448 = vmatpush3.msra.mxu1 %v2216_v12  ;;  %15183 = vst [vmem:[#allocation4_spill] sm:$0xff] %v11271_v37  ;;  %15184 = vst [vmem:[#allocation5_spill] sm:$0xff] %v11276_v58 }
 0x398   : >>> { %8449 = vmatprep.subr.mxu1 %v2246_v54  ;;  %8388 = vmatpush3.msra.mxu0 %v2156_v11  ;;  %15185 = vst [vmem:[#allocation6_spill] sm:$0xff] %v11284_v52  ;;  %15186 = vst [vmem:[#allocation7_spill] sm:$0xff] %v11291_v56 }
 0x399   : >>> { %8450 = vmatpush3.msra.mxu1 %v2214_v42 }
 0x39a   : >>> { %8451 = vmatprep.subr.mxu1 %v2244_v50  ;;  %v2240_v29 = vpop.permute.xlu0 %2239 }
 0x39b   : >>> { %v2186_v15 = vpop.permute.xlu1 %2185  ;;  %8452 = vmatpush3.msra.mxu1 %v2212_v59 }
 0x39c   : >>> { %8453 = vmatprep.subr.mxu1 %v2242_v28  ;;  %8389 = vmatprep.subr.mxu0 %v2186_v15 }
 0x39d   : >>> { %8454 = vmatpush3.msra.mxu1 %v2210_v19 }
 0x39e   : >>> { %8455 = vmatprep.subr.mxu1 %v2240_v29  ;;  %v2208_v62 = vpop.permute.xlu0 %2207 }
 0x39f   : >>> { %v2154_v21 = vpop.permute.xlu1 %2153  ;;  %8456 = vmatpush3.msra.mxu1 %v2208_v62 }
 0x3a0   : >>> { %8390 = vmatpush3.msra.mxu0 %v2154_v21 }
 0x3a2   : >>> { %v2238_v20 = vpop.permute.xlu0 %2237 }
 0x3a3   : >>> { %v2184_v61 = vpop.permute.xlu1 %2183  ;;  %8457 = vmatprep.subr.mxu1 %v2238_v20 }
 0x3a4   : >>> { %8391 = vmatprep.subr.mxu0 %v2184_v61 }
 0x3a6   : >>> { %v2206_v39 = vpop.permute.xlu0 %2205 }
 0x3a7   : >>> { %v2152_v16 = vpop.permute.xlu1 %2151  ;;  %8458 = vmatpush3.msra.mxu1 %v2206_v39 }
 0x3a8   : >>> { %8392 = vmatpush3.msra.mxu0 %v2152_v16 }
 0x3aa   : >>> { %v2618_v26 = vpop.permute.xlu0 %2617 }
 0x3ab   : >>> { %v2182_v30 = vpop.permute.xlu1 %2181 }
 0x3ac   : >>> { %8393 = vmatprep.subr.mxu0 %v2182_v30 }
 0x3ae   : >>> { %v11259_v31 = vpop.permute.xlu0 %2585 }
 0x3af   : >>> { %v2150_v63 = vpop.permute.xlu1 %2149 }
 0x3b0   : >>> { %8394 = vmatpush3.msra.mxu0 %v2150_v63 }
 0x3b2   : >>> { %v2202_v46 = vpop.permute.xlu0 %2201 }
 0x3b3   : >>> { %v2180_v40 = vpop.permute.xlu1 %2179 }
 0x3b4   : >>> { %8395 = vmatprep.subr.mxu0 %v2180_v40 }
 0x3b6   : >>> { %v2682_v47 = vpop.permute.xlu0 %2681 }
 0x3b7   : >>> { %v2148_v2 = vpop.permute.xlu1 %2147 }
 0x3b8   : >>> { %8396 = vmatpush3.msra.mxu0 %v2148_v2 }
 0x3bb   : >>> { %v2178_v14 = vpop.permute.xlu1 %2177 }
 0x3bc   : >>> { %8397 = vmatprep.subr.mxu0 %v2178_v14 }
 0x3bf   : >>> { %v2146_v41 = vpop.permute.xlu1 %2145 }
 0x3c0   : >>> { %8398 = vmatpush3.msra.mxu0 %v2146_v41 }
 0x3c3   : >>> { %v2176_v4 = vpop.permute.xlu1 %2175 }
 0x3c4   : >>> { %8399 = vmatprep.subr.mxu0 %v2176_v4  ;;  %v11319_v4 = vld [vmem:[#allocation3 + $0x158] sm:$0xff] }
 0x3c5   : >>> { %15187 = vst [vmem:[#allocation8_spill] sm:$0xff] %v11319_v4 }
 0x3c7   : >>> { %v2144_v1 = vpop.permute.xlu1 %2143 }
 0x3c8   : >>> { %8400 = vmatpush3.msra.mxu0 %v2144_v1  ;;  %v9854_v1 = vld [vmem:[#allocation3 + $0xc8] sm:$0xff] }
 0x3cb   : >>> { %v2174_v6 = vpop.permute.xlu1 %2173 }
 0x3cc   : >>> { %8401 = vmatprep.subr.mxu0 %v2174_v6 }
 0x3cf   : >>> { %v2142_v25 = vpop.permute.xlu1 %2141 }
 0x3d0   : >>> { %8402 = vmatpush3.msra.mxu0 %v2142_v25 }
 0x3d3   : >>> { %v2172_v43 = vpop.permute.xlu1 %2171 }
 0x3d4   : >>> { %8403 = vmatprep.subr.mxu0 %v2172_v43  ;;  %v11324_v43 = vld [vmem:[#allocation3 + $0x1d0] sm:$0xff] }
 0x3d5   : >>> { %15188 = vst [vmem:[#allocation9_spill] sm:$0xff] %v11324_v43 }
 0x3d7   : >>> { %v2140_v8 = vpop.permute.xlu1 %2139 }
 0x3d8   : >>> { %8404 = vmatpush3.msra.mxu0 %v2140_v8 }
 0x3db   : >>> { %v2170_v10 = vpop.permute.xlu1 %2169 }
 0x3dc   : >>> { %8405 = vmatprep.subr.mxu0 %v2170_v10 }
 0x3df   : >>> { %v2138_v9 = vpop.permute.xlu1 %2137 }
 0x3e0   : >>> { %8406 = vmatpush3.msra.mxu0 %v2138_v9 }
 0x3e1   : >>> { %8487 = vmatprep.subr.msk.mxu0 %vm1457_vm2, %v2618_v26 }
 0x3e3   : >>> { %v2236_v44 = vpop.permute.xlu1 %2235 }
 0x3e4   : >>> { %8459 = vmatprep.subr.mxu1 %v2236_v44 }
 0x3e7   : >>> { %v2204_v13 = vpop.permute.xlu1 %2203 }
 0x3e8   : >>> { %8460 = vmatpush3.msra.mxu1 %v2204_v13 }
 0x3eb   : >>> { %v2234_v17 = vpop.permute.xlu1 %2233 }
 0x3ec   : >>> { %8461 = vmatprep.subr.mxu1 %v2234_v17 }
 0x3ed   : >>> { %8462 = vmatpush3.msra.mxu1 %v2202_v46 }
 0x3ee   : >>> { %8535 = vmatprep.subr.msk.mxu1 %vm1457_vm2, %v2682_v47 }
 0x40a   : >>> { %v1676_v22 = vpop.f32.mrf.mxu0 }
 0x40b   : >>> { %v1836_v51 = vmul.f32 0.35355338, %v1676_v22 }
 0x40c   : >>> { %v1678_v5 = vpop.f32.mrf.mxu0 }
 0x40d   : >>> { %v11280_v23 = vadd.f32 %v11271_v37, %v1836_v51  ;;  %v1837_v7 = vmul.f32 0.35355338, %v1678_v5 }
 0x40e   : >>> { %v1682_v60 = vpop.f32.mrf.mxu0 }
 0x40f   : >>> { %v11287_v45 = vadd.f32 %v11276_v58, %v1837_v7  ;;  %v1840_v34 = vmul.f32 0.35355338, %v1682_v60  ;;  %v1789_v36 = vpop.f32.mrf.mxu1 }
 0x410   : >>> { %v1838_v55 = vmul.f32 0.35355338, %v1789_v36  ;;  %v1684_v53 = vpop.f32.mrf.mxu0 }
 0x411   : >>> { %v1921_v18 = vmax.f32 %v11280_v23, %v11287_v45  ;;  %v11296_v12 = vadd.f32 %v11271_v37, %v1840_v34  ;;  %v1841_v57 = vmul.f32 0.35355338, %v1684_v53  ;;  %v1791_v0 = vpop.f32.mrf.mxu1 }
 0x412   : >>> { %v11299_v54 = vadd.f32 %v11284_v52, %v1838_v55  ;;  %v1839_v38 = vmul.f32 0.35355338, %v1791_v0  ;;  %v1688_v30 = vpop.f32.mrf.mxu0 }
 0x413   : >>> { %v11302_v42 = vadd.f32 %v11276_v58, %v1841_v57  ;;  %v1795_v48 = vpop.f32.mrf.mxu1  ;;  %v1844_v47 = vmul.f32 0.35355338, %v1688_v30 }
 0x414   : >>> { %v1922_v50 = vmax.f32 %v1921_v18, %v11299_v54  ;;  %v11306_v11 = vadd.f32 %v11291_v56, %v1839_v38  ;;  %v1842_v59 = vmul.f32 0.35355338, %v1795_v48  ;;  %v1690_v20 = vpop.f32.mrf.mxu0 }
 0x415   : >>> { %v1926_v15 = vmax.f32 %v11296_v12, %v11302_v42  ;;  %v1797_v28 = vpop.f32.mrf.mxu1  ;;  %v1845_v35 = vmul.f32 0.35355338, %v1690_v20  ;;  %v11343_v55 = vadd.f32 %v11271_v37, %v1844_v47 }
 0x416   : >>> { %v11311_v21 = vadd.f32 %v11284_v52, %v1842_v59  ;;  %v1843_v19 = vmul.f32 0.35355338, %v1797_v28  ;;  %v1923_v61 = vmax.f32 %v1922_v50, %v11306_v11  ;;  %v1694_v63 = vpop.f32.mrf.mxu0 }
 0x417   : >>> { %v1801_v39 = vpop.f32.mrf.mxu1  ;;  %v11346_v53 = vadd.f32 %v11276_v58, %v1845_v35  ;;  %v1848_v0 = vmul.f32 0.35355338, %v1694_v63 }
 0x418   : >>> { %v1927_v29 = vmax.f32 %v1926_v15, %v11311_v21  ;;  %v11316_v16 = vadd.f32 %v11291_v56, %v1843_v19  ;;  %1924 = vmax.xlane.f32.xlu0 %v1923_v61  ;;  %v1696_v40 = vpop.f32.mrf.mxu0  ;;  %v1846_v18 = vmul.f32 0.35355338, %v1801_v39 }
 0x419   : >>> { %v1803_v2 = vpop.f32.mrf.mxu1  ;;  %v1849_v38 = vmul.f32 0.35355338, %v1696_v40  ;;  %v1931_v61 = vmax.f32 %v11343_v55, %v11346_v53  ;;  %v11365_v30 = vadd.f32 %v11271_v37, %v1848_v0  ;;  %v11408_v0 = vld [vmem:[#allocation3 + $0x48] sm:$0xff] }
 0x41a   : >>> { %v1928_v62 = vmax.f32 %v1927_v29, %v11316_v16  ;;  %v1700_v14 = vpop.f32.mrf.mxu0  ;;  %v11362_v29 = vadd.f32 %v11284_v52, %v1846_v18  ;;  %v1847_v63 = vmul.f32 0.35355338, %v1803_v2  ;;  %v11400_v18 = vld [vmem:[#allocation3 + $0xc0] sm:$0xff]  ;;  %15191 = vst [vmem:[#allocation13_spill] sm:$0xff] %v11408_v0 }
 0x41b   : >>> { %v1807_v41 = vpop.f32.mrf.mxu1  ;;  %v1852_v13 = vmul.f32 0.35355338, %v1700_v14  ;;  %v11368_v20 = vadd.f32 %v11276_v58, %v1849_v38  ;;  %15189 = vst [vmem:[#allocation11_spill] sm:$0xff] %v11400_v18  ;;  %v11412_v38 = vld [vmem:[#allocation3 + $0x40] sm:$0xff] }
 0x41c   : >>> { %1929 = vmax.xlane.f32.xlu1 %v1928_v62  ;;  %v1702_v6 = vpop.f32.mrf.mxu0  ;;  %v1850_v39 = vmul.f32 0.35355338, %v1807_v41  ;;  %v11383_v2 = vadd.f32 %v11291_v56, %v1847_v63  ;;  %15192 = vst [vmem:[#allocation14_spill] sm:$0xff] %v11412_v38 }
 0x41d   : >>> { %v1809_v25 = vpop.f32.mrf.mxu1  ;;  %v1853_v17 = vmul.f32 0.35355338, %v1702_v6  ;;  %v11337_v5 = vadd.f32 %v11271_v37, %v1852_v13 }
 0x41e   : >>> { %v11328_v8 = vpop.f32.mrf.mxu0  ;;  %v11386_v41 = vadd.f32 %v11284_v52, %v1850_v39  ;;  %v1851_v13 = vmul.f32 0.35355338, %v1809_v25 }
 0x41f   : >>> { %v1813_v26 = vpop.f32.mrf.mxu1  ;;  %v11340_v7 = vadd.f32 %v11276_v58, %v1853_v17 }
 0x420   : >>> { %v11330_v10 = vpop.f32.mrf.mxu0  ;;  %v1854_v60 = vmul.f32 0.35355338, %v1813_v26 }
 0x421   : >>> { %v1815_v9 = vpop.f32.mrf.mxu1  ;;  %v1941_v48 = vmax.f32 %v11337_v5, %v11340_v7 }
 0x422   : >>> { %v1712_v44 = vpop.f32.mrf.mxu0  ;;  %v11351_v50 = vadd.f32 %v11284_v52, %v1854_v60  ;;  %v1855_v59 = vmul.f32 0.35355338, %v1815_v9  ;;  %v1932_v9 = vmax.f32 %v1931_v61, %v11362_v29  ;;  %v11395_v60 = vadd.f32 %v11291_v56, %v1851_v13 }
 0x423   : >>> { %v11332_v46 = vpop.f32.mrf.mxu1  ;;  %v1860_v34 = vmul.f32 0.35355338, %v1712_v44  ;;  %v1936_v44 = vmax.f32 %v11365_v30, %v11368_v20  ;;  %v1857_v61 = vmul.f32 0.35355338, %v11330_v10 }
 0x424   : >>> { %v1714_v22 = vpop.f32.mrf.mxu0  ;;  %v1942_v40 = vmax.f32 %v1941_v48, %v11351_v50  ;;  %v11372_v14 = vadd.f32 %v11291_v56, %v1855_v59  ;;  %v11416_v48 = vld [vmem:[#allocation3 + $0x148] sm:$0xff]  ;;  %v11420_v59 = vld [vmem:[#allocation3 + $0xb8] sm:$0xff] }
 0x425   : >>> { %v11334_v51 = vpop.f32.mrf.mxu1  ;;  %v1861_v36 = vmul.f32 0.35355338, %v1714_v22  ;;  %v11354_v15 = vadd.f32 %v11271_v37, %v1860_v34  ;;  %v1937_v22 = vmax.f32 %v1936_v44, %v11386_v41  ;;  %v1933_v34 = vmax.f32 %v1932_v9, %v11383_v2  ;;  %15193 = vst [vmem:[#allocation15_spill] sm:$0xff] %v11416_v48  ;;  %15194 = vst [vmem:[#allocation16_spill] sm:$0xff] %v11420_v59  ;;  %v11449_v44 = vld [vmem:[#allocation3 + $0xb0] sm:$0xff] }
 0x426   : >>> { %v1943_v35 = vmax.f32 %v1942_v40, %v11372_v14  ;;  %v11434_v39 = vadd.f32 %v11276_v58, %v1857_v61  ;;  %v1858_v40 = vmul.f32 0.35355338, %v11332_v46  ;;  %v1859_v9 = vmul.f32 0.35355338, %v11334_v51  ;;  %15197 = vst [vmem:[#allocation19_spill] sm:$0xff] %v11449_v44 }
 0x427   : >>> { %v1825_v57 = vpop.f32.mrf.mxu1  ;;  %v11357_v28 = vadd.f32 %v11276_v58, %v1861_v36  ;;  %v1938_v25 = vmax.f32 %v1937_v22, %v11395_v60 }
 0x428   : >>> { %v1862_v19 = vmul.f32 0.35355338, %v1825_v57  ;;  %v11404_v57 = vld [vmem:[#allocation3 + $0x1c8] sm:$0xff]  ;;  %v11446_v10 = vadd.f32 %v11284_v52, %v1858_v40 }
 0x429   : >>> { %v1827_v62 = vpop.f32.mrf.mxu1  ;;  %15190 = vst [vmem:[#allocation12_spill] sm:$0xff] %v11404_v57 }
 0x42a   : >>> { %v11377_v6 = vadd.f32 %v11284_v52, %v1862_v19  ;;  %v1863_v26 = vmul.f32 0.35355338, %v1827_v62  ;;  %v1856_v19 = vmul.f32 0.35355338, %v11328_v8  ;;  %v11426_v62 = vld [vmem:[#allocation3 + $0x38] sm:$0xff] }
 0x42b   : >>> { %15195 = vst [vmem:[#allocation17_spill] sm:$0xff] %v11426_v62 }
 0x42c   : >>> { %v11390_v47 = vadd.f32 %v11291_v56, %v1863_v26  ;;  %v11431_v63 = vadd.f32 %v11271_v37, %v1856_v19  ;;  %v11439_v26 = vld [vmem:[#allocation3 + $0x140] sm:$0xff] }
 0x42d   : >>> { %2641 = vrot.lane.b32.xlu1 %v11319_v4, %s10161_s27  ;;  %15196 = vst [vmem:[#allocation18_spill] sm:$0xff] %v11439_v26 }
 0x42e   : >>> { %2605 = vrot.lane.b32.xlu0 %v9854_v1, %s10161_s27  ;;  %v1951_v1 = vmax.f32 %v11354_v15, %v11357_v28  ;;  %v1946_v8 = vmax.f32 %v11431_v63, %v11434_v39 }
 0x430   : >>> { %v1952_v17 = vmax.f32 %v1951_v1, %v11377_v6  ;;  %v11437_v1 = vpop.permute.xlu1 %2615  ;;  %v1947_v13 = vmax.f32 %v1946_v8, %v11446_v10 }
 0x432   : >>> { %2671 = vrot.lane.b32.xlu0 %v11324_v43, %s10161_s27  ;;  %v1953_v36 = vmax.f32 %v1952_v17, %v11390_v47  ;;  %v11457_v17 = vadd.f32 %v11291_v56, %v1859_v9  ;;  %v11553_v43 = vld [vmem:[#allocation3 + $0xa8] sm:$0xff] }
 0x433   : >>> { %15208 = vst [vmem:[#allocation30_spill] sm:$0xff] %v11553_v43 }
 0x434   : >>> { %v11453_v46 = vpop.permute.xlu1 %2583  ;;  %v1948_v22 = vmax.f32 %v1947_v13, %v11457_v17 }
 0x438   : >>> { %v11464_v51 = vpop.permute.xlu1 %2611 }
 0x43c   : >>> { %v11476_v19 = vpop.permute.xlu1 %2579 }
 0x440   : >>> { %v11480_v40 = vpop.permute.xlu1 %2645 }
 0x444   : >>> { %v11484_v9 = vpop.permute.xlu1 %2607 }
 0x445   : >>> { %15201 = vst [vmem:[#allocation23_spill] sm:$0xff] %v11484_v9 }
 0x448   : >>> { %v11492_v24 = vpop.permute.xlu1 %2673 }
 0x451   : >>> { %1934 = vmax.xlane.f32.xlu0 %v1933_v34  ;;  %1944 = vmax.xlane.f32.xlu1 %v1943_v35  ;;  %v11459_v35 = vld [vmem:[#allocation3 + $0x1b8] sm:$0xff]  ;;  %v11466_v34 = vpop.permute.xlu0 %2649 }
 0x452   : >>> { %15198 = vst [vmem:[#allocation20_spill] sm:$0xff] %v11459_v35 }
 0x455   : >>> { %1939 = vmax.xlane.f32.xlu0 %v1938_v25  ;;  %1954 = vmax.xlane.f32.xlu1 %v1953_v36  ;;  %v11468_v36 = vld [vmem:[#allocation3 + $0x30] sm:$0xff]  ;;  %v11472_v25 = vld [vmem:[#allocation3 + $0x138] sm:$0xff]  ;;  %v11478_v61 = vpop.permute.xlu0 %2613 }
 0x456   : >>> { %15199 = vst [vmem:[#allocation21_spill] sm:$0xff] %v11468_v36  ;;  %15200 = vst [vmem:[#allocation22_spill] sm:$0xff] %v11472_v25 }
 0x459   : >>> { %v11482_v8 = vpop.permute.xlu0 %2679 }
 0x45d   : >>> { %v11486_v13 = vpop.permute.xlu0 %2581 }
 0x461   : >>> { %v11494_v27 = vpop.permute.xlu0 %2647 }
 0x466   : >>> { %2603 = vrot.lane.b32.xlu1 %v11400_v18, %s10161_s27 }
 0x46a   : >>> { %2669 = vrot.lane.b32.xlu1 %v11404_v57, %s10161_s27 }
 0x46b   : >>> { %2573 = vrot.lane.b32.xlu0 %v11408_v0, %s10161_s27 }
 0x46e   : >>> { %2571 = vrot.lane.b32.xlu1 %v11412_v38, %s10161_s27 }
 0x472   : >>> { %2637 = vrot.lane.b32.xlu1 %v11416_v48, %s10161_s27  ;;  %v11543_v48 = vld [vmem:[#allocation3 + $0x1c0] sm:$0xff] }
 0x473   : >>> { %15205 = vst [vmem:[#allocation27_spill] sm:$0xff] %v11543_v48 }
 0x476   : >>> { %2601 = vrot.lane.b32.xlu1 %v11420_v59, %s10161_s27 }
 0x47a   : >>> { %2569 = vrot.lane.b32.xlu1 %v11426_v62, %s10161_s27  ;;  %v11500_v62 = vpop.permute.xlu0 %2677 }
 0x47e   : >>> { %2635 = vrot.lane.b32.xlu1 %v11439_v26, %s10161_s27 }
 0x482   : >>> { %2599 = vrot.lane.b32.xlu1 %v11449_v44, %s10161_s27 }
 0x486   : >>> { %2665 = vrot.lane.b32.xlu1 %v11459_v35, %s10161_s27 }
 0x48a   : >>> { %1949 = vmax.xlane.f32.xlu0 %v1948_v22  ;;  %2567 = vrot.lane.b32.xlu1 %v11468_v36, %s10161_s27  ;;  %v11488_v22 = vld [vmem:[#allocation3 + $0x150] sm:$0xff]  ;;  %v1718_v36 = vpop.f32.mrf.mxu0 }
 0x48b   : >>> { %15202 = vst [vmem:[#allocation24_spill] sm:$0xff] %v11488_v22  ;;  %v1864_v0 = vmul.f32 0.35355338, %v1718_v36 }
 0x48c   : >>> { %v1720_v18 = vpop.f32.mrf.mxu0 }
 0x48d   : >>> { %v1865_v26 = vmul.f32 0.35355338, %v1720_v18 }
 0x48e   : >>> { %2633 = vrot.lane.b32.xlu1 %v11472_v25, %s10161_s27 }
 0x4a0   : >>> { %2639 = vrot.lane.b32.xlu0 %v11488_v22, %s10161_s27 }
 0x4a5   : >>> { %v1930_v49 = vpop.xlane.xlu1 %1929 }
 0x4a6   : >>> { %v1965_v3 = vsub.f32 %v11296_v12, %v1930_v49  ;;  %v1966_v32 = vsub.f32 %v11302_v42, %v1930_v49  ;;  %v1967_v33 = vsub.f32 %v11311_v21, %v1930_v49  ;;  %v1968_v44 = vsub.f32 %v11316_v16, %v1930_v49  ;;  %v11502_v12 = vpop.permute.xlu0 %2609  ;;  %v1831_v42 = vpop.f32.mrf.mxu1 }
 0x4a7   : >>> { %v11505_v21 = vadd.f32 %v11271_v37, %v1864_v0  ;;  %v11508_v49 = vadd.f32 %v11276_v58, %v1865_v26 }
 0x4a8   : >>> { %v2001_v59 = vmul.f32 1.442695, %v1965_v3  ;;  %v2003_v38 = vmul.f32 1.442695, %v1966_v32  ;;  %v2005_v25 = vmul.f32 1.442695, %v1967_v33  ;;  %v1833_v32 = vpop.f32.mrf.mxu1 }
 0x4a9   : >>> { %v2007_v35 = vmul.f32 1.442695, %v1968_v44  ;;  %v1866_v3 = vmul.f32 0.35355338, %v1831_v42  ;;  %v1956_v16 = vmax.f32 %v11505_v21, %v11508_v49  ;;  %v1867_v18 = vmul.f32 0.35355338, %v1833_v32 }
 0x4aa   : >>> { %9533 = vpow2.f32 %v2001_v59  ;;  %v11510_v33 = vpop.permute.xlu0 %2675 }
 0x4ab   : >>> { %9535 = vpow2.f32 %v2003_v38  ;;  %v11515_v38 = vadd.f32 %v11284_v52, %v1866_v3  ;;  %v11523_v26 = vadd.f32 %v11291_v56, %v1867_v18 }
 0x4ac   : >>> { %9537 = vpow2.f32 %v2005_v25 }
 0x4ad   : >>> { %9539 = vpow2.f32 %v2007_v35  ;;  %v1957_v0 = vmax.f32 %v1956_v16, %v11515_v38 }
 0x4ae   : >>> { %v11529_v25 = vpop.permute.xlu0 %2577 }
 0x4af   : >>> { %v1958_v52 = vmax.f32 %v1957_v0, %v11523_v26  ;;  %v11550_v0 = vpop.permute.xlu1 %2641 }
 0x4b0   : >>> { %15207 = vst [vmem:[#allocation29_spill] sm:$0xff] %v11550_v0 }
 0x4b2   : >>> { %v11536_v16 = vpop.permute.xlu0 %2643 }
 0x4b6   : >>> { %v11538_v18 = vpop.permute.xlu0 %2575 }
 0x4b7   : >>> { %v11517_v59 = vpop.eup %9533  ;;  %15203 = vst [vmem:[#allocation25_spill] sm:$0xff] %v11538_v18 }
 0x4b8   : >>> { %v11519_v44 = vpop.eup %9535 }
 0x4b9   : >>> { %v2062_v35 = vadd.f32 %v11519_v44, %v11517_v59  ;;  %v11527_v36 = vpop.eup %9537 }
 0x4ba   : >>> { %v11532_v3 = vpop.eup %9539  ;;  %v1925_v56 = vpop.xlane.xlu0 %1924 }
 0x4bb   : >>> { %v2063_v42 = vadd.f32 %v11527_v36, %v2062_v35  ;;  %v1961_v58 = vsub.f32 %v11280_v23, %v1925_v56  ;;  %v1962_v35 = vsub.f32 %v11287_v45, %v1925_v56  ;;  %v1964_v4 = vsub.f32 %v11306_v11, %v1925_v56 }
 0x4bd   : >>> { %v2064_v32 = vadd.f32 %v11532_v3, %v2063_v42  ;;  %v1995_v23 = vmul.f32 1.442695, %v1962_v35  ;;  %v1999_v9 = vmul.f32 1.442695, %v1964_v4 }
 0x4be   : >>> { %v11540_v37 = vpop.permute.xlu0 %2605 }
 0x4bf   : >>> { %2065 = vadd.xlane.f32.xlu1 %v2064_v32  ;;  %1959 = vmax.xlane.f32.xlu0 %v1958_v52  ;;  %15204 = vst [vmem:[#allocation26_spill] sm:$0xff] %v11540_v37  ;;  %v1963_v52 = vsub.f32 %v11299_v54, %v1925_v56  ;;  %v1993_v32 = vmul.f32 1.442695, %v1961_v58 }
 0x4c1   : >>> { %v1997_v37 = vmul.f32 1.442695, %v1963_v52  ;;  %9541 = vpow2.f32 %v1993_v32 }
 0x4c2   : >>> { %v11548_v42 = vpop.permute.xlu0 %2671  ;;  %9543 = vpow2.f32 %v1995_v23 }
 0x4c3   : >>> { %15206 = vst [vmem:[#allocation28_spill] sm:$0xff] %v11548_v42  ;;  %9545 = vpow2.f32 %v1997_v37 }
 0x4d5   : >>> { %2667 = vrot.lane.b32.xlu0 %v11543_v48, %s10161_s27 }
 0x4d9   : >>> { %2597 = vrot.lane.b32.xlu0 %v11553_v43, %s10161_s27 }
 0x4da   : >>> { %v1935_v57 = vpop.xlane.xlu0 %1934  ;;  %v1945_v22 = vpop.xlane.xlu1 %1944 }
 0x4db   : >>> { %v1969_v48 = vsub.f32 %v11343_v55, %v1935_v57  ;;  %v1970_v45 = vsub.f32 %v11346_v53, %v1935_v57  ;;  %v1971_v18 = vsub.f32 %v11362_v29, %v1935_v57  ;;  %v1977_v58 = vsub.f32 %v11337_v5, %v1945_v22 }
 0x4dc   : >>> { %v1978_v43 = vsub.f32 %v11340_v7, %v1945_v22  ;;  %v1972_v55 = vsub.f32 %v11383_v2, %v1935_v57  ;;  %v1980_v2 = vsub.f32 %v11372_v14, %v1945_v22 }
 0x4dd   : >>> { %v2009_v54 = vmul.f32 1.442695, %v1969_v48  ;;  %v2011_v42 = vmul.f32 1.442695, %v1970_v45  ;;  %v2013_v56 = vmul.f32 1.442695, %v1971_v18  ;;  %v1979_v48 = vsub.f32 %v11351_v50, %v1945_v22 }
 0x4de   : >>> { %v1940_v35 = vpop.xlane.xlu0 %1939  ;;  %v2025_v53 = vmul.f32 1.442695, %v1977_v58  ;;  %v2027_v29 = vmul.f32 1.442695, %v1978_v43  ;;  %v2015_v37 = vmul.f32 1.442695, %v1972_v55 }
 0x4df   : >>> { %v1973_v0 = vsub.f32 %v11365_v30, %v1940_v35  ;;  %v1974_v11 = vsub.f32 %v11368_v20, %v1940_v35  ;;  %9547 = vpow2.f32 %v2009_v54  ;;  %v1975_v5 = vsub.f32 %v11386_v41, %v1940_v35  ;;  %v11570_v41 = vpop.eup %9541 }
 0x4e0   : >>> { %9549 = vpow2.f32 %v2011_v42  ;;  %v1976_v4 = vsub.f32 %v11395_v60, %v1940_v35  ;;  %v2029_v18 = vmul.f32 1.442695, %v1979_v48  ;;  %v11572_v50 = vpop.eup %9543  ;;  %v2031_v57 = vmul.f32 1.442695, %v1980_v2 }
 0x4e1   : >>> { %9551 = vpow2.f32 %v1999_v9  ;;  %v2017_v7 = vmul.f32 1.442695, %v1973_v0  ;;  %v2019_v30 = vmul.f32 1.442695, %v1974_v11  ;;  %v2021_v20 = vmul.f32 1.442695, %v1975_v5  ;;  %v11574_v60 = vpop.eup %9545 }
 0x4e2   : >>> { %9553 = vpow2.f32 %v2013_v56  ;;  %v2023_v43 = vmul.f32 1.442695, %v1976_v4  ;;  %v2057_v42 = vadd.f32 %v11572_v50, %v11570_v41  ;;  %v11618_v2 = vpop.permute.xlu0 %2573 }
 0x4e3   : >>> { %9555 = vpow2.f32 %v2025_v53 }
 0x4e4   : >>> { %9557 = vpow2.f32 %v2027_v29  ;;  %v2058_v32 = vadd.f32 %v11574_v60, %v2057_v42 }
 0x4e5   : >>> { %9559 = vpow2.f32 %v2017_v7 }
 0x4e6   : >>> { %9561 = vpow2.f32 %v2019_v30 }
 0x4e7   : >>> { %9563 = vpow2.f32 %v2015_v37 }
 0x4e8   : >>> { %9565 = vpow2.f32 %v2021_v20 }
 0x4e9   : >>> { %9567 = vpow2.f32 %v2029_v18 }
 0x4ea   : >>> { %9569 = vpow2.f32 %v2023_v43  ;;  %v1955_v43 = vpop.xlane.xlu1 %1954 }
 0x4eb   : >>> { %9571 = vpow2.f32 %v2031_v57 }
 0x4ec   : >>> { %v11576_v9 = vpop.eup %9547 }
 0x4ed   : >>> { %v11580_v0 = vpop.eup %9549 }
 0x4ee   : >>> { %v11582_v14 = vpop.eup %9551  ;;  %v2067_v23 = vadd.f32 %v11580_v0, %v11576_v9 }
 0x4ef   : >>> { %v11584_v22 = vpop.eup %9553  ;;  %v2059_v11 = vadd.f32 %v11582_v14, %v2058_v32 }
 0x4f0   : >>> { %v11586_v52 = vpop.eup %9555  ;;  %v2068_v55 = vadd.f32 %v11584_v22, %v2067_v23 }
 0x4f1   : >>> { %v11591_v45 = vpop.eup %9557 }
 0x4f2   : >>> { %v11593_v54 = vpop.eup %9559  ;;  %v2077_v53 = vadd.f32 %v11591_v45, %v11586_v52 }
 0x4f3   : >>> { %v11595_v58 = vpop.eup %9561 }
 0x4f4   : >>> { %v11597_v35 = vpop.eup %9563  ;;  %v2072_v56 = vadd.f32 %v11595_v58, %v11593_v54 }
 0x4f5   : >>> { %v11605_v29 = vpop.eup %9565  ;;  %v2069_v30 = vadd.f32 %v11597_v35, %v2068_v55 }
 0x4f6   : >>> { %v11607_v5 = vpop.eup %9567  ;;  %v2073_v48 = vadd.f32 %v11605_v29, %v2072_v56 }
 0x4f7   : >>> { %v11610_v7 = vpop.eup %9569  ;;  %v2078_v37 = vadd.f32 %v11607_v5, %v2077_v53 }
 0x4f8   : >>> { %2060 = vadd.xlane.f32.xlu0 %v2059_v11  ;;  %v2074_v4 = vadd.f32 %v11610_v7, %v2073_v48  ;;  %v11615_v20 = vpop.eup %9571  ;;  %v1985_v11 = vsub.f32 %v11354_v15, %v1955_v43  ;;  %v11625_v48 = vld [vmem:[#allocation3 + $0x28] sm:$0xff] }
 0x4f9   : >>> { %v2079_v18 = vadd.f32 %v11615_v20, %v2078_v37  ;;  %15209 = vst [vmem:[#allocation31_spill] sm:$0xff] %v11625_v48  ;;  %v11630_v37 = vld [vmem:[#allocation3 + $0xa0] sm:$0xff] }
 0x4fa   : >>> { %2075 = vadd.xlane.f32.xlu1 %v2074_v4  ;;  %v1986_v4 = vsub.f32 %v11357_v28, %v1955_v43  ;;  %15210 = vst [vmem:[#allocation32_spill] sm:$0xff] %v11630_v37 }
 0x4fc   : >>> { %2070 = vadd.xlane.f32.xlu0 %v2069_v30  ;;  %v2043_v15 = vmul.f32 1.442695, %v1986_v4 }
 0x500   : >>> { %2080 = vadd.xlane.f32.xlu0 %v2079_v18 }
 0x513   : >>> { %v1950_v57 = vpop.xlane.xlu0 %1949 }
 0x514   : >>> { %v1981_v42 = vsub.f32 %v11431_v63, %v1950_v57  ;;  %v1982_v32 = vsub.f32 %v11434_v39, %v1950_v57  ;;  %v1983_v23 = vsub.f32 %v11446_v10, %v1950_v57  ;;  %v1984_v56 = vsub.f32 %v11457_v17, %v1950_v57 }
 0x515   : >>> { %v2041_v39 = vmul.f32 1.442695, %v1985_v11  ;;  %v1987_v10 = vsub.f32 %v11377_v6, %v1955_v43  ;;  %v1988_v17 = vsub.f32 %v11390_v47, %v1955_v43 }
 0x516   : >>> { %v2033_v55 = vmul.f32 1.442695, %v1981_v42  ;;  %v2035_v53 = vmul.f32 1.442695, %v1982_v32  ;;  %2565 = vrot.lane.b32.xlu0 %v11625_v48, %s10161_s27  ;;  %v2037_v30 = vmul.f32 1.442695, %v1983_v23 }
 0x517   : >>> { %v2039_v63 = vmul.f32 1.442695, %v1984_v56  ;;  %v2045_v28 = vmul.f32 1.442695, %v1987_v10  ;;  %v2047_v57 = vmul.f32 1.442695, %v1988_v17  ;;  %v11670_v17 = vpop.permute.xlu0 %2639 }
 0x518   : >>> { %9573 = vpow2.f32 %v2033_v55  ;;  %v11666_v10 = vld [vmem:[#allocation3 + $0x130] sm:$0xff] }
 0x519   : >>> { %9575 = vpow2.f32 %v2035_v53  ;;  %15218 = vst [vmem:[#allocation40_spill] sm:$0xff] %v11666_v10 }
 0x51a   : >>> { %2595 = vrot.lane.b32.xlu0 %v11630_v37, %s10161_s27  ;;  %9577 = vpow2.f32 %v2037_v30  ;;  %v11684_v37 = vld [vmem:[#allocation3 + $0x128] sm:$0xff] }
 0x51b   : >>> { %9579 = vpow2.f32 %v2039_v63  ;;  %15220 = vst [vmem:[#allocation42_spill] sm:$0xff] %v11684_v37 }
 0x51c   : >>> { %9581 = vpow2.f32 %v2041_v39  ;;  %v11660_v39 = vpop.permute.xlu1 %2603 }
 0x51d   : >>> { %9583 = vpow2.f32 %v2043_v15  ;;  %v11662_v15 = vld [vmem:[#allocation3 + $0x1b0] sm:$0xff] }
 0x51e   : >>> { %9585 = vpow2.f32 %v2045_v28  ;;  %15217 = vst [vmem:[#allocation39_spill] sm:$0xff] %v11662_v15 }
 0x51f   : >>> { %9587 = vpow2.f32 %v2047_v57  ;;  %v11674_v57 = vld [vmem:[#allocation3 + $0x1a8] sm:$0xff] }
 0x520   : >>> { %v11672_v28 = vpop.permute.xlu1 %2669  ;;  %15219 = vst [vmem:[#allocation41_spill] sm:$0xff] %v11674_v57 }
 0x525   : >>> { %v11636_v18 = vpop.eup %9573 }
 0x526   : >>> { %15211 = vst [vmem:[#allocation33_spill] sm:$0xff] %v11636_v18  ;;  %v11638_v42 = vpop.eup %9575 }
 0x527   : >>> { %v2082_v32 = vadd.f32 %v11638_v42, %v11636_v18  ;;  %v11642_v23 = vpop.eup %9577 }
 0x528   : >>> { %15212 = vst [vmem:[#allocation34_spill] sm:$0xff] %v11642_v23  ;;  %v11645_v56 = vpop.eup %9579 }
 0x529   : >>> { %v2083_v6 = vadd.f32 %v11642_v23, %v2082_v32  ;;  %v11647_v11 = vpop.eup %9581  ;;  %v11778_v23 = vld [vmem:[#allocation3 + $0x88] sm:$0xff] }
 0x52a   : >>> { %15213 = vst [vmem:[#allocation35_spill] sm:$0xff] %v11647_v11  ;;  %v11650_v43 = vpop.eup %9583 }
 0x52b   : >>> { %v2084_v47 = vadd.f32 %v11645_v56, %v2083_v6  ;;  %15214 = vst [vmem:[#allocation36_spill] sm:$0xff] %v11650_v43  ;;  %v2087_v55 = vadd.f32 %v11650_v43, %v11647_v11  ;;  %v11654_v53 = vpop.eup %9585  ;;  %v11766_v11 = vld [vmem:[#allocation3 + $0x18] sm:$0xff] }
 0x52c   : >>> { %15215 = vst [vmem:[#allocation37_spill] sm:$0xff] %v11654_v53  ;;  %v11657_v30 = vpop.eup %9587  ;;  %15234 = vst [vmem:[#allocation56_spill] sm:$0xff] %v11766_v11 }
 0x52d   : >>> { %2085 = vadd.xlane.f32.xlu1 %v2084_v47  ;;  %v2088_v4 = vadd.f32 %v11654_v53, %v2087_v55  ;;  %15216 = vst [vmem:[#allocation38_spill] sm:$0xff] %v11657_v30 }
 0x52f   : >>> { %v2089_v63 = vadd.f32 %v11657_v30, %v2088_v4  ;;  %v11681_v4 = vpop.permute.xlu1 %2571  ;;  %v11774_v30 = vld [vmem:[#allocation3 + $0x10] sm:$0xff] }
 0x530   : >>> { %15236 = vst [vmem:[#allocation58_spill] sm:$0xff] %v11774_v30 }
 0x539   : >>> { %2090 = vadd.xlane.f32.xlu0 %v2089_v63 }
 0x53e   : >>> { %2663 = vrot.lane.b32.xlu1 %v11662_v15, %s10161_s27 }
 0x542   : >>> { %2631 = vrot.lane.b32.xlu1 %v11666_v10, %s10161_s27 }
 0x546   : >>> { %2661 = vrot.lane.b32.xlu1 %v11674_v57, %s10161_s27 }
 0x548   : >>> { %v1960_v32 = vpop.xlane.xlu0 %1959 }
 0x549   : >>> { %v1989_v6 = vsub.f32 %v11505_v21, %v1960_v32  ;;  %v1990_v47 = vsub.f32 %v11508_v49, %v1960_v32  ;;  %v1991_v55 = vsub.f32 %v11515_v38, %v1960_v32  ;;  %v1992_v63 = vsub.f32 %v11523_v26, %v1960_v32  ;;  %v11688_v21 = vld [vmem:[#allocation3 + $0x1a0] sm:$0xff]  ;;  %v11692_v49 = vpop.permute.xlu1 %2637  ;;  %v11700_v32 = vld [vmem:[#allocation3 + $0x198] sm:$0xff] }
 0x54a   : >>> { %2629 = vrot.lane.b32.xlu1 %v11684_v37, %s10161_s27  ;;  %15221 = vst [vmem:[#allocation43_spill] sm:$0xff] %v11688_v21  ;;  %v11694_v38 = vld [vmem:[#allocation3 + $0x120] sm:$0xff]  ;;  %15223 = vst [vmem:[#allocation45_spill] sm:$0xff] %v11700_v32 }
 0x54b   : >>> { %v2049_v48 = vmul.f32 1.442695, %v1989_v6  ;;  %v2051_v10 = vmul.f32 1.442695, %v1990_v47  ;;  %v2053_v15 = vmul.f32 1.442695, %v1991_v55 }
 0x54c   : >>> { %v2055_v57 = vmul.f32 1.442695, %v1992_v63  ;;  %15222 = vst [vmem:[#allocation44_spill] sm:$0xff] %v11694_v38  ;;  %v11719_v63 = vld [vmem:[#allocation3 + $0x190] sm:$0xff] }
 0x54d   : >>> { %9589 = vpow2.f32 %v2049_v48  ;;  %v11698_v26 = vpop.permute.xlu1 %2601  ;;  %15228 = vst [vmem:[#allocation50_spill] sm:$0xff] %v11719_v63 }
 0x54e   : >>> { %9591 = vpow2.f32 %v2051_v10  ;;  %2659 = vrot.lane.b32.xlu1 %v11688_v21, %s10161_s27  ;;  %v11706_v10 = vld [vmem:[#allocation3 + $0x118] sm:$0xff]  ;;  %v11728_v21 = vld [vmem:[#allocation3 + $0x110] sm:$0xff] }
 0x54f   : >>> { %9593 = vpow2.f32 %v2053_v15  ;;  %15225 = vst [vmem:[#allocation47_spill] sm:$0xff] %v11706_v10  ;;  %15230 = vst [vmem:[#allocation52_spill] sm:$0xff] %v11728_v21 }
 0x550   : >>> { %9595 = vpow2.f32 %v2055_v57 }
 0x551   : >>> { %v11712_v57 = vpop.permute.xlu1 %2569 }
 0x552   : >>> { %2627 = vrot.lane.b32.xlu1 %v11694_v38, %s10161_s27 }
 0x555   : >>> { %v11726_v38 = vpop.permute.xlu1 %2635 }
 0x556   : >>> { %2657 = vrot.lane.b32.xlu1 %v11700_v32, %s10161_s27 }
 0x559   : >>> { %v11736_v37 = vpop.permute.xlu1 %2599 }
 0x55a   : >>> { %v11704_v48 = vpop.eup %9589  ;;  %2625 = vrot.lane.b32.xlu1 %v11706_v10, %s10161_s27 }
 0x55b   : >>> { %15224 = vst [vmem:[#allocation46_spill] sm:$0xff] %v11704_v48  ;;  %v11710_v15 = vpop.eup %9591 }
 0x55c   : >>> { %15226 = vst [vmem:[#allocation48_spill] sm:$0xff] %v11710_v15  ;;  %v2092_v6 = vadd.f32 %v11710_v15, %v11704_v48  ;;  %v11716_v47 = vpop.eup %9593  ;;  %v9887_v48 = vld [vmem:[%s10933_s19 + $0x18] sm:$0xff] }
 0x55d   : >>> { %15227 = vst [vmem:[#allocation49_spill] sm:$0xff] %v11716_v47  ;;  %v11723_v32 = vpop.eup %9595  ;;  %v11758_v15 = vld [vmem:[#allocation3 + $0x98] sm:$0xff] }
 0x55e   : >>> { %v2093_v55 = vadd.f32 %v11716_v47, %v2092_v6  ;;  %2655 = vrot.lane.b32.xlu1 %v11719_v63, %s10161_s27  ;;  %15229 = vst [vmem:[#allocation51_spill] sm:$0xff] %v11723_v32  ;;  %v11732_v6 = vld [vmem:[#allocation3 + $0x188] sm:$0xff]  ;;  %v9885_v47 = vld [vmem:[#allocation3 + $0x180] sm:$0xff]  ;;  %15233 = vst [vmem:[#allocation55_spill] sm:$0xff] %v11758_v15 }
 0x55f   : >>> { %15231 = vst [vmem:[#allocation53_spill] sm:$0xff] %v11732_v6  ;;  %v9884_v63 = vld [vmem:[#allocation3 + $0x108] sm:$0xff] }
 0x560   : >>> { %v2094_v10 = vadd.f32 %v11723_v32, %v2093_v55  ;;  %v11739_v55 = vpop.permute.xlu1 %2665  ;;  %v11750_v32 = vld [vmem:[#allocation3 + $0x20] sm:$0xff] }
 0x561   : >>> { %15232 = vst [vmem:[#allocation54_spill] sm:$0xff] %v11750_v32 }
 0x562   : >>> { %2095 = vadd.xlane.f32.xlu0 %v2094_v10  ;;  %2623 = vrot.lane.b32.xlu1 %v11728_v21, %s10161_s27  ;;  %v9886_v10 = vld [vmem:[%s10933_s19 + $0x8] sm:$0xff] }
 0x564   : >>> { %v11744_v21 = vpop.permute.xlu1 %2567 }
 0x566   : >>> { %2653 = vrot.lane.b32.xlu1 %v11732_v6, %s10161_s27  ;;  %v11748_v6 = vpop.permute.xlu0 %2667 }
 0x56a   : >>> { %2621 = vrot.lane.b32.xlu1 %v9884_v63, %s10161_s27  ;;  %v11754_v63 = vpop.permute.xlu1 %2633 }
 0x56e   : >>> { %2651 = vrot.lane.b32.xlu1 %v9885_v47, %s10161_s27  ;;  %v9889_v47 = vld [vmem:[%s10933_s19 + $0x28] sm:$0xff]  ;;  %v2066_v53 = vpop.xlane.xlu1 %2065 }
 0x572   : >>> { %2541 = vrot.lane.b32.xlu1 %v9886_v10, %s10162_s28  ;;  %v11762_v10 = vpop.permute.xlu0 %2597 }
 0x576   : >>> { %2545 = vrot.lane.b32.xlu1 %v9887_v48, %s10162_s28  ;;  %v9891_v48 = vld [vmem:[%s10933_s19 + $0x38] sm:$0xff] }
 0x578   : >>> { %2563 = vrot.lane.b32.xlu0 %v11750_v32, %s10161_s27 }
 0x57a   : >>> { %2549 = vrot.lane.b32.xlu1 %v9889_v47, %s10162_s28  ;;  %v11770_v47 = vld [vmem:[#allocation3 + $0x90] sm:$0xff] }
 0x57b   : >>> { %15235 = vst [vmem:[#allocation57_spill] sm:$0xff] %v11770_v47 }
 0x57c   : >>> { %2593 = vrot.lane.b32.xlu0 %v11758_v15, %s10161_s27 }
 0x57e   : >>> { %2553 = vrot.lane.b32.xlu1 %v9891_v48, %s10162_s28 }
 0x580   : >>> { %2561 = vrot.lane.b32.xlu0 %v11766_v11, %s10161_s27 }
 0x581   : >>> { %v2061_v32 = vpop.xlane.xlu0 %2060 }
 0x582   : >>> { %9597 = vrcp.f32 %v2061_v32 }
 0x583   : >>> { %9599 = vrcp.f32 %v2066_v53  ;;  %v2076_v48 = vpop.xlane.xlu1 %2075 }
 0x584   : >>> { %2591 = vrot.lane.b32.xlu0 %v11770_v47, %s10161_s27 }
 0x585   : >>> { %v2071_v15 = vpop.xlane.xlu0 %2070 }
 0x586   : >>> { %9601 = vrcp.f32 %v2071_v15 }
 0x587   : >>> { %9603 = vrcp.f32 %v2076_v48 }
 0x588   : >>> { %2559 = vrot.lane.b32.xlu0 %v11774_v30, %s10161_s27  ;;  %v11786_v30 = vld [vmem:[#allocation3 + $0x8] sm:$0xff] }
 0x589   : >>> { %v2081_v43 = vpop.xlane.xlu0 %2080 }
 0x58a   : >>> { %9605 = vrcp.f32 %v2081_v43 }
 0x58c   : >>> { %2589 = vrot.lane.b32.xlu0 %v11778_v23, %s10161_s27 }
 0x58f   : >>> { %v9598_v53 = vpop.eup %9597 }
 0x590   : >>> { %v9600_v32 = vpop.eup %9599  ;;  %v2106_v47 = vmul.f32 %v9598_v53, %v11572_v50  ;;  %v2108_v15 = vmul.f32 %v9598_v53, %v11582_v14  ;;  %v2105_v11 = vmul.f32 %v9598_v53, %v11570_v41  ;;  %v2107_v18 = vmul.f32 %v9598_v53, %v11574_v60  ;;  %2557 = vrot.lane.b32.xlu0 %v11786_v30, %s10161_s27  ;;  %v15240_v14 = vld [vmem:[#allocation25_spill] sm:$0xff] }
 0x591   : >>> { %v2110_v43 = vmul.f32 %v9600_v32, %v11519_v44  ;;  %v2112_v48 = vmul.f32 %v9600_v32, %v11532_v3  ;;  %v2109_v41 = vmul.f32 %v9600_v32, %v11517_v59  ;;  %v2111_v60 = vmul.f32 %v9600_v32, %v11527_v36  ;;  %v9897_v59 = vld [vmem:[#allocation3 + $0x80] sm:$0xff]  ;;  %v9916_v32 = vld [vmem:[#allocation3 + $0x68] sm:$0xff] }
 0x592   : >>> { %2393 = vmatprep.mubr.f32.mxu0 %v2106_v47  ;;  %2498 = vmatprep.mubr.f32.mxu1 %v2108_v15 }
 0x593   : >>> { %2394 = vmatmul.mubr.f32.vlgmr.msra.gmra.mxu0 %v2105_v11  ;;  %2499 = vmatmul.mubr.f32.vlgmr.msra.gmra.mxu1 %v2107_v18  ;;  %v9602_v50 = vpop.eup %9601  ;;  %v9910_v18 = vld [vmem:[#allocation3 + $0xf0] sm:$0xff] }
 0x594   : >>> { %8488 = vmatpush3.xpose.msk.msra.mxu0 %vm1457_vm2, %v11259_v31  ;;  %8536 = vmatpush3.xpose.msk.msra.mxu1 %vm1457_vm2, %v11466_v34  ;;  %v2114_v44 = vmul.f32 %v9602_v50, %v11580_v0  ;;  %v2116_v31 = vmul.f32 %v9602_v50, %v11597_v35  ;;  %v9604_v34 = vpop.eup %9603  ;;  %v15238_v0 = vld [vmem:[#allocation23_spill] sm:$0xff]  ;;  %v9907_v35 = vld [vmem:[#allocation3 + $0x1f0] sm:$0xff] }
 0x595   : >>> { %2398 = vmatprep.mubr.f32.mxu0 %v2110_v43  ;;  %2503 = vmatprep.mubr.f32.mxu1 %v2112_v48  ;;  %v2120_v36 = vmul.f32 %v9604_v34, %v11610_v7  ;;  %v2119_v3 = vmul.f32 %v9604_v34, %v11605_v29  ;;  %v9908_v7 = vld [vmem:[#allocation3 + $0xf8] sm:$0xff]  ;;  %v9917_v43 = vld [vmem:[#allocation3 + $0x160] sm:$0xff] }
 0x596   : >>> { %8489 = vmatprep.subr.msk.mxu0 %vm1457_vm2, %v11437_v1  ;;  %8537 = vmatprep.subr.msk.mxu1 %vm1457_vm2, %v11482_v8  ;;  %v2113_v1 = vmul.f32 %v9602_v50, %v11576_v9  ;;  %v2115_v8 = vmul.f32 %v9602_v50, %v11584_v22  ;;  %v9899_v9 = vld [vmem:[%s10933_s19] sm:$0xff]  ;;  %v9902_v22 = vld [vmem:[%s10933_s19 + $0x10] sm:$0xff]  ;;  %v9919_v48 = vld [vmem:[#allocation3 + $0xd8] sm:$0xff] }
 0x597   : >>> { %2399 = vmatmul.mubr.f32.gmra.mxu0 %v2109_v41  ;;  %2504 = vmatmul.mubr.f32.gmra.mxu1 %v2111_v60  ;;  %v15244_v41 = vld [vmem:[#allocation36_spill] sm:$0xff] }
 0x598   : >>> { %8490 = vmatpush3.xpose.msk.msra.mxu0 %vm1457_vm2, %v11453_v46  ;;  %8538 = vmatpush3.xpose.msk.msra.mxu1 %vm1457_vm2, %v11494_v27  ;;  %v9606_v27 = vpop.eup %9605  ;;  %v2118_v46 = vmul.f32 %v9604_v34, %v11595_v58  ;;  %v9906_v58 = vld [vmem:[%s10933_s19 + $0x30] sm:$0xff] }
 0x599   : >>> { %2587 = vrot.lane.b32.xlu0 %v9897_v59, %s10161_s27  ;;  %2403 = vmatprep.mubr.f32.mxu0 %v2114_v44  ;;  %v15245_v44 = vld [vmem:[#allocation38_spill] sm:$0xff] }
 0x59a   : >>> { %2508 = vmatprep.mubr.f32.mxu1 %v2116_v31  ;;  %8491 = vmatprep.subr.msk.mxu0 %vm1457_vm2, %v11478_v61  ;;  %v9898_v61 = vld [vmem:[#allocation3] sm:$0xff] }
 0x59b   : >>> { %8539 = vmatprep.subr.msk.mxu1 %vm1457_vm2, %v11500_v62  ;;  %2404 = vmatmul.mubr.f32.gmra.mxu0 %v2113_v1  ;;  %v2117_v62 = vmul.f32 %v9604_v34, %v11593_v54  ;;  %v9905_v54 = vld [vmem:[#allocation3 + $0x178] sm:$0xff]  ;;  %v15247_v1 = vld [vmem:[#allocation37_spill] sm:$0xff] }
 0x59c   : >>> { %2509 = vmatmul.mubr.f32.gmra.mxu1 %v2115_v8  ;;  %8492 = vmatpush3.xpose.msk.msra.mxu0 %vm1457_vm2, %v11486_v13  ;;  %v2122_v13 = vmul.f32 %v9606_v27, %v11591_v45  ;;  %v9904_v45 = vld [vmem:[%s10933_s19 + $0x20] sm:$0xff]  ;;  %v15246_v34 = vld [vmem:[#allocation35_spill] sm:$0xff] }
 0x59d   : >>> { %8540 = vmatpush3.xpose.msk.msra.mxu1 %vm1457_vm2, %v11480_v40  ;;  %2555 = vrot.lane.b32.xlu0 %v9898_v61, %s10161_s27  ;;  %v2124_v40 = vmul.f32 %v9606_v27, %v11615_v20  ;;  %v9909_v20 = vld [vmem:[#allocation3 + $0x70] sm:$0xff]  ;;  %v9922_v61 = vld [vmem:[#allocation3 + $0x58] sm:$0xff] }
 0x59e   : >>> { %2408 = vmatprep.mubr.f32.mxu0 %v2118_v46  ;;  %2513 = vmatprep.mubr.f32.mxu1 %v2120_v36  ;;  %v9921_v36 = vld [vmem:[#allocation3 + $0x1d8] sm:$0xff] }
 0x59f   : >>> { %8493 = vmatprep.subr.msk.mxu0 %vm1457_vm2, %v11464_v51  ;;  %8541 = vmatprep.subr.msk.mxu1 %vm1457_vm2, %v11510_v33  ;;  %v2121_v51 = vmul.f32 %v9606_v27, %v11586_v52  ;;  %v2123_v33 = vmul.f32 %v9606_v27, %v11607_v5  ;;  %v9903_v52 = vld [vmem:[#allocation3 + $0x78] sm:$0xff]  ;;  %v2566_v5 = vpop.permute.xlu0 %2565  ;;  %v9920_v27 = vld [vmem:[#allocation3 + $0xe0] sm:$0xff] }
 0x5a0   : >>> { %2409 = vmatmul.mubr.f32.gmra.mxu0 %v2117_v62  ;;  %2514 = vmatmul.mubr.f32.gmra.mxu1 %v2119_v3  ;;  %v15248_v3 = vld [vmem:[#allocation8_spill] sm:$0xff] }
 0x5a1   : >>> { %8494 = vmatpush3.xpose.msk.msra.mxu0 %vm1457_vm2, %v11476_v19  ;;  %8542 = vmatpush3.xpose.msk.msra.mxu1 %vm1457_vm2, %v11536_v16  ;;  %v15237_v19 = vld [vmem:[#allocation29_spill] sm:$0xff]  ;;  %v9900_v16 = vld [vmem:[#allocation3 + $0x100] sm:$0xff] }
 0x5a2   : >>> { %2539 = vrot.lane.b32.xlu0 %v9899_v9, %s10162_s28  ;;  %2413 = vmatprep.mubr.f32.mxu0 %v2122_v13  ;;  %v15249_v13 = vld [vmem:[#allocation24_spill] sm:$0xff]  ;;  %v9923_v9 = vld [vmem:[#allocation3 + $0xd0] sm:$0xff] }
 0x5a3   : >>> { %2518 = vmatprep.mubr.f32.mxu1 %v2124_v40  ;;  %8495 = vmatprep.subr.msk.mxu0 %vm1457_vm2, %v11502_v12  ;;  %v15239_v12 = vld [vmem:[#allocation28_spill] sm:$0xff]  ;;  %v2596_v11 = vpop.permute.xlu0 %2595 }
 0x5a4   : >>> { %8543 = vmatprep.subr.msk.mxu1 %vm1457_vm2, %v11492_v24  ;;  %2414 = vmatmul.mubr.f32.gmra.mxu0 %v2121_v51  ;;  %v9901_v24 = vld [vmem:[#allocation3 + $0x1f8] sm:$0xff]  ;;  %v15250_v51 = vld [vmem:[#allocation12_spill] sm:$0xff] }
 0x5a5   : >>> { %2519 = vmatmul.mubr.f32.gmra.mxu1 %v2123_v33  ;;  %8496 = vmatpush3.xpose.msk.msra.mxu0 %vm1457_vm2, %v11529_v25  ;;  %v15241_v25 = vld [vmem:[#allocation26_spill] sm:$0xff] }
 0x5a6   : >>> { %8544 = vmatpush3.xpose.msk.msra.mxu1 %vm1457_vm2, %v15237_v19  ;;  %2619 = vrot.lane.b32.xlu0 %v9900_v16, %s10161_s27  ;;  %v15251_v19 = vld [vmem:[#allocation9_spill] sm:$0xff]  ;;  %v15252_v16 = vld [vmem:[#allocation15_spill] sm:$0xff]  ;;  %s10165_s27 = smov 112  }
 0x5a7   : >>> { %8497 = vmatprep.subr.msk.mxu0 %vm1457_vm2, %v15238_v0  ;;  %8545 = vmatprep.subr.msk.mxu1 %vm1457_vm2, %v15239_v12  ;;  %v9924_v12 = vld [vmem:[#allocation3 + $0x50] sm:$0xff] }
 0x5a8   : >>> { %3459 = vrot.lane.b32.xlu1 %v9901_v24, %s10163_s29  ;;  %v15253_v24 = vld [vmem:[#allocation27_spill] sm:$0xff] }
 0x5a9   : >>> { %8498 = vmatpush3.xpose.msk.msra.mxu0 %vm1457_vm2, %v15240_v14 }
 0x5aa   : >>> { %8546 = vmatpush3.xpose.msk.msra.mxu1 %vm1457_vm2, %v11670_v17  ;;  %8499 = vmatprep.subr.msk.mxu0 %vm1457_vm2, %v15241_v25  ;;  %v9912_v17 = vld [vmem:[#allocation3 + $0x1e0] sm:$0xff]  ;;  %v9925_v25 = vld [vmem:[#allocation3 + $0xc8] sm:$0xff] }
 0x5ab   : >>> { %8547 = vmatprep.subr.msk.mxu1 %vm1457_vm2, %v11672_v28  ;;  %2543 = vrot.lane.b32.xlu0 %v9902_v22, %s10162_s28  ;;  %v9913_v28 = vld [vmem:[#allocation3 + $0xe8] sm:$0xff]  ;;  %v15254_v22 = vld [vmem:[#allocation18_spill] sm:$0xff] }
 0x5ac   : >>> { %3363 = vrot.lane.b32.xlu1 %v9903_v52, %s10163_s29 }
 0x5ad   : >>> { %8500 = vmatpush3.xpose.msk.msra.mxu0 %vm1457_vm2, %v11618_v2 }
 0x5ae   : >>> { %8548 = vmatpush3.xpose.msk.msra.mxu1 %vm1457_vm2, %v11692_v49  ;;  %8501 = vmatprep.subr.msk.mxu0 %vm1457_vm2, %v11660_v39  ;;  %v9914_v49 = vld [vmem:[#allocation3 + $0x60] sm:$0xff] }
 0x5af   : >>> { %8549 = vmatprep.subr.msk.mxu1 %vm1457_vm2, %v11748_v6  ;;  %2547 = vrot.lane.b32.xlu0 %v9904_v45, %s10162_s28  ;;  %v15255_v45 = vld [vmem:[#allocation13_spill] sm:$0xff] }
 0x5b0   : >>> { %3427 = vrot.lane.b32.xlu1 %v9905_v54, %s10163_s29 }
 0x5b1   : >>> { %8502 = vmatpush3.xpose.msk.msra.mxu0 %vm1457_vm2, %v11681_v4 }
 0x5b2   : >>> { %8550 = vmatpush3.xpose.msk.msra.mxu1 %vm1457_vm2, %v11726_v38  ;;  %8503 = vmatprep.subr.msk.mxu0 %vm1457_vm2, %v11698_v26  ;;  %v9915_v26 = vld [vmem:[#allocation3 + $0x1e8] sm:$0xff] }
 0x5b3   : >>> { %8551 = vmatprep.subr.msk.mxu1 %vm1457_vm2, %v11739_v55  ;;  %2551 = vrot.lane.b32.xlu0 %v9906_v58, %s10162_s28  ;;  %v15242_v55 = vld [vmem:[#allocation33_spill] sm:$0xff]  ;;  %v15256_v58 = vld [vmem:[#allocation20_spill] sm:$0xff]  ;;  %s10166_s28 = smov 48  }
 0x5b4   : >>> { %3457 = vrot.lane.b32.xlu1 %v9907_v35, %s10163_s29  ;;  %v15257_v35 = vld [vmem:[#allocation11_spill] sm:$0xff] }
 0x5b5   : >>> { %8504 = vmatpush3.xpose.msk.msra.mxu0 %vm1457_vm2, %v11712_v57 }
 0x5b6   : >>> { %8552 = vmatpush3.xpose.msk.msra.mxu1 %vm1457_vm2, %v11754_v63  ;;  %8505 = vmatprep.subr.msk.mxu0 %vm1457_vm2, %v11736_v37  ;;  %v2086_v29 = vpop.xlane.xlu1 %2085  ;;  %v9911_v37 = vld [vmem:[#allocation3 + $0x170] sm:$0xff] }
 0x5b7   : >>> { %9607 = vrcp.f32 %v2086_v29  ;;  %3395 = vrot.lane.b32.xlu0 %v9908_v7, %s10163_s29  ;;  %v15259_v7 = vld [vmem:[#allocation14_spill] sm:$0xff] }
 0x5b8   : >>> { %3361 = vrot.lane.b32.xlu1 %v9909_v20, %s10163_s29 }
 0x5b9   : >>> { %8506 = vmatpush3.xpose.msk.msra.mxu0 %vm1457_vm2, %v11744_v21 }
 0x5ba   : >>> { %8507 = vmatprep.subr.msk.mxu0 %vm1457_vm2, %v11762_v10  ;;  %v2664_v2 = vpop.permute.xlu1 %2663  ;;  %v15243_v10 = vld [vmem:[#allocation34_spill] sm:$0xff] }
 0x5bb   : >>> { %8553 = vmatprep.subr.msk.mxu1 %vm1457_vm2, %v2664_v2  ;;  %3393 = vrot.lane.b32.xlu0 %v9910_v18, %s10163_s29  ;;  %v15260_v2 = vld [vmem:[#allocation39_spill] sm:$0xff]  ;;  %v15261_v18 = vld [vmem:[#allocation16_spill] sm:$0xff] }
 0x5bc   : >>> { %3425 = vrot.lane.b32.xlu1 %v9911_v37, %s10163_s29 }
 0x5bd   : >>> { %8508 = vmatpush3.xpose.msk.msra.mxu0 %vm1457_vm2, %v2566_v5  ;;  %v15258_v5 = vld [vmem:[#allocation22_spill] sm:$0xff] }
 0x5be   : >>> { %8509 = vmatprep.subr.msk.mxu0 %vm1457_vm2, %v2596_v11  ;;  %v2632_v39 = vpop.permute.xlu1 %2631 }
 0x5bf   : >>> { %8554 = vmatpush3.xpose.msk.msra.mxu1 %vm1457_vm2, %v2632_v39  ;;  %3453 = vrot.lane.b32.xlu0 %v9912_v17, %s10163_s29  ;;  %v15262_v39 = vld [vmem:[#allocation40_spill] sm:$0xff] }
 0x5c0   : >>> { %3391 = vrot.lane.b32.xlu1 %v9913_v28, %s10163_s29  ;;  %v15263_v17 = vld [vmem:[#allocation48_spill] sm:$0xff] }
 0x5c2   : >>> { %v2091_v4 = vpop.xlane.xlu0 %2090  ;;  %v2662_v21 = vpop.permute.xlu1 %2661 }
 0x5c3   : >>> { %9609 = vrcp.f32 %v2091_v4  ;;  %8555 = vmatprep.subr.msk.mxu1 %vm1457_vm2, %v2662_v21  ;;  %3357 = vrot.lane.b32.xlu0 %v9914_v49, %s10163_s29  ;;  %v15264_v4 = vld [vmem:[#allocation51_spill] sm:$0xff]  ;;  %v15265_v49 = vld [vmem:[#allocation46_spill] sm:$0xff] }
 0x5c4   : >>> { %v9608_v38 = vpop.eup %9607  ;;  %3455 = vrot.lane.b32.xlu1 %v9915_v26, %s10163_s29  ;;  %v15266_v26 = vld [vmem:[#allocation49_spill] sm:$0xff] }
 0x5c5   : >>> { %v2126_v57 = vmul.f32 %v9608_v38, %v11638_v42  ;;  %v2128_v6 = vmul.f32 %v9608_v38, %v11645_v56  ;;  %v2125_v63 = vmul.f32 %v9608_v38, %v15242_v55  ;;  %v2127_v47 = vmul.f32 %v9608_v38, %v15243_v10  ;;  %v9918_v42 = vld [vmem:[#allocation3 + $0x168] sm:$0xff] }
 0x5c6   : >>> { %v2630_v53 = vpop.permute.xlu1 %2629 }
 0x5c7   : >>> { %2418 = vmatprep.mubr.f32.mxu0 %v2126_v57  ;;  %2523 = vmatprep.mubr.f32.mxu1 %v2128_v6  ;;  %v15267_v6 = vld [vmem:[#allocation17_spill] sm:$0xff] }
 0x5c8   : >>> { %2419 = vmatmul.mubr.f32.gmra.mxu0 %v2125_v63  ;;  %2524 = vmatmul.mubr.f32.gmra.mxu1 %v2127_v47  ;;  %v15268_v63 = vld [vmem:[#allocation19_spill] sm:$0xff]  ;;  %v15269_v47 = vld [vmem:[#allocation41_spill] sm:$0xff] }
 0x5c9   : >>> { %8556 = vmatpush3.xpose.msk.msra.mxu1 %vm1457_vm2, %v2630_v53  ;;  %3359 = vrot.lane.b32.xlu1 %v9916_v32, %s10163_s29  ;;  %v15270_v53 = vld [vmem:[#allocation21_spill] sm:$0xff] }
 0x5ca   : >>> { %v2660_v15 = vpop.permute.xlu1 %2659  ;;  %3421 = vrot.lane.b32.xlu0 %v9917_v43, %s10163_s29  ;;  %v15272_v43 = vld [vmem:[#allocation30_spill] sm:$0xff] }
 0x5cb   : >>> { %8557 = vmatprep.subr.msk.mxu1 %vm1457_vm2, %v2660_v15  ;;  %v15271_v15 = vld [vmem:[#allocation42_spill] sm:$0xff] }
 0x5cd   : >>> { %3423 = vrot.lane.b32.xlu1 %v9918_v42, %s10163_s29 }
 0x5ce   : >>> { %v2628_v56 = vpop.permute.xlu1 %2627  ;;  %3387 = vrot.lane.b32.xlu0 %v9919_v48, %s10163_s29 }
 0x5cf   : >>> { %8558 = vmatpush3.xpose.msk.msra.mxu1 %vm1457_vm2, %v2628_v56  ;;  %v15273_v56 = vld [vmem:[#allocation43_spill] sm:$0xff] }
 0x5d0   : >>> { %v9610_v50 = vpop.eup %9609 }
 0x5d1   : >>> { %v2130_v60 = vmul.f32 %v9610_v50, %v15244_v41  ;;  %v2132_v31 = vmul.f32 %v9610_v50, %v15245_v44  ;;  %v2129_v59 = vmul.f32 %v9610_v50, %v15246_v34  ;;  %v2131_v8 = vmul.f32 %v9610_v50, %v15247_v1  ;;  %3389 = vrot.lane.b32.xlu1 %v9920_v27, %s10163_s29  ;;  %v15274_v50 = vld [vmem:[#allocation31_spill] sm:$0xff] }
 0x5d2   : >>> { %v2658_v46 = vpop.permute.xlu1 %2657  ;;  %3451 = vrot.lane.b32.xlu0 %v9921_v36, %s10163_s29  ;;  %v15279_v27 = vld [vmem:[#allocation47_spill] sm:$0xff] }
 0x5d3   : >>> { %2423 = vmatprep.mubr.f32.mxu0 %v2130_v60  ;;  %2528 = vmatprep.mubr.f32.mxu1 %v2132_v31  ;;  %v15275_v60 = vld [vmem:[#allocation44_spill] sm:$0xff] }
 0x5d4   : >>> { %2424 = vmatmul.mubr.f32.gmra.mxu0 %v2129_v59  ;;  %2529 = vmatmul.mubr.f32.gmra.mxu1 %v2131_v8  ;;  %v15276_v31 = vld [vmem:[#allocation32_spill] sm:$0xff]  ;;  %v15277_v59 = vld [vmem:[#allocation45_spill] sm:$0xff]  ;;  %v15278_v8 = vld [vmem:[#allocation54_spill] sm:$0xff] }
 0x5d5   : >>> { %8559 = vmatprep.subr.msk.mxu1 %vm1457_vm2, %v2658_v46  ;;  %3355 = vrot.lane.b32.xlu1 %v9922_v61, %s10163_s29  ;;  %v15280_v61 = vld [vmem:[#allocation55_spill] sm:$0xff] }
 0x5d6   : >>> { %v2626_v62 = vpop.permute.xlu1 %2625  ;;  %3419 = vrot.lane.b32.xlu0 %v15248_v3, %s10163_s29 }
 0x5d7   : >>> { %8560 = vmatpush3.xpose.msk.msra.mxu1 %vm1457_vm2, %v2626_v62  ;;  %v15281_v62 = vld [vmem:[#allocation50_spill] sm:$0xff] }
 0x5d9   : >>> { %3417 = vrot.lane.b32.xlu1 %v15249_v13, %s10163_s29 }
 0x5da   : >>> { %v2656_v40 = vpop.permute.xlu1 %2655  ;;  %3385 = vrot.lane.b32.xlu0 %v9923_v9, %s10163_s29  ;;  %v15283_v9 = vld [vmem:[#allocation52_spill] sm:$0xff] }
 0x5db   : >>> { %8561 = vmatprep.subr.msk.mxu1 %vm1457_vm2, %v2656_v40  ;;  %v15282_v40 = vld [vmem:[#allocation56_spill] sm:$0xff] }
 0x5dd   : >>> { %3447 = vrot.lane.b32.xlu1 %v15250_v51, %s10163_s29 }
 0x5de   : >>> { %v2624_v33 = vpop.permute.xlu1 %2623  ;;  %3449 = vrot.lane.b32.xlu0 %v15251_v19, %s10163_s29  ;;  %v15284_v19 = vld [vmem:[#allocation57_spill] sm:$0xff] }
 0x5df   : >>> { %8562 = vmatpush3.xpose.msk.msra.mxu1 %vm1457_vm2, %v2624_v33 }
 0x5e1   : >>> { %3415 = vrot.lane.b32.xlu1 %v15252_v16, %s10163_s29  ;;  %v15285_v16 = vld [vmem:[#allocation53_spill] sm:$0xff] }
 0x5e2   : >>> { %v2654_v0 = vpop.permute.xlu1 %2653  ;;  %3353 = vrot.lane.b32.xlu0 %v9924_v12, %s10163_s29 }
 0x5e3   : >>> { %8563 = vmatprep.subr.msk.mxu1 %vm1457_vm2, %v2654_v0 }
 0x5e5   : >>> { %3445 = vrot.lane.b32.xlu1 %v15253_v24, %s10163_s29  ;;  %v15286_v24 = vld [vmem:[#allocation58_spill] sm:$0xff] }
 0x5e6   : >>> { %v2622_v14 = vpop.permute.xlu1 %2621  ;;  %3383 = vrot.lane.b32.xlu0 %v9925_v25, %s10163_s29 }
 0x5e7   : >>> { %8564 = vmatpush3.xpose.msk.msra.mxu1 %vm1457_vm2, %v2622_v14 }
 0x5e9   : >>> { %3413 = vrot.lane.b32.xlu1 %v15254_v22, %s10163_s29 }
 0x5ea   : >>> { %v2652_v52 = vpop.permute.xlu1 %2651  ;;  %3351 = vrot.lane.b32.xlu0 %v15255_v45, %s10163_s29 }
 0x5eb   : >>> { %v2096_v54 = vpop.xlane.xlu0 %2095  ;;  %8565 = vmatprep.subr.msk.mxu1 %vm1457_vm2, %v2652_v52 }
 0x5ec   : >>> { %9611 = vrcp.f32 %v2096_v54 }
 0x5ed   : >>> { %3443 = vrot.lane.b32.xlu1 %v15256_v58, %s10163_s29 }
 0x5ee   : >>> { %3381 = vrot.lane.b32.xlu0 %v15257_v35, %s10163_s29  ;;  %v2542_v48 = vpop.permute.xlu1 %2541 }
 0x5ef   : >>> { %v2564_v29 = vpop.permute.xlu0 %2563 }
 0x5f0   : >>> { %8510 = vmatpush3.xpose.msk.msra.mxu0 %vm1457_vm2, %v2564_v29 }
 0x5f1   : >>> { %3411 = vrot.lane.b32.xlu1 %v15258_v5, %s10163_s29 }
 0x5f2   : >>> { %3349 = vrot.lane.b32.xlu0 %v15259_v7, %s10163_s29  ;;  %v2546_v44 = vpop.permute.xlu1 %2545 }
 0x5f3   : >>> { %v2594_v20 = vpop.permute.xlu0 %2593 }
 0x5f4   : >>> { %8511 = vmatprep.subr.msk.mxu0 %vm1457_vm2, %v2594_v20 }
 0x5f5   : >>> { %3441 = vrot.lane.b32.xlu1 %v15260_v2, %s10163_s29 }
 0x5f6   : >>> { %3379 = vrot.lane.b32.xlu0 %v15261_v18, %s10163_s29  ;;  %v2550_v1 = vpop.permute.xlu1 %2549 }
 0x5f7   : >>> { %v2562_v37 = vpop.permute.xlu0 %2561 }
 0x5f8   : >>> { %8512 = vmatpush3.xpose.msk.msra.mxu0 %vm1457_vm2, %v2562_v37 }
 0x5f9   : >>> { %v9612_v11 = vpop.eup %9611  ;;  %3409 = vrot.lane.b32.xlu1 %v15262_v39, %s10163_s29 }
 0x5fa   : >>> { %v2134_v28 = vmul.f32 %v9612_v11, %v15263_v17  ;;  %v2136_v21 = vmul.f32 %v9612_v11, %v15264_v4  ;;  %v2133_v38 = vmul.f32 %v9612_v11, %v15265_v49  ;;  %v2135_v57 = vmul.f32 %v9612_v11, %v15266_v26  ;;  %3347 = vrot.lane.b32.xlu0 %v15267_v6, %s10163_s29  ;;  %v2554_v36 = vpop.permute.xlu1 %2553 }
 0x5fb   : >>> { %v2592_v55 = vpop.permute.xlu0 %2591 }
 0x5fc   : >>> { %2428 = vmatprep.mubr.f32.mxu0 %v2134_v28  ;;  %2533 = vmatprep.mubr.f32.mxu1 %v2136_v21 }
 0x5fd   : >>> { %8513 = vmatprep.subr.msk.mxu0 %vm1457_vm2, %v2592_v55  ;;  %2429 = vmatmul.mubr.f32.gmra.mxu0 %v2133_v38 }
 0x5fe   : >>> { %2534 = vmatmul.mubr.f32.gmra.mxu1 %v2135_v57  ;;  %3377 = vrot.lane.b32.xlu0 %v15268_v63, %s10163_s29 }
 0x5ff   : >>> { %v2560_v10 = vpop.permute.xlu0 %2559  ;;  %3439 = vrot.lane.b32.xlu1 %v15269_v47, %s10163_s29 }
 0x600   : >>> { %8514 = vmatpush3.xpose.msk.msra.mxu0 %vm1457_vm2, %v2560_v10 }
 0x602   : >>> { %3345 = vrot.lane.b32.xlu0 %v15270_v53, %s10163_s29 }
 0x603   : >>> { %v2590_v32 = vpop.permute.xlu0 %2589  ;;  %3407 = vrot.lane.b32.xlu1 %v15271_v15, %s10163_s29 }
 0x604   : >>> { %8515 = vmatprep.subr.msk.mxu0 %vm1457_vm2, %v2590_v32 }
 0x606   : >>> { %3375 = vrot.lane.b32.xlu0 %v15272_v43, %s10163_s29 }
 0x607   : >>> { %v2558_v42 = vpop.permute.xlu0 %2557  ;;  %3437 = vrot.lane.b32.xlu1 %v15273_v56, %s10163_s29 }
 0x608   : >>> { %8516 = vmatpush3.xpose.msk.msra.mxu0 %vm1457_vm2, %v2558_v42 }
 0x60a   : >>> { %3343 = vrot.lane.b32.xlu0 %v15274_v50, %s10163_s29 }
 0x60b   : >>> { %v2588_v41 = vpop.permute.xlu0 %2587  ;;  %3405 = vrot.lane.b32.xlu1 %v15275_v60, %s10163_s29 }
 0x60c   : >>> { %8517 = vmatprep.subr.msk.mxu0 %vm1457_vm2, %v2588_v41 }
 0x60e   : >>> { %3373 = vrot.lane.b32.xlu0 %v15276_v31, %s10163_s29 }
 0x60f   : >>> { %v2556_v34 = vpop.permute.xlu0 %2555  ;;  %3435 = vrot.lane.b32.xlu1 %v15277_v59, %s10163_s29 }
 0x610   : >>> { %8518 = vmatpush3.xpose.msk.msra.mxu0 %vm1457_vm2, %v2556_v34 }
 0x612   : >>> { %3341 = vrot.lane.b32.xlu0 %v15278_v8, %s10163_s29 }
 0x613   : >>> { %3403 = vrot.lane.b32.xlu1 %v15279_v27, %s10163_s29 }
 0x614   : >>> { %v2540_v46 = vpop.permute.xlu0 %2539 }
 0x615   : >>> { %8519 = vmatprep.mubr.msk.f32.mxu0 %vm1457_vm2, %v2540_v46  ;;  %8567 = vmatprep.mubr.msk.f32.mxu1 %vm1457_vm2, %v2540_v46 }
 0x616   : >>> { %8520 = vmatmul.mubr.msk.f32.vlgmr.msra.gmra.mxu0 %vm1457_vm2, %v2540_v46  ;;  %3371 = vrot.lane.b32.xlu0 %v15280_v61, %s10163_s29 }
 0x617   : >>> { %8521 = vmatprep.mubr.msk.f32.mxu0 %vm1457_vm2, %v2542_v48  ;;  %3433 = vrot.lane.b32.xlu1 %v15281_v62, %s10163_s29 }
 0x618   : >>> { %v2620_v3 = vpop.permute.xlu0 %2619 }
 0x619   : >>> { %8566 = vmatpush3.xpose.msk.msra.mxu1 %vm1457_vm2, %v2620_v3 }
 0x61a   : >>> { %8522 = vmatmul.mubr.msk.f32.gmra.mxu0 %vm1457_vm2, %v2542_v48  ;;  %v3460_v13 = vpop.permute.xlu1 %3459  ;;  %3339 = vrot.lane.b32.xlu0 %v15282_v40, %s10163_s29 }
 0x61b   : >>> { %3401 = vrot.lane.b32.xlu1 %v15283_v9, %s10163_s29  ;;  %8639 = vmatprep.subr.mxu1 %v3460_v13 }
 0x61c   : >>> { %8568 = vmatmul.mubr.msk.f32.vlgmr.msra.gmra.mxu1 %vm1457_vm2, %v2540_v46 }
 0x61d   : >>> { %8569 = vmatprep.mubr.msk.f32.mxu1 %vm1457_vm2, %v2542_v48  ;;  %v2544_v51 = vpop.permute.xlu0 %2543 }
 0x61e   : >>> { %8523 = vmatprep.mubr.msk.f32.mxu0 %vm1457_vm2, %v2544_v51  ;;  %v3364_v33 = vpop.permute.xlu1 %3363  ;;  %3369 = vrot.lane.b32.xlu0 %v15284_v19, %s10163_s29 }
 0x61f   : >>> { %8524 = vmatmul.mubr.msk.f32.gmra.mxu0 %vm1457_vm2, %v2544_v51  ;;  %3431 = vrot.lane.b32.xlu1 %v15285_v16, %s10163_s29 }
 0x620   : >>> { %8570 = vmatmul.mubr.msk.f32.gmra.mxu1 %vm1457_vm2, %v2542_v48  ;;  %8525 = vmatprep.mubr.msk.f32.mxu0 %vm1457_vm2, %v2546_v44 }
 0x621   : >>> { %8571 = vmatprep.mubr.msk.f32.mxu1 %vm1457_vm2, %v2544_v51  ;;  %v2548_v0 = vpop.permute.xlu0 %2547 }
 0x622   : >>> { %v3428_v12 = vpop.permute.xlu1 %3427  ;;  %3337 = vrot.lane.b32.xlu0 %v15286_v24, %s10163_s29 }
 0x623   : >>> { %8526 = vmatmul.mubr.msk.f32.gmra.mxu0 %vm1457_vm2, %v2546_v44  ;;  %8640 = vmatpush3.msra.mxu1 %v3428_v12 }
 0x624   : >>> { %8572 = vmatmul.mubr.msk.f32.gmra.mxu1 %vm1457_vm2, %v2544_v51  ;;  %8527 = vmatprep.mubr.msk.f32.mxu0 %vm1457_vm2, %v2548_v0 }
 0x625   : >>> { %8573 = vmatprep.mubr.msk.f32.mxu1 %vm1457_vm2, %v2546_v44  ;;  %v2552_v25 = vpop.permute.xlu0 %2551 }
 0x626   : >>> { %v3458_v14 = vpop.permute.xlu1 %3457  ;;  %3367 = vrot.lane.b32.xlu0 %v11778_v23, %s10163_s29 }
 0x627   : >>> { %8528 = vmatmul.mubr.msk.f32.gmra.mxu0 %vm1457_vm2, %v2548_v0  ;;  %8641 = vmatprep.subr.mxu1 %v3458_v14 }
 0x628   : >>> { %8574 = vmatmul.mubr.msk.f32.gmra.mxu1 %vm1457_vm2, %v2546_v44  ;;  %8529 = vmatprep.mubr.msk.f32.mxu0 %vm1457_vm2, %v2550_v1 }
 0x629   : >>> { %8575 = vmatprep.mubr.msk.f32.mxu1 %vm1457_vm2, %v2548_v0  ;;  %v3396_v52 = vpop.permute.xlu0 %3395 }
 0x62a   : >>> { %v3362_v23 = vpop.permute.xlu1 %3361  ;;  %8583 = vmatprep.subr.mxu0 %v3396_v52 }
 0x62b   : >>> { %8530 = vmatmul.mubr.msk.f32.gmra.mxu0 %vm1457_vm2, %v2550_v1 }
 0x62c   : >>> { %8576 = vmatmul.mubr.msk.f32.gmra.mxu1 %vm1457_vm2, %v2548_v0  ;;  %8531 = vmatprep.mubr.msk.f32.mxu0 %vm1457_vm2, %v2552_v25 }
 0x62d   : >>> { %8577 = vmatprep.mubr.msk.f32.mxu1 %vm1457_vm2, %v2550_v1  ;;  %8584 = vmatpush3.msra.mxu0 %v3364_v33  ;;  %v3394_v54 = vpop.permute.xlu0 %3393 }
 0x62e   : >>> { %v3426_v22 = vpop.permute.xlu1 %3425  ;;  %8585 = vmatprep.subr.mxu0 %v3394_v54 }
 0x62f   : >>> { %8532 = vmatmul.mubr.msk.f32.gmra.mxu0 %vm1457_vm2, %v2552_v25  ;;  %8642 = vmatpush3.msra.mxu1 %v3426_v22 }
 0x630   : >>> { %8578 = vmatmul.mubr.msk.f32.gmra.mxu1 %vm1457_vm2, %v2550_v1  ;;  %8533 = vmatprep.mubr.msk.f32.mxu0 %vm1457_vm2, %v2554_v36 }
 0x631   : >>> { %8579 = vmatprep.mubr.msk.f32.mxu1 %vm1457_vm2, %v2552_v25  ;;  %8586 = vmatpush3.msra.mxu0 %v3362_v23  ;;  %v3454_v29 = vpop.permute.xlu0 %3453 }
 0x632   : >>> { %v3392_v45 = vpop.permute.xlu1 %3391 }
 0x633   : >>> { %8534 = vmatmul.mubr.msk.f32.gmra.mxu0 %vm1457_vm2, %v2554_v36  ;;  %8587 = vmatprep.subr.mxu0 %v3392_v45 }
 0x634   : >>> { %8580 = vmatmul.mubr.msk.f32.gmra.mxu1 %vm1457_vm2, %v2552_v25 }
 0x635   : >>> { %8581 = vmatprep.mubr.msk.f32.mxu1 %vm1457_vm2, %v2554_v36  ;;  %v3358_v10 = vpop.permute.xlu0 %3357 }
 0x636   : >>> { %v3456_v58 = vpop.permute.xlu1 %3455 }
 0x637   : >>> { %8643 = vmatprep.subr.mxu1 %v3456_v58 }
 0x638   : >>> { %8582 = vmatmul.mubr.msk.f32.gmra.mxu1 %vm1457_vm2, %v2554_v36 }
 0x63b   : >>> { %v3360_v35 = vpop.permute.xlu1 %3359 }
 0x63c   : >>> { %8588 = vmatpush3.msra.mxu0 %v3360_v35  ;;  %v3422_v56 = vpop.permute.xlu0 %3421 }
 0x63f   : >>> { %v3424_v20 = vpop.permute.xlu1 %3423 }
 0x640   : >>> { %8644 = vmatpush3.msra.mxu1 %v3424_v20  ;;  %v3388_v59 = vpop.permute.xlu0 %3387 }
 0x641   : >>> { %8645 = vmatprep.subr.mxu1 %v3454_v29 }
 0x642   : >>> { %8646 = vmatpush3.msra.mxu1 %v3422_v56 }
 0x643   : >>> { %v3390_v26 = vpop.permute.xlu1 %3389 }
 0x644   : >>> { %8589 = vmatprep.subr.mxu0 %v3390_v26  ;;  %v3452_v36 = vpop.permute.xlu0 %3451 }
 0x645   : >>> { %8590 = vmatpush3.msra.mxu0 %v3358_v10  ;;  %8647 = vmatprep.subr.mxu1 %v3452_v36 }
 0x646   : >>> { %8591 = vmatprep.subr.mxu0 %v3388_v59 }
 0x647   : >>> { %v3356_v61 = vpop.permute.xlu1 %3355 }
 0x648   : >>> { %8592 = vmatpush3.msra.mxu0 %v3356_v61  ;;  %v3420_v3 = vpop.permute.xlu0 %3419 }
 0x649   : >>> { %8648 = vmatpush3.msra.mxu1 %v3420_v3 }
 0x64b   : >>> { %v3418_v13 = vpop.permute.xlu1 %3417 }
 0x64c   : >>> { %v3386_v40 = vpop.permute.xlu0 %3385 }
 0x64d   : >>> { %8593 = vmatprep.subr.mxu0 %v3386_v40 }
 0x64f   : >>> { %v3448_v9 = vpop.permute.xlu1 %3447 }
 0x650   : >>> { %v3450_v51 = vpop.permute.xlu0 %3449 }
 0x651   : >>> { %8649 = vmatprep.subr.mxu1 %v3450_v51 }
 0x652   : >>> { %8650 = vmatpush3.msra.mxu1 %v3418_v13 }
 0x653   : >>> { %v8407_v5 = vpop.f32.mrf.mxu0  ;;  %v8463_v7 = vpop.f32.mrf.mxu1  ;;  %8651 = vmatprep.subr.mxu1 %v3448_v9 }
 0x654   : >>> { %v3354_v33 = vpop.permute.xlu0 %3353  ;;  %v3416_v19 = vpop.permute.xlu1 %3415 }
 0x655   : >>> { %v8408_v2 = vpop.f32.mrf.mxu0  ;;  %v8464_v18 = vpop.f32.mrf.mxu1  ;;  %8594 = vmatpush3.msra.mxu0 %v3354_v33  ;;  %8652 = vmatpush3.msra.mxu1 %v3416_v19 }
 0x656   : >>> { %v8409_v37 = vadd.f32 %v8408_v2, %v8407_v5  ;;  %v8465_v11 = vadd.f32 %v8464_v18, %v8463_v7 }
 0x657   : >>> { %v8410_v39 = vpop.f32.mrf.mxu0  ;;  %v8466_v17 = vpop.f32.mrf.mxu1 }
 0x658   : >>> { %v12054_v28 = vadd.f32 %v8465_v11, %v8409_v37  ;;  %v3384_v16 = vpop.permute.xlu0 %3383  ;;  %v3446_v0 = vpop.permute.xlu1 %3445 }
 0x659   : >>> { %v8411_v4 = vpop.f32.mrf.mxu0  ;;  %v8467_v21 = vpop.f32.mrf.mxu1  ;;  %8595 = vmatprep.subr.mxu0 %v3384_v16  ;;  %8653 = vmatprep.subr.mxu1 %v3446_v0  ;;  %v15287_v16 = vld [vmem:[#allocation5_spill] sm:$0xff] }
 0x65a   : >>> { %v8412_v49 = vadd.f32 %v8411_v4, %v8410_v39  ;;  %v8468_v38 = vadd.f32 %v8467_v21, %v8466_v17 }
 0x65b   : >>> { %v8413_v57 = vpop.f32.mrf.mxu0 }
 0x65c   : >>> { %v12056_v6 = vadd.f32 %v8468_v38, %v8412_v49  ;;  %v8469_v55 = vpop.f32.mrf.mxu1  ;;  %v3352_v12 = vpop.permute.xlu0 %3351 }
 0x65d   : >>> { %v8414_v63 = vpop.f32.mrf.mxu0  ;;  %8596 = vmatpush3.msra.mxu0 %v3352_v12  ;;  %v3414_v24 = vpop.permute.xlu1 %3413 }
 0x65e   : >>> { %v8415_v47 = vadd.f32 %v8414_v63, %v8413_v57  ;;  %v8470_v53 = vpop.f32.mrf.mxu1  ;;  %8654 = vmatpush3.msra.mxu1 %v3414_v24  ;;  %v15288_v24 = vld [vmem:[#allocation4_spill] sm:$0xff] }
 0x65f   : >>> { %v8471_v32 = vadd.f32 %v8470_v53, %v8469_v55 }
 0x660   : >>> { %v8416_v15 = vpop.f32.mrf.mxu0  ;;  %v8472_v43 = vpop.f32.mrf.mxu1 }
 0x661   : >>> { %v12058_v42 = vadd.f32 %v8471_v32, %v8415_v47  ;;  %v3382_v14 = vpop.permute.xlu0 %3381  ;;  %v3444_v25 = vpop.permute.xlu1 %3443 }
 0x662   : >>> { %v8417_v48 = vpop.f32.mrf.mxu0  ;;  %v8473_v50 = vpop.f32.mrf.mxu1  ;;  %8597 = vmatprep.subr.mxu0 %v3382_v14  ;;  %8655 = vmatprep.subr.mxu1 %v3444_v25 }
 0x663   : >>> { %v8418_v41 = vadd.f32 %v8417_v48, %v8416_v15  ;;  %v8474_v60 = vadd.f32 %v8473_v50, %v8472_v43 }
 0x664   : >>> { %v8419_v44 = vpop.f32.mrf.mxu0 }
 0x665   : >>> { %v12060_v31 = vadd.f32 %v8474_v60, %v8418_v41  ;;  %v8475_v34 = vpop.f32.mrf.mxu1  ;;  %v3350_v52 = vpop.permute.xlu0 %3349 }
 0x666   : >>> { %v8420_v1 = vpop.f32.mrf.mxu0  ;;  %8598 = vmatpush3.msra.mxu0 %v3350_v52  ;;  %v3412_v29 = vpop.permute.xlu1 %3411 }
 0x667   : >>> { %v8421_v8 = vadd.f32 %v8420_v1, %v8419_v44  ;;  %v8476_v27 = vpop.f32.mrf.mxu1  ;;  %8656 = vmatpush3.msra.mxu1 %v3412_v29  ;;  %v15289_v29 = vld [vmem:[#allocation6_spill] sm:$0xff] }
 0x668   : >>> { %v8477_v46 = vadd.f32 %v8476_v27, %v8475_v34 }
 0x669   : >>> { %v3380_v7 = vpop.permute.xlu0 %3379 }
 0x66a   : >>> { %v12062_v62 = vadd.f32 %v8477_v46, %v8421_v8  ;;  %8599 = vmatprep.subr.mxu0 %v3380_v7  ;;  %v3442_v20 = vpop.permute.xlu1 %3441 }
 0x66b   : >>> { %8657 = vmatprep.subr.mxu1 %v3442_v20 }
 0x66d   : >>> { %v3348_v2 = vpop.permute.xlu0 %3347 }
 0x66e   : >>> { %8600 = vmatpush3.msra.mxu0 %v3348_v2  ;;  %v3410_v18 = vpop.permute.xlu1 %3409 }
 0x66f   : >>> { %8658 = vmatpush3.msra.mxu1 %v3410_v18 }
 0x671   : >>> { %v3378_v39 = vpop.permute.xlu0 %3377 }
 0x672   : >>> { %8601 = vmatprep.subr.mxu0 %v3378_v39  ;;  %v3440_v38 = vpop.permute.xlu1 %3439 }
 0x673   : >>> { %8659 = vmatprep.subr.mxu1 %v3440_v38 }
 0x675   : >>> { %v3346_v57 = vpop.permute.xlu0 %3345 }
 0x676   : >>> { %8602 = vmatpush3.msra.mxu0 %v3346_v57  ;;  %v3408_v55 = vpop.permute.xlu1 %3407 }
 0x677   : >>> { %8660 = vmatpush3.msra.mxu1 %v3408_v55 }
 0x679   : >>> { %v3376_v63 = vpop.permute.xlu0 %3375 }
 0x67a   : >>> { %8603 = vmatprep.subr.mxu0 %v3376_v63  ;;  %v3438_v10 = vpop.permute.xlu1 %3437 }
 0x67b   : >>> { %8661 = vmatprep.subr.mxu1 %v3438_v10 }
 0x67d   : >>> { %v3344_v47 = vpop.permute.xlu0 %3343 }
 0x67e   : >>> { %8604 = vmatpush3.msra.mxu0 %v3344_v47  ;;  %v3406_v53 = vpop.permute.xlu1 %3405 }
 0x67f   : >>> { %8662 = vmatpush3.msra.mxu1 %v3406_v53 }
 0x681   : >>> { %v3374_v32 = vpop.permute.xlu0 %3373 }
 0x682   : >>> { %8605 = vmatprep.subr.mxu0 %v3374_v32  ;;  %v3436_v15 = vpop.permute.xlu1 %3435 }
 0x683   : >>> { %8663 = vmatprep.subr.mxu1 %v3436_v15 }
 0x685   : >>> { %v3342_v43 = vpop.permute.xlu0 %3341 }
 0x686   : >>> { %8606 = vmatpush3.msra.mxu0 %v3342_v43  ;;  %v3404_v56 = vpop.permute.xlu1 %3403 }
 0x687   : >>> { %8664 = vmatpush3.msra.mxu1 %v3404_v56 }
 0x688   : >>> { %v8422_v23 = vpop.f32.mrf.mxu0  ;;  %v8478_v22 = vpop.f32.mrf.mxu1 }
 0x689   : >>> { %v3372_v48 = vpop.permute.xlu0 %3371 }
 0x68a   : >>> { %v8423_v45 = vpop.f32.mrf.mxu0  ;;  %v8479_v54 = vpop.f32.mrf.mxu1  ;;  %8607 = vmatprep.subr.mxu0 %v3372_v48 }
 0x68b   : >>> { %v8424_v58 = vadd.f32 %v8423_v45, %v8422_v23  ;;  %v8480_v35 = vadd.f32 %v8479_v54, %v8478_v22  ;;  %v3434_v50 = vpop.permute.xlu1 %3433 }
 0x68c   : >>> { %8665 = vmatprep.subr.mxu1 %v3434_v50 }
 0x68d   : >>> { %v12064_v5 = vadd.f32 %v8480_v35, %v8424_v58  ;;  %v3340_v41 = vpop.permute.xlu0 %3339 }
 0x68e   : >>> { %8608 = vmatpush3.msra.mxu0 %v3340_v41 }
 0x68f   : >>> { %v3402_v60 = vpop.permute.xlu1 %3401 }
 0x690   : >>> { %8666 = vmatpush3.msra.mxu1 %v3402_v60 }
 0x691   : >>> { %v3370_v44 = vpop.permute.xlu0 %3369 }
 0x692   : >>> { %8609 = vmatprep.subr.mxu0 %v3370_v44 }
 0x693   : >>> { %v3432_v34 = vpop.permute.xlu1 %3431 }
 0x694   : >>> { %v8425_v37 = vpop.f32.mrf.mxu0  ;;  %v8481_v11 = vpop.f32.mrf.mxu1  ;;  %8667 = vmatprep.subr.mxu1 %v3432_v34  ;;  %v12102_v34 = vld [vmem:[#allocation3 + $0x108] sm:$0xff] }
 0x695   : >>> { %v3338_v59 = vpop.permute.xlu0 %3337 }
 0x696   : >>> { %v8426_v17 = vpop.f32.mrf.mxu0  ;;  %v8482_v4 = vpop.f32.mrf.mxu1  ;;  %8610 = vmatpush3.msra.mxu0 %v3338_v59 }
 0x697   : >>> { %v8427_v21 = vadd.f32 %v8426_v17, %v8425_v37  ;;  %v8483_v49 = vadd.f32 %v8482_v4, %v8481_v11  ;;  %v15290_v11 = vld [vmem:[#allocation7_spill] sm:$0xff] }
 0x699   : >>> { %v12066_v26 = vadd.f32 %v8483_v49, %v8427_v21  ;;  %v3368_v8 = vpop.permute.xlu0 %3367 }
 0x69a   : >>> { %8611 = vmatprep.subr.mxu0 %v3368_v8 }
 0x6bd   : >>> { %v8428_v1 = vpop.f32.mrf.mxu0 }
 0x6be   : >>> { %v8484_v27 = vpop.f32.mrf.mxu1 }
 0x6bf   : >>> { %v8429_v46 = vpop.f32.mrf.mxu0 }
 0x6c0   : >>> { %v8430_v36 = vadd.f32 %v8429_v46, %v8428_v1  ;;  %v8485_v61 = vpop.f32.mrf.mxu1 }
 0x6c1   : >>> { %v8486_v3 = vadd.f32 %v8485_v61, %v8484_v27 }
 0x6c3   : >>> { %v12068_v13 = vadd.f32 %v8486_v3, %v8430_v36 }
 0x6d6   : >>> { %v2893_v40 = vpop.f32.mrf.mxu0 }
 0x6d7   : >>> { %v3053_v9 = vmul.f32 0.35355338, %v2893_v40 }
 0x6d8   : >>> { %v2895_v51 = vpop.f32.mrf.mxu0 }
 0x6d9   : >>> { %v3054_v33 = vmul.f32 0.35355338, %v2895_v51  ;;  %v12074_v14 = vadd.f32 %v3053_v9, %v15288_v24 }
 0x6da   : >>> { %v2899_v19 = vpop.f32.mrf.mxu0 }
 0x6db   : >>> { %v12071_v0 = vadd.f32 %v3054_v33, %v15287_v16  ;;  %v3057_v12 = vmul.f32 0.35355338, %v2899_v19 }
 0x6dc   : >>> { %v2901_v25 = vpop.f32.mrf.mxu0  ;;  %v3006_v23 = vpop.f32.mrf.mxu1 }
 0x6dd   : >>> { %v3058_v22 = vmul.f32 0.35355338, %v2901_v25  ;;  %v3055_v52 = vmul.f32 0.35355338, %v3006_v23  ;;  %v3117_v45 = vmax.f32 %v12074_v14, %v12071_v0  ;;  %v12079_v58 = vadd.f32 %v3057_v12, %v15288_v24 }
 0x6de   : >>> { %v3008_v54 = vpop.f32.mrf.mxu1 }
 0x6df   : >>> { %v12082_v35 = vadd.f32 %v3058_v22, %v15287_v16  ;;  %v12085_v7 = vadd.f32 %v3055_v52, %v15289_v29  ;;  %v3056_v20 = vmul.f32 0.35355338, %v3008_v54  ;;  %v2905_v2 = vpop.f32.mrf.mxu0 }
 0x6e0   : >>> { %v3012_v18 = vpop.f32.mrf.mxu1  ;;  %v3061_v46 = vmul.f32 0.35355338, %v2905_v2 }
 0x6e1   : >>> { %v3118_v37 = vmax.f32 %v3117_v45, %v12085_v7  ;;  %v12089_v39 = vadd.f32 %v3056_v20, %v15290_v11  ;;  %v3059_v17 = vmul.f32 0.35355338, %v3012_v18  ;;  %v3122_v21 = vmax.f32 %v12079_v58, %v12082_v35  ;;  %v2907_v55 = vpop.f32.mrf.mxu0 }
 0x6e2   : >>> { %v3014_v4 = vpop.f32.mrf.mxu1  ;;  %v3062_v36 = vmul.f32 0.35355338, %v2907_v55  ;;  %v12109_v40 = vadd.f32 %v3061_v46, %v15288_v24 }
 0x6e3   : >>> { %v12094_v49 = vadd.f32 %v3059_v17, %v15289_v29  ;;  %v3060_v38 = vmul.f32 0.35355338, %v3014_v4  ;;  %v3119_v57 = vmax.f32 %v3118_v37, %v12089_v39  ;;  %v2911_v53 = vpop.f32.mrf.mxu0 }
 0x6e4   : >>> { %v3018_v32 = vpop.f32.mrf.mxu1  ;;  %v12112_v9 = vadd.f32 %v3062_v36, %v15287_v16  ;;  %v3065_v19 = vmul.f32 0.35355338, %v2911_v53 }
 0x6e5   : >>> { %v3123_v63 = vmax.f32 %v3122_v21, %v12094_v49  ;;  %v12099_v10 = vadd.f32 %v3060_v38, %v15290_v11  ;;  %3120 = vmax.xlane.f32.xlu0 %v3119_v57  ;;  %v2913_v15 = vpop.f32.mrf.mxu0  ;;  %v3063_v12 = vmul.f32 0.35355338, %v3018_v32 }
 0x6e6   : >>> { %v3020_v43 = vpop.f32.mrf.mxu1  ;;  %v3066_v25 = vmul.f32 0.35355338, %v2913_v15  ;;  %v3127_v22 = vmax.f32 %v12109_v40, %v12112_v9  ;;  %v12117_v54 = vadd.f32 %v3065_v19, %v15288_v24 }
 0x6e7   : >>> { %v3124_v47 = vmax.f32 %v3123_v63, %v12099_v10  ;;  %v2917_v56 = vpop.f32.mrf.mxu0  ;;  %v12120_v20 = vadd.f32 %v3063_v12, %v15289_v29  ;;  %v3064_v18 = vmul.f32 0.35355338, %v3020_v43 }
 0x6e8   : >>> { %v3024_v48 = vpop.f32.mrf.mxu1  ;;  %v12123_v2 = vadd.f32 %v3066_v25, %v15287_v16  ;;  %v3069_v37 = vmul.f32 0.35355338, %v2917_v56 }
 0x6e9   : >>> { %3125 = vmax.xlane.f32.xlu1 %v3124_v47  ;;  %v2919_v50 = vpop.f32.mrf.mxu0  ;;  %v3067_v55 = vmul.f32 0.35355338, %v3024_v48  ;;  %v3128_v53 = vmax.f32 %v3127_v22, %v12120_v20  ;;  %v12133_v32 = vadd.f32 %v3064_v18, %v15290_v11 }
 0x6ea   : >>> { %v3026_v41 = vpop.f32.mrf.mxu1  ;;  %v3070_v63 = vmul.f32 0.35355338, %v2919_v50  ;;  %v3132_v15 = vmax.f32 %v12117_v54, %v12123_v2  ;;  %v12138_v43 = vadd.f32 %v3069_v37, %v15288_v24 }
 0x6eb   : >>> { %v2923_v60 = vpop.f32.mrf.mxu0  ;;  %v12152_v46 = vadd.f32 %v3067_v55, %v15289_v29 }
 0x6ec   : >>> { %v3030_v44 = vpop.f32.mrf.mxu1  ;;  %v12155_v36 = vadd.f32 %v3070_v63, %v15287_v16 }
 0x6ed   : >>> { %v2925_v59 = vpop.f32.mrf.mxu0  ;;  %v3071_v19 = vmul.f32 0.35355338, %v3030_v44 }
 0x6ee   : >>> { %v3032_v1 = vpop.f32.mrf.mxu1  ;;  %v3074_v23 = vmul.f32 0.35355338, %v2925_v59  ;;  %v3137_v44 = vmax.f32 %v12138_v43, %v12155_v36 }
 0x6ef   : >>> { %v2929_v8 = vpop.f32.mrf.mxu0 }
 0x6f0   : >>> { %v3036_v27 = vpop.f32.mrf.mxu1  ;;  %v12129_v4 = vadd.f32 %v3074_v23, %v15287_v16  ;;  %v3077_v25 = vmul.f32 0.35355338, %v2929_v8  ;;  %v3129_v23 = vmax.f32 %v3128_v53, %v12133_v32 }
 0x6f1   : >>> { %v2931_v61 = vpop.f32.mrf.mxu0  ;;  %v3075_v21 = vmul.f32 0.35355338, %v3036_v27 }
 0x6f2   : >>> { %v3038_v3 = vpop.f32.mrf.mxu1 }
 0x6f3   : >>> { %v2935_v51 = vpop.f32.mrf.mxu0  ;;  %v3076_v48 = vmul.f32 0.35355338, %v3038_v3 }
 0x6f4   : >>> { %v3042_v33 = vpop.f32.mrf.mxu1  ;;  %v3081_v38 = vmul.f32 0.35355338, %v2935_v51  ;;  %v3068_v51 = vmul.f32 0.35355338, %v3026_v41  ;;  %v3133_v41 = vmax.f32 %v3132_v15, %v12152_v46 }
 0x6f5   : >>> { %v2937_v52 = vpop.f32.mrf.mxu0  ;;  %v12160_v22 = vadd.f32 %v3076_v48, %v15290_v11  ;;  %v3079_v55 = vmul.f32 0.35355338, %v3042_v33 }
 0x6f6   : >>> { %v3044_v45 = vpop.f32.mrf.mxu1  ;;  %v3082_v57 = vmul.f32 0.35355338, %v2937_v52  ;;  %v12146_v50 = vadd.f32 %v3081_v38, %v15288_v24  ;;  %v12171_v8 = vadd.f32 %v3068_v51, %v15290_v11  ;;  %v12177_v38 = vadd.f32 %v3077_v25, %v15288_v24 }
 0x6f7   : >>> { %v12195_v33 = vadd.f32 %v3079_v55, %v15289_v29 }
 0x6f8   : >>> { %v3048_v47 = vpop.f32.mrf.mxu1  ;;  %v12149_v59 = vadd.f32 %v3082_v57, %v15287_v16 }
 0x6f9   : >>> { %v3083_v27 = vmul.f32 0.35355338, %v3048_v47 }
 0x6fa   : >>> { %3399 = vrot.lane.b32.xlu1 %v12102_v34, %s10163_s29  ;;  %v3050_v12 = vpop.f32.mrf.mxu1  ;;  %v3152_v52 = vmax.f32 %v12146_v50, %v12149_v59 }
 0x6fb   : >>> { %3335 = vrot.lane.b32.xlu0 %v11786_v30, %s10163_s29  ;;  %v3073_v30 = vmul.f32 0.35355338, %v2923_v60  ;;  %v12143_v60 = vadd.f32 %v3075_v21, %v15289_v29  ;;  %v12165_v18 = vadd.f32 %v3083_v27, %v15289_v29  ;;  %v3084_v37 = vmul.f32 0.35355338, %v3050_v12 }
 0x6fc   : >>> { %v3072_v21 = vmul.f32 0.35355338, %v3032_v1  ;;  %v3080_v27 = vmul.f32 0.35355338, %v3044_v45  ;;  %v12208_v45 = vld [vmem:[#allocation3 + $0x80] sm:$0xff] }
 0x6fd   : >>> { %v12126_v17 = vadd.f32 %v3073_v30, %v15288_v24  ;;  %v3078_v30 = vmul.f32 0.35355338, %v2931_v61  ;;  %v12174_v61 = vadd.f32 %v3071_v19, %v15289_v29  ;;  %v3153_v63 = vmax.f32 %v3152_v52, %v12165_v18  ;;  %v12418_v29 = vld [vmem:[#allocation3 + $0x1d8] sm:$0xff] }
 0x6fe   : >>> { %v12184_v47 = vadd.f32 %v3084_v37, %v15290_v11  ;;  %v12190_v1 = vadd.f32 %v3072_v21, %v15290_v11  ;;  %v12200_v12 = vadd.f32 %v3080_v27, %v15290_v11  ;;  %v12414_v11 = vld [vmem:[#allocation3 + $0x60] sm:$0xff]  ;;  %15300 = vst [vmem:[#allocation35_spill] sm:$0xff] %v12418_v29  ;;  %v12426_v24 = vld [vmem:[#allocation3 + $0x158] sm:$0xff] }
 0x6ff   : >>> { %v3142_v56 = vmax.f32 %v12126_v17, %v12129_v4  ;;  %v12180_v57 = vadd.f32 %v3078_v30, %v15287_v16  ;;  %v3138_v15 = vmax.f32 %v3137_v44, %v12174_v61  ;;  %15299 = vst [vmem:[#allocation38_spill] sm:$0xff] %v12414_v11  ;;  %v12422_v16 = vld [vmem:[#allocation3 + $0xd8] sm:$0xff]  ;;  %15302 = vst [vmem:[#allocation8_spill] sm:$0xff] %v12426_v24 }
 0x700   : >>> { %v3154_v51 = vmax.f32 %v3153_v63, %v12184_v47  ;;  %15301 = vst [vmem:[#allocation37_spill] sm:$0xff] %v12422_v16 }
 0x701   : >>> { %v3143_v3 = vmax.f32 %v3142_v56, %v12143_v60  ;;  %v3134_v56 = vmax.f32 %v3133_v41, %v12171_v8  ;;  %v3147_v48 = vmax.f32 %v12177_v38, %v12180_v57  ;;  %v3139_v25 = vmax.f32 %v3138_v15, %v12190_v1 }
 0x703   : >>> { %v3144_v53 = vmax.f32 %v3143_v3, %v12160_v22  ;;  %v3148_v19 = vmax.f32 %v3147_v48, %v12195_v33  ;;  %v12204_v3 = vld [vmem:[#allocation3 + $0x180] sm:$0xff] }
 0x705   : >>> { %v3149_v30 = vmax.f32 %v3148_v19, %v12200_v12 }
 0x71a   : >>> { %3130 = vmax.xlane.f32.xlu0 %v3129_v23 }
 0x71e   : >>> { %3135 = vmax.xlane.f32.xlu0 %v3134_v56  ;;  %3145 = vmax.xlane.f32.xlu1 %v3144_v53 }
 0x722   : >>> { %3140 = vmax.xlane.f32.xlu0 %v3139_v25  ;;  %3155 = vmax.xlane.f32.xlu1 %v3154_v51 }
 0x726   : >>> { %3150 = vmax.xlane.f32.xlu0 %v3149_v30 }
 0x733   : >>> { %3429 = vrot.lane.b32.xlu1 %v12204_v3, %s10163_s29 }
 0x73c   : >>> { %3365 = vrot.lane.b32.xlu0 %v12208_v45, %s10163_s29 }
 0x76e   : >>> { %v3121_v23 = vpop.xlane.xlu0 %3120 }
 0x76f   : >>> { %v3157_v52 = vsub.f32 %v12074_v14, %v3121_v23  ;;  %v3158_v37 = vsub.f32 %v12071_v0, %v3121_v23  ;;  %v3159_v41 = vsub.f32 %v12085_v7, %v3121_v23  ;;  %v3160_v44 = vsub.f32 %v12089_v39, %v3121_v23 }
 0x771   : >>> { %v3189_v21 = vmul.f32 1.442695, %v3157_v52  ;;  %v3191_v55 = vmul.f32 1.442695, %v3158_v37  ;;  %v3193_v63 = vmul.f32 1.442695, %v3159_v41 }
 0x772   : >>> { %v3195_v53 = vmul.f32 1.442695, %v3160_v44  ;;  %v3126_v15 = vpop.xlane.xlu1 %3125  ;;  %v3336_v56 = vpop.permute.xlu0 %3335 }
 0x773   : >>> { %9613 = vpow2.f32 %v3189_v21  ;;  %v3161_v48 = vsub.f32 %v12079_v58, %v3126_v15  ;;  %v3162_v27 = vsub.f32 %v12082_v35, %v3126_v15  ;;  %v3163_v51 = vsub.f32 %v12094_v49, %v3126_v15  ;;  %8612 = vmatpush3.msra.mxu0 %v3336_v56  ;;  %v12248_v56 = vld [vmem:[#allocation3] sm:$0xff] }
 0x774   : >>> { %9615 = vpow2.f32 %v3191_v55  ;;  %v3164_v0 = vsub.f32 %v12099_v10, %v3126_v15  ;;  %v12244_v15 = vld [vmem:[#allocation3 + $0x100] sm:$0xff] }
 0x775   : >>> { %9617 = vpow2.f32 %v3193_v63  ;;  %v3197_v14 = vmul.f32 1.442695, %v3161_v48  ;;  %v3199_v7 = vmul.f32 1.442695, %v3162_v27  ;;  %v3201_v39 = vmul.f32 1.442695, %v3163_v51 }
 0x776   : >>> { %9619 = vpow2.f32 %v3195_v53  ;;  %v3400_v19 = vpop.permute.xlu1 %3399  ;;  %v3203_v25 = vmul.f32 1.442695, %v3164_v0 }
 0x777   : >>> { %9621 = vpow2.f32 %v3197_v14  ;;  %8668 = vmatpush3.msra.mxu1 %v3400_v19 }
 0x778   : >>> { %9623 = vpow2.f32 %v3199_v7 }
 0x779   : >>> { %9625 = vpow2.f32 %v3201_v39 }
 0x77a   : >>> { %9627 = vpow2.f32 %v3203_v25 }
 0x780   : >>> { %v12220_v58 = vpop.eup %9613 }
 0x781   : >>> { %v12222_v35 = vpop.eup %9615 }
 0x782   : >>> { %v12224_v49 = vpop.eup %9617  ;;  %v3253_v10 = vadd.f32 %v12222_v35, %v12220_v58 }
 0x783   : >>> { %v12228_v30 = vpop.eup %9619 }
 0x784   : >>> { %v12230_v23 = vpop.eup %9621  ;;  %v3254_v52 = vadd.f32 %v12224_v49, %v3253_v10 }
 0x785   : >>> { %v12233_v37 = vpop.eup %9623 }
 0x786   : >>> { %v3255_v41 = vadd.f32 %v12228_v30, %v3254_v52  ;;  %v3258_v44 = vadd.f32 %v12233_v37, %v12230_v23  ;;  %v12238_v21 = vpop.eup %9625 }
 0x787   : >>> { %v12241_v63 = vpop.eup %9627 }
 0x788   : >>> { %3256 = vadd.xlane.f32.xlu0 %v3255_v41  ;;  %v3259_v55 = vadd.f32 %v12238_v21, %v3258_v44 }
 0x78a   : >>> { %v3260_v53 = vadd.f32 %v12241_v63, %v3259_v55 }
 0x78c   : >>> { %3261 = vadd.xlane.f32.xlu1 %v3260_v53 }
 0x79d   : >>> { %3397 = vrot.lane.b32.xlu1 %v12244_v15, %s10163_s29 }
 0x79e   : >>> { %3333 = vrot.lane.b32.xlu0 %v12248_v56, %s10163_s29  ;;  %s10167_s29 = smov 72  }
 0x7a3   : >>> { %v3131_v48 = vpop.xlane.xlu0 %3130 }
 0x7a4   : >>> { %v3165_v27 = vsub.f32 %v12109_v40, %v3131_v48  ;;  %v3166_v51 = vsub.f32 %v12112_v9, %v3131_v48  ;;  %v3167_v0 = vsub.f32 %v12120_v20, %v3131_v48  ;;  %v3168_v14 = vsub.f32 %v12133_v32, %v3131_v48 }
 0x7a6   : >>> { %v3205_v7 = vmul.f32 1.442695, %v3165_v27  ;;  %v3207_v39 = vmul.f32 1.442695, %v3166_v51  ;;  %v3209_v19 = vmul.f32 1.442695, %v3167_v0 }
 0x7a7   : >>> { %v3211_v25 = vmul.f32 1.442695, %v3168_v14  ;;  %v12256_v10 = vpop.xlane.xlu1 %3145  ;;  %v3136_v52 = vpop.xlane.xlu0 %3135 }
 0x7a8   : >>> { %9629 = vpow2.f32 %v3205_v7  ;;  %v3177_v41 = vsub.f32 %v12126_v17, %v12256_v10  ;;  %v3178_v40 = vsub.f32 %v12129_v4, %v12256_v10  ;;  %v3179_v9 = vsub.f32 %v12143_v60, %v12256_v10 }
 0x7a9   : >>> { %9631 = vpow2.f32 %v3207_v39  ;;  %v3169_v20 = vsub.f32 %v12117_v54, %v3136_v52  ;;  %v3170_v32 = vsub.f32 %v12123_v2, %v3136_v52  ;;  %v3171_v48 = vsub.f32 %v12152_v46, %v3136_v52 }
 0x7aa   : >>> { %v3229_v44 = vmul.f32 1.442695, %v3177_v41  ;;  %v3231_v55 = vmul.f32 1.442695, %v3178_v40  ;;  %9633 = vpow2.f32 %v3209_v19  ;;  %v3233_v53 = vmul.f32 1.442695, %v3179_v9 }
 0x7ab   : >>> { %v3172_v27 = vsub.f32 %v12171_v8, %v3136_v52  ;;  %v3156_v17 = vpop.xlane.xlu1 %3155  ;;  %v3141_v51 = vpop.xlane.xlu0 %3140  ;;  %9635 = vpow2.f32 %v3211_v25  ;;  %v3213_v4 = vmul.f32 1.442695, %v3169_v20  ;;  %v3215_v60 = vmul.f32 1.442695, %v3170_v32 }
 0x7ac   : >>> { %v3185_v0 = vsub.f32 %v12146_v50, %v3156_v17  ;;  %9637 = vpow2.f32 %v3229_v44  ;;  %v3186_v54 = vsub.f32 %v12149_v59, %v3156_v17  ;;  %v3217_v2 = vmul.f32 1.442695, %v3171_v48 }
 0x7ad   : >>> { %9639 = vpow2.f32 %v3231_v55  ;;  %v3187_v14 = vsub.f32 %v12165_v18, %v3156_v17  ;;  %v3219_v7 = vmul.f32 1.442695, %v3172_v27  ;;  %v3188_v46 = vsub.f32 %v12184_v47, %v3156_v17 }
 0x7ae   : >>> { %9641 = vpow2.f32 %v3233_v53  ;;  %v3245_v19 = vmul.f32 1.442695, %v3185_v0  ;;  %v3173_v25 = vsub.f32 %v12138_v43, %v3141_v51  ;;  %v3247_v50 = vmul.f32 1.442695, %v3186_v54 }
 0x7af   : >>> { %v3151_v39 = vpop.xlane.xlu0 %3150  ;;  %v3430_v8 = vpop.permute.xlu1 %3429  ;;  %9643 = vpow2.f32 %v3213_v4  ;;  %v3174_v52 = vsub.f32 %v12155_v36, %v3141_v51  ;;  %v3249_v59 = vmul.f32 1.442695, %v3187_v14  ;;  %v3175_v41 = vsub.f32 %v12174_v61, %v3141_v51 }
 0x7b0   : >>> { %8669 = vmatprep.subr.mxu1 %v3430_v8  ;;  %9645 = vpow2.f32 %v3215_v60  ;;  %v3251_v18 = vmul.f32 1.442695, %v3188_v46  ;;  %v3176_v40 = vsub.f32 %v12190_v1, %v3141_v51  ;;  %v3221_v9 = vmul.f32 1.442695, %v3173_v25 }
 0x7b1   : >>> { %9647 = vpow2.f32 %v3217_v2  ;;  %v3181_v20 = vsub.f32 %v12177_v38, %v3151_v39  ;;  %v3223_v32 = vmul.f32 1.442695, %v3174_v52  ;;  %v3182_v36 = vsub.f32 %v12180_v57, %v3151_v39 }
 0x7b2   : >>> { %9649 = vpow2.f32 %v3219_v7  ;;  %v3225_v61 = vmul.f32 1.442695, %v3175_v41  ;;  %v3227_v55 = vmul.f32 1.442695, %v3176_v40  ;;  %v3180_v38 = vsub.f32 %v12160_v22, %v12256_v10 }
 0x7b3   : >>> { %v3366_v47 = vpop.permute.xlu0 %3365  ;;  %9651 = vpow2.f32 %v3245_v19  ;;  %v3237_v48 = vmul.f32 1.442695, %v3181_v20  ;;  %v3183_v57 = vsub.f32 %v12195_v33, %v3151_v39  ;;  %v3239_v17 = vmul.f32 1.442695, %v3182_v36 }
 0x7b4   : >>> { %8613 = vmatprep.subr.mxu0 %v3366_v47  ;;  %9653 = vpow2.f32 %v3247_v50  ;;  %v3235_v22 = vmul.f32 1.442695, %v3180_v38  ;;  %v3184_v2 = vsub.f32 %v12200_v12, %v3151_v39 }
 0x7b5   : >>> { %v12277_v43 = vpop.eup %9629  ;;  %9655 = vpow2.f32 %v3249_v59  ;;  %v3241_v33 = vmul.f32 1.442695, %v3183_v57 }
 0x7b6   : >>> { %v12280_v44 = vpop.eup %9631  ;;  %9657 = vpow2.f32 %v3251_v18  ;;  %v3243_v25 = vmul.f32 1.442695, %v3184_v2 }
 0x7b7   : >>> { %v3263_v1 = vadd.f32 %v12280_v44, %v12277_v43  ;;  %v12284_v53 = vpop.eup %9633  ;;  %9659 = vpow2.f32 %v3221_v9 }
 0x7b8   : >>> { %v12288_v27 = vpop.eup %9635  ;;  %9661 = vpow2.f32 %v3223_v32 }
 0x7b9   : >>> { %v3264_v51 = vadd.f32 %v12284_v53, %v3263_v1  ;;  %v12292_v4 = vpop.eup %9637  ;;  %9663 = vpow2.f32 %v3225_v61 }
 0x7ba   : >>> { %v12294_v0 = vpop.eup %9639  ;;  %9665 = vpow2.f32 %v3227_v55 }
 0x7bb   : >>> { %v3265_v60 = vadd.f32 %v12288_v27, %v3264_v51  ;;  %v12297_v54 = vpop.eup %9641  ;;  %9667 = vpow2.f32 %v3237_v48  ;;  %v3278_v36 = vadd.f32 %v12294_v0, %v12292_v4 }
 0x7bc   : >>> { %v12299_v10 = vpop.eup %9643  ;;  %9669 = vpow2.f32 %v3239_v17 }
 0x7bd   : >>> { %3266 = vadd.xlane.f32.xlu0 %v3265_v60  ;;  %v12302_v14 = vpop.eup %9645  ;;  %9671 = vpow2.f32 %v3235_v22  ;;  %v3279_v57 = vadd.f32 %v12297_v54, %v3278_v36  ;;  %v12382_v36 = vld [vmem:[#allocation3 + $0x70] sm:$0xff] }
 0x7be   : >>> { %v12304_v7 = vpop.eup %9647  ;;  %v3268_v46 = vadd.f32 %v12302_v14, %v12299_v10  ;;  %9673 = vpow2.f32 %v3241_v33  ;;  %15292 = vst [vmem:[#allocation23_spill] sm:$0xff] %v12382_v36 }
 0x7bf   : >>> { %v12308_v8 = vpop.eup %9649  ;;  %9675 = vpow2.f32 %v3243_v25  ;;  %v12354_v25 = vld [vmem:[#allocation3 + $0x78] sm:$0xff] }
 0x7c0   : >>> { %v12310_v19 = vpop.eup %9651  ;;  %v3269_v50 = vadd.f32 %v12304_v7, %v3268_v46 }
 0x7c1   : >>> { %v12313_v12 = vpop.eup %9653 }
 0x7c2   : >>> { %v12315_v39 = vpop.eup %9655  ;;  %v3270_v52 = vadd.f32 %v12308_v8, %v3269_v50  ;;  %v3288_v59 = vadd.f32 %v12313_v12, %v12310_v19  ;;  %v12358_v50 = vld [vmem:[#allocation3 + $0xf0] sm:$0xff] }
 0x7c3   : >>> { %v12320_v41 = vpop.eup %9657 }
 0x7c4   : >>> { %v12322_v18 = vpop.eup %9659  ;;  %3271 = vadd.xlane.f32.xlu1 %v3270_v52  ;;  %v3289_v40 = vadd.f32 %v12315_v39, %v3288_v59  ;;  %v12362_v52 = vld [vmem:[#allocation3 + $0x1f8] sm:$0xff] }
 0x7c5   : >>> { %v12325_v47 = vpop.eup %9661  ;;  %v12366_v59 = vld [vmem:[#allocation3 + $0x178] sm:$0xff] }
 0x7c6   : >>> { %v12327_v9 = vpop.eup %9663  ;;  %v3290_v20 = vadd.f32 %v12320_v41, %v3289_v40  ;;  %v3273_v32 = vadd.f32 %v12325_v47, %v12322_v18  ;;  %v12370_v40 = vld [vmem:[#allocation3 + $0x1f0] sm:$0xff] }
 0x7c7   : >>> { %v12334_v61 = vpop.eup %9665 }
 0x7c8   : >>> { %v12336_v55 = vpop.eup %9667  ;;  %3291 = vadd.xlane.f32.xlu1 %v3290_v20  ;;  %v3274_v1 = vadd.f32 %v12327_v9, %v3273_v32  ;;  %v12374_v20 = vld [vmem:[#allocation3 + $0xf8] sm:$0xff]  ;;  %v12378_v32 = vld [vmem:[#allocation3 + $0x170] sm:$0xff] }
 0x7c9   : >>> { %v12339_v38 = vpop.eup %9669  ;;  %15291 = vst [vmem:[#allocation29_spill] sm:$0xff] %v12378_v32 }
 0x7ca   : >>> { %v3275_v48 = vadd.f32 %v12334_v61, %v3274_v1  ;;  %v3283_v17 = vadd.f32 %v12339_v38, %v12336_v55  ;;  %v12345_v51 = vpop.eup %9671  ;;  %v12386_v1 = vld [vmem:[#allocation3 + $0x1e8] sm:$0xff] }
 0x7cb   : >>> { %v12347_v60 = vpop.eup %9673  ;;  %v3280_v22 = vadd.f32 %v12345_v51, %v3279_v57  ;;  %15293 = vst [vmem:[#allocation28_spill] sm:$0xff] %v12386_v1  ;;  %v12394_v57 = vld [vmem:[#allocation3 + $0x168] sm:$0xff] }
 0x7cc   : >>> { %3276 = vadd.xlane.f32.xlu0 %v3275_v48  ;;  %v3284_v2 = vadd.f32 %v12347_v60, %v3283_v17  ;;  %v12351_v33 = vpop.eup %9675  ;;  %v12390_v48 = vld [vmem:[#allocation3 + $0xe8] sm:$0xff]  ;;  %15295 = vst [vmem:[#allocation26_spill] sm:$0xff] %v12394_v57 }
 0x7cd   : >>> { %15294 = vst [vmem:[#allocation25_spill] sm:$0xff] %v12390_v48  ;;  %v12398_v17 = vld [vmem:[#allocation3 + $0x68] sm:$0xff] }
 0x7ce   : >>> { %v3285_v46 = vadd.f32 %v12351_v33, %v3284_v2  ;;  %15296 = vst [vmem:[#allocation33_spill] sm:$0xff] %v12398_v17  ;;  %v12406_v2 = vld [vmem:[#allocation3 + $0xe0] sm:$0xff] }
 0x7cf   : >>> { %15297 = vst [vmem:[#allocation34_spill] sm:$0xff] %v12406_v2 }
 0x7d0   : >>> { %3281 = vadd.xlane.f32.xlu0 %v3280_v22  ;;  %v12402_v22 = vld [vmem:[#allocation3 + $0x1e0] sm:$0xff] }
 0x7d4   : >>> { %3286 = vadd.xlane.f32.xlu0 %v3285_v46  ;;  %v12410_v46 = vld [vmem:[#allocation3 + $0x160] sm:$0xff] }
 0x7d5   : >>> { %15298 = vst [vmem:[#allocation36_spill] sm:$0xff] %v12410_v46 }
 0x7d9   : >>> { %4039 = vrot.lane.b32.xlu1 %v12354_v25, %s10164_s30 }
 0x7dd   : >>> { %4069 = vrot.lane.b32.xlu1 %v12358_v50, %s10164_s30 }
 0x7e1   : >>> { %4135 = vrot.lane.b32.xlu1 %v12362_v52, %s10164_s30 }
 0x7e5   : >>> { %4103 = vrot.lane.b32.xlu1 %v12366_v59, %s10164_s30 }
 0x7e9   : >>> { %4133 = vrot.lane.b32.xlu1 %v12370_v40, %s10164_s30 }
 0x7ea   : >>> { %4071 = vrot.lane.b32.xlu0 %v12374_v20, %s10164_s30 }
 0x7ed   : >>> { %4101 = vrot.lane.b32.xlu1 %v12378_v32, %s10164_s30 }
 0x7ee   : >>> { %4037 = vrot.lane.b32.xlu0 %v12382_v36, %s10164_s30 }
 0x7f1   : >>> { %4131 = vrot.lane.b32.xlu1 %v12386_v1, %s10164_s30  ;;  %v12442_v1 = vld [vmem:[#allocation3 + $0x150] sm:$0xff] }
 0x7f2   : >>> { %4067 = vrot.lane.b32.xlu0 %v12390_v48, %s10164_s30  ;;  %15306 = vst [vmem:[#allocation15_spill] sm:$0xff] %v12442_v1 }
 0x7f5   : >>> { %4099 = vrot.lane.b32.xlu1 %v12394_v57, %s10164_s30  ;;  %v12434_v57 = vld [vmem:[#allocation3 + $0x1d0] sm:$0xff] }
 0x7f6   : >>> { %4035 = vrot.lane.b32.xlu0 %v12398_v17, %s10164_s30  ;;  %15304 = vst [vmem:[#allocation12_spill] sm:$0xff] %v12434_v57  ;;  %v12438_v17 = vld [vmem:[#allocation3 + $0xd0] sm:$0xff] }
 0x7f7   : >>> { %15305 = vst [vmem:[#allocation9_spill] sm:$0xff] %v12438_v17 }
 0x7f9   : >>> { %4129 = vrot.lane.b32.xlu1 %v12402_v22, %s10164_s30 }
 0x7fa   : >>> { %4065 = vrot.lane.b32.xlu0 %v12406_v2, %s10164_s30  ;;  %v12430_v2 = vld [vmem:[#allocation3 + $0x58] sm:$0xff] }
 0x7fb   : >>> { %15303 = vst [vmem:[#allocation24_spill] sm:$0xff] %v12430_v2 }
 0x7fd   : >>> { %4097 = vrot.lane.b32.xlu1 %v12410_v46, %s10164_s30 }
 0x7fe   : >>> { %4033 = vrot.lane.b32.xlu0 %v12414_v11, %s10164_s30 }
 0x801   : >>> { %4127 = vrot.lane.b32.xlu1 %v12418_v29, %s10164_s30  ;;  %v12450_v29 = vld [vmem:[#allocation3 + $0x1c8] sm:$0xff] }
 0x802   : >>> { %4063 = vrot.lane.b32.xlu0 %v12422_v16, %s10164_s30  ;;  %15308 = vst [vmem:[#allocation18_spill] sm:$0xff] %v12450_v29  ;;  %v12474_v16 = vld [vmem:[#allocation3 + $0x1c0] sm:$0xff] }
 0x803   : >>> { %15312 = vst [vmem:[#allocation22_spill] sm:$0xff] %v12474_v16 }
 0x805   : >>> { %4095 = vrot.lane.b32.xlu1 %v12426_v24, %s10164_s30  ;;  %v12446_v24 = vld [vmem:[#allocation3 + $0x50] sm:$0xff] }
 0x806   : >>> { %4031 = vrot.lane.b32.xlu0 %v12430_v2, %s10164_s30  ;;  %15307 = vst [vmem:[#allocation27_spill] sm:$0xff] %v12446_v24 }
 0x809   : >>> { %4125 = vrot.lane.b32.xlu1 %v12434_v57, %s10164_s30  ;;  %v12454_v57 = vld [vmem:[#allocation3 + $0xc8] sm:$0xff] }
 0x80a   : >>> { %4061 = vrot.lane.b32.xlu0 %v12438_v17, %s10164_s30  ;;  %15309 = vst [vmem:[#allocation13_spill] sm:$0xff] %v12454_v57  ;;  %v12465_v17 = vld [vmem:[#allocation3 + $0x148] sm:$0xff] }
 0x80b   : >>> { %15310 = vst [vmem:[#allocation20_spill] sm:$0xff] %v12465_v17 }
 0x80d   : >>> { %4093 = vrot.lane.b32.xlu1 %v12442_v1, %s10164_s30  ;;  %v1189_v1 = vld [vmem:[%s12462_s25 + $0x8] sm:$0xff] }
 0x80e   : >>> { %4029 = vrot.lane.b32.xlu0 %v12446_v24, %s10164_s30 }
 0x811   : >>> { %v3257_v2 = vpop.xlane.xlu0 %3256  ;;  %4123 = vrot.lane.b32.xlu1 %v12450_v29, %s10164_s30  ;;  %v12469_v29 = vld [vmem:[#allocation3 + $0x48] sm:$0xff] }
 0x812   : >>> { %9677 = vrcp.f32 %v3257_v2  ;;  %4059 = vrot.lane.b32.xlu0 %v12454_v57, %s10164_s30  ;;  %15311 = vst [vmem:[#allocation11_spill] sm:$0xff] %v12469_v29  ;;  %v1188_v57 = vld [vmem:[%s12462_s25] sm:$0xff] }
 0x815   : >>> { %v3262_v24 = vpop.xlane.xlu1 %3261  ;;  %v3334_v2 = vpop.permute.xlu0 %3333  ;;  %4091 = vrot.lane.b32.xlu1 %v12465_v17, %s10164_s30 }
 0x816   : >>> { %9679 = vrcp.f32 %v3262_v24  ;;  %8614 = vmatpush3.msra.mxu0 %v3334_v2  ;;  %4027 = vrot.lane.b32.xlu0 %v12469_v29, %s10164_s30  ;;  %v12478_v24 = vld [vmem:[#allocation3 + $0xc0] sm:$0xff] }
 0x817   : >>> { %9231 = vmatprep.subr.mxu0 %v1189_v1  ;;  %15313 = vst [vmem:[#allocation14_spill] sm:$0xff] %v12478_v24  ;;  %v12482_v2 = vld [vmem:[#allocation3 + $0x140] sm:$0xff] }
 0x818   : >>> { %15314 = vst [vmem:[#allocation39_spill] sm:$0xff] %v12482_v2  ;;  %v12486_v29 = vld [vmem:[#allocation3 + $0x40] sm:$0xff] }
 0x819   : >>> { %v3398_v48 = vpop.permute.xlu1 %3397  ;;  %4121 = vrot.lane.b32.xlu1 %v12474_v16, %s10164_s30  ;;  %15315 = vst [vmem:[#allocation16_spill] sm:$0xff] %v12486_v29 }
 0x81a   : >>> { %8670 = vmatpush3.msra.mxu1 %v3398_v48  ;;  %4057 = vrot.lane.b32.xlu0 %v12478_v24, %s10164_s30 }
 0x81b   : >>> { %9245 = vmatprep.subr.mxu1 %v1188_v57 }
 0x81d   : >>> { %4089 = vrot.lane.b32.xlu1 %v12482_v2, %s10164_s30 }
 0x81e   : >>> { %4025 = vrot.lane.b32.xlu0 %v12486_v29, %s10164_s30 }
 0x81f   : >>> { %v9678_v17 = vpop.eup %9677 }
 0x820   : >>> { %v3302_v48 = vmul.f32 %v9678_v17, %v12222_v35  ;;  %v3304_v16 = vmul.f32 %v9678_v17, %v12228_v30  ;;  %v3301_v32 = vmul.f32 %v9678_v17, %v12220_v58  ;;  %v3303_v46 = vmul.f32 %v9678_v17, %v12224_v49  ;;  %v12498_v35 = vld [vmem:[#allocation3 + $0xb8] sm:$0xff]  ;;  %v12514_v30 = vld [vmem:[#allocation3 + $0xb0] sm:$0xff]  ;;  %v12558_v17 = vld [vmem:[#allocation3 + $0x120] sm:$0xff] }
 0x821   : >>> { %v12502_v58 = vld [vmem:[#allocation3 + $0x1b8] sm:$0xff]  ;;  %15322 = vst [vmem:[#allocation19_spill] sm:$0xff] %v12558_v17 }
 0x822   : >>> { %3589 = vmatprep.mubr.f32.mxu0 %v3302_v48  ;;  %3694 = vmatprep.mubr.f32.mxu1 %v3304_v16  ;;  %v12506_v16 = vld [vmem:[#allocation3 + $0x38] sm:$0xff] }
 0x823   : >>> { %v9680_v24 = vpop.eup %9679  ;;  %3590 = vmatmul.mubr.f32.vlgmr.msra.gmra.mxu0 %v3301_v32  ;;  %3695 = vmatmul.mubr.f32.vlgmr.msra.gmra.mxu1 %v3303_v46  ;;  %v12510_v49 = vld [vmem:[#allocation3 + $0x138] sm:$0xff]  ;;  %v12542_v32 = vld [vmem:[#allocation3 + $0x128] sm:$0xff] }
 0x824   : >>> { %v3306_v2 = vmul.f32 %v9680_v24, %v12233_v37  ;;  %v3308_v36 = vmul.f32 %v9680_v24, %v12241_v63  ;;  %v3305_v11 = vmul.f32 %v9680_v24, %v12230_v23  ;;  %v3307_v29 = vmul.f32 %v9680_v24, %v12238_v21  ;;  %9246 = vmatpush3.msra.mxu1 %v1188_v57  ;;  %v12518_v23 = vld [vmem:[#allocation3 + $0x1b0] sm:$0xff]  ;;  %v12530_v37 = vld [vmem:[#allocation3 + $0xa8] sm:$0xff]  ;;  %v12554_v57 = vld [vmem:[#allocation3 + $0x20] sm:$0xff] }
 0x825   : >>> { %4055 = vrot.lane.b32.xlu0 %v12498_v35, %s10164_s30  ;;  %4119 = vrot.lane.b32.xlu1 %v12502_v58, %s10164_s30  ;;  %v12534_v21 = vld [vmem:[#allocation3 + $0x1a8] sm:$0xff]  ;;  %15318 = vst [vmem:[#allocation51_spill] sm:$0xff] %v12542_v32  ;;  %15321 = vst [vmem:[#allocation17_spill] sm:$0xff] %v12554_v57  ;;  %v12562_v46 = vld [vmem:[#allocation3 + $0x98] sm:$0xff] }
 0x826   : >>> { %3594 = vmatprep.mubr.f32.mxu0 %v3306_v2  ;;  %3699 = vmatprep.mubr.f32.mxu1 %v3308_v36  ;;  %15316 = vst [vmem:[#allocation40_spill] sm:$0xff] %v12534_v21  ;;  %v12538_v63 = vld [vmem:[#allocation3 + $0x28] sm:$0xff]  ;;  %v12546_v36 = vld [vmem:[#allocation3 + $0xa0] sm:$0xff]  ;;  %15323 = vst [vmem:[#allocation41_spill] sm:$0xff] %v12562_v46 }
 0x827   : >>> { %3595 = vmatmul.mubr.f32.gmra.mxu0 %v3305_v11  ;;  %3700 = vmatmul.mubr.f32.gmra.mxu1 %v3307_v29  ;;  %v12522_v29 = vld [vmem:[#allocation3 + $0x30] sm:$0xff]  ;;  %15317 = vst [vmem:[#allocation48_spill] sm:$0xff] %v12538_v63  ;;  %15319 = vst [vmem:[#allocation46_spill] sm:$0xff] %v12546_v36  ;;  %v12566_v24 = vld [vmem:[#allocation3 + $0x198] sm:$0xff] }
 0x828   : >>> { %9232 = vmatpush3.msra.mxu0 %v1189_v1  ;;  %v12526_v11 = vld [vmem:[#allocation3 + $0x130] sm:$0xff]  ;;  %v12550_v1 = vld [vmem:[#allocation3 + $0x1a0] sm:$0xff]  ;;  %15324 = vst [vmem:[#allocation21_spill] sm:$0xff] %v12566_v24  ;;  %v12570_v48 = vld [vmem:[#allocation3 + $0x18] sm:$0xff] }
 0x829   : >>> { %4023 = vrot.lane.b32.xlu0 %v12506_v16, %s10164_s30  ;;  %4087 = vrot.lane.b32.xlu1 %v12510_v49, %s10164_s30  ;;  %15320 = vst [vmem:[#allocation49_spill] sm:$0xff] %v12550_v1  ;;  %15325 = vst [vmem:[#allocation42_spill] sm:$0xff] %v12570_v48 }
 0x82d   : >>> { %4053 = vrot.lane.b32.xlu0 %v12514_v30, %s10164_s30  ;;  %4117 = vrot.lane.b32.xlu1 %v12518_v23, %s10164_s30 }
 0x831   : >>> { %4021 = vrot.lane.b32.xlu0 %v12522_v29, %s10164_s30  ;;  %4085 = vrot.lane.b32.xlu1 %v12526_v11, %s10164_s30 }
 0x835   : >>> { %4051 = vrot.lane.b32.xlu0 %v12530_v37, %s10164_s30  ;;  %4115 = vrot.lane.b32.xlu1 %v12534_v21, %s10164_s30 }
 0x839   : >>> { %4019 = vrot.lane.b32.xlu0 %v12538_v63, %s10164_s30  ;;  %4083 = vrot.lane.b32.xlu1 %v12542_v32, %s10164_s30  ;;  %v12604_v63 = vld [vmem:[#allocation3 + $0x188] sm:$0xff] }
 0x83a   : >>> { %15330 = vst [vmem:[#allocation32_spill] sm:$0xff] %v12604_v63 }
 0x83d   : >>> { %4049 = vrot.lane.b32.xlu0 %v12546_v36, %s10164_s30  ;;  %4113 = vrot.lane.b32.xlu1 %v12550_v1, %s10164_s30  ;;  %v12574_v1 = vld [vmem:[#allocation3 + $0x118] sm:$0xff]  ;;  %v12598_v36 = vld [vmem:[#allocation3 + $0x88] sm:$0xff] }
 0x83e   : >>> { %15326 = vst [vmem:[#allocation30_spill] sm:$0xff] %v12574_v1 }
 0x841   : >>> { %4017 = vrot.lane.b32.xlu0 %v12554_v57, %s10164_s30  ;;  %4081 = vrot.lane.b32.xlu1 %v12558_v17, %s10164_s30  ;;  %v12578_v17 = vld [vmem:[#allocation3 + $0x90] sm:$0xff] }
 0x842   : >>> { %15327 = vst [vmem:[#allocation43_spill] sm:$0xff] %v12578_v17 }
 0x845   : >>> { %4047 = vrot.lane.b32.xlu0 %v12562_v46, %s10164_s30  ;;  %4111 = vrot.lane.b32.xlu1 %v12566_v24, %s10164_s30  ;;  %v12582_v46 = vld [vmem:[#allocation3 + $0x190] sm:$0xff] }
 0x846   : >>> { %v3267_v2 = vpop.xlane.xlu0 %3266  ;;  %15328 = vst [vmem:[#allocation31_spill] sm:$0xff] %v12582_v46  ;;  %v12586_v24 = vld [vmem:[#allocation3 + $0x10] sm:$0xff] }
 0x847   : >>> { %9681 = vrcp.f32 %v3267_v2  ;;  %15329 = vst [vmem:[#allocation44_spill] sm:$0xff] %v12586_v24 }
 0x849   : >>> { %4015 = vrot.lane.b32.xlu0 %v12570_v48, %s10164_s30  ;;  %4079 = vrot.lane.b32.xlu1 %v12574_v1, %s10164_s30  ;;  %v12590_v48 = vld [vmem:[#allocation3 + $0x110] sm:$0xff] }
 0x84d   : >>> { %4045 = vrot.lane.b32.xlu0 %v12578_v17, %s10164_s30  ;;  %4109 = vrot.lane.b32.xlu1 %v12582_v46, %s10164_s30  ;;  %v3272_v2 = vpop.xlane.xlu1 %3271 }
 0x84e   : >>> { %9683 = vrcp.f32 %v3272_v2 }
 0x851   : >>> { %4013 = vrot.lane.b32.xlu0 %v12586_v24, %s10164_s30  ;;  %4077 = vrot.lane.b32.xlu1 %v12590_v48, %s10164_s30  ;;  %v3292_v1 = vpop.xlane.xlu1 %3291 }
 0x854   : >>> { %v9682_v57 = vpop.eup %9681 }
 0x855   : >>> { %v3310_v17 = vmul.f32 %v9682_v57, %v12280_v44  ;;  %v3312_v32 = vmul.f32 %v9682_v57, %v12288_v27  ;;  %v3309_v46 = vmul.f32 %v9682_v57, %v12277_v43  ;;  %v3311_v2 = vmul.f32 %v9682_v57, %v12284_v53  ;;  %4043 = vrot.lane.b32.xlu0 %v12598_v36, %s10164_s30  ;;  %v3277_v24 = vpop.xlane.xlu0 %3276  ;;  %v12602_v21 = vpop.permute.xlu1 %4039  ;;  %v9989_v43 = vld [vmem:[#allocation3 + $0x8] sm:$0xff] }
 0x856   : >>> { %4107 = vrot.lane.b32.xlu1 %v12604_v63, %s10164_s30  ;;  %9685 = vrcp.f32 %v3277_v24 }
 0x857   : >>> { %3599 = vmatprep.mubr.f32.mxu0 %v3310_v17  ;;  %3704 = vmatprep.mubr.f32.mxu1 %v3312_v32 }
 0x858   : >>> { %3600 = vmatmul.mubr.f32.gmra.mxu0 %v3309_v46  ;;  %3705 = vmatmul.mubr.f32.gmra.mxu1 %v3311_v2 }
 0x859   : >>> { %4011 = vrot.lane.b32.xlu0 %v9989_v43, %s10164_s30  ;;  %v3282_v44 = vpop.xlane.xlu0 %3281  ;;  %v12609_v53 = vpop.permute.xlu1 %4069  ;;  %v9992_v43 = vld [vmem:[%s10933_s19 + $0x18] sm:$0xff] }
 0x85a   : >>> { %4075 = vrot.lane.b32.xlu1 %v12102_v34, %s10164_s30  ;;  %9687 = vrcp.f32 %v3282_v44 }
 0x85b   : >>> { %v9684_v27 = vpop.eup %9683  ;;  %9689 = vrcp.f32 %v3292_v1 }
 0x85c   : >>> { %v3314_v57 = vmul.f32 %v9684_v27, %v12302_v14  ;;  %v3316_v63 = vmul.f32 %v9684_v27, %v12308_v8  ;;  %v3313_v17 = vmul.f32 %v9684_v27, %v12299_v10  ;;  %v3315_v32 = vmul.f32 %v9684_v27, %v12304_v7 }
 0x85d   : >>> { %4041 = vrot.lane.b32.xlu0 %v12208_v45, %s10164_s30  ;;  %v3287_v46 = vpop.xlane.xlu0 %3286  ;;  %v4136_v24 = vpop.permute.xlu1 %4135  ;;  %v9990_v45 = vld [vmem:[%s10933_s19 + $0x8] sm:$0xff] }
 0x85e   : >>> { %4105 = vrot.lane.b32.xlu1 %v12204_v3, %s10164_s30  ;;  %9691 = vrcp.f32 %v3287_v46  ;;  %3604 = vmatprep.mubr.f32.mxu0 %v3314_v57  ;;  %v9994_v46 = vld [vmem:[%s10933_s19 + $0x10] sm:$0xff] }
 0x85f   : >>> { %3709 = vmatprep.mubr.f32.mxu1 %v3316_v63  ;;  %3605 = vmatmul.mubr.f32.gmra.mxu0 %v3313_v17  ;;  %v9991_v63 = vld [vmem:[%s10933_s19] sm:$0xff]  ;;  %v9993_v17 = vld [vmem:[%s10933_s19 + $0x28] sm:$0xff] }
 0x860   : >>> { %3710 = vmatmul.mubr.f32.gmra.mxu1 %v3315_v32  ;;  %8761 = vmatprep.subr.msk.mxu1 %vm1457_vm2, %v4136_v24 }
 0x861   : >>> { %4009 = vrot.lane.b32.xlu0 %v12248_v56, %s10164_s30  ;;  %v4072_v34 = vpop.permute.xlu0 %4071  ;;  %v12623_v10 = vpop.permute.xlu1 %4103 }
 0x862   : >>> { %3995 = vrot.lane.b32.xlu1 %v9990_v45, %s10165_s27  ;;  %8713 = vmatprep.subr.msk.mxu0 %vm1457_vm2, %v4072_v34  ;;  %v9995_v45 = vld [vmem:[%s10933_s19 + $0x38] sm:$0xff] }
 0x863   : >>> { %v9686_v3 = vpop.eup %9685 }
 0x864   : >>> { %v3318_v14 = vmul.f32 %v9686_v3, %v12325_v47  ;;  %v3320_v7 = vmul.f32 %v9686_v3, %v12334_v61  ;;  %v3317_v8 = vmul.f32 %v9686_v3, %v12322_v18  ;;  %v3319_v56 = vmul.f32 %v9686_v3, %v12327_v9 }
 0x865   : >>> { %3993 = vrot.lane.b32.xlu0 %v9991_v63, %s10165_s27  ;;  %v12635_v1 = vpop.permute.xlu0 %4037  ;;  %v4134_v2 = vpop.permute.xlu1 %4133 }
 0x866   : >>> { %3999 = vrot.lane.b32.xlu1 %v9992_v43, %s10165_s27  ;;  %3609 = vmatprep.mubr.f32.mxu0 %v3318_v14 }
 0x867   : >>> { %3714 = vmatprep.mubr.f32.mxu1 %v3320_v7  ;;  %v9688_v44 = vpop.eup %9687  ;;  %3610 = vmatmul.mubr.f32.gmra.mxu0 %v3317_v8  ;;  %v9996_v7 = vld [vmem:[%s10933_s19 + $0x20] sm:$0xff]  ;;  %v9997_v8 = vld [vmem:[%s10933_s19 + $0x30] sm:$0xff] }
 0x868   : >>> { %3715 = vmatmul.mubr.f32.gmra.mxu1 %v3319_v56  ;;  %v3322_v47 = vmul.f32 %v9688_v44, %v12294_v0  ;;  %v3324_v18 = vmul.f32 %v9688_v44, %v12345_v51  ;;  %v3321_v9 = vmul.f32 %v9688_v44, %v12292_v4  ;;  %v3323_v61 = vmul.f32 %v9688_v44, %v12297_v54  ;;  %v9690_v32 = vpop.eup %9689 }
 0x869   : >>> { %4073 = vrot.lane.b32.xlu0 %v12244_v15, %s10164_s30  ;;  %v12645_v27 = vpop.permute.xlu0 %4067  ;;  %v4102_v57 = vpop.permute.xlu1 %4101  ;;  %s10168_s30 = smov 104  }
 0x86a   : >>> { %4003 = vrot.lane.b32.xlu1 %v9993_v17, %s10165_s27  ;;  %3614 = vmatprep.mubr.f32.mxu0 %v3322_v47 }
 0x86b   : >>> { %3719 = vmatprep.mubr.f32.mxu1 %v3324_v18  ;;  %v9692_v0 = vpop.eup %9691  ;;  %3615 = vmatmul.mubr.f32.gmra.mxu0 %v3321_v9 }
 0x86c   : >>> { %3720 = vmatmul.mubr.f32.gmra.mxu1 %v3323_v61  ;;  %v3326_v4 = vmul.f32 %v9692_v0, %v12339_v38  ;;  %v3328_v54 = vmul.f32 %v9692_v0, %v12351_v33  ;;  %v3325_v51 = vmul.f32 %v9692_v0, %v12336_v55  ;;  %v3327_v15 = vmul.f32 %v9692_v0, %v12347_v60 }
 0x86d   : >>> { %3997 = vrot.lane.b32.xlu0 %v9994_v46, %s10165_s27  ;;  %v12655_v24 = vpop.permute.xlu0 %4035  ;;  %v4132_v34 = vpop.permute.xlu1 %4131  ;;  %v3330_v38 = vmul.f32 %v9690_v32, %v12313_v12  ;;  %v3332_v33 = vmul.f32 %v9690_v32, %v12320_v41  ;;  %v3329_v55 = vmul.f32 %v9690_v32, %v12310_v19  ;;  %v3331_v60 = vmul.f32 %v9690_v32, %v12315_v39 }
 0x86e   : >>> { %4007 = vrot.lane.b32.xlu1 %v9995_v45, %s10165_s27  ;;  %3619 = vmatprep.mubr.f32.mxu0 %v3326_v4 }
 0x86f   : >>> { %3724 = vmatprep.mubr.f32.mxu1 %v3328_v54  ;;  %3620 = vmatmul.mubr.f32.gmra.mxu0 %v3325_v51 }
 0x870   : >>> { %3725 = vmatmul.mubr.f32.gmra.mxu1 %v3327_v15  ;;  %3624 = vmatprep.mubr.f32.mxu0 %v3330_v38 }
 0x871   : >>> { %3729 = vmatprep.mubr.f32.mxu1 %v3332_v33  ;;  %v12663_v3 = vpop.permute.xlu0 %4065  ;;  %v4100_v14 = vpop.permute.xlu1 %4099  ;;  %4001 = vrot.lane.b32.xlu0 %v9996_v7, %s10165_s27 }
 0x872   : >>> { %4913 = vrot.lane.b32.xlu1 %v12362_v52, %s10166_s28 }
 0x873   : >>> { %3625 = vmatmul.mubr.f32.gmra.mxu0 %v3329_v55 }
 0x874   : >>> { %3730 = vmatmul.mubr.f32.gmra.mxu1 %v3331_v60 }
 0x875   : >>> { %9247 = vmatprep.mubr.msk.f32.mxu1 %vm1457_vm2, %v12054_v28  ;;  %v12669_v12 = vpop.permute.xlu0 %4033  ;;  %v4130_v41 = vpop.permute.xlu1 %4129  ;;  %4005 = vrot.lane.b32.xlu0 %v9997_v8, %s10165_s27  ;;  %s14458_s27 = scalar_lea.vmem [#allocation2], %s7875_s23  ;;  %s14495_s23 = smov (%p1180_p5), 0  }
 0x876   : >>> { %4817 = vrot.lane.b32.xlu1 %v12354_v25, %s10166_s28  ;;  %v15331_v25 = vld [vmem:[#allocation38_spill] sm:$0xff] }
 0x878   : >>> { %9248 = vmatmul.mubr.msk.f32.vlgmr.msra.gmra.mxu1 %vm1457_vm2, %v12056_v6 }
 0x879   : >>> { %9250 = vmatprep.mubr.msk.f32.mxu1 %vm1457_vm2, %v12058_v42  ;;  %8762 = vmatpush3.xpose.msk.msra.mxu1 %vm1457_vm2, %v12623_v10  ;;  %v12680_v19 = vpop.permute.xlu0 %4063  ;;  %v4098_v28 = vpop.permute.xlu1 %4097 }
 0x87a   : >>> { %8763 = vmatprep.subr.msk.mxu1 %vm1457_vm2, %v4134_v2  ;;  %4849 = vrot.lane.b32.xlu0 %v12374_v20, %s10166_s28 }
 0x87b   : >>> { %4881 = vrot.lane.b32.xlu1 %v12366_v59, %s10166_s28  ;;  %v15332_v59 = vld [vmem:[#allocation23_spill] sm:$0xff] }
 0x87c   : >>> { %9251 = vmatmul.mubr.msk.f32.gmra.mxu1 %vm1457_vm2, %v12060_v31 }
 0x87d   : >>> { %9253 = vmatprep.mubr.msk.f32.mxu1 %vm1457_vm2, %v12062_v62  ;;  %8764 = vmatpush3.xpose.msk.msra.mxu1 %vm1457_vm2, %v4102_v57  ;;  %v12688_v6 = vpop.permute.xlu0 %4031  ;;  %v4128_v42 = vpop.permute.xlu1 %4127 }
 0x87e   : >>> { %8765 = vmatprep.subr.msk.mxu1 %vm1457_vm2, %v4132_v34  ;;  %4847 = vrot.lane.b32.xlu0 %v12358_v50, %s10166_s28 }
 0x87f   : >>> { %4911 = vrot.lane.b32.xlu1 %v12370_v40, %s10166_s28  ;;  %v15334_v40 = vld [vmem:[#allocation29_spill] sm:$0xff] }
 0x880   : >>> { %9254 = vmatmul.mubr.msk.f32.gmra.mxu1 %vm1457_vm2, %v12064_v5 }
 0x881   : >>> { %9256 = vmatprep.mubr.msk.f32.mxu1 %vm1457_vm2, %v12066_v26  ;;  %8766 = vmatpush3.xpose.msk.msra.mxu1 %vm1457_vm2, %v4100_v14  ;;  %v12695_v39 = vpop.permute.xlu0 %4061  ;;  %v4096_v31 = vpop.permute.xlu1 %4095 }
 0x882   : >>> { %8767 = vmatprep.subr.msk.mxu1 %vm1457_vm2, %v4130_v41  ;;  %4907 = vrot.lane.b32.xlu0 %v12402_v22, %s10166_s28  ;;  %v15333_v22 = vld [vmem:[#allocation36_spill] sm:$0xff] }
 0x883   : >>> { %4815 = vrot.lane.b32.xlu1 %v15332_v59, %s10166_s28  ;;  %v15341_v59 = vld [vmem:[#allocation9_spill] sm:$0xff] }
 0x884   : >>> { %9257 = vmatmul.mubr.msk.f32.gmra.mxu1 %vm1457_vm2, %v12068_v13 }
 0x885   : >>> { %8768 = vmatpush3.xpose.msk.msra.mxu1 %vm1457_vm2, %v4098_v28  ;;  %v12701_v62 = vpop.permute.xlu0 %4029  ;;  %v4126_v10 = vpop.permute.xlu1 %4125 }
 0x886   : >>> { %8769 = vmatprep.subr.msk.mxu1 %vm1457_vm2, %v4128_v42  ;;  %4811 = vrot.lane.b32.xlu0 %v15331_v25, %s10166_s28  ;;  %v15340_v25 = vld [vmem:[#allocation33_spill] sm:$0xff] }
 0x887   : >>> { %4879 = vrot.lane.b32.xlu1 %v15334_v40, %s10166_s28 }
 0x889   : >>> { %8770 = vmatpush3.xpose.msk.msra.mxu1 %vm1457_vm2, %v4096_v31  ;;  %v12705_v5 = vpop.permute.xlu0 %4059  ;;  %v4094_v26 = vpop.permute.xlu1 %4093 }
 0x88a   : >>> { %8771 = vmatprep.subr.msk.mxu1 %vm1457_vm2, %v4126_v10  ;;  %4875 = vrot.lane.b32.xlu0 %v15333_v22, %s10166_s28 }
 0x88d   : >>> { %8772 = vmatpush3.xpose.msk.msra.mxu1 %vm1457_vm2, %v4094_v26  ;;  %v12709_v56 = vpop.permute.xlu0 %4027  ;;  %v4124_v63 = vpop.permute.xlu1 %4123 }
 0x88e   : >>> { %8773 = vmatprep.subr.msk.mxu1 %vm1457_vm2, %v4124_v63 }
 0x891   : >>> { %v12712_v13 = vpop.permute.xlu0 %4057  ;;  %v4092_v2 = vpop.permute.xlu1 %4091 }
 0x892   : >>> { %8774 = vmatpush3.xpose.msk.msra.mxu1 %vm1457_vm2, %v4092_v2 }
 0x895   : >>> { %v12715_v43 = vpop.permute.xlu0 %4025  ;;  %v4122_v44 = vpop.permute.xlu1 %4121 }
 0x896   : >>> { %8775 = vmatprep.subr.msk.mxu1 %vm1457_vm2, %v4122_v44  ;;  %v15335_v44 = vld [vmem:[#allocation37_spill] sm:$0xff] }
 0x897   : >>> { %4841 = vrot.lane.b32.xlu0 %v15335_v44, %s10166_s28 }
 0x899   : >>> { %v12718_v47 = vpop.permute.xlu0 %4055  ;;  %v4090_v18 = vpop.permute.xlu1 %4089 }
 0x89a   : >>> { %8776 = vmatpush3.xpose.msk.msra.mxu1 %vm1457_vm2, %v4090_v18 }
 0x89d   : >>> { %v12721_v9 = vpop.permute.xlu0 %4023  ;;  %v4120_v61 = vpop.permute.xlu1 %4119 }
 0x89e   : >>> { %8777 = vmatprep.subr.msk.mxu1 %vm1457_vm2, %v4120_v61  ;;  %v15336_v61 = vld [vmem:[#allocation25_spill] sm:$0xff] }
 0x89f   : >>> { %4845 = vrot.lane.b32.xlu1 %v15336_v61, %s10166_s28 }
 0x8a1   : >>> { %v12724_v57 = vpop.permute.xlu0 %4053  ;;  %v4088_v17 = vpop.permute.xlu1 %4087 }
 0x8a2   : >>> { %8778 = vmatpush3.xpose.msk.msra.mxu1 %vm1457_vm2, %v4088_v17 }
 0x8a5   : >>> { %v12727_v32 = vpop.permute.xlu0 %4021  ;;  %v4118_v0 = vpop.permute.xlu1 %4117 }
 0x8a6   : >>> { %8779 = vmatprep.subr.msk.mxu1 %vm1457_vm2, %v4118_v0  ;;  %v15337_v0 = vld [vmem:[#allocation35_spill] sm:$0xff] }
 0x8a7   : >>> { %4905 = vrot.lane.b32.xlu0 %v15337_v0, %s10166_s28  ;;  %v15342_v0 = vld [vmem:[#allocation26_spill] sm:$0xff] }
 0x8a9   : >>> { %v12730_v4 = vpop.permute.xlu0 %4051  ;;  %v4086_v54 = vpop.permute.xlu1 %4085 }
 0x8aa   : >>> { %8780 = vmatpush3.xpose.msk.msra.mxu1 %vm1457_vm2, %v4086_v54 }
 0x8ad   : >>> { %v12733_v51 = vpop.permute.xlu0 %4019  ;;  %v4116_v15 = vpop.permute.xlu1 %4115 }
 0x8ae   : >>> { %8781 = vmatprep.subr.msk.mxu1 %vm1457_vm2, %v4116_v15 }
 0x8b1   : >>> { %v12736_v46 = vpop.permute.xlu0 %4049  ;;  %v4084_v34 = vpop.permute.xlu1 %4083 }
 0x8b2   : >>> { %8782 = vmatpush3.xpose.msk.msra.mxu1 %vm1457_vm2, %v4084_v34  ;;  %v15338_v34 = vld [vmem:[#allocation28_spill] sm:$0xff] }
 0x8b3   : >>> { %4909 = vrot.lane.b32.xlu1 %v15338_v34, %s10166_s28 }
 0x8b5   : >>> { %v12739_v45 = vpop.permute.xlu0 %4017  ;;  %v4114_v38 = vpop.permute.xlu1 %4113 }
 0x8b6   : >>> { %8783 = vmatprep.subr.msk.mxu1 %vm1457_vm2, %v4114_v38  ;;  %v15339_v38 = vld [vmem:[#allocation8_spill] sm:$0xff] }
 0x8b7   : >>> { %4873 = vrot.lane.b32.xlu0 %v15339_v38, %s10166_s28  ;;  %4813 = vrot.lane.b32.xlu1 %v15340_v25, %s10166_s28  ;;  %v15344_v38 = vld [vmem:[#allocation34_spill] sm:$0xff] }
 0x8b9   : >>> { %v12742_v33 = vpop.permute.xlu0 %4047  ;;  %v4082_v55 = vpop.permute.xlu1 %4081 }
 0x8ba   : >>> { %8784 = vmatpush3.xpose.msk.msra.mxu1 %vm1457_vm2, %v4082_v55 }
 0x8bb   : >>> { %4839 = vrot.lane.b32.xlu0 %v15341_v59, %s10166_s28  ;;  %4877 = vrot.lane.b32.xlu1 %v15342_v0, %s10166_s28 }
 0x8bd   : >>> { %v12745_v60 = vpop.permute.xlu0 %4015  ;;  %v4112_v14 = vpop.permute.xlu1 %4111 }
 0x8be   : >>> { %8785 = vmatprep.subr.msk.mxu1 %vm1457_vm2, %v4112_v14 }
 0x8bf   : >>> { %4843 = vrot.lane.b32.xlu1 %v15344_v38, %s10166_s28 }
 0x8c1   : >>> { %v12748_v7 = vpop.permute.xlu0 %4045  ;;  %v4080_v41 = vpop.permute.xlu1 %4079 }
 0x8c2   : >>> { %8786 = vmatpush3.xpose.msk.msra.mxu1 %vm1457_vm2, %v4080_v41 }
 0x8c5   : >>> { %v12751_v8 = vpop.permute.xlu0 %4013  ;;  %v4110_v28 = vpop.permute.xlu1 %4109 }
 0x8c6   : >>> { %8787 = vmatprep.subr.msk.mxu1 %vm1457_vm2, %v4110_v28 }
 0x8c9   : >>> { %v12758_v42 = vpop.permute.xlu0 %4043  ;;  %v4078_v31 = vpop.permute.xlu1 %4077 }
 0x8ca   : >>> { %8788 = vmatpush3.xpose.msk.msra.mxu1 %vm1457_vm2, %v4078_v31 }
 0x8cd   : >>> { %v12765_v10 = vpop.permute.xlu0 %4011  ;;  %v4108_v26 = vpop.permute.xlu1 %4107 }
 0x8ce   : >>> { %8789 = vmatprep.subr.msk.mxu1 %vm1457_vm2, %v4108_v26 }
 0x8d1   : >>> { %v12772_v52 = vpop.permute.xlu0 %4041  ;;  %v4076_v20 = vpop.permute.xlu1 %4075 }
 0x8d2   : >>> { %8790 = vmatpush3.xpose.msk.msra.mxu1 %vm1457_vm2, %v4076_v20 }
 0x8d5   : >>> { %v12779_v50 = vpop.permute.xlu0 %4009  ;;  %v4106_v63 = vpop.permute.xlu1 %4105 }
 0x8d6   : >>> { %8791 = vmatprep.subr.msk.mxu1 %vm1457_vm2, %v4106_v63 }
 0x8d9   : >>> { %v12786_v2 = vpop.permute.xlu0 %3993  ;;  %v12797_v17 = vpop.permute.xlu1 %3995 }
 0x8da   : >>> { %8793 = vmatprep.mubr.msk.f32.mxu1 %vm1457_vm2, %v12786_v2 }
 0x8dd   : >>> { %v4074_v18 = vpop.permute.xlu0 %4073  ;;  %v12820_v61 = vpop.permute.xlu1 %3999 }
 0x8de   : >>> { %8792 = vmatpush3.xpose.msk.msra.mxu1 %vm1457_vm2, %v4074_v18 }
 0x8e1   : >>> { %8794 = vmatmul.mubr.msk.f32.vlgmr.msra.gmra.mxu1 %vm1457_vm2, %v12786_v2  ;;  %v12811_v31 = vpop.permute.xlu0 %3997 }
 0x8e2   : >>> { %8795 = vmatprep.mubr.msk.f32.mxu1 %vm1457_vm2, %v12797_v17 }
 0x8e3   : >>> { %v8615_v54 = vpop.f32.mrf.mxu0  ;;  %v8671_v15 = vpop.f32.mrf.mxu1 }
 0x8e5   : >>> { %v8616_v55 = vpop.f32.mrf.mxu0  ;;  %v8672_v14 = vpop.f32.mrf.mxu1  ;;  %8796 = vmatmul.mubr.msk.f32.gmra.mxu1 %vm1457_vm2, %v12797_v17 }
 0x8e6   : >>> { %v8617_v41 = vadd.f32 %v8616_v55, %v8615_v54  ;;  %v8673_v28 = vadd.f32 %v8672_v14, %v8671_v15  ;;  %8797 = vmatprep.mubr.msk.f32.mxu1 %vm1457_vm2, %v12811_v31  ;;  %v15343_v15 = vld [vmem:[#allocation12_spill] sm:$0xff]  ;;  %v12831_v34 = vpop.permute.xlu0 %4001  ;;  %v15345_v55 = vld [vmem:[#allocation27_spill] sm:$0xff]  ;;  %v12845_v14 = vpop.permute.xlu1 %4003 }
 0x8e7   : >>> { %v8618_v26 = vpop.f32.mrf.mxu0  ;;  %v8674_v20 = vpop.f32.mrf.mxu1  ;;  %4903 = vrot.lane.b32.xlu0 %v15343_v15, %s10166_s28  ;;  %v15367_v15 = vld [vmem:[#allocation30_spill] sm:$0xff] }
 0x8e8   : >>> { %v3697_v63 = vadd.f32 %v8673_v28, %v8617_v41 }
 0x8e9   : >>> { %v8619_v22 = vpop.f32.mrf.mxu0  ;;  %v8675_v40 = vpop.f32.mrf.mxu1  ;;  %8798 = vmatmul.mubr.msk.f32.gmra.mxu1 %vm1457_vm2, %v12811_v31 }
 0x8ea   : >>> { %v8620_v44 = vadd.f32 %v8619_v22, %v8618_v26  ;;  %v8676_v18 = vadd.f32 %v8675_v40, %v8674_v20  ;;  %9233 = vmatprep.mubr.msk.f32.mxu0 %vm1457_vm2, %v3697_v63  ;;  %8799 = vmatprep.mubr.msk.f32.mxu1 %vm1457_vm2, %v12820_v61  ;;  %v12859_v41 = vpop.permute.xlu0 %4005  ;;  %v12873_v28 = vpop.permute.xlu1 %4007  ;;  %v15354_v26 = vld [vmem:[#allocation22_spill] sm:$0xff]  ;;  %v15366_v22 = vld [vmem:[#allocation43_spill] sm:$0xff] }
 0x8eb   : >>> { %4807 = vrot.lane.b32.xlu0 %v15345_v55, %s10166_s28 }
 0x8ec   : >>> { %v3702_v54 = vadd.f32 %v8676_v18, %v8620_v44 }
 0x8ed   : >>> { %8800 = vmatmul.mubr.msk.f32.gmra.mxu1 %vm1457_vm2, %v12820_v61 }
 0x8ee   : >>> { %9234 = vmatmul.mubr.msk.f32.vlgmr.msra.gmra.mxu0 %vm1457_vm2, %v3702_v54  ;;  %8801 = vmatprep.mubr.msk.f32.mxu1 %vm1457_vm2, %v12831_v34 }
 0x8ef   : >>> { %8714 = vmatpush3.xpose.msk.msra.mxu0 %vm1457_vm2, %v12602_v21  ;;  %v15346_v21 = vld [vmem:[#allocation24_spill] sm:$0xff] }
 0x8f0   : >>> { %8715 = vmatprep.subr.msk.mxu0 %vm1457_vm2, %v12609_v53  ;;  %4809 = vrot.lane.b32.xlu1 %v15346_v21, %s10166_s28  ;;  %v15347_v53 = vld [vmem:[#allocation13_spill] sm:$0xff] }
 0x8f1   : >>> { %8802 = vmatmul.mubr.msk.f32.gmra.mxu1 %vm1457_vm2, %v12831_v34  ;;  %4837 = vrot.lane.b32.xlu0 %v15347_v53, %s10166_s28 }
 0x8f2   : >>> { %8803 = vmatprep.mubr.msk.f32.mxu1 %vm1457_vm2, %v12845_v14 }
 0x8f3   : >>> { %8716 = vmatpush3.xpose.msk.msra.mxu0 %vm1457_vm2, %v12635_v1  ;;  %v15348_v1 = vld [vmem:[#allocation15_spill] sm:$0xff] }
 0x8f4   : >>> { %8717 = vmatprep.subr.msk.mxu0 %vm1457_vm2, %v12645_v27  ;;  %4871 = vrot.lane.b32.xlu1 %v15348_v1, %s10166_s28  ;;  %v15349_v27 = vld [vmem:[#allocation11_spill] sm:$0xff] }
 0x8f5   : >>> { %8804 = vmatmul.mubr.msk.f32.gmra.mxu1 %vm1457_vm2, %v12845_v14  ;;  %4805 = vrot.lane.b32.xlu0 %v15349_v27, %s10166_s28 }
 0x8f6   : >>> { %8805 = vmatprep.mubr.msk.f32.mxu1 %vm1457_vm2, %v12859_v41 }
 0x8f7   : >>> { %8718 = vmatpush3.xpose.msk.msra.mxu0 %vm1457_vm2, %v12655_v24  ;;  %v15350_v24 = vld [vmem:[#allocation18_spill] sm:$0xff] }
 0x8f8   : >>> { %8719 = vmatprep.subr.msk.mxu0 %vm1457_vm2, %v12663_v3  ;;  %4901 = vrot.lane.b32.xlu1 %v15350_v24, %s10166_s28  ;;  %v15351_v3 = vld [vmem:[#allocation14_spill] sm:$0xff] }
 0x8f9   : >>> { %8806 = vmatmul.mubr.msk.f32.gmra.mxu1 %vm1457_vm2, %v12859_v41  ;;  %4835 = vrot.lane.b32.xlu0 %v15351_v3, %s10166_s28  ;;  %v15369_v3 = vld [vmem:[#allocation31_spill] sm:$0xff] }
 0x8fa   : >>> { %8807 = vmatprep.mubr.msk.f32.mxu1 %vm1457_vm2, %v12873_v28 }
 0x8fb   : >>> { %8720 = vmatpush3.xpose.msk.msra.mxu0 %vm1457_vm2, %v12669_v12  ;;  %v15352_v12 = vld [vmem:[#allocation20_spill] sm:$0xff] }
 0x8fc   : >>> { %8721 = vmatprep.subr.msk.mxu0 %vm1457_vm2, %v12680_v19  ;;  %4869 = vrot.lane.b32.xlu1 %v15352_v12, %s10166_s28  ;;  %v15353_v19 = vld [vmem:[#allocation16_spill] sm:$0xff] }
 0x8fd   : >>> { %8808 = vmatmul.mubr.msk.f32.gmra.mxu1 %vm1457_vm2, %v12873_v28  ;;  %4803 = vrot.lane.b32.xlu0 %v15353_v19, %s10166_s28 }
 0x8ff   : >>> { %8722 = vmatpush3.xpose.msk.msra.mxu0 %vm1457_vm2, %v12688_v6  ;;  %v15355_v6 = vld [vmem:[#allocation39_spill] sm:$0xff] }
 0x900   : >>> { %8723 = vmatprep.subr.msk.mxu0 %vm1457_vm2, %v12695_v39  ;;  %4899 = vrot.lane.b32.xlu1 %v15354_v26, %s10166_s28 }
 0x901   : >>> { %4833 = vrot.lane.b32.xlu0 %v12498_v35, %s10166_s28 }
 0x903   : >>> { %8724 = vmatpush3.xpose.msk.msra.mxu0 %vm1457_vm2, %v12701_v62  ;;  %v15358_v62 = vld [vmem:[#allocation46_spill] sm:$0xff] }
 0x904   : >>> { %8725 = vmatprep.subr.msk.mxu0 %vm1457_vm2, %v12705_v5  ;;  %4867 = vrot.lane.b32.xlu1 %v15355_v6, %s10166_s28 }
 0x905   : >>> { %4801 = vrot.lane.b32.xlu0 %v12506_v16, %s10166_s28  ;;  %v15356_v16 = vld [vmem:[#allocation48_spill] sm:$0xff] }
 0x907   : >>> { %8726 = vmatpush3.xpose.msk.msra.mxu0 %vm1457_vm2, %v12709_v56  ;;  %v15359_v56 = vld [vmem:[#allocation51_spill] sm:$0xff] }
 0x908   : >>> { %8727 = vmatprep.subr.msk.mxu0 %vm1457_vm2, %v12712_v13  ;;  %4897 = vrot.lane.b32.xlu1 %v12502_v58, %s10166_s28  ;;  %v15360_v13 = vld [vmem:[#allocation17_spill] sm:$0xff] }
 0x909   : >>> { %4831 = vrot.lane.b32.xlu0 %v12514_v30, %s10166_s28 }
 0x90b   : >>> { %8728 = vmatpush3.xpose.msk.msra.mxu0 %vm1457_vm2, %v12715_v43 }
 0x90c   : >>> { %8729 = vmatprep.subr.msk.mxu0 %vm1457_vm2, %v12718_v47  ;;  %4865 = vrot.lane.b32.xlu1 %v12510_v49, %s10166_s28 }
 0x90d   : >>> { %4799 = vrot.lane.b32.xlu0 %v12522_v29, %s10166_s28 }
 0x90f   : >>> { %8730 = vmatpush3.xpose.msk.msra.mxu0 %vm1457_vm2, %v12721_v9 }
 0x910   : >>> { %8731 = vmatprep.subr.msk.mxu0 %vm1457_vm2, %v12724_v57  ;;  %4895 = vrot.lane.b32.xlu1 %v12518_v23, %s10166_s28 }
 0x911   : >>> { %4829 = vrot.lane.b32.xlu0 %v12530_v37, %s10166_s28  ;;  %v15357_v37 = vld [vmem:[#allocation40_spill] sm:$0xff] }
 0x913   : >>> { %8732 = vmatpush3.xpose.msk.msra.mxu0 %vm1457_vm2, %v12727_v32  ;;  %v15361_v32 = vld [vmem:[#allocation49_spill] sm:$0xff] }
 0x914   : >>> { %8733 = vmatprep.subr.msk.mxu0 %vm1457_vm2, %v12730_v4  ;;  %4863 = vrot.lane.b32.xlu1 %v12526_v11, %s10166_s28 }
 0x915   : >>> { %4797 = vrot.lane.b32.xlu0 %v15356_v16, %s10166_s28  ;;  %v4914_v16 = vpop.permute.xlu1 %4913 }
 0x916   : >>> { %8865 = vmatprep.subr.mxu1 %v4914_v16 }
 0x917   : >>> { %8734 = vmatpush3.xpose.msk.msra.mxu0 %vm1457_vm2, %v12733_v51  ;;  %v15362_v51 = vld [vmem:[#allocation41_spill] sm:$0xff] }
 0x918   : >>> { %8735 = vmatprep.subr.msk.mxu0 %vm1457_vm2, %v12736_v46  ;;  %v8621_v35 = vpop.f32.mrf.mxu0  ;;  %v8677_v58 = vpop.f32.mrf.mxu1  ;;  %4893 = vrot.lane.b32.xlu1 %v15357_v37, %s10166_s28 }
 0x919   : >>> { %4827 = vrot.lane.b32.xlu0 %v15358_v62, %s10166_s28 }
 0x91a   : >>> { %v8622_v49 = vpop.f32.mrf.mxu0  ;;  %v8678_v30 = vpop.f32.mrf.mxu1 }
 0x91b   : >>> { %v8623_v23 = vadd.f32 %v8622_v49, %v8621_v35  ;;  %v8679_v29 = vadd.f32 %v8678_v30, %v8677_v58  ;;  %8736 = vmatpush3.xpose.msk.msra.mxu0 %vm1457_vm2, %v12739_v45  ;;  %v15370_v49 = vld [vmem:[#allocation32_spill] sm:$0xff] }
 0x91c   : >>> { %8737 = vmatprep.subr.msk.mxu0 %vm1457_vm2, %v12742_v33  ;;  %4861 = vrot.lane.b32.xlu1 %v15359_v56, %s10166_s28  ;;  %v15363_v33 = vld [vmem:[#allocation19_spill] sm:$0xff] }
 0x91d   : >>> { %v3707_v39 = vadd.f32 %v8679_v29, %v8623_v23  ;;  %4795 = vrot.lane.b32.xlu0 %v15360_v13, %s10166_s28 }
 0x91f   : >>> { %8738 = vmatpush3.xpose.msk.msra.mxu0 %vm1457_vm2, %v12745_v60  ;;  %9236 = vmatprep.mubr.msk.f32.mxu0 %vm1457_vm2, %v3707_v39  ;;  %v8624_v11 = vpop.f32.mrf.mxu0  ;;  %v15364_v60 = vld [vmem:[#allocation42_spill] sm:$0xff] }
 0x920   : >>> { %v8680_v5 = vpop.f32.mrf.mxu1  ;;  %8739 = vmatprep.subr.msk.mxu0 %vm1457_vm2, %v12748_v7  ;;  %4891 = vrot.lane.b32.xlu1 %v15361_v32, %s10166_s28 }
 0x921   : >>> { %v8625_v43 = vpop.f32.mrf.mxu0  ;;  %4825 = vrot.lane.b32.xlu0 %v15362_v51, %s10166_s28 }
 0x922   : >>> { %v8681_v47 = vpop.f32.mrf.mxu1  ;;  %v8626_v9 = vadd.f32 %v8625_v43, %v8624_v11 }
 0x923   : >>> { %v8682_v57 = vadd.f32 %v8681_v47, %v8680_v5  ;;  %8740 = vmatpush3.xpose.msk.msra.mxu0 %vm1457_vm2, %v12751_v8 }
 0x924   : >>> { %8741 = vmatprep.subr.msk.mxu0 %vm1457_vm2, %v12758_v42  ;;  %4859 = vrot.lane.b32.xlu1 %v15363_v33, %s10166_s28 }
 0x925   : >>> { %v3712_v4 = vadd.f32 %v8682_v57, %v8626_v9  ;;  %4793 = vrot.lane.b32.xlu0 %v15364_v60, %s10166_s28 }
 0x927   : >>> { %9237 = vmatmul.mubr.msk.f32.gmra.mxu0 %vm1457_vm2, %v3712_v4  ;;  %v8627_v46 = vpop.f32.mrf.mxu0 }
 0x928   : >>> { %v8683_v45 = vpop.f32.mrf.mxu1  ;;  %8742 = vmatpush3.xpose.msk.msra.mxu0 %vm1457_vm2, %v12765_v10  ;;  %v15365_v10 = vld [vmem:[#allocation21_spill] sm:$0xff] }
 0x929   : >>> { %8743 = vmatprep.subr.msk.mxu0 %vm1457_vm2, %v12772_v52  ;;  %v8628_v7 = vpop.f32.mrf.mxu0  ;;  %4889 = vrot.lane.b32.xlu1 %v15365_v10, %s10166_s28 }
 0x92a   : >>> { %v8684_v8 = vpop.f32.mrf.mxu1  ;;  %v8629_v42 = vadd.f32 %v8628_v7, %v8627_v46  ;;  %4823 = vrot.lane.b32.xlu0 %v15366_v22, %s10166_s28 }
 0x92b   : >>> { %v8685_v20 = vadd.f32 %v8684_v8, %v8683_v45  ;;  %v8630_v25 = vpop.f32.mrf.mxu0 }
 0x92c   : >>> { %v8686_v63 = vpop.f32.mrf.mxu1  ;;  %8744 = vmatpush3.xpose.msk.msra.mxu0 %vm1457_vm2, %v12779_v50  ;;  %v15368_v50 = vld [vmem:[#allocation44_spill] sm:$0xff] }
 0x92d   : >>> { %v3717_v59 = vadd.f32 %v8685_v20, %v8629_v42  ;;  %v8631_v52 = vpop.f32.mrf.mxu0  ;;  %4857 = vrot.lane.b32.xlu1 %v15367_v15, %s10166_s28 }
 0x92e   : >>> { %v8687_v40 = vpop.f32.mrf.mxu1  ;;  %v8632_v44 = vadd.f32 %v8631_v52, %v8630_v25  ;;  %4791 = vrot.lane.b32.xlu0 %v15368_v50, %s10166_s28 }
 0x92f   : >>> { %v8688_v18 = vadd.f32 %v8687_v40, %v8686_v63  ;;  %9239 = vmatprep.mubr.msk.f32.mxu0 %vm1457_vm2, %v3717_v59  ;;  %v8633_v0 = vpop.f32.mrf.mxu0 }
 0x930   : >>> { %v8689_v54 = vpop.f32.mrf.mxu1 }
 0x931   : >>> { %v3722_v38 = vadd.f32 %v8688_v18, %v8632_v44  ;;  %v8634_v55 = vpop.f32.mrf.mxu0  ;;  %4887 = vrot.lane.b32.xlu1 %v15369_v3, %s10166_s28 }
 0x932   : >>> { %v8690_v21 = vpop.f32.mrf.mxu1  ;;  %v8635_v53 = vadd.f32 %v8634_v55, %v8633_v0  ;;  %4821 = vrot.lane.b32.xlu0 %v12598_v36, %s10166_s28  ;;  %v4818_v36 = vpop.permute.xlu1 %4817 }
 0x933   : >>> { %v8691_v1 = vadd.f32 %v8690_v21, %v8689_v54  ;;  %9240 = vmatmul.mubr.msk.f32.gmra.mxu0 %vm1457_vm2, %v3722_v38  ;;  %v8636_v27 = vpop.f32.mrf.mxu0 }
 0x934   : >>> { %v8692_v24 = vpop.f32.mrf.mxu1 }
 0x935   : >>> { %v3727_v12 = vadd.f32 %v8691_v1, %v8635_v53  ;;  %v8637_v19 = vpop.f32.mrf.mxu0  ;;  %4855 = vrot.lane.b32.xlu1 %v12590_v48, %s10166_s28 }
 0x936   : >>> { %v8693_v26 = vpop.f32.mrf.mxu1  ;;  %v8638_v6 = vadd.f32 %v8637_v19, %v8636_v27  ;;  %v4882_v30 = vpop.permute.xlu1 %4881 }
 0x937   : >>> { %v8694_v35 = vadd.f32 %v8693_v26, %v8692_v24  ;;  %9242 = vmatprep.mubr.msk.f32.mxu0 %vm1457_vm2, %v3727_v12  ;;  %8866 = vmatpush3.msra.mxu1 %v4882_v30 }
 0x938   : >>> { %v13033_v24 = vpop.f32.mrf.mxu1 }
 0x939   : >>> { %v3732_v58 = vadd.f32 %v8694_v35, %v8638_v6  ;;  %4885 = vrot.lane.b32.xlu1 %v15370_v49, %s10166_s28  ;;  %15371 = vst [vmem:[#allocation45_spill] sm:$0xff] %v13033_v24 }
 0x93a   : >>> { %v4912_v48 = vpop.permute.xlu1 %4911  ;;  %v13035_v19 = vpop.f32.mrf.mxu1 }
 0x93b   : >>> { %9243 = vmatmul.mubr.msk.f32.gmra.mxu0 %vm1457_vm2, %v3732_v58  ;;  %8867 = vmatprep.subr.mxu1 %v4912_v48  ;;  %15372 = vst [vmem:[#allocation54_spill] sm:$0xff] %v13035_v19  ;;  %v13439_v19 = vld [vmem:[#allocation3 + $0x150] sm:$0xff] }
 0x93c   : >>> { %8745 = vmatprep.mubr.msk.f32.mxu0 %vm1457_vm2, %v12786_v2  ;;  %v13037_v6 = vpop.f32.mrf.mxu1  ;;  %15400 = vst [vmem:[#allocation24_spill] sm:$0xff] %v13439_v19 }
 0x93d   : >>> { %15373 = vst [vmem:[#allocation47_spill] sm:$0xff] %v13037_v6  ;;  %v13431_v6 = vld [vmem:[#allocation3 + $0x1d0] sm:$0xff] }
 0x93e   : >>> { %v13039_v35 = vpop.f32.mrf.mxu1  ;;  %15399 = vst [vmem:[#allocation27_spill] sm:$0xff] %v13431_v6 }
 0x93f   : >>> { %8746 = vmatmul.mubr.msk.f32.vlgmr.msra.gmra.mxu0 %vm1457_vm2, %v12786_v2  ;;  %v4816_v2 = vpop.permute.xlu1 %4815  ;;  %15374 = vst [vmem:[#allocation55_spill] sm:$0xff] %v13039_v35  ;;  %v13423_v35 = vld [vmem:[#allocation3 + $0x158] sm:$0xff] }
 0x940   : >>> { %8747 = vmatprep.mubr.msk.f32.mxu0 %vm1457_vm2, %v12797_v17  ;;  %v13043_v16 = vpop.f32.mrf.mxu1  ;;  %15398 = vst [vmem:[#allocation34_spill] sm:$0xff] %v13423_v35 }
 0x941   : >>> { %15376 = vst [vmem:[#allocation56_spill] sm:$0xff] %v13043_v16  ;;  %v13415_v16 = vld [vmem:[#allocation3 + $0x1d8] sm:$0xff] }
 0x942   : >>> { %v13049_v30 = vpop.f32.mrf.mxu1  ;;  %15397 = vst [vmem:[#allocation12_spill] sm:$0xff] %v13415_v16 }
 0x943   : >>> { %8748 = vmatmul.mubr.msk.f32.gmra.mxu0 %vm1457_vm2, %v12797_v17  ;;  %v4880_v23 = vpop.permute.xlu1 %4879  ;;  %v4850_v17 = vpop.permute.xlu0 %4849  ;;  %15379 = vst [vmem:[#allocation53_spill] sm:$0xff] %v13049_v30  ;;  %v13407_v30 = vld [vmem:[#allocation3 + $0x160] sm:$0xff] }
 0x944   : >>> { %8749 = vmatprep.mubr.msk.f32.mxu0 %vm1457_vm2, %v12811_v31  ;;  %8868 = vmatpush3.msra.mxu1 %v4880_v23  ;;  %15396 = vst [vmem:[#allocation26_spill] sm:$0xff] %v13407_v30 }
 0x945   : >>> { %8809 = vmatprep.subr.mxu0 %v4850_v17 }
 0x946   : >>> { %8810 = vmatpush3.msra.mxu0 %v4818_v36 }
 0x947   : >>> { %8750 = vmatmul.mubr.msk.f32.gmra.mxu0 %vm1457_vm2, %v12811_v31  ;;  %v4846_v31 = vpop.permute.xlu1 %4845 }
 0x948   : >>> { %8751 = vmatprep.mubr.msk.f32.mxu0 %vm1457_vm2, %v12820_v61 }
 0x94b   : >>> { %8752 = vmatmul.mubr.msk.f32.gmra.mxu0 %vm1457_vm2, %v12820_v61  ;;  %v4910_v61 = vpop.permute.xlu1 %4909 }
 0x94c   : >>> { %8753 = vmatprep.mubr.msk.f32.mxu0 %vm1457_vm2, %v12831_v34  ;;  %8869 = vmatprep.subr.mxu1 %v4910_v61 }
 0x94f   : >>> { %8754 = vmatmul.mubr.msk.f32.gmra.mxu0 %vm1457_vm2, %v12831_v34  ;;  %v4814_v34 = vpop.permute.xlu1 %4813 }
 0x950   : >>> { %8755 = vmatprep.mubr.msk.f32.mxu0 %vm1457_vm2, %v12845_v14 }
 0x953   : >>> { %8756 = vmatmul.mubr.msk.f32.gmra.mxu0 %vm1457_vm2, %v12845_v14  ;;  %v4848_v14 = vpop.permute.xlu0 %4847  ;;  %v4878_v29 = vpop.permute.xlu1 %4877 }
 0x954   : >>> { %8757 = vmatprep.mubr.msk.f32.mxu0 %vm1457_vm2, %v12859_v41  ;;  %8811 = vmatprep.subr.mxu0 %v4848_v14 }
 0x955   : >>> { %8812 = vmatpush3.msra.mxu0 %v4816_v2  ;;  %8870 = vmatpush3.msra.mxu1 %v4878_v29  ;;  %v13053_v2 = vpop.f32.mrf.mxu1 }
 0x956   : >>> { %8813 = vmatprep.subr.mxu0 %v4846_v31  ;;  %15381 = vst [vmem:[#allocation38_spill] sm:$0xff] %v13053_v2 }
 0x957   : >>> { %8758 = vmatmul.mubr.msk.f32.gmra.mxu0 %vm1457_vm2, %v12859_v41  ;;  %v4908_v41 = vpop.permute.xlu0 %4907  ;;  %v4844_v37 = vpop.permute.xlu1 %4843 }
 0x958   : >>> { %8759 = vmatprep.mubr.msk.f32.mxu0 %vm1457_vm2, %v12873_v28  ;;  %8814 = vmatpush3.msra.mxu0 %v4814_v34  ;;  %v13057_v17 = vpop.f32.mrf.mxu1 }
 0x959   : >>> { %8871 = vmatprep.subr.mxu1 %v4908_v41  ;;  %8815 = vmatprep.subr.mxu0 %v4844_v37  ;;  %15383 = vst [vmem:[#allocation36_spill] sm:$0xff] %v13057_v17 }
 0x95b   : >>> { %8760 = vmatmul.mubr.msk.f32.gmra.mxu0 %vm1457_vm2, %v12873_v28  ;;  %v4812_v39 = vpop.permute.xlu0 %4811 }
 0x95c   : >>> { %8816 = vmatpush3.msra.mxu0 %v4812_v39 }
 0x95f   : >>> { %v4876_v28 = vpop.permute.xlu0 %4875 }
 0x960   : >>> { %8872 = vmatpush3.msra.mxu1 %v4876_v28 }
 0x962   : >>> { %v4810_v5 = vpop.permute.xlu1 %4809 }
 0x963   : >>> { %v4842_v62 = vpop.permute.xlu0 %4841 }
 0x964   : >>> { %8817 = vmatprep.subr.mxu0 %v4842_v62 }
 0x965   : >>> { %8818 = vmatpush3.msra.mxu0 %v4810_v5 }
 0x966   : >>> { %v4872_v13 = vpop.permute.xlu1 %4871 }
 0x967   : >>> { %v4906_v11 = vpop.permute.xlu0 %4905 }
 0x968   : >>> { %8873 = vmatprep.subr.mxu1 %v4906_v11 }
 0x96a   : >>> { %v4902_v9 = vpop.permute.xlu1 %4901 }
 0x96b   : >>> { %v4874_v56 = vpop.permute.xlu0 %4873 }
 0x96c   : >>> { %8874 = vmatpush3.msra.mxu1 %v4874_v56 }
 0x96e   : >>> { %v4870_v4 = vpop.permute.xlu1 %4869 }
 0x96f   : >>> { %v4840_v43 = vpop.permute.xlu0 %4839 }
 0x970   : >>> { %8819 = vmatprep.subr.mxu0 %v4840_v43 }
 0x972   : >>> { %v4900_v46 = vpop.permute.xlu1 %4899 }
 0x973   : >>> { %v4904_v47 = vpop.permute.xlu0 %4903 }
 0x974   : >>> { %8875 = vmatprep.subr.mxu1 %v4904_v47  ;;  %v15388_v47 = vld [vmem:[#allocation5_spill] sm:$0xff] }
 0x975   : >>> { %8876 = vmatpush3.msra.mxu1 %v4872_v13  ;;  %v15387_v13 = vld [vmem:[#allocation4_spill] sm:$0xff] }
 0x976   : >>> { %8877 = vmatprep.subr.mxu1 %v4902_v9  ;;  %v4868_v33 = vpop.permute.xlu1 %4867 }
 0x977   : >>> { %v4808_v57 = vpop.permute.xlu0 %4807  ;;  %8878 = vmatpush3.msra.mxu1 %v4870_v4 }
 0x978   : >>> { %8820 = vmatpush3.msra.mxu0 %v4808_v57  ;;  %8879 = vmatprep.subr.mxu1 %v4900_v46 }
 0x979   : >>> { %8880 = vmatpush3.msra.mxu1 %v4868_v33 }
 0x97a   : >>> { %v4898_v7 = vpop.permute.xlu1 %4897 }
 0x97b   : >>> { %v4838_v32 = vpop.permute.xlu0 %4837  ;;  %8881 = vmatprep.subr.mxu1 %v4898_v7  ;;  %v15390_v7 = vld [vmem:[#allocation7_spill] sm:$0xff] }
 0x97c   : >>> { %8821 = vmatprep.subr.mxu0 %v4838_v32 }
 0x97e   : >>> { %v4866_v42 = vpop.permute.xlu1 %4865 }
 0x97f   : >>> { %v4806_v51 = vpop.permute.xlu0 %4805  ;;  %8882 = vmatpush3.msra.mxu1 %v4866_v42 }
 0x980   : >>> { %8822 = vmatpush3.msra.mxu0 %v4806_v51  ;;  %v15389_v51 = vld [vmem:[#allocation6_spill] sm:$0xff] }
 0x982   : >>> { %v4896_v25 = vpop.permute.xlu1 %4895 }
 0x983   : >>> { %v4836_v45 = vpop.permute.xlu0 %4835  ;;  %8883 = vmatprep.subr.mxu1 %v4896_v25 }
 0x984   : >>> { %8823 = vmatprep.subr.mxu0 %v4836_v45 }
 0x986   : >>> { %v4864_v10 = vpop.permute.xlu1 %4863 }
 0x987   : >>> { %v4804_v60 = vpop.permute.xlu0 %4803  ;;  %8884 = vmatpush3.msra.mxu1 %v4864_v10 }
 0x988   : >>> { %8824 = vmatpush3.msra.mxu0 %v4804_v60 }
 0x98a   : >>> { %v4894_v22 = vpop.permute.xlu1 %4893 }
 0x98b   : >>> { %v4834_v8 = vpop.permute.xlu0 %4833  ;;  %8885 = vmatprep.subr.mxu1 %v4894_v22 }
 0x98c   : >>> { %8825 = vmatprep.subr.mxu0 %v4834_v8 }
 0x98e   : >>> { %v4862_v40 = vpop.permute.xlu1 %4861 }
 0x98f   : >>> { %v4802_v20 = vpop.permute.xlu0 %4801  ;;  %8886 = vmatpush3.msra.mxu1 %v4862_v40 }
 0x990   : >>> { %8826 = vmatpush3.msra.mxu0 %v4802_v20 }
 0x992   : >>> { %v4892_v18 = vpop.permute.xlu1 %4891 }
 0x993   : >>> { %v4832_v63 = vpop.permute.xlu0 %4831  ;;  %8887 = vmatprep.subr.mxu1 %v4892_v18 }
 0x994   : >>> { %8827 = vmatprep.subr.mxu0 %v4832_v63 }
 0x996   : >>> { %v4860_v54 = vpop.permute.xlu1 %4859 }
 0x997   : >>> { %v4800_v59 = vpop.permute.xlu0 %4799  ;;  %8888 = vmatpush3.msra.mxu1 %v4860_v54 }
 0x998   : >>> { %8828 = vmatpush3.msra.mxu0 %v4800_v59 }
 0x99b   : >>> { %v4830_v52 = vpop.permute.xlu0 %4829  ;;  %v4890_v38 = vpop.permute.xlu1 %4889 }
 0x99c   : >>> { %8829 = vmatprep.subr.mxu0 %v4830_v52  ;;  %8889 = vmatprep.subr.mxu1 %v4890_v38 }
 0x99f   : >>> { %v4798_v44 = vpop.permute.xlu0 %4797  ;;  %v4858_v55 = vpop.permute.xlu1 %4857 }
 0x9a0   : >>> { %8830 = vmatpush3.msra.mxu0 %v4798_v44  ;;  %8890 = vmatpush3.msra.mxu1 %v4858_v55 }
 0x9a1   : >>> { %v4460_v61 = vpop.f32.mrf.mxu1 }
 0x9a2   : >>> { %v4509_v62 = vmul.f32 0.35355338, %v4460_v61 }
 0x9a3   : >>> { %v4828_v0 = vpop.permute.xlu0 %4827  ;;  %v4888_v53 = vpop.permute.xlu1 %4887 }
 0x9a4   : >>> { %8831 = vmatprep.subr.mxu0 %v4828_v0  ;;  %8891 = vmatprep.subr.mxu1 %v4888_v53  ;;  %v4462_v29 = vpop.f32.mrf.mxu1  ;;  %v13072_v46 = vadd.f32 %v4509_v62, %v15389_v51 }
 0x9a5   : >>> { %v4510_v5 = vmul.f32 0.35355338, %v4462_v29 }
 0x9a6   : >>> { %v4466_v39 = vpop.f32.mrf.mxu1 }
 0x9a7   : >>> { %v4796_v15 = vpop.permute.xlu0 %4795  ;;  %v4856_v27 = vpop.permute.xlu1 %4855  ;;  %v4513_v45 = vmul.f32 0.35355338, %v4466_v39  ;;  %v13077_v8 = vadd.f32 %v4510_v5, %v15390_v7 }
 0x9a8   : >>> { %8832 = vmatpush3.msra.mxu0 %v4796_v15  ;;  %8892 = vmatpush3.msra.mxu1 %v4856_v27  ;;  %v4468_v32 = vpop.f32.mrf.mxu1 }
 0x9a9   : >>> { %v4514_v20 = vmul.f32 0.35355338, %v4468_v32  ;;  %v13087_v59 = vadd.f32 %v4513_v45, %v15389_v51 }
 0x9aa   : >>> { %v4472_v15 = vpop.f32.mrf.mxu1 }
 0x9ab   : >>> { %v4826_v50 = vpop.permute.xlu0 %4825  ;;  %v4886_v12 = vpop.permute.xlu1 %4885  ;;  %v13093_v44 = vadd.f32 %v4514_v20, %v15390_v7 }
 0x9ac   : >>> { %8833 = vmatprep.subr.mxu0 %v4826_v50  ;;  %8893 = vmatprep.subr.mxu1 %v4886_v12  ;;  %v4474_v50 = vpop.f32.mrf.mxu1  ;;  %v13097_v12 = vld [vmem:[#allocation3 + $0x108] sm:$0xff] }
 0x9ae   : >>> { %v13041_v58 = vpop.f32.mrf.mxu0 }
 0x9af   : >>> { %v4794_v21 = vpop.permute.xlu0 %4793  ;;  %15375 = vst [vmem:[#allocation50_spill] sm:$0xff] %v13041_v58  ;;  %v13447_v58 = vld [vmem:[#allocation3 + $0x1c8] sm:$0xff] }
 0x9b0   : >>> { %8834 = vmatpush3.msra.mxu0 %v4794_v21  ;;  %v13045_v49 = vpop.f32.mrf.mxu0  ;;  %v4478_v21 = vpop.f32.mrf.mxu1  ;;  %15401 = vst [vmem:[#allocation13_spill] sm:$0xff] %v13447_v58 }
 0x9b1   : >>> { %15377 = vst [vmem:[#allocation52_spill] sm:$0xff] %v13045_v49  ;;  %v13443_v49 = vld [vmem:[#allocation3 + $0x50] sm:$0xff] }
 0x9b3   : >>> { %v4824_v1 = vpop.permute.xlu0 %4823 }
 0x9b4   : >>> { %8835 = vmatprep.subr.mxu0 %v4824_v1  ;;  %v4480_v1 = vpop.f32.mrf.mxu1 }
 0x9b7   : >>> { %v4792_v3 = vpop.permute.xlu0 %4791 }
 0x9b8   : >>> { %8836 = vmatpush3.msra.mxu0 %v4792_v3  ;;  %v4484_v3 = vpop.f32.mrf.mxu1 }
 0x9ba   : >>> { %v4486_v29 = vpop.f32.mrf.mxu1 }
 0x9bb   : >>> { %v4822_v26 = vpop.permute.xlu0 %4821 }
 0x9bc   : >>> { %8837 = vmatprep.subr.mxu0 %v4822_v26  ;;  %v13101_v26 = vld [vmem:[#allocation3 + $0x8] sm:$0xff] }
 0x9e7   : >>> { %v13047_v36 = vpop.f32.mrf.mxu0 }
 0x9e8   : >>> { %15378 = vst [vmem:[#allocation57_spill] sm:$0xff] %v13047_v36  ;;  %v13435_v36 = vld [vmem:[#allocation3 + $0xd0] sm:$0xff] }
 0x9e9   : >>> { %v13051_v48 = vpop.f32.mrf.mxu0 }
 0x9ea   : >>> { %15380 = vst [vmem:[#allocation58_spill] sm:$0xff] %v13051_v48  ;;  %v13427_v48 = vld [vmem:[#allocation3 + $0x58] sm:$0xff] }
 0x9f3   : >>> { %v13055_v23 = vpop.f32.mrf.mxu0 }
 0x9f4   : >>> { %15382 = vst [vmem:[#allocation23_spill] sm:$0xff] %v13055_v23  ;;  %v13419_v23 = vld [vmem:[#allocation3 + $0xd8] sm:$0xff] }
 0x9f5   : >>> { %v13059_v31 = vpop.f32.mrf.mxu0 }
 0x9f6   : >>> { %15384 = vst [vmem:[#allocation29_spill] sm:$0xff] %v13059_v31  ;;  %v13411_v31 = vld [vmem:[#allocation3 + $0x60] sm:$0xff] }
 0x9fb   : >>> { %v13061_v34 = vpop.f32.mrf.mxu0 }
 0x9fc   : >>> { %15385 = vst [vmem:[#allocation37_spill] sm:$0xff] %v13061_v34 }
 0x9fd   : >>> { %v13063_v14 = vpop.f32.mrf.mxu0 }
 0x9fe   : >>> { %15386 = vst [vmem:[#allocation25_spill] sm:$0xff] %v13063_v14 }
 0x9ff   : >>> { %v4347_v41 = vpop.f32.mrf.mxu0 }
 0xa00   : >>> { %v4507_v37 = vmul.f32 0.35355338, %v4347_v41 }
 0xa01   : >>> { %v4349_v28 = vpop.f32.mrf.mxu0 }
 0xa02   : >>> { %v4508_v11 = vmul.f32 0.35355338, %v4349_v28  ;;  %v13066_v43 = vadd.f32 %v4507_v37, %v15387_v13  ;;  %v4490_v37 = vpop.f32.mrf.mxu1 }
 0xa03   : >>> { %v4353_v56 = vpop.f32.mrf.mxu0 }
 0xa04   : >>> { %v13069_v9 = vadd.f32 %v4508_v11, %v15388_v47  ;;  %v4511_v57 = vmul.f32 0.35355338, %v4353_v56  ;;  %v4492_v28 = vpop.f32.mrf.mxu1 }
 0xa05   : >>> { %v4355_v4 = vpop.f32.mrf.mxu0 }
 0xa06   : >>> { %v4571_v33 = vmax.f32 %v13066_v43, %v13069_v9  ;;  %v4512_v60 = vmul.f32 0.35355338, %v4355_v4  ;;  %v13080_v25 = vadd.f32 %v4511_v57, %v15387_v13  ;;  %v4496_v56 = vpop.f32.mrf.mxu1  ;;  %v4517_v57 = vmul.f32 0.35355338, %v4472_v15 }
 0xa07   : >>> { %v4359_v42 = vpop.f32.mrf.mxu0 }
 0xa08   : >>> { %v13083_v63 = vadd.f32 %v4512_v60, %v15388_v47  ;;  %v4572_v10 = vmax.f32 %v4571_v33, %v13072_v46  ;;  %v4515_v62 = vmul.f32 0.35355338, %v4359_v42  ;;  %v4518_v42 = vmul.f32 0.35355338, %v4474_v50 }
 0xa09   : >>> { %v4361_v40 = vpop.f32.mrf.mxu0 }
 0xa0a   : >>> { %v4576_v22 = vmax.f32 %v13080_v25, %v13083_v63  ;;  %v4573_v52 = vmax.f32 %v4572_v10, %v13077_v8  ;;  %v4516_v11 = vmul.f32 0.35355338, %v4361_v40  ;;  %v13106_v45 = vadd.f32 %v4515_v62, %v15387_v13 }
 0xa0b   : >>> { %v4365_v54 = vpop.f32.mrf.mxu0  ;;  %v4529_v40 = vmul.f32 0.35355338, %v4490_v37  ;;  %v4521_v62 = vmul.f32 0.35355338, %v4478_v21 }
 0xa0c   : >>> { %4574 = vmax.xlane.f32.xlu0 %v4573_v52  ;;  %v4577_v18 = vmax.f32 %v4576_v22, %v13087_v59  ;;  %v13109_v33 = vadd.f32 %v4516_v11, %v15388_v47  ;;  %v4519_v60 = vmul.f32 0.35355338, %v4365_v54  ;;  %v4498_v22 = vpop.f32.mrf.mxu1  ;;  %v13112_v52 = vadd.f32 %v4517_v57, %v15389_v51 }
 0xa0d   : >>> { %v4367_v38 = vpop.f32.mrf.mxu0  ;;  %v13129_v57 = vadd.f32 %v4518_v42, %v15390_v7  ;;  %v4525_v42 = vmul.f32 0.35355338, %v4484_v3 }
 0xa0e   : >>> { %v4578_v0 = vmax.f32 %v4577_v18, %v13093_v44  ;;  %v4520_v20 = vmul.f32 0.35355338, %v4367_v38  ;;  %v13123_v54 = vadd.f32 %v4519_v60, %v15387_v13  ;;  %v4502_v50 = vpop.f32.mrf.mxu1 }
 0xa0f   : >>> { %v4371_v55 = vpop.f32.mrf.mxu0  ;;  %v4537_v21 = vmul.f32 0.35355338, %v4502_v50 }
 0xa10   : >>> { %4579 = vmax.xlane.f32.xlu1 %v4578_v0  ;;  %v13126_v38 = vadd.f32 %v4520_v20, %v15388_v47  ;;  %v4523_v37 = vmul.f32 0.35355338, %v4371_v55 }
 0xa11   : >>> { %v4373_v53 = vpop.f32.mrf.mxu0 }
 0xa12   : >>> { %v4524_v11 = vmul.f32 0.35355338, %v4373_v53  ;;  %v4586_v53 = vmax.f32 %v13123_v54, %v13126_v38 }
 0xa13   : >>> { %v4377_v27 = vpop.f32.mrf.mxu0 }
 0xa14   : >>> { %v4527_v32 = vmul.f32 0.35355338, %v4377_v27 }
 0xa15   : >>> { %v4379_v61 = vpop.f32.mrf.mxu0 }
 0xa16   : >>> { %v4528_v4 = vmul.f32 0.35355338, %v4379_v61  ;;  %v13115_v18 = vadd.f32 %v4527_v32, %v15387_v13  ;;  %v4581_v61 = vmax.f32 %v13106_v45, %v13109_v33  ;;  %v4522_v32 = vmul.f32 0.35355338, %v4480_v1 }
 0xa17   : >>> { %v4383_v41 = vpop.f32.mrf.mxu0  ;;  %v13146_v1 = vadd.f32 %v4521_v62, %v15389_v51  ;;  %v13164_v62 = vadd.f32 %v4537_v21, %v15389_v51 }
 0xa18   : >>> { %v13118_v0 = vadd.f32 %v4528_v4, %v15388_v47  ;;  %v4530_v4 = vmul.f32 0.35355338, %v4492_v28  ;;  %v4582_v55 = vmax.f32 %v4581_v61, %v13112_v52  ;;  %v4504_v28 = vpop.f32.mrf.mxu1  ;;  %v4531_v17 = vmul.f32 0.35355338, %v4383_v41 }
 0xa19   : >>> { %v4385_v39 = vpop.f32.mrf.mxu0  ;;  %v13155_v50 = vadd.f32 %v4522_v32, %v15390_v7  ;;  %v4526_v41 = vmul.f32 0.35355338, %v4486_v29  ;;  %v4587_v2 = vmax.f32 %v4586_v53, %v13146_v1 }
 0xa1a   : >>> { %v13158_v61 = vadd.f32 %v4530_v4, %v15390_v7  ;;  %v4583_v32 = vmax.f32 %v4582_v55, %v13129_v57 }
 0xa1b   : >>> { %v4389_v5 = vpop.f32.mrf.mxu0 }
 0xa1c   : >>> { %v4535_v15 = vmul.f32 0.35355338, %v4389_v5  ;;  %v13132_v5 = vadd.f32 %v4529_v40, %v15389_v51  ;;  %v13149_v40 = vadd.f32 %v4523_v37, %v15387_v13  ;;  %v4538_v37 = vmul.f32 0.35355338, %v4504_v28 }
 0xa1d   : >>> { %v4391_v10 = vpop.f32.mrf.mxu0  ;;  %v4534_v28 = vmul.f32 0.35355338, %v4498_v22 }
 0xa1e   : >>> { %v4536_v27 = vmul.f32 0.35355338, %v4391_v10  ;;  %v4596_v10 = vmax.f32 %v13115_v18, %v13118_v0  ;;  %v13137_v60 = vadd.f32 %v4535_v15, %v15387_v13  ;;  %v13152_v15 = vadd.f32 %v4524_v11, %v15388_v47 }
 0xa1f   : >>> { %v13167_v11 = vadd.f32 %v4525_v42, %v15389_v51  ;;  %v13181_v42 = vadd.f32 %v4538_v37, %v15390_v7  ;;  %v13197_v37 = vadd.f32 %v4534_v28, %v15390_v7 }
 0xa20   : >>> { %v13140_v20 = vadd.f32 %v4536_v27, %v15388_v47  ;;  %v4532_v27 = vmul.f32 0.35355338, %v4385_v39  ;;  %v4597_v14 = vmax.f32 %v4596_v10, %v13132_v5  ;;  %v4533_v39 = vmul.f32 0.35355338, %v4496_v56 }
 0xa21   : >>> { %4853 = vrot.lane.b32.xlu1 %v13097_v12, %s10166_s28  ;;  %v4591_v4 = vmax.f32 %v13149_v40, %v13152_v15  ;;  %v13174_v10 = vadd.f32 %v4531_v17, %v15387_v13  ;;  %v13185_v56 = vadd.f32 %v4526_v41, %v15390_v7  ;;  %v13403_v13 = vld [vmem:[#allocation3 + $0xe0] sm:$0xff] }
 0xa22   : >>> { %4789 = vrot.lane.b32.xlu0 %v13101_v26, %s10166_s28  ;;  %v4606_v3 = vmax.f32 %v13137_v60, %v13140_v20  ;;  %v13177_v34 = vadd.f32 %v4532_v27, %v15388_v47  ;;  %v4598_v29 = vmax.f32 %v4597_v14, %v13158_v61  ;;  %v13188_v55 = vadd.f32 %v4533_v39, %v15389_v51 }
 0xa23   : >>> { %v4592_v17 = vmax.f32 %v4591_v4, %v13167_v11  ;;  %v4588_v27 = vmax.f32 %v4587_v2, %v13155_v50  ;;  %v13205_v2 = vld [vmem:[#allocation3 + $0x80] sm:$0xff] }
 0xa24   : >>> { %v4607_v21 = vmax.f32 %v4606_v3, %v13164_v62  ;;  %v4601_v53 = vmax.f32 %v13174_v10, %v13177_v34 }
 0xa25   : >>> { %v4593_v41 = vmax.f32 %v4592_v17, %v13185_v56 }
 0xa26   : >>> { %v4608_v3 = vmax.f32 %v4607_v21, %v13181_v42  ;;  %v4602_v14 = vmax.f32 %v4601_v53, %v13188_v55 }
 0xa28   : >>> { %v4603_v39 = vmax.f32 %v4602_v14, %v13197_v37 }
 0xa41   : >>> { %4584 = vmax.xlane.f32.xlu0 %v4583_v32  ;;  %v13201_v32 = vld [vmem:[#allocation3 + $0x180] sm:$0xff] }
 0xa45   : >>> { %4589 = vmax.xlane.f32.xlu0 %v4588_v27  ;;  %4599 = vmax.xlane.f32.xlu1 %v4598_v29 }
 0xa49   : >>> { %4594 = vmax.xlane.f32.xlu0 %v4593_v41  ;;  %4609 = vmax.xlane.f32.xlu1 %v4608_v3 }
 0xa4d   : >>> { %4604 = vmax.xlane.f32.xlu0 %v4603_v39 }
 0xa5a   : >>> { %4883 = vrot.lane.b32.xlu1 %v13201_v32, %s10166_s28 }
 0xa63   : >>> { %4819 = vrot.lane.b32.xlu0 %v13205_v2, %s10166_s28 }
 0xa95   : >>> { %v4575_v22 = vpop.xlane.xlu0 %4574 }
 0xa96   : >>> { %v4611_v4 = vsub.f32 %v13066_v43, %v4575_v22  ;;  %v4612_v21 = vsub.f32 %v13069_v9, %v4575_v22  ;;  %v4613_v29 = vsub.f32 %v13072_v46, %v4575_v22  ;;  %v4614_v17 = vsub.f32 %v13077_v8, %v4575_v22 }
 0xa98   : >>> { %v4643_v53 = vmul.f32 1.442695, %v4611_v4  ;;  %v4645_v28 = vmul.f32 1.442695, %v4612_v21  ;;  %v4647_v27 = vmul.f32 1.442695, %v4613_v29 }
 0xa99   : >>> { %v4649_v3 = vmul.f32 1.442695, %v4614_v17  ;;  %v4580_v14 = vpop.xlane.xlu1 %4579  ;;  %v4790_v41 = vpop.permute.xlu0 %4789 }
 0xa9a   : >>> { %9693 = vpow2.f32 %v4643_v53  ;;  %v4615_v39 = vsub.f32 %v13080_v25, %v4580_v14  ;;  %v4616_v7 = vsub.f32 %v13083_v63, %v4580_v14  ;;  %v4617_v51 = vsub.f32 %v13087_v59, %v4580_v14  ;;  %8838 = vmatpush3.msra.mxu0 %v4790_v41  ;;  %v13241_v41 = vld [vmem:[#allocation3 + $0x100] sm:$0xff] }
 0xa9b   : >>> { %9695 = vpow2.f32 %v4645_v28  ;;  %v4618_v43 = vsub.f32 %v13093_v44, %v4580_v14 }
 0xa9c   : >>> { %9697 = vpow2.f32 %v4647_v27  ;;  %v4651_v9 = vmul.f32 1.442695, %v4615_v39  ;;  %v4653_v46 = vmul.f32 1.442695, %v4616_v7  ;;  %v4655_v8 = vmul.f32 1.442695, %v4617_v51 }
 0xa9d   : >>> { %9699 = vpow2.f32 %v4649_v3  ;;  %v4854_v22 = vpop.permute.xlu1 %4853  ;;  %v4657_v4 = vmul.f32 1.442695, %v4618_v43  ;;  %v13245_v39 = vld [vmem:[#allocation3] sm:$0xff] }
 0xa9e   : >>> { %9701 = vpow2.f32 %v4651_v9  ;;  %8894 = vmatpush3.msra.mxu1 %v4854_v22 }
 0xa9f   : >>> { %9703 = vpow2.f32 %v4653_v46 }
 0xaa0   : >>> { %9705 = vpow2.f32 %v4655_v8 }
 0xaa1   : >>> { %9707 = vpow2.f32 %v4657_v4 }
 0xaa7   : >>> { %v13217_v25 = vpop.eup %9693 }
 0xaa8   : >>> { %v13219_v63 = vpop.eup %9695 }
 0xaa9   : >>> { %v13221_v59 = vpop.eup %9697  ;;  %v4707_v44 = vadd.f32 %v13219_v63, %v13217_v25 }
 0xaaa   : >>> { %v13225_v21 = vpop.eup %9699 }
 0xaab   : >>> { %v13227_v7 = vpop.eup %9701  ;;  %v4708_v51 = vadd.f32 %v13221_v59, %v4707_v44 }
 0xaac   : >>> { %v13230_v29 = vpop.eup %9703 }
 0xaad   : >>> { %v4709_v17 = vadd.f32 %v13225_v21, %v4708_v51  ;;  %v4712_v53 = vadd.f32 %v13230_v29, %v13227_v7  ;;  %v13235_v28 = vpop.eup %9705 }
 0xaae   : >>> { %v13238_v3 = vpop.eup %9707 }
 0xaaf   : >>> { %4710 = vadd.xlane.f32.xlu0 %v4709_v17  ;;  %v4713_v27 = vadd.f32 %v13235_v28, %v4712_v53 }
 0xab1   : >>> { %v4714_v14 = vadd.f32 %v13238_v3, %v4713_v27 }
 0xab3   : >>> { %4715 = vadd.xlane.f32.xlu1 %v4714_v14 }
 0xac4   : >>> { %4851 = vrot.lane.b32.xlu1 %v13241_v41, %s10166_s28 }
 0xac5   : >>> { %4787 = vrot.lane.b32.xlu0 %v13245_v39, %s10166_s28 }
 0xaca   : >>> { %v4585_v43 = vpop.xlane.xlu0 %4584 }
 0xacb   : >>> { %v4619_v9 = vsub.f32 %v13106_v45, %v4585_v43  ;;  %v4620_v46 = vsub.f32 %v13109_v33, %v4585_v43  ;;  %v4621_v8 = vsub.f32 %v13112_v52, %v4585_v43  ;;  %v4622_v22 = vsub.f32 %v13129_v57, %v4585_v43 }
 0xacd   : >>> { %v4659_v4 = vmul.f32 1.442695, %v4619_v9  ;;  %v4661_v44 = vmul.f32 1.442695, %v4620_v46  ;;  %v4663_v51 = vmul.f32 1.442695, %v4621_v8 }
 0xace   : >>> { %v4665_v17 = vmul.f32 1.442695, %v4622_v22  ;;  %v13253_v53 = vpop.xlane.xlu1 %4599  ;;  %v4590_v27 = vpop.xlane.xlu0 %4589 }
 0xacf   : >>> { %9709 = vpow2.f32 %v4659_v4  ;;  %v4631_v14 = vsub.f32 %v13115_v18, %v13253_v53  ;;  %v4632_v45 = vsub.f32 %v13118_v0, %v13253_v53  ;;  %v4633_v33 = vsub.f32 %v13132_v5, %v13253_v53 }
 0xad0   : >>> { %9711 = vpow2.f32 %v4661_v44  ;;  %v4623_v52 = vsub.f32 %v13123_v54, %v4590_v27  ;;  %v4624_v57 = vsub.f32 %v13126_v38, %v4590_v27  ;;  %v4625_v8 = vsub.f32 %v13146_v1, %v4590_v27 }
 0xad1   : >>> { %v4683_v43 = vmul.f32 1.442695, %v4631_v14  ;;  %v4685_v9 = vmul.f32 1.442695, %v4632_v45  ;;  %9713 = vpow2.f32 %v4663_v51  ;;  %v4687_v46 = vmul.f32 1.442695, %v4633_v33 }
 0xad2   : >>> { %v4626_v22 = vsub.f32 %v13155_v50, %v4590_v27  ;;  %v4610_v18 = vpop.xlane.xlu1 %4609  ;;  %v4595_v4 = vpop.xlane.xlu0 %4594  ;;  %9715 = vpow2.f32 %v4665_v17  ;;  %v4667_v0 = vmul.f32 1.442695, %v4623_v52  ;;  %v4669_v5 = vmul.f32 1.442695, %v4624_v57 }
 0xad3   : >>> { %v4639_v47 = vsub.f32 %v13137_v60, %v4610_v18  ;;  %9717 = vpow2.f32 %v4683_v43  ;;  %v4640_v54 = vsub.f32 %v13140_v20, %v4610_v18  ;;  %v4671_v38 = vmul.f32 1.442695, %v4625_v8 }
 0xad4   : >>> { %9719 = vpow2.f32 %v4685_v9  ;;  %v4641_v44 = vsub.f32 %v13164_v62, %v4610_v18  ;;  %v4673_v51 = vmul.f32 1.442695, %v4626_v22  ;;  %v4642_v1 = vsub.f32 %v13181_v42, %v4610_v18 }
 0xad5   : >>> { %9721 = vpow2.f32 %v4687_v46  ;;  %v4699_v27 = vmul.f32 1.442695, %v4639_v47  ;;  %v4627_v17 = vsub.f32 %v13149_v40, %v4595_v4  ;;  %v4701_v60 = vmul.f32 1.442695, %v4640_v54 }
 0xad6   : >>> { %v4605_v14 = vpop.xlane.xlu0 %4604  ;;  %v4884_v50 = vpop.permute.xlu1 %4883  ;;  %9723 = vpow2.f32 %v4667_v0  ;;  %v4628_v45 = vsub.f32 %v13152_v15, %v4595_v4  ;;  %v4703_v20 = vmul.f32 1.442695, %v4641_v44  ;;  %v4629_v33 = vsub.f32 %v13167_v11, %v4595_v4 }
 0xad7   : >>> { %8895 = vmatprep.subr.mxu1 %v4884_v50  ;;  %9725 = vpow2.f32 %v4669_v5  ;;  %v4705_v62 = vmul.f32 1.442695, %v4642_v1  ;;  %v4630_v52 = vsub.f32 %v13185_v56, %v4595_v4  ;;  %v4675_v57 = vmul.f32 1.442695, %v4627_v17 }
 0xad8   : >>> { %9727 = vpow2.f32 %v4671_v38  ;;  %v4635_v47 = vsub.f32 %v13174_v10, %v4605_v14  ;;  %v4677_v43 = vmul.f32 1.442695, %v4628_v45  ;;  %v4636_v15 = vsub.f32 %v13177_v34, %v4605_v14 }
 0xad9   : >>> { %9729 = vpow2.f32 %v4673_v51  ;;  %v4679_v11 = vmul.f32 1.442695, %v4629_v33  ;;  %v4681_v46 = vmul.f32 1.442695, %v4630_v52  ;;  %v4634_v10 = vsub.f32 %v13158_v61, %v13253_v53 }
 0xada   : >>> { %v4820_v42 = vpop.permute.xlu0 %4819  ;;  %9731 = vpow2.f32 %v4699_v27  ;;  %v4691_v22 = vmul.f32 1.442695, %v4635_v47  ;;  %v4637_v34 = vsub.f32 %v13188_v55, %v4605_v14  ;;  %v4693_v4 = vmul.f32 1.442695, %v4636_v15 }
 0xadb   : >>> { %8839 = vmatprep.subr.mxu0 %v4820_v42  ;;  %9733 = vpow2.f32 %v4701_v60  ;;  %v4689_v61 = vmul.f32 1.442695, %v4634_v10  ;;  %v4638_v51 = vsub.f32 %v13197_v37, %v4605_v14 }
 0xadc   : >>> { %v13274_v40 = vpop.eup %9709  ;;  %9735 = vpow2.f32 %v4703_v20  ;;  %v4695_v55 = vmul.f32 1.442695, %v4637_v34 }
 0xadd   : >>> { %v13277_v9 = vpop.eup %9711  ;;  %9737 = vpow2.f32 %v4705_v62  ;;  %v4697_v45 = vmul.f32 1.442695, %v4638_v51 }
 0xade   : >>> { %v4717_v56 = vadd.f32 %v13277_v9, %v13274_v40  ;;  %v13281_v8 = vpop.eup %9713  ;;  %9739 = vpow2.f32 %v4675_v57 }
 0xadf   : >>> { %v13285_v18 = vpop.eup %9715  ;;  %9741 = vpow2.f32 %v4677_v43 }
 0xae0   : >>> { %v4718_v0 = vadd.f32 %v13281_v8, %v4717_v56  ;;  %v13289_v5 = vpop.eup %9717  ;;  %9743 = vpow2.f32 %v4679_v11 }
 0xae1   : >>> { %v13291_v54 = vpop.eup %9719  ;;  %9745 = vpow2.f32 %v4681_v46 }
 0xae2   : >>> { %v4719_v38 = vadd.f32 %v13285_v18, %v4718_v0  ;;  %v13294_v44 = vpop.eup %9721  ;;  %9747 = vpow2.f32 %v4691_v22  ;;  %v4732_v46 = vadd.f32 %v13291_v54, %v13289_v5 }
 0xae3   : >>> { %v13296_v53 = vpop.eup %9723  ;;  %9749 = vpow2.f32 %v4693_v4 }
 0xae4   : >>> { %4720 = vadd.xlane.f32.xlu0 %v4719_v38  ;;  %v13299_v1 = vpop.eup %9725  ;;  %9751 = vpow2.f32 %v4689_v61  ;;  %v4733_v0 = vadd.f32 %v13294_v44, %v4732_v46  ;;  %v13371_v46 = vld [vmem:[#allocation3 + $0xf8] sm:$0xff] }
 0xae5   : >>> { %v13301_v50 = vpop.eup %9727  ;;  %v4722_v27 = vadd.f32 %v13299_v1, %v13296_v53  ;;  %9753 = vpow2.f32 %v4695_v55 }
 0xae6   : >>> { %v13305_v17 = vpop.eup %9729  ;;  %9755 = vpow2.f32 %v4697_v45 }
 0xae7   : >>> { %v13307_v60 = vpop.eup %9731  ;;  %v4723_v20 = vadd.f32 %v13301_v50, %v4722_v27 }
 0xae8   : >>> { %v13310_v37 = vpop.eup %9733 }
 0xae9   : >>> { %v13312_v14 = vpop.eup %9735  ;;  %v4724_v33 = vadd.f32 %v13305_v17, %v4723_v20  ;;  %v4742_v62 = vadd.f32 %v13310_v37, %v13307_v60 }
 0xaea   : >>> { %v13317_v52 = vpop.eup %9737 }
 0xaeb   : >>> { %v13319_v42 = vpop.eup %9739  ;;  %4725 = vadd.xlane.f32.xlu1 %v4724_v33  ;;  %v4743_v57 = vadd.f32 %v13312_v14, %v4742_v62  ;;  %v13351_v33 = vld [vmem:[#allocation3 + $0x78] sm:$0xff]  ;;  %v13355_v62 = vld [vmem:[#allocation3 + $0xf0] sm:$0xff] }
 0xaec   : >>> { %v13322_v47 = vpop.eup %9741 }
 0xaed   : >>> { %v13324_v43 = vpop.eup %9743  ;;  %v4744_v15 = vadd.f32 %v13317_v52, %v4743_v57  ;;  %v4727_v11 = vadd.f32 %v13322_v47, %v13319_v42  ;;  %v13359_v57 = vld [vmem:[#allocation3 + $0x1f8] sm:$0xff] }
 0xaee   : >>> { %v13331_v56 = vpop.eup %9745  ;;  %15391 = vst [vmem:[#allocation35_spill] sm:$0xff] %v13359_v57 }
 0xaef   : >>> { %v13333_v10 = vpop.eup %9747  ;;  %4745 = vadd.xlane.f32.xlu1 %v4744_v15  ;;  %v4728_v22 = vadd.f32 %v13324_v43, %v4727_v11  ;;  %v13363_v15 = vld [vmem:[#allocation3 + $0x178] sm:$0xff]  ;;  %v13367_v11 = vld [vmem:[#allocation3 + $0x1f0] sm:$0xff] }
 0xaf0   : >>> { %v13336_v34 = vpop.eup %9749  ;;  %15392 = vst [vmem:[#allocation28_spill] sm:$0xff] %v13363_v15  ;;  %15393 = vst [vmem:[#allocation8_spill] sm:$0xff] %v13367_v11 }
 0xaf1   : >>> { %v4729_v4 = vadd.f32 %v13331_v56, %v4728_v22  ;;  %v4737_v38 = vadd.f32 %v13336_v34, %v13333_v10  ;;  %v13342_v61 = vpop.eup %9751  ;;  %v13375_v22 = vld [vmem:[#allocation3 + $0x170] sm:$0xff] }
 0xaf2   : >>> { %v13344_v51 = vpop.eup %9753  ;;  %v4734_v55 = vadd.f32 %v13342_v61, %v4733_v0  ;;  %v13383_v0 = vld [vmem:[#allocation3 + $0x1e8] sm:$0xff] }
 0xaf3   : >>> { %4730 = vadd.xlane.f32.xlu0 %v4729_v4  ;;  %v4738_v27 = vadd.f32 %v13344_v51, %v4737_v38  ;;  %v13348_v45 = vpop.eup %9755  ;;  %v13379_v4 = vld [vmem:[#allocation3 + $0x70] sm:$0xff]  ;;  %15394 = vst [vmem:[#allocation33_spill] sm:$0xff] %v13383_v0  ;;  %v13387_v38 = vld [vmem:[#allocation3 + $0xe8] sm:$0xff] }
 0xaf5   : >>> { %v4739_v20 = vadd.f32 %v13348_v45, %v4738_v27  ;;  %v13395_v27 = vld [vmem:[#allocation3 + $0x68] sm:$0xff] }
 0xaf7   : >>> { %4735 = vadd.xlane.f32.xlu0 %v4734_v55  ;;  %v13391_v55 = vld [vmem:[#allocation3 + $0x168] sm:$0xff] }
 0xaf8   : >>> { %15395 = vst [vmem:[#allocation9_spill] sm:$0xff] %v13391_v55 }
 0xafb   : >>> { %4740 = vadd.xlane.f32.xlu0 %v4739_v20  ;;  %v13399_v20 = vld [vmem:[#allocation3 + $0x1e0] sm:$0xff] }
 0xb00   : >>> { %5372 = vrot.lane.b32.xlu1 %v13351_v33, %s10167_s29 }
 0xb04   : >>> { %5402 = vrot.lane.b32.xlu1 %v13355_v62, %s10167_s29 }
 0xb08   : >>> { %5468 = vrot.lane.b32.xlu1 %v13359_v57, %s10167_s29 }
 0xb0c   : >>> { %5436 = vrot.lane.b32.xlu1 %v13363_v15, %s10167_s29 }
 0xb10   : >>> { %5466 = vrot.lane.b32.xlu1 %v13367_v11, %s10167_s29  ;;  %v13464_v11 = vld [vmem:[#allocation3 + $0x1c0] sm:$0xff] }
 0xb11   : >>> { %5404 = vrot.lane.b32.xlu0 %v13371_v46, %s10167_s29  ;;  %15404 = vst [vmem:[#allocation18_spill] sm:$0xff] %v13464_v11 }
 0xb14   : >>> { %5434 = vrot.lane.b32.xlu1 %v13375_v22, %s10167_s29 }
 0xb15   : >>> { %5370 = vrot.lane.b32.xlu0 %v13379_v4, %s10167_s29 }
 0xb18   : >>> { %5464 = vrot.lane.b32.xlu1 %v13383_v0, %s10167_s29  ;;  %v1190_v0 = vld [vmem:[%s12462_s25 + $0x10] sm:$0xff] }
 0xb19   : >>> { %5400 = vrot.lane.b32.xlu0 %v13387_v38, %s10167_s29 }
 0xb1c   : >>> { %5432 = vrot.lane.b32.xlu1 %v13391_v55, %s10167_s29  ;;  %v13451_v55 = vld [vmem:[#allocation3 + $0xc8] sm:$0xff] }
 0xb1d   : >>> { %5368 = vrot.lane.b32.xlu0 %v13395_v27, %s10167_s29 }
 0xb20   : >>> { %5462 = vrot.lane.b32.xlu1 %v13399_v20, %s10167_s29 }
 0xb21   : >>> { %5398 = vrot.lane.b32.xlu0 %v13403_v13, %s10167_s29 }
 0xb24   : >>> { %5430 = vrot.lane.b32.xlu1 %v13407_v30, %s10167_s29 }
 0xb25   : >>> { %5366 = vrot.lane.b32.xlu0 %v13411_v31, %s10167_s29 }
 0xb28   : >>> { %5460 = vrot.lane.b32.xlu1 %v13415_v16, %s10167_s29  ;;  %v13476_v16 = vld [vmem:[#allocation3 + $0x40] sm:$0xff] }
 0xb29   : >>> { %5396 = vrot.lane.b32.xlu0 %v13419_v23, %s10167_s29  ;;  %15407 = vst [vmem:[#allocation16_spill] sm:$0xff] %v13476_v16 }
 0xb2c   : >>> { %5428 = vrot.lane.b32.xlu1 %v13423_v35, %s10167_s29  ;;  %v13456_v35 = vld [vmem:[#allocation3 + $0x148] sm:$0xff] }
 0xb2d   : >>> { %5364 = vrot.lane.b32.xlu0 %v13427_v48, %s10167_s29  ;;  %15402 = vst [vmem:[#allocation15_spill] sm:$0xff] %v13456_v35 }
 0xb30   : >>> { %5458 = vrot.lane.b32.xlu1 %v13431_v6, %s10167_s29 }
 0xb31   : >>> { %5394 = vrot.lane.b32.xlu0 %v13435_v36, %s10167_s29 }
 0xb34   : >>> { %5426 = vrot.lane.b32.xlu1 %v13439_v19, %s10167_s29 }
 0xb35   : >>> { %5362 = vrot.lane.b32.xlu0 %v13443_v49, %s10167_s29 }
 0xb38   : >>> { %v4711_v24 = vpop.xlane.xlu0 %4710  ;;  %5456 = vrot.lane.b32.xlu1 %v13447_v58, %s10167_s29 }
 0xb39   : >>> { %9757 = vrcp.f32 %v4711_v24  ;;  %5392 = vrot.lane.b32.xlu0 %v13451_v55, %s10167_s29  ;;  %v13460_v24 = vld [vmem:[#allocation3 + $0x48] sm:$0xff] }
 0xb3a   : >>> { %15403 = vst [vmem:[#allocation11_spill] sm:$0xff] %v13460_v24 }
 0xb3c   : >>> { %v4716_v6 = vpop.xlane.xlu1 %4715  ;;  %v4788_v19 = vpop.permute.xlu0 %4787  ;;  %5424 = vrot.lane.b32.xlu1 %v13456_v35, %s10167_s29 }
 0xb3d   : >>> { %9759 = vrcp.f32 %v4716_v6  ;;  %8840 = vmatpush3.msra.mxu0 %v4788_v19  ;;  %5360 = vrot.lane.b32.xlu0 %v13460_v24, %s10167_s29  ;;  %v13468_v6 = vld [vmem:[#allocation3 + $0xc0] sm:$0xff] }
 0xb3e   : >>> { %9259 = vmatprep.subr.mxu0 %v1190_v0  ;;  %15405 = vst [vmem:[#allocation14_spill] sm:$0xff] %v13468_v6  ;;  %v13472_v19 = vld [vmem:[#allocation3 + $0x140] sm:$0xff] }
 0xb3f   : >>> { %15406 = vst [vmem:[#allocation20_spill] sm:$0xff] %v13472_v19 }
 0xb40   : >>> { %v4852_v58 = vpop.permute.xlu1 %4851  ;;  %5454 = vrot.lane.b32.xlu1 %v13464_v11, %s10167_s29 }
 0xb41   : >>> { %8896 = vmatpush3.msra.mxu1 %v4852_v58  ;;  %5390 = vrot.lane.b32.xlu0 %v13468_v6, %s10167_s29 }
 0xb44   : >>> { %5422 = vrot.lane.b32.xlu1 %v13472_v19, %s10167_s29 }
 0xb45   : >>> { %5358 = vrot.lane.b32.xlu0 %v13476_v16, %s10167_s29 }
 0xb46   : >>> { %v9758_v35 = vpop.eup %9757 }
 0xb47   : >>> { %v4756_v58 = vmul.f32 %v9758_v35, %v13219_v63  ;;  %v4758_v11 = vmul.f32 %v9758_v35, %v13225_v21  ;;  %v4755_v15 = vmul.f32 %v9758_v35, %v13217_v25  ;;  %v4757_v24 = vmul.f32 %v9758_v35, %v13221_v59  ;;  %v13488_v63 = vld [vmem:[#allocation3 + $0xb8] sm:$0xff]  ;;  %v13504_v21 = vld [vmem:[#allocation3 + $0xb0] sm:$0xff] }
 0xb48   : >>> { %v13492_v25 = vld [vmem:[#allocation3 + $0x1b8] sm:$0xff] }
 0xb49   : >>> { %5043 = vmatprep.mubr.f32.mxu0 %v4756_v58  ;;  %5148 = vmatprep.mubr.f32.mxu1 %v4758_v11  ;;  %15408 = vst [vmem:[#allocation22_spill] sm:$0xff] %v13492_v25  ;;  %v13496_v35 = vld [vmem:[#allocation3 + $0x38] sm:$0xff]  ;;  %v10049_v11 = vld [vmem:[#allocation3 + $0x1a0] sm:$0xff] }
 0xb4a   : >>> { %v9760_v6 = vpop.eup %9759  ;;  %5044 = vmatmul.mubr.f32.vlgmr.msra.gmra.mxu0 %v4755_v15  ;;  %5149 = vmatmul.mubr.f32.vlgmr.msra.gmra.mxu1 %v4757_v24  ;;  %v13500_v59 = vld [vmem:[#allocation3 + $0x138] sm:$0xff]  ;;  %v13524_v15 = vld [vmem:[#allocation3 + $0xa0] sm:$0xff] }
 0xb4b   : >>> { %v4760_v19 = vmul.f32 %v9760_v6, %v13230_v29  ;;  %v4762_v30 = vmul.f32 %v9760_v6, %v13238_v3  ;;  %v4759_v57 = vmul.f32 %v9760_v6, %v13227_v7  ;;  %v4761_v16 = vmul.f32 %v9760_v6, %v13235_v28  ;;  %5388 = vrot.lane.b32.xlu0 %v13488_v63, %s10167_s29  ;;  %v10041_v7 = vld [vmem:[#allocation3 + $0x1b0] sm:$0xff]  ;;  %v13514_v29 = vld [vmem:[#allocation3 + $0xa8] sm:$0xff]  ;;  %v10051_v24 = vld [vmem:[#allocation3 + $0x120] sm:$0xff] }
 0xb4c   : >>> { %5452 = vrot.lane.b32.xlu1 %v13492_v25, %s10167_s29  ;;  %9260 = vmatpush3.msra.mxu0 %v1190_v0  ;;  %15409 = vst [vmem:[#allocation39_spill] sm:$0xff] %v13500_v59  ;;  %v10045_v28 = vld [vmem:[#allocation3 + $0x1a8] sm:$0xff]  ;;  %v13529_v0 = vld [vmem:[#allocation3 + $0x20] sm:$0xff]  ;;  %v13534_v6 = vld [vmem:[#allocation3 + $0x98] sm:$0xff] }
 0xb4d   : >>> { %5048 = vmatprep.mubr.f32.mxu0 %v4760_v19  ;;  %5153 = vmatprep.mubr.f32.mxu1 %v4762_v30  ;;  %v13509_v30 = vld [vmem:[#allocation3 + $0x30] sm:$0xff]  ;;  %v13519_v3 = vld [vmem:[#allocation3 + $0x28] sm:$0xff]  ;;  %v10053_v19 = vld [vmem:[#allocation3 + $0x198] sm:$0xff] }
 0xb4e   : >>> { %5049 = vmatmul.mubr.f32.gmra.mxu0 %v4759_v57  ;;  %5154 = vmatmul.mubr.f32.gmra.mxu1 %v4761_v16  ;;  %v10043_v16 = vld [vmem:[#allocation3 + $0x130] sm:$0xff]  ;;  %v10047_v57 = vld [vmem:[#allocation3 + $0x128] sm:$0xff] }
 0xb4f   : >>> { %5356 = vrot.lane.b32.xlu0 %v13496_v35, %s10167_s29 }
 0xb50   : >>> { %5420 = vrot.lane.b32.xlu1 %v13500_v59, %s10167_s29  ;;  %v13554_v59 = vld [vmem:[#allocation3 + $0x88] sm:$0xff] }
 0xb53   : >>> { %5386 = vrot.lane.b32.xlu0 %v13504_v21, %s10167_s29 }
 0xb54   : >>> { %5450 = vrot.lane.b32.xlu1 %v10041_v7, %s10167_s29  ;;  %v13539_v7 = vld [vmem:[#allocation3 + $0x18] sm:$0xff] }
 0xb55   : >>> { %15410 = vst [vmem:[#allocation48_spill] sm:$0xff] %v13539_v7 }
 0xb57   : >>> { %5354 = vrot.lane.b32.xlu0 %v13509_v30, %s10167_s29 }
 0xb58   : >>> { %5418 = vrot.lane.b32.xlu1 %v10043_v16, %s10167_s29  ;;  %v10055_v16 = vld [vmem:[#allocation3 + $0x118] sm:$0xff] }
 0xb5b   : >>> { %5384 = vrot.lane.b32.xlu0 %v13514_v29, %s10167_s29 }
 0xb5c   : >>> { %5448 = vrot.lane.b32.xlu1 %v10045_v28, %s10167_s29  ;;  %v13544_v28 = vld [vmem:[#allocation3 + $0x90] sm:$0xff] }
 0xb5d   : >>> { %15411 = vst [vmem:[#allocation40_spill] sm:$0xff] %v13544_v28 }
 0xb5f   : >>> { %5352 = vrot.lane.b32.xlu0 %v13519_v3, %s10167_s29 }
 0xb60   : >>> { %5416 = vrot.lane.b32.xlu1 %v10047_v57, %s10167_s29  ;;  %v10057_v57 = vld [vmem:[#allocation3 + $0x190] sm:$0xff] }
 0xb63   : >>> { %5382 = vrot.lane.b32.xlu0 %v13524_v15, %s10167_s29 }
 0xb64   : >>> { %5446 = vrot.lane.b32.xlu1 %v10049_v11, %s10167_s29 }
 0xb67   : >>> { %5350 = vrot.lane.b32.xlu0 %v13529_v0, %s10167_s29 }
 0xb68   : >>> { %5414 = vrot.lane.b32.xlu1 %v10051_v24, %s10167_s29  ;;  %v13549_v24 = vld [vmem:[#allocation3 + $0x10] sm:$0xff] }
 0xb69   : >>> { %15412 = vst [vmem:[#allocation46_spill] sm:$0xff] %v13549_v24 }
 0xb6b   : >>> { %5380 = vrot.lane.b32.xlu0 %v13534_v6, %s10167_s29 }
 0xb6c   : >>> { %5444 = vrot.lane.b32.xlu1 %v10053_v19, %s10167_s29  ;;  %v10059_v19 = vld [vmem:[#allocation3 + $0x110] sm:$0xff] }
 0xb6d   : >>> { %v4721_v58 = vpop.xlane.xlu0 %4720 }
 0xb6e   : >>> { %9761 = vrcp.f32 %v4721_v58 }
 0xb6f   : >>> { %5348 = vrot.lane.b32.xlu0 %v13539_v7, %s10167_s29  ;;  %v10061_v7 = vld [vmem:[#allocation3 + $0x188] sm:$0xff] }
 0xb70   : >>> { %5412 = vrot.lane.b32.xlu1 %v10055_v16, %s10167_s29 }
 0xb73   : >>> { %5378 = vrot.lane.b32.xlu0 %v13544_v28, %s10167_s29 }
 0xb74   : >>> { %5442 = vrot.lane.b32.xlu1 %v10057_v57, %s10167_s29  ;;  %v4726_v11 = vpop.xlane.xlu1 %4725 }
 0xb75   : >>> { %9763 = vrcp.f32 %v4726_v11 }
 0xb77   : >>> { %5346 = vrot.lane.b32.xlu0 %v13549_v24, %s10167_s29 }
 0xb78   : >>> { %5410 = vrot.lane.b32.xlu1 %v10059_v19, %s10167_s29  ;;  %v4746_v58 = vpop.xlane.xlu1 %4745 }
 0xb7b   : >>> { %v9762_v16 = vpop.eup %9761  ;;  %5376 = vrot.lane.b32.xlu0 %v13554_v59, %s10167_s29 }
 0xb7c   : >>> { %v4764_v25 = vmul.f32 %v9762_v16, %v13277_v9  ;;  %v4766_v57 = vmul.f32 %v9762_v16, %v13285_v18  ;;  %v4763_v11 = vmul.f32 %v9762_v16, %v13274_v40  ;;  %v4765_v28 = vmul.f32 %v9762_v16, %v13281_v8  ;;  %5440 = vrot.lane.b32.xlu1 %v10061_v7, %s10167_s29  ;;  %v4731_v24 = vpop.xlane.xlu0 %4730  ;;  %v5373_v19 = vpop.permute.xlu1 %5372  ;;  %v10063_v16 = vld [vmem:[%s10933_s19] sm:$0xff] }
 0xb7d   : >>> { %9765 = vrcp.f32 %v4731_v24 }
 0xb7e   : >>> { %5053 = vmatprep.mubr.f32.mxu0 %v4764_v25  ;;  %5158 = vmatprep.mubr.f32.mxu1 %v4766_v57 }
 0xb7f   : >>> { %5054 = vmatmul.mubr.f32.gmra.mxu0 %v4763_v11  ;;  %5159 = vmatmul.mubr.f32.gmra.mxu1 %v4765_v28  ;;  %v10064_v11 = vld [vmem:[%s10933_s19 + $0x18] sm:$0xff] }
 0xb80   : >>> { %5344 = vrot.lane.b32.xlu0 %v13101_v26, %s10167_s29  ;;  %5408 = vrot.lane.b32.xlu1 %v13097_v12, %s10167_s29  ;;  %v4736_v9 = vpop.xlane.xlu0 %4735  ;;  %v5403_v40 = vpop.permute.xlu1 %5402 }
 0xb81   : >>> { %9767 = vrcp.f32 %v4736_v9 }
 0xb82   : >>> { %v9764_v8 = vpop.eup %9763  ;;  %9769 = vrcp.f32 %v4746_v58 }
 0xb83   : >>> { %v4768_v18 = vmul.f32 %v9764_v8, %v13299_v1  ;;  %v4770_v7 = vmul.f32 %v9764_v8, %v13305_v17  ;;  %v4767_v24 = vmul.f32 %v9764_v8, %v13296_v53  ;;  %v4769_v25 = vmul.f32 %v9764_v8, %v13301_v50  ;;  %v10065_v8 = vld [vmem:[%s10933_s19 + $0x28] sm:$0xff] }
 0xb84   : >>> { %5374 = vrot.lane.b32.xlu0 %v13205_v2, %s10167_s29  ;;  %v4741_v26 = vpop.xlane.xlu0 %4740  ;;  %v5469_v28 = vpop.permute.xlu1 %5468  ;;  %5438 = vrot.lane.b32.xlu1 %v13201_v32, %s10167_s29  ;;  %v10062_v2 = vld [vmem:[%s10933_s19 + $0x8] sm:$0xff] }
 0xb85   : >>> { %9771 = vrcp.f32 %v4741_v26  ;;  %5058 = vmatprep.mubr.f32.mxu0 %v4768_v18  ;;  %5163 = vmatprep.mubr.f32.mxu1 %v4770_v7  ;;  %v10067_v26 = vld [vmem:[%s10933_s19 + $0x38] sm:$0xff] }
 0xb86   : >>> { %5059 = vmatmul.mubr.f32.gmra.mxu0 %v4767_v24  ;;  %5164 = vmatmul.mubr.f32.gmra.mxu1 %v4769_v25  ;;  %v10066_v24 = vld [vmem:[%s10933_s19 + $0x10] sm:$0xff] }
 0xb87   : >>> { %8978 = vmatprep.subr.msk.mxu0 %vm1457_vm2, %v5469_v28 }
 0xb88   : >>> { %5342 = vrot.lane.b32.xlu0 %v13245_v39, %s10167_s29  ;;  %v5405_v12 = vpop.permute.xlu0 %5404  ;;  %v13577_v53 = vpop.permute.xlu1 %5436  ;;  %5328 = vrot.lane.b32.xlu1 %v10062_v2, %s10168_s30  ;;  %v10068_v2 = vld [vmem:[%s10933_s19 + $0x20] sm:$0xff] }
 0xb89   : >>> { %8930 = vmatprep.subr.msk.mxu1 %vm1457_vm2, %v5405_v12 }
 0xb8a   : >>> { %v9766_v32 = vpop.eup %9765  ;;  %8931 = vmatpush3.xpose.msk.msra.mxu1 %vm1457_vm2, %v5373_v19 }
 0xb8b   : >>> { %v4772_v1 = vmul.f32 %v9766_v32, %v13322_v47  ;;  %v4774_v39 = vmul.f32 %v9766_v32, %v13331_v56  ;;  %v4771_v50 = vmul.f32 %v9766_v32, %v13319_v42  ;;  %v4773_v17 = vmul.f32 %v9766_v32, %v13324_v43  ;;  %8932 = vmatprep.subr.msk.mxu1 %vm1457_vm2, %v5403_v40  ;;  %v10069_v32 = vld [vmem:[%s10933_s19 + $0x30] sm:$0xff]  ;;  %s10169_s19 = smov 40  }
 0xb8c   : >>> { %v5371_v58 = vpop.permute.xlu0 %5370  ;;  %5326 = vrot.lane.b32.xlu0 %v10063_v16, %s10168_s30  ;;  %v13591_v57 = vpop.permute.xlu1 %5466  ;;  %5332 = vrot.lane.b32.xlu1 %v10064_v11, %s10168_s30 }
 0xb8d   : >>> { %5063 = vmatprep.mubr.f32.mxu0 %v4772_v1  ;;  %5168 = vmatprep.mubr.f32.mxu1 %v4774_v39 }
 0xb8e   : >>> { %v9768_v47 = vpop.eup %9767  ;;  %5064 = vmatmul.mubr.f32.gmra.mxu0 %v4771_v50  ;;  %5169 = vmatmul.mubr.f32.gmra.mxu1 %v4773_v17 }
 0xb8f   : >>> { %v4776_v42 = vmul.f32 %v9768_v47, %v13291_v54  ;;  %v4778_v43 = vmul.f32 %v9768_v47, %v13342_v61  ;;  %v4775_v56 = vmul.f32 %v9768_v47, %v13289_v5  ;;  %v4777_v19 = vmul.f32 %v9768_v47, %v13294_v44  ;;  %8933 = vmatpush3.xpose.msk.msra.mxu1 %vm1457_vm2, %v5371_v58  ;;  %v9770_v54 = vpop.eup %9769 }
 0xb90   : >>> { %v5401_v9 = vpop.permute.xlu0 %5400  ;;  %5406 = vrot.lane.b32.xlu0 %v13241_v41, %s10167_s29  ;;  %v13602_v40 = vpop.permute.xlu1 %5434  ;;  %5336 = vrot.lane.b32.xlu1 %v10065_v8, %s10168_s30 }
 0xb91   : >>> { %5068 = vmatprep.mubr.f32.mxu0 %v4776_v42  ;;  %5173 = vmatprep.mubr.f32.mxu1 %v4778_v43 }
 0xb92   : >>> { %v9772_v61 = vpop.eup %9771  ;;  %5069 = vmatmul.mubr.f32.gmra.mxu0 %v4775_v56  ;;  %5174 = vmatmul.mubr.f32.gmra.mxu1 %v4777_v19 }
 0xb93   : >>> { %v4780_v5 = vmul.f32 %v9772_v61, %v13336_v34  ;;  %v4782_v44 = vmul.f32 %v9772_v61, %v13348_v45  ;;  %v4779_v18 = vmul.f32 %v9772_v61, %v13333_v10  ;;  %v4781_v41 = vmul.f32 %v9772_v61, %v13344_v51  ;;  %8934 = vmatprep.subr.msk.mxu1 %vm1457_vm2, %v5401_v9 }
 0xb94   : >>> { %v5369_v7 = vpop.permute.xlu0 %5368  ;;  %5330 = vrot.lane.b32.xlu0 %v10066_v24, %s10168_s30  ;;  %v13613_v25 = vpop.permute.xlu1 %5464  ;;  %5340 = vrot.lane.b32.xlu1 %v10067_v26, %s10168_s30  ;;  %v4784_v34 = vmul.f32 %v9770_v54, %v13310_v37  ;;  %v4786_v10 = vmul.f32 %v9770_v54, %v13317_v52  ;;  %v4783_v51 = vmul.f32 %v9770_v54, %v13307_v60 }
 0xb95   : >>> { %5073 = vmatprep.mubr.f32.mxu0 %v4780_v5  ;;  %5178 = vmatprep.mubr.f32.mxu1 %v4782_v44  ;;  %v4785_v45 = vmul.f32 %v9770_v54, %v13312_v14 }
 0xb96   : >>> { %5074 = vmatmul.mubr.f32.gmra.mxu0 %v4779_v18  ;;  %5179 = vmatmul.mubr.f32.gmra.mxu1 %v4781_v41 }
 0xb97   : >>> { %5078 = vmatprep.mubr.f32.mxu0 %v4784_v34  ;;  %5183 = vmatprep.mubr.f32.mxu1 %v4786_v10 }
 0xb98   : >>> { %8935 = vmatpush3.xpose.msk.msra.mxu1 %vm1457_vm2, %v5369_v7  ;;  %v5399_v28 = vpop.permute.xlu0 %5398  ;;  %v13622_v12 = vpop.permute.xlu1 %5432  ;;  %5334 = vrot.lane.b32.xlu0 %v10068_v2, %s10168_s30 }
 0xb99   : >>> { %8936 = vmatprep.subr.msk.mxu1 %vm1457_vm2, %v5399_v28  ;;  %6150 = vrot.lane.b32.xlu1 %v13351_v33, %s10169_s19 }
 0xb9a   : >>> { %5079 = vmatmul.mubr.f32.gmra.mxu0 %v4783_v51  ;;  %5184 = vmatmul.mubr.f32.gmra.mxu1 %v4785_v45 }
 0xb9c   : >>> { %v5367_v37 = vpop.permute.xlu0 %5366  ;;  %v13627_v52 = vpop.permute.xlu1 %5462  ;;  %5338 = vrot.lane.b32.xlu0 %v10069_v32, %s10168_s30 }
 0xb9d   : >>> { %8937 = vmatpush3.xpose.msk.msra.mxu1 %vm1457_vm2, %v5367_v37  ;;  %6180 = vrot.lane.b32.xlu1 %v13355_v62, %s10169_s19 }
 0xba0   : >>> { %v5397_v60 = vpop.permute.xlu0 %5396  ;;  %v13632_v14 = vpop.permute.xlu1 %5430  ;;  %6182 = vrot.lane.b32.xlu0 %v13371_v46, %s10169_s19 }
 0xba1   : >>> { %8938 = vmatprep.subr.msk.mxu1 %vm1457_vm2, %v5397_v60  ;;  %6144 = vrot.lane.b32.xlu1 %v13411_v31, %s10169_s19 }
 0xba4   : >>> { %v5365_v1 = vpop.permute.xlu0 %5364  ;;  %v13635_v39 = vpop.permute.xlu1 %5460  ;;  %6148 = vrot.lane.b32.xlu0 %v13379_v4, %s10169_s19 }
 0xba5   : >>> { %8939 = vmatpush3.xpose.msk.msra.mxu1 %vm1457_vm2, %v5365_v1  ;;  %6142 = vrot.lane.b32.xlu1 %v13427_v48, %s10169_s19 }
 0xba8   : >>> { %v5395_v50 = vpop.permute.xlu0 %5394  ;;  %v13638_v17 = vpop.permute.xlu1 %5428  ;;  %6178 = vrot.lane.b32.xlu0 %v13387_v38, %s10169_s19 }
 0xba9   : >>> { %8940 = vmatprep.subr.msk.mxu1 %vm1457_vm2, %v5395_v50  ;;  %6172 = vrot.lane.b32.xlu1 %v13435_v36, %s10169_s19 }
 0xbac   : >>> { %v5363_v58 = vpop.permute.xlu0 %5362  ;;  %v13641_v16 = vpop.permute.xlu1 %5458  ;;  %6146 = vrot.lane.b32.xlu0 %v13395_v27, %s10169_s19 }
 0xbad   : >>> { %8941 = vmatpush3.xpose.msk.msra.mxu1 %vm1457_vm2, %v5363_v58  ;;  %6212 = vrot.lane.b32.xlu1 %v13375_v22, %s10169_s19  ;;  %v15413_v22 = vld [vmem:[#allocation35_spill] sm:$0xff] }
 0xbb0   : >>> { %v5393_v11 = vpop.permute.xlu0 %5392  ;;  %v13644_v47 = vpop.permute.xlu1 %5426  ;;  %6176 = vrot.lane.b32.xlu0 %v13403_v13, %s10169_s19 }
 0xbb1   : >>> { %8942 = vmatprep.subr.msk.mxu1 %vm1457_vm2, %v5393_v11  ;;  %6240 = vrot.lane.b32.xlu1 %v13399_v20, %s10169_s19  ;;  %v15415_v20 = vld [vmem:[#allocation11_spill] sm:$0xff] }
 0xbb4   : >>> { %v5361_v42 = vpop.permute.xlu0 %5360  ;;  %v13647_v43 = vpop.permute.xlu1 %5456  ;;  %6174 = vrot.lane.b32.xlu0 %v13419_v23, %s10169_s19 }
 0xbb5   : >>> { %8943 = vmatpush3.xpose.msk.msra.mxu1 %vm1457_vm2, %v5361_v42  ;;  %6132 = vrot.lane.b32.xlu1 %v13509_v30, %s10169_s19  ;;  %v15416_v30 = vld [vmem:[#allocation28_spill] sm:$0xff] }
 0xbb8   : >>> { %v5391_v56 = vpop.permute.xlu0 %5390  ;;  %v13650_v19 = vpop.permute.xlu1 %5424  ;;  %6140 = vrot.lane.b32.xlu0 %v13443_v49, %s10169_s19 }
 0xbb9   : >>> { %8944 = vmatprep.subr.msk.mxu1 %vm1457_vm2, %v5391_v56 }
 0xbbc   : >>> { %v5359_v9 = vpop.permute.xlu0 %5358  ;;  %v13653_v8 = vpop.permute.xlu1 %5454  ;;  %6170 = vrot.lane.b32.xlu0 %v13451_v55, %s10169_s19  ;;  %v15414_v55 = vld [vmem:[#allocation26_spill] sm:$0xff] }
 0xbbd   : >>> { %8945 = vmatpush3.xpose.msk.msra.mxu1 %vm1457_vm2, %v5359_v9  ;;  %6208 = vrot.lane.b32.xlu1 %v15414_v55, %s10169_s19 }
 0xbc0   : >>> { %v5389_v54 = vpop.permute.xlu0 %5388  ;;  %v13656_v61 = vpop.permute.xlu1 %5422  ;;  %6246 = vrot.lane.b32.xlu0 %v15413_v22, %s10169_s19 }
 0xbc1   : >>> { %8946 = vmatprep.subr.msk.mxu1 %vm1457_vm2, %v5389_v54  ;;  %6162 = vrot.lane.b32.xlu1 %v13514_v29, %s10169_s19  ;;  %v15418_v29 = vld [vmem:[#allocation14_spill] sm:$0xff] }
 0xbc4   : >>> { %v5357_v5 = vpop.permute.xlu0 %5356  ;;  %v13659_v44 = vpop.permute.xlu1 %5452  ;;  %6138 = vrot.lane.b32.xlu0 %v15415_v20, %s10169_s19 }
 0xbc5   : >>> { %8947 = vmatpush3.xpose.msk.msra.mxu1 %vm1457_vm2, %v5357_v5 }
 0xbc8   : >>> { %v5387_v18 = vpop.permute.xlu0 %5386  ;;  %v13662_v41 = vpop.permute.xlu1 %5420  ;;  %6214 = vrot.lane.b32.xlu0 %v15416_v30, %s10169_s19 }
 0xbc9   : >>> { %8948 = vmatprep.subr.msk.mxu1 %vm1457_vm2, %v5387_v18 }
 0xbcc   : >>> { %v5355_v7 = vpop.permute.xlu0 %5354  ;;  %v13665_v24 = vpop.permute.xlu1 %5450  ;;  %6168 = vrot.lane.b32.xlu0 %v15418_v29, %s10169_s19 }
 0xbcd   : >>> { %8949 = vmatpush3.xpose.msk.msra.mxu1 %vm1457_vm2, %v5355_v7 }
 0xbd0   : >>> { %v5385_v26 = vpop.permute.xlu0 %5384  ;;  %v13668_v34 = vpop.permute.xlu1 %5418 }
 0xbd1   : >>> { %8950 = vmatprep.subr.msk.mxu1 %vm1457_vm2, %v5385_v26 }
 0xbd4   : >>> { %v5353_v10 = vpop.permute.xlu0 %5352  ;;  %v13671_v51 = vpop.permute.xlu1 %5448 }
 0xbd5   : >>> { %8951 = vmatpush3.xpose.msk.msra.mxu1 %vm1457_vm2, %v5353_v10 }
 0xbd8   : >>> { %v5383_v45 = vpop.permute.xlu0 %5382  ;;  %v13674_v28 = vpop.permute.xlu1 %5416 }
 0xbd9   : >>> { %8952 = vmatprep.subr.msk.mxu1 %vm1457_vm2, %v5383_v45 }
 0xbdc   : >>> { %v5351_v2 = vpop.permute.xlu0 %5350  ;;  %v13677_v37 = vpop.permute.xlu1 %5446 }
 0xbdd   : >>> { %8953 = vmatpush3.xpose.msk.msra.mxu1 %vm1457_vm2, %v5351_v2 }
 0xbe0   : >>> { %v5381_v32 = vpop.permute.xlu0 %5380  ;;  %v13680_v60 = vpop.permute.xlu1 %5414 }
 0xbe1   : >>> { %8954 = vmatprep.subr.msk.mxu1 %vm1457_vm2, %v5381_v32 }
 0xbe4   : >>> { %v5349_v1 = vpop.permute.xlu0 %5348  ;;  %v13683_v50 = vpop.permute.xlu1 %5444 }
 0xbe5   : >>> { %8955 = vmatpush3.xpose.msk.msra.mxu1 %vm1457_vm2, %v5349_v1 }
 0xbe8   : >>> { %v5379_v58 = vpop.permute.xlu0 %5378  ;;  %v13686_v11 = vpop.permute.xlu1 %5412 }
 0xbe9   : >>> { %8956 = vmatprep.subr.msk.mxu1 %vm1457_vm2, %v5379_v58 }
 0xbec   : >>> { %v5347_v42 = vpop.permute.xlu0 %5346  ;;  %v13689_v56 = vpop.permute.xlu1 %5442 }
 0xbed   : >>> { %8957 = vmatpush3.xpose.msk.msra.mxu1 %vm1457_vm2, %v5347_v42 }
 0xbf0   : >>> { %v5377_v9 = vpop.permute.xlu0 %5376  ;;  %v13692_v54 = vpop.permute.xlu1 %5410 }
 0xbf1   : >>> { %8958 = vmatprep.subr.msk.mxu1 %vm1457_vm2, %v5377_v9 }
 0xbf4   : >>> { %v5345_v5 = vpop.permute.xlu0 %5344  ;;  %v13695_v18 = vpop.permute.xlu1 %5440 }
 0xbf5   : >>> { %8959 = vmatpush3.xpose.msk.msra.mxu1 %vm1457_vm2, %v5345_v5 }
 0xbf8   : >>> { %v5375_v7 = vpop.permute.xlu0 %5374  ;;  %v13698_v26 = vpop.permute.xlu1 %5408 }
 0xbf9   : >>> { %8960 = vmatprep.subr.msk.mxu1 %vm1457_vm2, %v5375_v7 }
 0xbfc   : >>> { %v5343_v10 = vpop.permute.xlu0 %5342  ;;  %v13705_v45 = vpop.permute.xlu1 %5438 }
 0xbfd   : >>> { %8961 = vmatpush3.xpose.msk.msra.mxu1 %vm1457_vm2, %v5343_v10 }
 0xc00   : >>> { %v13712_v2 = vpop.permute.xlu0 %5326  ;;  %v13714_v32 = vpop.permute.xlu1 %5328 }
 0xc01   : >>> { %8962 = vmatprep.mubr.msk.f32.mxu1 %vm1457_vm2, %v13712_v2 }
 0xc02   : >>> { %8963 = vmatmul.mubr.msk.f32.vlgmr.msra.gmra.mxu1 %vm1457_vm2, %v13712_v2 }
 0xc03   : >>> { %8964 = vmatprep.mubr.msk.f32.mxu1 %vm1457_vm2, %v13714_v32 }
 0xc04   : >>> { %v13726_v33 = vpop.permute.xlu0 %5406  ;;  %v13736_v46 = vpop.permute.xlu1 %5332 }
 0xc06   : >>> { %8965 = vmatmul.mubr.msk.f32.gmra.mxu1 %vm1457_vm2, %v13714_v32 }
 0xc08   : >>> { %v13734_v62 = vpop.permute.xlu0 %5330 }
 0xc09   : >>> { %8966 = vmatprep.mubr.msk.f32.mxu1 %vm1457_vm2, %v13734_v62 }
 0xc0a   : >>> { %v8841_v4 = vpop.f32.mrf.mxu0  ;;  %v8897_v38 = vpop.f32.mrf.mxu1  ;;  %8967 = vmatmul.mubr.msk.f32.gmra.mxu1 %vm1457_vm2, %v13734_v62 }
 0xc0b   : >>> { %8968 = vmatprep.mubr.msk.f32.mxu1 %vm1457_vm2, %v13736_v46 }
 0xc0c   : >>> { %v8842_v31 = vpop.f32.mrf.mxu0  ;;  %v8898_v27 = vpop.f32.mrf.mxu1 }
 0xc0d   : >>> { %v8843_v48 = vadd.f32 %v8842_v31, %v8841_v4  ;;  %v8899_v1 = vadd.f32 %v8898_v27, %v8897_v38  ;;  %v13748_v58 = vpop.permute.xlu0 %5334  ;;  %v13759_v4 = vpop.permute.xlu1 %5336 }
 0xc0e   : >>> { %v8844_v42 = vpop.f32.mrf.mxu0  ;;  %v8900_v9 = vpop.f32.mrf.mxu1  ;;  %8969 = vmatmul.mubr.msk.f32.gmra.mxu1 %vm1457_vm2, %v13736_v46 }
 0xc0f   : >>> { %v5151_v5 = vadd.f32 %v8899_v1, %v8843_v48  ;;  %8970 = vmatprep.mubr.msk.f32.mxu1 %vm1457_vm2, %v13748_v58 }
 0xc10   : >>> { %v8845_v13 = vpop.f32.mrf.mxu0  ;;  %v8901_v7 = vpop.f32.mrf.mxu1 }
 0xc11   : >>> { %v8846_v36 = vadd.f32 %v8845_v13, %v8844_v42  ;;  %v8902_v10 = vadd.f32 %v8901_v7, %v8900_v9  ;;  %9261 = vmatprep.mubr.msk.f32.mxu0 %vm1457_vm2, %v5151_v5  ;;  %v13770_v23 = vpop.permute.xlu0 %5338  ;;  %v13782_v49 = vpop.permute.xlu1 %5340 }
 0xc12   : >>> { %8971 = vmatmul.mubr.msk.f32.gmra.mxu1 %vm1457_vm2, %v13748_v58 }
 0xc13   : >>> { %v5156_v38 = vadd.f32 %v8902_v10, %v8846_v36  ;;  %8972 = vmatprep.mubr.msk.f32.mxu1 %vm1457_vm2, %v13759_v4  ;;  %v15432_v36 = vld [vmem:[#allocation20_spill] sm:$0xff] }
 0xc15   : >>> { %9262 = vmatmul.mubr.msk.f32.vlgmr.msra.gmra.mxu0 %vm1457_vm2, %v5156_v38 }
 0xc16   : >>> { %8979 = vmatpush3.xpose.msk.msra.mxu0 %vm1457_vm2, %v13577_v53  ;;  %8973 = vmatmul.mubr.msk.f32.gmra.mxu1 %vm1457_vm2, %v13759_v4  ;;  %v15417_v53 = vld [vmem:[#allocation12_spill] sm:$0xff] }
 0xc17   : >>> { %8980 = vmatprep.subr.msk.mxu0 %vm1457_vm2, %v13591_v57  ;;  %8974 = vmatprep.mubr.msk.f32.mxu1 %vm1457_vm2, %v13770_v23  ;;  %v15419_v57 = vld [vmem:[#allocation8_spill] sm:$0xff] }
 0xc18   : >>> { %6238 = vrot.lane.b32.xlu1 %v15417_v53, %s10169_s19  ;;  %6244 = vrot.lane.b32.xlu0 %v15419_v57, %s10169_s19 }
 0xc1a   : >>> { %8981 = vmatpush3.xpose.msk.msra.mxu0 %vm1457_vm2, %v13602_v40  ;;  %8975 = vmatmul.mubr.msk.f32.gmra.mxu1 %vm1457_vm2, %v13770_v23  ;;  %v15420_v40 = vld [vmem:[#allocation34_spill] sm:$0xff] }
 0xc1b   : >>> { %8982 = vmatprep.subr.msk.mxu0 %vm1457_vm2, %v13613_v25  ;;  %8976 = vmatprep.mubr.msk.f32.mxu1 %vm1457_vm2, %v13782_v49  ;;  %v15422_v25 = vld [vmem:[#allocation27_spill] sm:$0xff] }
 0xc1c   : >>> { %6130 = vrot.lane.b32.xlu1 %v13519_v3, %s10169_s19  ;;  %v15421_v3 = vld [vmem:[#allocation16_spill] sm:$0xff] }
 0xc1d   : >>> { %6136 = vrot.lane.b32.xlu0 %v15421_v3, %s10169_s19  ;;  %v10070_v3 = vld [vmem:[#allocation3 + $0x8] sm:$0xff] }
 0xc1e   : >>> { %8983 = vmatpush3.xpose.msk.msra.mxu0 %vm1457_vm2, %v13622_v12  ;;  %8977 = vmatmul.mubr.msk.f32.gmra.mxu1 %vm1457_vm2, %v13782_v49  ;;  %v15424_v12 = vld [vmem:[#allocation9_spill] sm:$0xff] }
 0xc1f   : >>> { %8984 = vmatprep.subr.msk.mxu0 %vm1457_vm2, %v13627_v52 }
 0xc20   : >>> { %6206 = vrot.lane.b32.xlu1 %v15420_v40, %s10169_s19  ;;  %v15433_v40 = vld [vmem:[#allocation22_spill] sm:$0xff] }
 0xc21   : >>> { %6166 = vrot.lane.b32.xlu0 %v13488_v63, %s10169_s19 }
 0xc22   : >>> { %8985 = vmatpush3.xpose.msk.msra.mxu0 %vm1457_vm2, %v13632_v14 }
 0xc23   : >>> { %8986 = vmatprep.subr.msk.mxu0 %vm1457_vm2, %v13635_v39  ;;  %v15425_v39 = vld [vmem:[#allocation13_spill] sm:$0xff] }
 0xc24   : >>> { %6160 = vrot.lane.b32.xlu1 %v13524_v15, %s10169_s19  ;;  %v15423_v15 = vld [vmem:[#allocation33_spill] sm:$0xff] }
 0xc25   : >>> { %6242 = vrot.lane.b32.xlu0 %v15423_v15, %s10169_s19 }
 0xc26   : >>> { %8987 = vmatpush3.xpose.msk.msra.mxu0 %vm1457_vm2, %v13638_v17 }
 0xc27   : >>> { %8988 = vmatprep.subr.msk.mxu0 %vm1457_vm2, %v13641_v16  ;;  %v15426_v16 = vld [vmem:[#allocation48_spill] sm:$0xff] }
 0xc28   : >>> { %6236 = vrot.lane.b32.xlu1 %v15422_v25, %s10169_s19  ;;  %v6183_v25 = vpop.permute.xlu0 %6182 }
 0xc29   : >>> { %6134 = vrot.lane.b32.xlu0 %v13496_v35, %s10169_s19  ;;  %9026 = vmatprep.subr.mxu1 %v6183_v25 }
 0xc2a   : >>> { %8989 = vmatpush3.xpose.msk.msra.mxu0 %vm1457_vm2, %v13644_v47 }
 0xc2b   : >>> { %8990 = vmatprep.subr.msk.mxu0 %vm1457_vm2, %v13647_v43 }
 0xc2c   : >>> { %6128 = vrot.lane.b32.xlu1 %v13529_v0, %s10169_s19 }
 0xc2d   : >>> { %6210 = vrot.lane.b32.xlu0 %v15424_v12, %s10169_s19 }
 0xc2e   : >>> { %8991 = vmatpush3.xpose.msk.msra.mxu0 %vm1457_vm2, %v13650_v19  ;;  %v15427_v19 = vld [vmem:[#allocation24_spill] sm:$0xff] }
 0xc2f   : >>> { %8992 = vmatprep.subr.msk.mxu0 %vm1457_vm2, %v13653_v8 }
 0xc30   : >>> { %6158 = vrot.lane.b32.xlu1 %v13534_v6, %s10169_s19 }
 0xc31   : >>> { %6164 = vrot.lane.b32.xlu0 %v13504_v21, %s10169_s19  ;;  %v15428_v21 = vld [vmem:[#allocation15_spill] sm:$0xff] }
 0xc32   : >>> { %8993 = vmatpush3.xpose.msk.msra.mxu0 %vm1457_vm2, %v13656_v61 }
 0xc33   : >>> { %8994 = vmatprep.subr.msk.mxu0 %vm1457_vm2, %v13659_v44 }
 0xc34   : >>> { %6234 = vrot.lane.b32.xlu1 %v15425_v39, %s10169_s19 }
 0xc35   : >>> { %6204 = vrot.lane.b32.xlu0 %v15427_v19, %s10169_s19 }
 0xc36   : >>> { %8995 = vmatpush3.xpose.msk.msra.mxu0 %vm1457_vm2, %v13662_v41 }
 0xc37   : >>> { %8996 = vmatprep.subr.msk.mxu0 %vm1457_vm2, %v13665_v24 }
 0xc38   : >>> { %6126 = vrot.lane.b32.xlu1 %v15426_v16, %s10169_s19 }
 0xc3a   : >>> { %8997 = vmatpush3.xpose.msk.msra.mxu0 %vm1457_vm2, %v13668_v34  ;;  %v15429_v34 = vld [vmem:[#allocation40_spill] sm:$0xff] }
 0xc3b   : >>> { %8998 = vmatprep.subr.msk.mxu0 %vm1457_vm2, %v13671_v51 }
 0xc3c   : >>> { %6202 = vrot.lane.b32.xlu1 %v15428_v21, %s10169_s19 }
 0xc3e   : >>> { %8999 = vmatpush3.xpose.msk.msra.mxu0 %vm1457_vm2, %v13674_v28 }
 0xc3f   : >>> { %9000 = vmatprep.subr.msk.mxu0 %vm1457_vm2, %v13677_v37  ;;  %v8847_v63 = vpop.f32.mrf.mxu0  ;;  %v8903_v0 = vpop.f32.mrf.mxu1 }
 0xc40   : >>> { %6156 = vrot.lane.b32.xlu1 %v15429_v34, %s10169_s19  ;;  %v15436_v34 = vld [vmem:[#allocation45_spill] sm:$0xff] }
 0xc41   : >>> { %v8848_v52 = vpop.f32.mrf.mxu0  ;;  %v8904_v14 = vpop.f32.mrf.mxu1 }
 0xc42   : >>> { %v8849_v35 = vadd.f32 %v8848_v52, %v8847_v63  ;;  %v8905_v17 = vadd.f32 %v8904_v14, %v8903_v0  ;;  %9001 = vmatpush3.xpose.msk.msra.mxu0 %vm1457_vm2, %v13680_v60 }
 0xc43   : >>> { %9002 = vmatprep.subr.msk.mxu0 %vm1457_vm2, %v13683_v50  ;;  %v15430_v50 = vld [vmem:[#allocation18_spill] sm:$0xff] }
 0xc44   : >>> { %v5161_v6 = vadd.f32 %v8905_v17, %v8849_v35  ;;  %6232 = vrot.lane.b32.xlu1 %v15430_v50, %s10169_s19  ;;  %v15438_v50 = vld [vmem:[#allocation54_spill] sm:$0xff] }
 0xc46   : >>> { %9003 = vmatpush3.xpose.msk.msra.mxu0 %vm1457_vm2, %v13686_v11  ;;  %9264 = vmatprep.mubr.msk.f32.mxu0 %vm1457_vm2, %v5161_v6  ;;  %v8850_v47 = vpop.f32.mrf.mxu0  ;;  %v8906_v43 = vpop.f32.mrf.mxu1 }
 0xc47   : >>> { %9004 = vmatprep.subr.msk.mxu0 %vm1457_vm2, %v13689_v56 }
 0xc48   : >>> { %v8851_v8 = vpop.f32.mrf.mxu0  ;;  %v8907_v61 = vpop.f32.mrf.mxu1 }
 0xc49   : >>> { %v8852_v44 = vadd.f32 %v8851_v8, %v8850_v47  ;;  %v8908_v41 = vadd.f32 %v8907_v61, %v8906_v43 }
 0xc4a   : >>> { %9005 = vmatpush3.xpose.msk.msra.mxu0 %vm1457_vm2, %v13692_v54 }
 0xc4b   : >>> { %9006 = vmatprep.subr.msk.mxu0 %vm1457_vm2, %v13695_v18  ;;  %v5166_v24 = vadd.f32 %v8908_v41, %v8852_v44 }
 0xc4d   : >>> { %9265 = vmatmul.mubr.msk.f32.gmra.mxu0 %vm1457_vm2, %v5166_v24  ;;  %v15435_v24 = vld [vmem:[#allocation50_spill] sm:$0xff] }
 0xc4e   : >>> { %v8853_v51 = vpop.f32.mrf.mxu0  ;;  %v8909_v28 = vpop.f32.mrf.mxu1  ;;  %9007 = vmatpush3.xpose.msk.msra.mxu0 %vm1457_vm2, %v13698_v26  ;;  %v15431_v26 = vld [vmem:[#allocation46_spill] sm:$0xff] }
 0xc4f   : >>> { %9008 = vmatprep.subr.msk.mxu0 %vm1457_vm2, %v13705_v45  ;;  %6124 = vrot.lane.b32.xlu1 %v15431_v26, %s10169_s19 }
 0xc50   : >>> { %v8854_v37 = vpop.f32.mrf.mxu0  ;;  %v8910_v60 = vpop.f32.mrf.mxu1 }
 0xc51   : >>> { %v8855_v11 = vadd.f32 %v8854_v37, %v8853_v51  ;;  %v8911_v56 = vadd.f32 %v8910_v60, %v8909_v28  ;;  %v3960_v51 = vadd.f32 %v15436_v34, %v15435_v24  ;;  %v15437_v60 = vld [vmem:[#allocation52_spill] sm:$0xff] }
 0xc52   : >>> { %v8856_v54 = vpop.f32.mrf.mxu0  ;;  %v8912_v18 = vpop.f32.mrf.mxu1  ;;  %9009 = vmatpush3.xpose.msk.msra.mxu0 %vm1457_vm2, %v13726_v33 }
 0xc53   : >>> { %v5171_v31 = vadd.f32 %v8911_v56, %v8855_v11  ;;  %6200 = vrot.lane.b32.xlu1 %v15432_v36, %s10169_s19  ;;  %v3955_v11 = vadd.f32 %v15438_v50, %v15437_v60 }
 0xc54   : >>> { %v8857_v27 = vpop.f32.mrf.mxu0  ;;  %v8913_v48 = vpop.f32.mrf.mxu1 }
 0xc55   : >>> { %v8858_v1 = vadd.f32 %v8857_v27, %v8856_v54  ;;  %v8914_v45 = vadd.f32 %v8913_v48, %v8912_v18  ;;  %9267 = vmatprep.mubr.msk.f32.mxu0 %vm1457_vm2, %v5171_v31 }
 0xc56   : >>> { %v8859_v42 = vpop.f32.mrf.mxu0  ;;  %v8915_v9 = vpop.f32.mrf.mxu1 }
 0xc57   : >>> { %v5176_v5 = vadd.f32 %v8914_v45, %v8858_v1  ;;  %6154 = vrot.lane.b32.xlu1 %v13554_v59, %s10169_s19  ;;  %v15434_v59 = vld [vmem:[#allocation39_spill] sm:$0xff] }
 0xc58   : >>> { %v8860_v13 = vpop.f32.mrf.mxu0  ;;  %v8916_v7 = vpop.f32.mrf.mxu1 }
 0xc59   : >>> { %v8861_v10 = vadd.f32 %v8860_v13, %v8859_v42  ;;  %v8917_v33 = vadd.f32 %v8916_v7, %v8915_v9  ;;  %9268 = vmatmul.mubr.msk.f32.gmra.mxu0 %vm1457_vm2, %v5176_v5 }
 0xc5a   : >>> { %v8862_v38 = vpop.f32.mrf.mxu0  ;;  %v8918_v22 = vpop.f32.mrf.mxu1 }
 0xc5b   : >>> { %v5181_v55 = vadd.f32 %v8917_v33, %v8861_v10  ;;  %6230 = vrot.lane.b32.xlu1 %v15433_v40, %s10169_s19  ;;  %v15443_v40 = vld [vmem:[#allocation58_spill] sm:$0xff] }
 0xc5c   : >>> { %v8863_v20 = vpop.f32.mrf.mxu0  ;;  %v8919_v30 = vpop.f32.mrf.mxu1 }
 0xc5d   : >>> { %v8864_v53 = vadd.f32 %v8863_v20, %v8862_v38  ;;  %v8920_v29 = vadd.f32 %v8919_v30, %v8918_v22  ;;  %9270 = vmatprep.mubr.msk.f32.mxu0 %vm1457_vm2, %v5181_v55  ;;  %v15441_v20 = vld [vmem:[#allocation57_spill] sm:$0xff]  ;;  %v15442_v30 = vld [vmem:[#allocation47_spill] sm:$0xff] }
 0xc5f   : >>> { %v5186_v57 = vadd.f32 %v8920_v29, %v8864_v53  ;;  %6122 = vrot.lane.b32.xlu1 %v10070_v3, %s10169_s19  ;;  %v3970_v53 = vadd.f32 %v15442_v30, %v15441_v20  ;;  %v15444_v3 = vld [vmem:[#allocation55_spill] sm:$0xff] }
 0xc61   : >>> { %9271 = vmatmul.mubr.msk.f32.gmra.mxu0 %vm1457_vm2, %v5186_v57 }
 0xc62   : >>> { %9010 = vmatprep.mubr.msk.f32.mxu0 %vm1457_vm2, %v13712_v2 }
 0xc63   : >>> { %6198 = vrot.lane.b32.xlu1 %v15434_v59, %s10169_s19  ;;  %v3965_v59 = vadd.f32 %v15444_v3, %v15443_v40 }
 0xc65   : >>> { %9011 = vmatmul.mubr.msk.f32.vlgmr.msra.gmra.mxu0 %vm1457_vm2, %v13712_v2  ;;  %v6149_v2 = vpop.permute.xlu0 %6148 }
 0xc66   : >>> { %9012 = vmatprep.mubr.msk.f32.mxu0 %vm1457_vm2, %v13714_v32 }
 0xc69   : >>> { %9013 = vmatmul.mubr.msk.f32.gmra.mxu0 %vm1457_vm2, %v13714_v32  ;;  %v6179_v32 = vpop.permute.xlu0 %6178 }
 0xc6a   : >>> { %9014 = vmatprep.mubr.msk.f32.mxu0 %vm1457_vm2, %v13734_v62 }
 0xc6d   : >>> { %9015 = vmatmul.mubr.msk.f32.gmra.mxu0 %vm1457_vm2, %v13734_v62  ;;  %v6147_v62 = vpop.permute.xlu0 %6146 }
 0xc6e   : >>> { %9016 = vmatprep.mubr.msk.f32.mxu0 %vm1457_vm2, %v13736_v46 }
 0xc71   : >>> { %9017 = vmatmul.mubr.msk.f32.gmra.mxu0 %vm1457_vm2, %v13736_v46  ;;  %v6177_v46 = vpop.permute.xlu0 %6176 }
 0xc72   : >>> { %9018 = vmatprep.mubr.msk.f32.mxu0 %vm1457_vm2, %v13748_v58 }
 0xc75   : >>> { %9019 = vmatmul.mubr.msk.f32.gmra.mxu0 %vm1457_vm2, %v13748_v58  ;;  %v6175_v58 = vpop.permute.xlu0 %6174 }
 0xc76   : >>> { %9020 = vmatprep.mubr.msk.f32.mxu0 %vm1457_vm2, %v13759_v4 }
 0xc79   : >>> { %9021 = vmatmul.mubr.msk.f32.gmra.mxu0 %vm1457_vm2, %v13759_v4  ;;  %v6141_v15 = vpop.permute.xlu0 %6140 }
 0xc7a   : >>> { %9022 = vmatprep.mubr.msk.f32.mxu0 %vm1457_vm2, %v13770_v23 }
 0xc7d   : >>> { %9023 = vmatmul.mubr.msk.f32.gmra.mxu0 %vm1457_vm2, %v13770_v23  ;;  %v6171_v63 = vpop.permute.xlu0 %6170  ;;  %v6151_v23 = vpop.permute.xlu1 %6150 }
 0xc7e   : >>> { %9024 = vmatprep.mubr.msk.f32.mxu0 %vm1457_vm2, %v13782_v49  ;;  %9027 = vmatpush3.msra.mxu1 %v6151_v23  ;;  %v15448_v23 = vld [vmem:[#allocation56_spill] sm:$0xff] }
 0xc81   : >>> { %9025 = vmatmul.mubr.msk.f32.gmra.mxu0 %vm1457_vm2, %v13782_v49  ;;  %v13951_v0 = vpop.permute.xlu0 %6246  ;;  %v6181_v14 = vpop.permute.xlu1 %6180 }
 0xc82   : >>> { %9082 = vmatprep.subr.mxu0 %v13951_v0  ;;  %9028 = vmatprep.subr.mxu1 %v6181_v14 }
 0xc83   : >>> { %9029 = vmatpush3.msra.mxu1 %v6149_v2 }
 0xc84   : >>> { %9030 = vmatprep.subr.mxu1 %v6179_v32 }
 0xc85   : >>> { %v6139_v4 = vpop.permute.xlu0 %6138  ;;  %9031 = vmatpush3.msra.mxu1 %v6147_v62  ;;  %v6145_v35 = vpop.permute.xlu1 %6144 }
 0xc86   : >>> { %9032 = vmatprep.subr.mxu1 %v6177_v46 }
 0xc87   : >>> { %9033 = vmatpush3.msra.mxu1 %v6145_v35  ;;  %v15449_v35 = vld [vmem:[#allocation29_spill] sm:$0xff] }
 0xc88   : >>> { %9034 = vmatprep.subr.mxu1 %v6175_v58 }
 0xc89   : >>> { %v13954_v12 = vpop.permute.xlu0 %6214  ;;  %v6143_v6 = vpop.permute.xlu1 %6142 }
 0xc8a   : >>> { %9083 = vmatpush3.msra.mxu0 %v13954_v12  ;;  %9035 = vmatpush3.msra.mxu1 %v6143_v6 }
 0xc8d   : >>> { %v6169_v52 = vpop.permute.xlu0 %6168  ;;  %v6173_v47 = vpop.permute.xlu1 %6172 }
 0xc8e   : >>> { %9036 = vmatprep.subr.mxu1 %v6173_v47 }
 0xc8f   : >>> { %9037 = vmatpush3.msra.mxu1 %v6141_v15 }
 0xc90   : >>> { %9038 = vmatprep.subr.mxu1 %v6171_v63 }
 0xc91   : >>> { %v13957_v39 = vpop.permute.xlu0 %6244  ;;  %9039 = vmatpush3.msra.mxu1 %v6139_v4  ;;  %v13962_v19 = vpop.permute.xlu1 %6212  ;;  %v15447_v4 = vld [vmem:[#allocation23_spill] sm:$0xff] }
 0xc92   : >>> { %9084 = vmatprep.subr.mxu0 %v13957_v39  ;;  %9040 = vmatprep.subr.mxu1 %v6169_v52  ;;  %v3980_v52 = vadd.f32 %v15448_v23, %v15447_v4  ;;  %v15462_v23 = vld [vmem:[#allocation6_spill] sm:$0xff] }
 0xc93   : >>> { %9085 = vmatpush3.msra.mxu0 %v13962_v19 }
 0xc95   : >>> { %v6137_v49 = vpop.permute.xlu0 %6136  ;;  %v13968_v61 = vpop.permute.xlu1 %6240 }
 0xc96   : >>> { %9041 = vmatpush3.msra.mxu1 %v6137_v49 }
 0xc99   : >>> { %v6167_v17 = vpop.permute.xlu0 %6166  ;;  %v6133_v44 = vpop.permute.xlu1 %6132 }
 0xc9a   : >>> { %9042 = vmatprep.subr.mxu1 %v6167_v17  ;;  %v15450_v17 = vld [vmem:[#allocation53_spill] sm:$0xff] }
 0xc9b   : >>> { %v3975_v6 = vadd.f32 %v15450_v17, %v15449_v35  ;;  %v15463_v17 = vld [vmem:[#allocation7_spill] sm:$0xff] }
 0xc9d   : >>> { %v13960_v16 = vpop.permute.xlu0 %6242  ;;  %v13972_v41 = vpop.permute.xlu1 %6208 }
 0xc9e   : >>> { %9086 = vmatprep.subr.mxu0 %v13960_v16 }
 0xca1   : >>> { %v6135_v43 = vpop.permute.xlu0 %6134  ;;  %v6163_v28 = vpop.permute.xlu1 %6162 }
 0xca2   : >>> { %9043 = vmatpush3.msra.mxu1 %v6135_v43 }
 0xca5   : >>> { %v13966_v8 = vpop.permute.xlu0 %6210  ;;  %v13983_v31 = vpop.permute.xlu1 %6238 }
 0xca6   : >>> { %9087 = vmatpush3.msra.mxu0 %v13966_v8 }
 0xca7   : >>> { %9088 = vmatprep.subr.mxu0 %v13968_v61 }
 0xca8   : >>> { %9089 = vmatpush3.msra.mxu0 %v13972_v41 }
 0xca9   : >>> { %v6165_v21 = vpop.permute.xlu0 %6164  ;;  %9090 = vmatprep.subr.mxu0 %v13983_v31  ;;  %v6131_v27 = vpop.permute.xlu1 %6130 }
 0xcaa   : >>> { %9044 = vmatprep.subr.mxu1 %v6165_v21 }
 0xcab   : >>> { %9045 = vmatpush3.msra.mxu1 %v6133_v44 }
 0xcac   : >>> { %9046 = vmatprep.subr.mxu1 %v6163_v28  ;;  %v15454_v28 = vld [vmem:[#allocation37_spill] sm:$0xff] }
 0xcad   : >>> { %9047 = vmatpush3.msra.mxu1 %v6131_v27  ;;  %v13986_v48 = vpop.permute.xlu1 %6206  ;;  %v13989_v1 = vpop.permute.xlu0 %6204  ;;  %v15457_v27 = vld [vmem:[#allocation36_spill] sm:$0xff] }
 0xcae   : >>> { %9091 = vmatpush3.msra.mxu0 %v13986_v48 }
 0xcb1   : >>> { %v6161_v26 = vpop.permute.xlu1 %6160 }
 0xcb2   : >>> { %9048 = vmatprep.subr.mxu1 %v6161_v26 }
 0xcb5   : >>> { %v13991_v45 = vpop.permute.xlu1 %6236 }
 0xcb6   : >>> { %9092 = vmatprep.subr.mxu0 %v13991_v45 }
 0xcb7   : >>> { %9093 = vmatpush3.msra.mxu0 %v13989_v1 }
 0xcb9   : >>> { %v6129_v42 = vpop.permute.xlu1 %6128 }
 0xcba   : >>> { %9049 = vmatpush3.msra.mxu1 %v6129_v42 }
 0xcbd   : >>> { %v6159_v9 = vpop.permute.xlu1 %6158 }
 0xcbe   : >>> { %9050 = vmatprep.subr.mxu1 %v6159_v9  ;;  %v15459_v9 = vld [vmem:[#allocation4_spill] sm:$0xff] }
 0xcc1   : >>> { %v13995_v5 = vpop.permute.xlu1 %6234 }
 0xcc2   : >>> { %9094 = vmatprep.subr.mxu0 %v13995_v5  ;;  %v5680_v33 = vpop.f32.mrf.mxu1 }
 0xcc3   : >>> { %v5840_v34 = vmul.f32 0.35355338, %v5680_v33 }
 0xcc4   : >>> { %v5682_v22 = vpop.f32.mrf.mxu1 }
 0xcc5   : >>> { %v6127_v13 = vpop.permute.xlu1 %6126 }
 0xcc6   : >>> { %9051 = vmatpush3.msra.mxu1 %v6127_v13  ;;  %v5686_v57 = vpop.f32.mrf.mxu1  ;;  %v14036_v13 = vadd.f32 %v5840_v34, %v15459_v9 }
 0xcc7   : >>> { %v5844_v30 = vmul.f32 0.35355338, %v5686_v57 }
 0xcc8   : >>> { %v5688_v46 = vpop.f32.mrf.mxu1 }
 0xcc9   : >>> { %v13998_v7 = vpop.permute.xlu1 %6202 }
 0xcca   : >>> { %9095 = vmatpush3.msra.mxu0 %v13998_v7  ;;  %v5692_v15 = vpop.f32.mrf.mxu1 }
 0xccc   : >>> { %v5694_v49 = vpop.f32.mrf.mxu1 }
 0xccd   : >>> { %v6157_v36 = vpop.permute.xlu1 %6156 }
 0xcce   : >>> { %9052 = vmatprep.subr.mxu1 %v6157_v36  ;;  %v5698_v24 = vpop.f32.mrf.mxu1  ;;  %v15460_v36 = vld [vmem:[#allocation5_spill] sm:$0xff] }
 0xccf   : >>> { %v5852_v34 = vmul.f32 0.35355338, %v5698_v24 }
 0xcd1   : >>> { %v14001_v10 = vpop.permute.xlu1 %6232 }
 0xcd2   : >>> { %9096 = vmatprep.subr.mxu0 %v14001_v10 }
 0xcd5   : >>> { %v9263_v37 = vpop.f32.mrf.mxu0  ;;  %v6125_v38 = vpop.permute.xlu1 %6124 }
 0xcd6   : >>> { %v13979_v56 = vadd.f32 %v9263_v37, %v3960_v51  ;;  %9053 = vmatpush3.msra.mxu1 %v6125_v38  ;;  %v5841_v51 = vmul.f32 0.35355338, %v5682_v22  ;;  %v15455_v37 = vld [vmem:[#allocation38_spill] sm:$0xff]  ;;  %v5845_v22 = vmul.f32 0.35355338, %v5688_v46 }
 0xcd7   : >>> { %v5279_v54 = vpop.f32.mrf.mxu0  ;;  %v3990_v60 = vadd.f32 %v15455_v37, %v15454_v28 }
 0xcd8   : >>> { %15439 = vst [vmem:[#allocation51_spill] sm:$0xff] %v13979_v56  ;;  %v13981_v18 = vadd.f32 %v5279_v54, %v3955_v11  ;;  %v5700_v11 = vpop.f32.mrf.mxu1  ;;  %v15456_v54 = vld [vmem:[#allocation25_spill] sm:$0xff]  ;;  %v14039_v38 = vadd.f32 %v5841_v51, %v15460_v36  ;;  %v14049_v4 = vadd.f32 %v5845_v22, %v15460_v36 }
 0xcd9   : >>> { %v14004_v55 = vpop.permute.xlu1 %6200  ;;  %v3985_v26 = vadd.f32 %v15457_v27, %v15456_v54  ;;  %v5853_v28 = vmul.f32 0.35355338, %v5700_v11  ;;  %v14077_v11 = vadd.f32 %v5852_v34, %v15459_v9 }
 0xcda   : >>> { %15440 = vst [vmem:[#allocation17_spill] sm:$0xff] %v13981_v18  ;;  %9097 = vmatpush3.msra.mxu0 %v14004_v55  ;;  %v5904_v3 = vmax.f32 %v14036_v13, %v14039_v38 }
 0xcdd   : >>> { %v6155_v32 = vpop.permute.xlu1 %6154 }
 0xcde   : >>> { %9054 = vmatprep.subr.mxu1 %v6155_v32  ;;  %v5849_v32 = vmul.f32 0.35355338, %v5694_v49 }
 0xce1   : >>> { %v14015_v58 = vpop.permute.xlu1 %6230 }
 0xce2   : >>> { %9098 = vmatprep.subr.mxu0 %v14015_v58 }
 0xce5   : >>> { %v6123_v63 = vpop.permute.xlu1 %6122 }
 0xce6   : >>> { %9055 = vmatpush3.msra.mxu1 %v6123_v63  ;;  %v14046_v63 = vadd.f32 %v5844_v30, %v15459_v9 }
 0xce9   : >>> { %v14024_v21 = vpop.permute.xlu1 %6198 }
 0xcea   : >>> { %15452 = vst [vmem:[#allocation42_spill] sm:$0xff] %v14024_v21  ;;  %9099 = vmatpush3.msra.mxu0 %v14024_v21 }
 0xd0d   : >>> { %v9266_v29 = vpop.f32.mrf.mxu0 }
 0xd0e   : >>> { %v14011_v25 = vadd.f32 %v9266_v29, %v3970_v53  ;;  %v5704_v29 = vpop.f32.mrf.mxu1 }
 0xd0f   : >>> { %v5289_v2 = vpop.f32.mrf.mxu0 }
 0xd10   : >>> { %15445 = vst [vmem:[#allocation49_spill] sm:$0xff] %v14011_v25  ;;  %v14013_v62 = vadd.f32 %v5289_v2, %v3965_v59  ;;  %v5848_v59 = vmul.f32 0.35355338, %v5692_v15 }
 0xd12   : >>> { %15446 = vst [vmem:[#allocation41_spill] sm:$0xff] %v14013_v62  ;;  %v14059_v49 = vadd.f32 %v5848_v59, %v15459_v9 }
 0xd19   : >>> { %v9269_v14 = vpop.f32.mrf.mxu0 }
 0xd1a   : >>> { %v14022_v47 = vadd.f32 %v9269_v14, %v3980_v52  ;;  %v5706_v14 = vpop.f32.mrf.mxu1 }
 0xd1b   : >>> { %v5299_v43 = vpop.f32.mrf.mxu0 }
 0xd1c   : >>> { %15451 = vst [vmem:[#allocation19_spill] sm:$0xff] %v14022_v47  ;;  %v14026_v44 = vadd.f32 %v5299_v43, %v3975_v6  ;;  %v14062_v43 = vadd.f32 %v5849_v32, %v15460_v36  ;;  %v5710_v37 = vpop.f32.mrf.mxu1 }
 0xd1e   : >>> { %15453 = vst [vmem:[#allocation21_spill] sm:$0xff] %v14026_v44  ;;  %v5914_v24 = vmax.f32 %v14059_v49, %v14062_v43  ;;  %v5712_v59 = vpop.f32.mrf.mxu1  ;;  %v10076_v44 = vld [vmem:[#allocation3 + $0x128] sm:$0xff] }
 0xd21   : >>> { %v9272_v50 = vpop.f32.mrf.mxu0 }
 0xd22   : >>> { %v14033_v42 = vadd.f32 %v9272_v50, %v3990_v60  ;;  %v5909_v60 = vmax.f32 %v14046_v63, %v14049_v4 }
 0xd23   : >>> { %v5309_v20 = vpop.f32.mrf.mxu0 }
 0xd24   : >>> { %15458 = vst [vmem:[#allocation43_spill] sm:$0xff] %v14033_v42  ;;  %v14041_v33 = vadd.f32 %v5309_v20, %v3985_v26 }
 0xd25   : >>> { %v5793_v53 = vpop.f32.mrf.mxu0 }
 0xd26   : >>> { %15461 = vst [vmem:[#allocation30_spill] sm:$0xff] %v14041_v33  ;;  %v5842_v40 = vmul.f32 0.35355338, %v5793_v53  ;;  %v14080_v53 = vadd.f32 %v5853_v28, %v15460_v36  ;;  %v5861_v28 = vmul.f32 0.35355338, %v5712_v59 }
 0xd27   : >>> { %v5795_v2 = vpop.f32.mrf.mxu0 }
 0xd28   : >>> { %v14052_v57 = vadd.f32 %v5842_v40, %v15462_v23  ;;  %v5843_v52 = vmul.f32 0.35355338, %v5795_v2  ;;  %v5856_v40 = vmul.f32 0.35355338, %v5704_v29  ;;  %v5919_v29 = vmax.f32 %v14077_v11, %v14080_v53 }
 0xd29   : >>> { %v5799_v46 = vpop.f32.mrf.mxu0 }
 0xd2a   : >>> { %v5905_v35 = vmax.f32 %v5904_v3, %v14052_v57  ;;  %v14056_v6 = vadd.f32 %v5843_v52, %v15463_v17  ;;  %v5846_v15 = vmul.f32 0.35355338, %v5799_v46  ;;  %v5857_v52 = vmul.f32 0.35355338, %v5706_v14 }
 0xd2b   : >>> { %v5801_v51 = vpop.f32.mrf.mxu0 }
 0xd2c   : >>> { %v14067_v50 = vadd.f32 %v5846_v15, %v15462_v23  ;;  %v5847_v54 = vmul.f32 0.35355338, %v5801_v51  ;;  %v5906_v27 = vmax.f32 %v5905_v35, %v14056_v6  ;;  %v5860_v15 = vmul.f32 0.35355338, %v5710_v37 }
 0xd2d   : >>> { %v5805_v26 = vpop.f32.mrf.mxu0  ;;  %v14096_v14 = vadd.f32 %v5857_v52, %v15460_v36 }
 0xd2e   : >>> { %v5910_v20 = vmax.f32 %v5909_v60, %v14067_v50  ;;  %v14072_v30 = vadd.f32 %v5847_v54, %v15463_v17  ;;  %v5850_v22 = vmul.f32 0.35355338, %v5805_v26  ;;  %5907 = vmax.xlane.f32.xlu0 %v5906_v27  ;;  %v14093_v54 = vadd.f32 %v5856_v40, %v15459_v9 }
 0xd2f   : >>> { %v5807_v3 = vpop.f32.mrf.mxu0 }
 0xd30   : >>> { %v14083_v2 = vadd.f32 %v5850_v22, %v15462_v23  ;;  %v5851_v32 = vmul.f32 0.35355338, %v5807_v3  ;;  %v5911_v46 = vmax.f32 %v5910_v20, %v14072_v30  ;;  %v14103_v22 = vadd.f32 %v5860_v15, %v15459_v9 }
 0xd31   : >>> { %v5811_v35 = vpop.f32.mrf.mxu0 }
 0xd32   : >>> { %v5915_v51 = vmax.f32 %v5914_v24, %v14083_v2  ;;  %v14088_v34 = vadd.f32 %v5851_v32, %v15463_v17  ;;  %v5854_v60 = vmul.f32 0.35355338, %v5811_v35  ;;  %5912 = vmax.xlane.f32.xlu1 %v5911_v46  ;;  %v14110_v32 = vadd.f32 %v5861_v28, %v15460_v36 }
 0xd33   : >>> { %v5813_v27 = vpop.f32.mrf.mxu0  ;;  %v5924_v46 = vmax.f32 %v14093_v54, %v14096_v14 }
 0xd34   : >>> { %v14099_v37 = vadd.f32 %v5854_v60, %v15462_v23  ;;  %v5855_v26 = vmul.f32 0.35355338, %v5813_v27  ;;  %v5916_v20 = vmax.f32 %v5915_v51, %v14088_v34  ;;  %v5929_v27 = vmax.f32 %v14103_v22, %v14110_v32 }
 0xd35   : >>> { %v5817_v24 = vpop.f32.mrf.mxu0 }
 0xd36   : >>> { %v5920_v3 = vmax.f32 %v5919_v29, %v14099_v37  ;;  %v14107_v59 = vadd.f32 %v5855_v26, %v15463_v17  ;;  %v5858_v40 = vmul.f32 0.35355338, %v5817_v24  ;;  %5917 = vmax.xlane.f32.xlu0 %v5916_v20 }
 0xd37   : >>> { %v5819_v52 = vpop.f32.mrf.mxu0 }
 0xd38   : >>> { %v14115_v35 = vadd.f32 %v5858_v40, %v15462_v23  ;;  %v5859_v15 = vmul.f32 0.35355338, %v5819_v52  ;;  %v5921_v51 = vmax.f32 %v5920_v3, %v14107_v59 }
 0xd39   : >>> { %v5823_v60 = vpop.f32.mrf.mxu0 }
 0xd3a   : >>> { %v5925_v29 = vmax.f32 %v5924_v46, %v14115_v35  ;;  %v14122_v26 = vadd.f32 %v5859_v15, %v15463_v17  ;;  %v5862_v28 = vmul.f32 0.35355338, %v5823_v60  ;;  %5922 = vmax.xlane.f32.xlu0 %v5921_v51  ;;  %v10071_v15 = vld [vmem:[#allocation3 + $0x80] sm:$0xff]  ;;  %v10072_v51 = vld [vmem:[#allocation3 + $0x1b0] sm:$0xff]  ;;  %v5716_v60 = vpop.f32.mrf.mxu1 }
 0xd3b   : >>> { %v5825_v20 = vpop.f32.mrf.mxu0  ;;  %v5864_v18 = vmul.f32 0.35355338, %v5716_v60 }
 0xd3c   : >>> { %v14125_v24 = vadd.f32 %v5862_v28, %v15462_v23  ;;  %v5863_v40 = vmul.f32 0.35355338, %v5825_v20  ;;  %v5926_v52 = vmax.f32 %v5925_v29, %v14122_v26  ;;  %v10073_v28 = vld [vmem:[#allocation3] sm:$0xff]  ;;  %v5718_v29 = vpop.f32.mrf.mxu1  ;;  %v10074_v20 = vld [vmem:[#allocation3 + $0x130] sm:$0xff] }
 0xd3e   : >>> { %v5930_v3 = vmax.f32 %v5929_v27, %v14125_v24  ;;  %v14130_v33 = vadd.f32 %v5863_v40, %v15463_v17  ;;  %5927 = vmax.xlane.f32.xlu0 %v5926_v52  ;;  %v5722_v27 = vpop.f32.mrf.mxu1  ;;  %v5829_v40 = vpop.f32.mrf.mxu0  ;;  %v10075_v52 = vld [vmem:[#allocation3 + $0x1a8] sm:$0xff] }
 0xd3f   : >>> { %v5868_v42 = vmul.f32 0.35355338, %v5722_v27  ;;  %v5866_v21 = vmul.f32 0.35355338, %v5829_v40  ;;  %v10083_v40 = vld [vmem:[#allocation3 + $0x190] sm:$0xff] }
 0xd40   : >>> { %v5931_v46 = vmax.f32 %v5930_v3, %v14130_v33  ;;  %v5724_v3 = vpop.f32.mrf.mxu1 }
 0xd41   : >>> { %v14140_v47 = vadd.f32 %v5868_v42, %v15459_v9  ;;  %v5865_v42 = vmul.f32 0.35355338, %v5718_v29 }
 0xd42   : >>> { %5932 = vmax.xlane.f32.xlu1 %v5931_v46  ;;  %v5831_v46 = vpop.f32.mrf.mxu0 }
 0xd53   : >>> { %6152 = vrot.lane.b32.xlu1 %v10071_v15, %s10169_s19  ;;  %v5869_v15 = vmul.f32 0.35355338, %v5724_v3 }
 0xd54   : >>> { %6228 = vrot.lane.b32.xlu0 %v10072_v51, %s10169_s19  ;;  %v5835_v51 = vpop.f32.mrf.mxu0 }
 0xd56   : >>> { %v5837_v62 = vpop.f32.mrf.mxu0 }
 0xd57   : >>> { %v5871_v27 = vmul.f32 0.35355338, %v5837_v62 }
 0xd58   : >>> { %6120 = vrot.lane.b32.xlu0 %v10073_v28, %s10169_s19  ;;  %v14143_v28 = vadd.f32 %v5869_v15, %v15460_v36  ;;  %v14156_v15 = vadd.f32 %v5864_v18, %v15459_v9  ;;  %v10077_v9 = vld [vmem:[#allocation3 + $0x1a0] sm:$0xff] }
 0xd5a   : >>> { %v5939_v25 = vmax.f32 %v14140_v47, %v14143_v28 }
 0xd5c   : >>> { %6196 = vrot.lane.b32.xlu0 %v10074_v20, %s10169_s19  ;;  %v5870_v20 = vmul.f32 0.35355338, %v5835_v51  ;;  %v14159_v51 = vadd.f32 %v5865_v42, %v15460_v36  ;;  %v10078_v36 = vld [vmem:[#allocation3 + $0x110] sm:$0xff] }
 0xd5e   : >>> { %v5934_v62 = vmax.f32 %v14156_v15, %v14159_v51 }
 0xd60   : >>> { %6226 = vrot.lane.b32.xlu0 %v10075_v52, %s10169_s19  ;;  %v14148_v52 = vadd.f32 %v5870_v20, %v15462_v23  ;;  %v5867_v20 = vmul.f32 0.35355338, %v5831_v46  ;;  %v10084_v46 = vld [vmem:[#allocation3 + $0x188] sm:$0xff] }
 0xd62   : >>> { %v5940_v3 = vmax.f32 %v5939_v25, %v14148_v52  ;;  %v14164_v25 = vadd.f32 %v5866_v21, %v15462_v23  ;;  %v14168_v29 = vadd.f32 %v5867_v20, %v15463_v17  ;;  %v10080_v21 = vld [vmem:[#allocation3 + $0x120] sm:$0xff]  ;;  %v10081_v23 = vld [vmem:[#allocation3 + $0x198] sm:$0xff] }
 0xd64   : >>> { %6194 = vrot.lane.b32.xlu0 %v10076_v44, %s10169_s19  ;;  %v14152_v44 = vadd.f32 %v5871_v27, %v15463_v17  ;;  %v5935_v60 = vmax.f32 %v5934_v62, %v14164_v25  ;;  %v10082_v17 = vld [vmem:[#allocation3 + $0x118] sm:$0xff] }
 0xd66   : >>> { %v5941_v56 = vmax.f32 %v5940_v3, %v14152_v44  ;;  %v5936_v18 = vmax.f32 %v5935_v60, %v14168_v29 }
 0xd77   : >>> { %5942 = vmax.xlane.f32.xlu1 %v5941_v56  ;;  %v10079_v56 = vld [vmem:[#allocation3 + $0x108] sm:$0xff] }
 0xd83   : >>> { %5937 = vmax.xlane.f32.xlu0 %v5936_v18 }
 0xd88   : >>> { %6224 = vrot.lane.b32.xlu1 %v10077_v9, %s10169_s19 }
 0xd8c   : >>> { %6188 = vrot.lane.b32.xlu1 %v10078_v36, %s10169_s19 }
 0xd90   : >>> { %6186 = vrot.lane.b32.xlu1 %v10079_v56, %s10169_s19 }
 0xd99   : >>> { %6192 = vrot.lane.b32.xlu0 %v10080_v21, %s10169_s19 }
 0xd9d   : >>> { %6222 = vrot.lane.b32.xlu0 %v10081_v23, %s10169_s19 }
 0xda1   : >>> { %6190 = vrot.lane.b32.xlu0 %v10082_v17, %s10169_s19 }
 0xda5   : >>> { %6220 = vrot.lane.b32.xlu0 %v10083_v40, %s10169_s19 }
 0xda9   : >>> { %6218 = vrot.lane.b32.xlu0 %v10084_v46, %s10169_s19 }
 0xdb7   : >>> { %v5908_v27 = vpop.xlane.xlu0 %5907 }
 0xdb8   : >>> { %v5944_v3 = vsub.f32 %v14036_v13, %v5908_v27  ;;  %v5945_v42 = vsub.f32 %v14039_v38, %v5908_v27  ;;  %v5946_v62 = vsub.f32 %v14052_v57, %v5908_v27  ;;  %v5947_v20 = vsub.f32 %v14056_v6, %v5908_v27 }
 0xdba   : >>> { %v5976_v60 = vmul.f32 1.442695, %v5944_v3  ;;  %v5978_v18 = vmul.f32 1.442695, %v5945_v42  ;;  %v5980_v9 = vmul.f32 1.442695, %v5946_v62 }
 0xdbb   : >>> { %v5982_v36 = vmul.f32 1.442695, %v5947_v20  ;;  %v5913_v56 = vpop.xlane.xlu1 %5912 }
 0xdbc   : >>> { %9773 = vpow2.f32 %v5976_v60  ;;  %v5948_v21 = vsub.f32 %v14046_v63, %v5913_v56  ;;  %v5949_v23 = vsub.f32 %v14049_v4, %v5913_v56  ;;  %v5950_v17 = vsub.f32 %v14067_v50, %v5913_v56 }
 0xdbd   : >>> { %9775 = vpow2.f32 %v5978_v18  ;;  %v5951_v13 = vsub.f32 %v14072_v30, %v5913_v56 }
 0xdbe   : >>> { %9777 = vpow2.f32 %v5980_v9  ;;  %v5984_v38 = vmul.f32 1.442695, %v5948_v21  ;;  %v5986_v57 = vmul.f32 1.442695, %v5949_v23  ;;  %v5988_v40 = vmul.f32 1.442695, %v5950_v17 }
 0xdbf   : >>> { %9779 = vpow2.f32 %v5982_v36  ;;  %v5990_v6 = vmul.f32 1.442695, %v5951_v13  ;;  %v5918_v46 = vpop.xlane.xlu0 %5917 }
 0xdc0   : >>> { %9781 = vpow2.f32 %v5984_v38  ;;  %v5952_v27 = vsub.f32 %v14059_v49, %v5918_v46  ;;  %v5953_v3 = vsub.f32 %v14062_v43, %v5918_v46  ;;  %v5954_v63 = vsub.f32 %v14083_v2, %v5918_v46 }
 0xdc1   : >>> { %9783 = vpow2.f32 %v5986_v57  ;;  %v5955_v4 = vsub.f32 %v14088_v34, %v5918_v46 }
 0xdc2   : >>> { %9785 = vpow2.f32 %v5988_v40  ;;  %v5992_v50 = vmul.f32 1.442695, %v5952_v27  ;;  %v5994_v30 = vmul.f32 1.442695, %v5953_v3  ;;  %v5996_v42 = vmul.f32 1.442695, %v5954_v63 }
 0xdc3   : >>> { %9787 = vpow2.f32 %v5990_v6  ;;  %v5998_v62 = vmul.f32 1.442695, %v5955_v4  ;;  %v5923_v20 = vpop.xlane.xlu0 %5922 }
 0xdc4   : >>> { %9789 = vpow2.f32 %v5992_v50  ;;  %v5956_v60 = vsub.f32 %v14077_v11, %v5923_v20  ;;  %v5957_v18 = vsub.f32 %v14080_v53, %v5923_v20  ;;  %v5958_v49 = vsub.f32 %v14099_v37, %v5923_v20 }
 0xdc5   : >>> { %9791 = vpow2.f32 %v5994_v30  ;;  %v5959_v43 = vsub.f32 %v14107_v59, %v5923_v20 }
 0xdc6   : >>> { %9793 = vpow2.f32 %v5996_v42  ;;  %v6000_v2 = vmul.f32 1.442695, %v5956_v60  ;;  %v6002_v34 = vmul.f32 1.442695, %v5957_v18  ;;  %v6004_v9 = vmul.f32 1.442695, %v5958_v49 }
 0xdc7   : >>> { %9795 = vpow2.f32 %v5998_v62  ;;  %v6006_v36 = vmul.f32 1.442695, %v5959_v43  ;;  %v5928_v56 = vpop.xlane.xlu0 %5927 }
 0xdc8   : >>> { %9797 = vpow2.f32 %v6000_v2  ;;  %v5960_v21 = vsub.f32 %v14093_v54, %v5928_v56  ;;  %v5961_v23 = vsub.f32 %v14096_v14, %v5928_v56  ;;  %v5962_v11 = vsub.f32 %v14115_v35, %v5928_v56 }
 0xdc9   : >>> { %v14198_v53 = vpop.eup %9773  ;;  %9799 = vpow2.f32 %v6002_v34  ;;  %v5963_v37 = vsub.f32 %v14122_v26, %v5928_v56 }
 0xdca   : >>> { %v14201_v59 = vpop.eup %9775  ;;  %9801 = vpow2.f32 %v6004_v9  ;;  %v6008_v17 = vmul.f32 1.442695, %v5960_v21  ;;  %v6010_v13 = vmul.f32 1.442695, %v5961_v23  ;;  %v6012_v38 = vmul.f32 1.442695, %v5962_v11 }
 0xdcb   : >>> { %v14203_v57 = vpop.eup %9777  ;;  %9803 = vpow2.f32 %v6006_v36  ;;  %v6014_v40 = vmul.f32 1.442695, %v5963_v37  ;;  %v5933_v54 = vpop.xlane.xlu1 %5932  ;;  %v6040_v14 = vadd.f32 %v14201_v59, %v14198_v53 }
 0xdcc   : >>> { %v14205_v6 = vpop.permute.xlu0 %6228  ;;  %v14209_v35 = vpop.eup %9779  ;;  %9805 = vpow2.f32 %v6008_v17  ;;  %v5964_v26 = vsub.f32 %v14103_v22, %v5933_v54  ;;  %v5965_v46 = vsub.f32 %v14110_v32, %v5933_v54  ;;  %v5966_v27 = vsub.f32 %v14125_v24, %v5933_v54 }
 0xdcd   : >>> { %9100 = vmatprep.subr.mxu0 %v14205_v6  ;;  %v14215_v3 = vpop.eup %9781  ;;  %9807 = vpow2.f32 %v6010_v13  ;;  %v5967_v63 = vsub.f32 %v14130_v33, %v5933_v54  ;;  %v6041_v4 = vadd.f32 %v14203_v57, %v6040_v14 }
 0xdce   : >>> { %v14219_v50 = vpop.eup %9783  ;;  %9809 = vpow2.f32 %v6012_v38  ;;  %v6016_v30 = vmul.f32 1.442695, %v5964_v26  ;;  %v6018_v42 = vmul.f32 1.442695, %v5965_v46  ;;  %v6020_v22 = vmul.f32 1.442695, %v5966_v27 }
 0xdcf   : >>> { %v14221_v62 = vpop.eup %9785  ;;  %9811 = vpow2.f32 %v6014_v40  ;;  %v6153_v32 = vpop.permute.xlu1 %6152  ;;  %v6042_v20 = vadd.f32 %v14209_v35, %v6041_v4  ;;  %v6045_v60 = vadd.f32 %v14219_v50, %v14215_v3  ;;  %v6022_v49 = vmul.f32 1.442695, %v5967_v63 }
 0xdd0   : >>> { %v6121_v24 = vpop.permute.xlu0 %6120  ;;  %v14226_v18 = vpop.eup %9787  ;;  %9813 = vpow2.f32 %v6016_v30  ;;  %9056 = vmatprep.subr.mxu1 %v6153_v32 }
 0xdd1   : >>> { %v14228_v33 = vpop.eup %9789  ;;  %9815 = vpow2.f32 %v6018_v42  ;;  %6043 = vadd.xlane.f32.xlu1 %v6042_v20  ;;  %9057 = vmatpush3.msra.mxu1 %v6121_v24  ;;  %v6046_v43 = vadd.f32 %v14221_v62, %v6045_v60 }
 0xdd2   : >>> { %v14231_v2 = vpop.eup %9791  ;;  %9383 = vmatprep.subr.mxu1 %v13951_v0  ;;  %9817 = vpow2.f32 %v6020_v22 }
 0xdd3   : >>> { %v14234_v34 = vpop.eup %9793  ;;  %v6047_v36 = vadd.f32 %v14226_v18, %v6046_v43  ;;  %v6050_v56 = vadd.f32 %v14231_v2, %v14228_v33  ;;  %9819 = vpow2.f32 %v6022_v49 }
 0xdd4   : >>> { %v14236_v9 = vpop.permute.xlu0 %6196  ;;  %v14241_v21 = vpop.eup %9795 }
 0xdd5   : >>> { %9101 = vmatpush3.msra.mxu0 %v14236_v9  ;;  %v14244_v23 = vpop.eup %9797  ;;  %6048 = vadd.xlane.f32.xlu0 %v6047_v36  ;;  %v6051_v0 = vadd.f32 %v14234_v34, %v6050_v56 }
 0xdd6   : >>> { %v14247_v11 = vpop.eup %9799 }
 0xdd7   : >>> { %v14249_v37 = vpop.eup %9801  ;;  %v6052_v13 = vadd.f32 %v14241_v21, %v6051_v0  ;;  %v6055_v38 = vadd.f32 %v14247_v11, %v14244_v23 }
 0xdd8   : >>> { %v14251_v17 = vpop.permute.xlu0 %6226  ;;  %v14256_v40 = vpop.eup %9803 }
 0xdd9   : >>> { %9102 = vmatprep.subr.mxu0 %v14251_v17  ;;  %v14259_v54 = vpop.eup %9805  ;;  %6053 = vadd.xlane.f32.xlu1 %v6052_v13  ;;  %v6056_v14 = vadd.f32 %v14249_v37, %v6055_v38 }
 0xdda   : >>> { %v14262_v26 = vpop.eup %9807 }
 0xddb   : >>> { %v14264_v46 = vpop.eup %9809  ;;  %v6057_v63 = vadd.f32 %v14256_v40, %v6056_v14  ;;  %v6060_v4 = vadd.f32 %v14262_v26, %v14259_v54 }
 0xddc   : >>> { %v14266_v27 = vpop.permute.xlu0 %6194  ;;  %v14271_v30 = vpop.eup %9811 }
 0xddd   : >>> { %9103 = vmatpush3.msra.mxu0 %v14266_v27  ;;  %v14274_v42 = vpop.eup %9813  ;;  %6058 = vadd.xlane.f32.xlu1 %v6057_v63  ;;  %v6061_v22 = vadd.f32 %v14264_v46, %v6060_v4 }
 0xdde   : >>> { %v14277_v32 = vpop.eup %9815 }
 0xddf   : >>> { %v6062_v24 = vadd.f32 %v14271_v30, %v6061_v22  ;;  %v6065_v20 = vadd.f32 %v14277_v32, %v14274_v42  ;;  %v14282_v60 = vpop.eup %9817 }
 0xde0   : >>> { %15464 = vst [vmem:[#allocation44_spill] sm:$0xff] %v14282_v60  ;;  %v14285_v43 = vpop.eup %9819 }
 0xde1   : >>> { %6063 = vadd.xlane.f32.xlu0 %v6062_v24  ;;  %v6066_v49 = vadd.f32 %v14282_v60, %v6065_v20  ;;  %15465 = vst [vmem:[#allocation31_spill] sm:$0xff] %v14285_v43 }
 0xde3   : >>> { %v6067_v36 = vadd.f32 %v14285_v43, %v6066_v49 }
 0xde5   : >>> { %6068 = vadd.xlane.f32.xlu0 %v6067_v36 }
 0xe00   : >>> { %v5943_v56 = vpop.xlane.xlu1 %5942 }
 0xe01   : >>> { %v5972_v0 = vsub.f32 %v14140_v47, %v5943_v56  ;;  %v5973_v13 = vsub.f32 %v14143_v28, %v5943_v56  ;;  %v5974_v38 = vsub.f32 %v14148_v52, %v5943_v56  ;;  %v5975_v14 = vsub.f32 %v14152_v44, %v5943_v56 }
 0xe03   : >>> { %v6032_v63 = vmul.f32 1.442695, %v5972_v0  ;;  %v6034_v4 = vmul.f32 1.442695, %v5973_v13  ;;  %v6036_v22 = vmul.f32 1.442695, %v5974_v38 }
 0xe04   : >>> { %v14292_v24 = vpop.permute.xlu1 %6224  ;;  %v6038_v20 = vmul.f32 1.442695, %v5975_v14 }
 0xe05   : >>> { %9821 = vpow2.f32 %v6032_v63  ;;  %9104 = vmatprep.subr.mxu0 %v14292_v24 }
 0xe06   : >>> { %9823 = vpow2.f32 %v6034_v4 }
 0xe07   : >>> { %9825 = vpow2.f32 %v6036_v22 }
 0xe08   : >>> { %9827 = vpow2.f32 %v6038_v20 }
 0xe0c   : >>> { %v5938_v49 = vpop.xlane.xlu0 %5937 }
 0xe0d   : >>> { %v5968_v47 = vsub.f32 %v14156_v15, %v5938_v49  ;;  %v5969_v28 = vsub.f32 %v14159_v51, %v5938_v49  ;;  %v5970_v52 = vsub.f32 %v14164_v25, %v5938_v49  ;;  %v5971_v44 = vsub.f32 %v14168_v29, %v5938_v49  ;;  %v14320_v49 = vpop.permute.xlu1 %6188 }
 0xe0f   : >>> { %v6024_v36 = vmul.f32 1.442695, %v5968_v47  ;;  %v6026_v56 = vmul.f32 1.442695, %v5969_v28  ;;  %v6028_v0 = vmul.f32 1.442695, %v5970_v52 }
 0xe10   : >>> { %v14299_v13 = vpop.permute.xlu0 %6192  ;;  %v6030_v14 = vmul.f32 1.442695, %v5971_v44 }
 0xe11   : >>> { %9829 = vpow2.f32 %v6024_v36  ;;  %9105 = vmatpush3.msra.mxu0 %v14299_v13 }
 0xe12   : >>> { %v14302_v38 = vpop.eup %9821  ;;  %9831 = vpow2.f32 %v6026_v56 }
 0xe13   : >>> { %v14304_v63 = vpop.eup %9823  ;;  %9833 = vpow2.f32 %v6028_v0  ;;  %v14336_v0 = vpop.permute.xlu1 %6186 }
 0xe14   : >>> { %v6075_v15 = vadd.f32 %v14304_v63, %v14302_v38  ;;  %v14308_v51 = vpop.permute.xlu0 %6222  ;;  %v14310_v25 = vpop.eup %9825  ;;  %9835 = vpow2.f32 %v6030_v14 }
 0xe15   : >>> { %15466 = vst [vmem:[#allocation32_spill] sm:$0xff] %v14310_v25  ;;  %9106 = vmatprep.subr.mxu0 %v14308_v51  ;;  %v14314_v4 = vpop.eup %9827 }
 0xe16   : >>> { %v6076_v29 = vadd.f32 %v14310_v25, %v6075_v15  ;;  %15467 = vst [vmem:[#allocation35_spill] sm:$0xff] %v14314_v4  ;;  %v10086_v25 = vld [vmem:[#allocation3 + $0x180] sm:$0xff] }
 0xe18   : >>> { %v6077_v22 = vadd.f32 %v14314_v4, %v6076_v29  ;;  %v14317_v20 = vpop.permute.xlu0 %6190 }
 0xe19   : >>> { %9107 = vmatpush3.msra.mxu0 %v14317_v20 }
 0xe1a   : >>> { %6078 = vadd.xlane.f32.xlu1 %v6077_v22  ;;  %v10085_v22 = vld [vmem:[#allocation3 + $0x100] sm:$0xff] }
 0xe1c   : >>> { %v14322_v47 = vpop.permute.xlu0 %6220 }
 0xe1d   : >>> { %9108 = vmatprep.subr.mxu0 %v14322_v47 }
 0xe1e   : >>> { %v14325_v28 = vpop.eup %9829  ;;  %9109 = vmatpush3.msra.mxu0 %v14320_v49 }
 0xe1f   : >>> { %v14328_v52 = vpop.eup %9831 }
 0xe20   : >>> { %v6070_v44 = vadd.f32 %v14328_v52, %v14325_v28  ;;  %v14332_v36 = vpop.permute.xlu0 %6218  ;;  %v14334_v56 = vpop.eup %9833 }
 0xe21   : >>> { %15468 = vst [vmem:[#allocation26_spill] sm:$0xff] %v14334_v56  ;;  %9110 = vmatprep.subr.mxu0 %v14332_v36  ;;  %v14341_v15 = vpop.eup %9835 }
 0xe22   : >>> { %v6071_v14 = vadd.f32 %v14334_v56, %v6070_v44  ;;  %9111 = vmatpush3.msra.mxu0 %v14336_v0 }
 0xe24   : >>> { %v6072_v29 = vadd.f32 %v14341_v15, %v6071_v14 }
 0xe26   : >>> { %6073 = vadd.xlane.f32.xlu0 %v6072_v29 }
 0xe2b   : >>> { %6184 = vrot.lane.b32.xlu1 %v10085_v22, %s10169_s19 }
 0xe3c   : >>> { %6216 = vrot.lane.b32.xlu0 %v10086_v25, %s10169_s19 }
 0xe5a   : >>> { %v6044_v4 = vpop.xlane.xlu1 %6043 }
 0xe5b   : >>> { %9837 = vrcp.f32 %v6044_v4 }
 0xe5e   : >>> { %v6049_v60 = vpop.xlane.xlu0 %6048 }
 0xe5f   : >>> { %9839 = vrcp.f32 %v6049_v60 }
 0xe62   : >>> { %v6054_v43 = vpop.xlane.xlu1 %6053 }
 0xe63   : >>> { %9841 = vrcp.f32 %v6054_v43 }
 0xe66   : >>> { %v6059_v44 = vpop.xlane.xlu1 %6058 }
 0xe67   : >>> { %9843 = vrcp.f32 %v6059_v44 }
 0xe68   : >>> { %v14346_v56 = vpop.eup %9837 }
 0xe69   : >>> { %v6089_v14 = vmul.f32 %v14346_v56, %v14201_v59  ;;  %v6091_v29 = vmul.f32 %v14346_v56, %v14209_v35  ;;  %v6088_v22 = vmul.f32 %v14346_v56, %v14198_v53 }
 0xe6a   : >>> { %v6064_v25 = vpop.xlane.xlu0 %6063 }
 0xe6b   : >>> { %9845 = vrcp.f32 %v6064_v25  ;;  %6376 = vmatprep.mubr.f32.mxu1 %v6089_v14  ;;  %6481 = vmatprep.mubr.f32.mxu0 %v6091_v29 }
 0xe6c   : >>> { %v14354_v60 = vpop.eup %9839  ;;  %6377 = vmatmul.mubr.f32.vlgmr.msra.gmra.mxu1 %v6088_v22 }
 0xe6d   : >>> { %9399 = vmatpush3.msra.mxu1 %v13954_v12  ;;  %v6093_v43 = vmul.f32 %v14354_v60, %v14219_v50  ;;  %v6092_v59 = vmul.f32 %v14354_v60, %v14215_v3  ;;  %v6094_v50 = vmul.f32 %v14354_v60, %v14221_v62 }
 0xe6e   : >>> { %9384 = vmatprep.subr.mxu1 %v13957_v39  ;;  %v6069_v35 = vpop.xlane.xlu0 %6068 }
 0xe6f   : >>> { %9400 = vmatpush3.msra.mxu1 %v13962_v19  ;;  %9847 = vrcp.f32 %v6069_v35  ;;  %6381 = vmatprep.mubr.f32.mxu1 %v6093_v43 }
 0xe70   : >>> { %v14363_v53 = vpop.eup %9841  ;;  %9385 = vmatprep.subr.mxu1 %v13960_v16  ;;  %6382 = vmatmul.mubr.f32.gmra.mxu1 %v6092_v59 }
 0xe71   : >>> { %9401 = vmatpush3.msra.mxu1 %v13966_v8  ;;  %v6097_v12 = vmul.f32 %v14363_v53, %v14231_v2  ;;  %v6096_v3 = vmul.f32 %v14363_v53, %v14228_v33  ;;  %v6099_v33 = vmul.f32 %v14363_v53, %v14241_v21 }
 0xe72   : >>> { %9386 = vmatprep.subr.mxu1 %v13968_v61 }
 0xe73   : >>> { %9402 = vmatpush3.msra.mxu1 %v13972_v41  ;;  %6386 = vmatprep.mubr.f32.mxu1 %v6097_v12 }
 0xe74   : >>> { %v14373_v39 = vpop.eup %9843  ;;  %9387 = vmatprep.subr.mxu1 %v13983_v31  ;;  %6387 = vmatmul.mubr.f32.gmra.mxu1 %v6096_v3 }
 0xe75   : >>> { %9403 = vmatpush3.msra.mxu1 %v13986_v48  ;;  %v6101_v16 = vmul.f32 %v14373_v39, %v14247_v11  ;;  %v6100_v19 = vmul.f32 %v14373_v39, %v14244_v23  ;;  %v15469_v48 = vld [vmem:[#allocation42_spill] sm:$0xff]  ;;  %v6103_v23 = vmul.f32 %v14373_v39, %v14256_v40  ;;  %v6102_v21 = vmul.f32 %v14373_v39, %v14249_v37 }
 0xe76   : >>> { %9388 = vmatprep.subr.mxu1 %v13991_v45  ;;  %v15471_v37 = vld [vmem:[#allocation26_spill] sm:$0xff] }
 0xe77   : >>> { %9404 = vmatpush3.msra.mxu1 %v13989_v1  ;;  %6391 = vmatprep.mubr.f32.mxu1 %v6101_v16 }
 0xe78   : >>> { %v14383_v8 = vpop.eup %9845  ;;  %9389 = vmatprep.subr.mxu1 %v13995_v5  ;;  %6392 = vmatmul.mubr.f32.gmra.mxu1 %v6100_v19 }
 0xe79   : >>> { %9405 = vmatpush3.msra.mxu1 %v13998_v7  ;;  %v6105_v61 = vmul.f32 %v14383_v8, %v14262_v26  ;;  %v6104_v41 = vmul.f32 %v14383_v8, %v14259_v54  ;;  %v6106_v40 = vmul.f32 %v14383_v8, %v14264_v46  ;;  %v15470_v26 = vld [vmem:[#allocation31_spill] sm:$0xff]  ;;  %v15474_v46 = vld [vmem:[#allocation32_spill] sm:$0xff] }
 0xe7a   : >>> { %9390 = vmatprep.subr.mxu1 %v14001_v10 }
 0xe7b   : >>> { %9406 = vmatpush3.msra.mxu1 %v14004_v55  ;;  %6396 = vmatprep.mubr.f32.mxu1 %v6105_v61 }
 0xe7c   : >>> { %v14393_v31 = vpop.eup %9847  ;;  %9391 = vmatprep.subr.mxu1 %v14015_v58  ;;  %6397 = vmatmul.mubr.f32.gmra.mxu1 %v6104_v41  ;;  %v6090_v58 = vmul.f32 %v14346_v56, %v14203_v57 }
 0xe7d   : >>> { %9407 = vmatpush3.msra.mxu1 %v15469_v48  ;;  %v6109_v1 = vmul.f32 %v14393_v31, %v14277_v32  ;;  %v6108_v45 = vmul.f32 %v14393_v31, %v14274_v42  ;;  %v15472_v42 = vld [vmem:[#allocation44_spill] sm:$0xff] }
 0xe7e   : >>> { %9392 = vmatprep.subr.mxu1 %v14205_v6  ;;  %v6095_v6 = vmul.f32 %v14354_v60, %v14226_v18  ;;  %v6110_v32 = vmul.f32 %v14393_v31, %v15472_v42  ;;  %v6661_v42 = vld [vmem:[%s14458_s27 + $0x8] sm:$0xff] }
 0xe7f   : >>> { %9408 = vmatpush3.msra.mxu1 %v14236_v9  ;;  %6401 = vmatprep.mubr.f32.mxu1 %v6109_v1  ;;  %v6098_v9 = vmul.f32 %v14363_v53, %v14234_v34  ;;  %v6107_v34 = vmul.f32 %v14383_v8, %v14271_v30 }
 0xe80   : >>> { %9393 = vmatprep.subr.mxu1 %v14251_v17  ;;  %6402 = vmatmul.mubr.f32.gmra.mxu1 %v6108_v45 }
 0xe81   : >>> { %9409 = vmatpush3.msra.mxu1 %v14266_v27  ;;  %v6111_v27 = vmul.f32 %v14393_v31, %v15470_v26 }
 0xe82   : >>> { %9394 = vmatprep.subr.mxu1 %v14292_v24  ;;  %v15473_v24 = vld [vmem:[#allocation35_spill] sm:$0xff] }
 0xe83   : >>> { %9410 = vmatpush3.msra.mxu1 %v14299_v13 }
 0xe84   : >>> { %9395 = vmatprep.subr.mxu1 %v14308_v51 }
 0xe85   : >>> { %9411 = vmatpush3.msra.mxu1 %v14317_v20 }
 0xe86   : >>> { %9396 = vmatprep.subr.mxu1 %v14322_v47 }
 0xe87   : >>> { %9412 = vmatpush3.msra.mxu1 %v14320_v49 }
 0xe88   : >>> { %9397 = vmatprep.subr.mxu1 %v14332_v36 }
 0xe89   : >>> { %9413 = vmatpush3.msra.mxu1 %v14336_v0 }
 0xea3   : >>> { %v6079_v5 = vpop.xlane.xlu1 %6078 }
 0xea4   : >>> { %9849 = vrcp.f32 %v6079_v5 }
 0xea7   : >>> { %v6185_v10 = vpop.permute.xlu1 %6184 }
 0xeaf   : >>> { %v6074_v7 = vpop.xlane.xlu0 %6073 }
 0xeb0   : >>> { %9851 = vrcp.f32 %v6074_v7 }
 0xeb1   : >>> { %v9850_v2 = vpop.eup %9849 }
 0xeb2   : >>> { %v6117_v62 = vmul.f32 %v9850_v2, %v14304_v63  ;;  %v6116_v17 = vmul.f32 %v9850_v2, %v14302_v38  ;;  %v6119_v13 = vmul.f32 %v9850_v2, %v15473_v24  ;;  %v6118_v38 = vmul.f32 %v9850_v2, %v15474_v46  ;;  %v1191_v63 = vld [vmem:[%s12462_s25 + $0x18] sm:$0xff]  ;;  %s6676_s25 = scalar_lea.vmem %s15016_s7, %s10145_s22 }
 0xeb3   : >>> { %v6217_v55 = vpop.permute.xlu0 %6216 }
 0xeb4   : >>> { %9112 = vmatprep.subr.mxu0 %v6217_v55  ;;  %9398 = vmatprep.subr.mxu1 %v6217_v55 }
 0xeb5   : >>> { %9113 = vmatpush3.msra.mxu0 %v6185_v10  ;;  %9414 = vmatpush3.msra.mxu1 %v6185_v10 }
 0xeb6   : >>> { %6482 = vmatmul.mubr.f32.vlgmr.msra.gmra.mxu0 %v6090_v58  ;;  %9273 = vmatprep.subr.mxu1 %v1191_v63 }
 0xeb7   : >>> { %6486 = vmatprep.mubr.f32.mxu0 %v6095_v6 }
 0xeba   : >>> { %6487 = vmatmul.mubr.f32.gmra.mxu0 %v6094_v50 }
 0xebb   : >>> { %6491 = vmatprep.mubr.f32.mxu0 %v6099_v33 }
 0xebd   : >>> { %v9852_v57 = vpop.eup %9851 }
 0xebe   : >>> { %6492 = vmatmul.mubr.f32.gmra.mxu0 %v6098_v9  ;;  %v6113_v18 = vmul.f32 %v9852_v57, %v14328_v52  ;;  %v6112_v11 = vmul.f32 %v9852_v57, %v14325_v28  ;;  %v6115_v54 = vmul.f32 %v9852_v57, %v14341_v15  ;;  %v6114_v30 = vmul.f32 %v9852_v57, %v15471_v37 }
 0xebf   : >>> { %6496 = vmatprep.mubr.f32.mxu0 %v6103_v23 }
 0xec0   : >>> { %6406 = vmatprep.mubr.f32.mxu1 %v6113_v18 }
 0xec1   : >>> { %6407 = vmatmul.mubr.f32.gmra.mxu1 %v6112_v11 }
 0xec2   : >>> { %6411 = vmatprep.mubr.f32.mxu1 %v6117_v62  ;;  %6497 = vmatmul.mubr.f32.gmra.mxu0 %v6102_v21 }
 0xec3   : >>> { %6501 = vmatprep.mubr.f32.mxu0 %v6107_v34 }
 0xec5   : >>> { %6412 = vmatmul.mubr.f32.gmra.mxu1 %v6116_v17 }
 0xec6   : >>> { %6502 = vmatmul.mubr.f32.gmra.mxu0 %v6106_v40  ;;  %6511 = vmatprep.mubr.f32.mxu1 %v6115_v54 }
 0xec7   : >>> { %6506 = vmatprep.mubr.f32.mxu0 %v6111_v27 }
 0xec9   : >>> { %6512 = vmatmul.mubr.f32.vlgmr.msra.gmra.mxu1 %v6114_v30 }
 0xeca   : >>> { %6507 = vmatmul.mubr.f32.gmra.mxu0 %v6110_v32  ;;  %6516 = vmatprep.mubr.f32.mxu1 %v6119_v13  ;;  %v15475_v32 = vld [vmem:[#allocation51_spill] sm:$0xff]  ;;  %v8229_v13 = vld [vmem:[%s6676_s25] ss:$0 sm:$0xff] }
 0xecb   : >>> { %9274 = vmatpush3.msra.mxu1 %v1191_v63 }
 0xecd   : >>> { %6517 = vmatmul.mubr.f32.gmra.mxu1 %v6118_v38  ;;  %v6660_v38 = vld [vmem:[%s14458_s27] sm:$0xff] }
 0xf2c   : >>> { %v9058_v51 = vpop.f32.mrf.mxu1 }
 0xf2e   : >>> { %v9059_v4 = vpop.f32.mrf.mxu1 }
 0xf2f   : >>> { %v9060_v14 = vadd.f32 %v9059_v4, %v9058_v51  ;;  %v15476_v51 = vld [vmem:[#allocation17_spill] sm:$0xff] }
 0xf30   : >>> { %v9061_v20 = vpop.f32.mrf.mxu1 }
 0xf32   : >>> { %v9062_v49 = vpop.f32.mrf.mxu1 }
 0xf33   : >>> { %v9063_v59 = vadd.f32 %v9062_v49, %v9061_v20 }
 0xf34   : >>> { %v9064_v47 = vpop.f32.mrf.mxu1 }
 0xf36   : >>> { %v9065_v28 = vpop.f32.mrf.mxu1 }
 0xf37   : >>> { %v9066_v16 = vadd.f32 %v9065_v28, %v9064_v47 }
 0xf38   : >>> { %v9067_v52 = vpop.f32.mrf.mxu1 }
 0xf3a   : >>> { %v9068_v36 = vpop.f32.mrf.mxu1 }
 0xf3b   : >>> { %v9069_v1 = vadd.f32 %v9068_v36, %v9067_v52  ;;  %v6663_v52 = vld [vmem:[%s14458_s27 + $0x18] sm:$0xff]  ;;  %v15477_v36 = vld [vmem:[#allocation49_spill] sm:$0xff] }
 0xf3c   : >>> { %v9070_v56 = vpop.f32.mrf.mxu1 }
 0xf3e   : >>> { %v9071_v15 = vpop.f32.mrf.mxu1 }
 0xf3f   : >>> { %v9072_v6 = vadd.f32 %v9071_v15, %v9070_v56  ;;  %v6662_v15 = vld [vmem:[%s14458_s27 + $0x10] sm:$0xff] }
 0xf40   : >>> { %v9073_v25 = vpop.f32.mrf.mxu1 }
 0xf42   : >>> { %v9074_v12 = vpop.f32.mrf.mxu1 }
 0xf43   : >>> { %v9075_v11 = vadd.f32 %v9074_v12, %v9073_v25 }
 0xf76   : >>> { %v9114_v0 = vpop.f32.mrf.mxu0 }
 0xf78   : >>> { %v9115_v44 = vpop.f32.mrf.mxu0 }
 0xf79   : >>> { %v9116_v29 = vadd.f32 %v9115_v44, %v9114_v0 }
 0xf7a   : >>> { %v9117_v22 = vpop.f32.mrf.mxu0 }
 0xf7b   : >>> { %v6484_v60 = vadd.f32 %v9116_v29, %v9060_v14  ;;  %v15478_v14 = vld [vmem:[#allocation41_spill] sm:$0xff] }
 0xf7c   : >>> { %v9118_v43 = vpop.f32.mrf.mxu0 }
 0xf7d   : >>> { %v9119_v35 = vadd.f32 %v9118_v43, %v9117_v22  ;;  %9275 = vmatprep.mubr.msk.f32.mxu1 %vm1457_vm2, %v6484_v60 }
 0xf7e   : >>> { %v9120_v53 = vpop.f32.mrf.mxu0 }
 0xf7f   : >>> { %v6489_v3 = vadd.f32 %v9119_v35, %v9063_v59  ;;  %v6665_v59 = vld [vmem:[%s14458_s27 + $0x28] sm:$0xff]  ;;  %v15479_v35 = vld [vmem:[#allocation19_spill] sm:$0xff] }
 0xf80   : >>> { %v9121_v39 = vpop.f32.mrf.mxu0 }
 0xf81   : >>> { %v9122_v19 = vadd.f32 %v9121_v39, %v9120_v53  ;;  %v9076_v8 = vpop.f32.mrf.mxu1  ;;  %9276 = vmatmul.mubr.msk.f32.vlgmr.msra.gmra.mxu1 %vm1457_vm2, %v6489_v3  ;;  %v6664_v3 = vld [vmem:[%s14458_s27 + $0x20] sm:$0xff] }
 0xf82   : >>> { %v9123_v61 = vpop.f32.mrf.mxu0 }
 0xf83   : >>> { %v6494_v41 = vadd.f32 %v9122_v19, %v9066_v16  ;;  %v9077_v31 = vpop.f32.mrf.mxu1  ;;  %v15480_v16 = vld [vmem:[#allocation21_spill] sm:$0xff] }
 0xf84   : >>> { %v9124_v48 = vpop.f32.mrf.mxu0  ;;  %v9078_v34 = vadd.f32 %v9077_v31, %v9076_v8 }
 0xf85   : >>> { %v9125_v45 = vadd.f32 %v9124_v48, %v9123_v61  ;;  %v9079_v5 = vpop.f32.mrf.mxu1  ;;  %9278 = vmatprep.mubr.msk.f32.mxu1 %vm1457_vm2, %v6494_v41  ;;  %v6667_v61 = vld [vmem:[%s14458_s27 + $0x38] sm:$0xff] }
 0xf86   : >>> { %v9126_v7 = vpop.f32.mrf.mxu0  ;;  %v15481_v48 = vld [vmem:[#allocation43_spill] sm:$0xff] }
 0xf87   : >>> { %v6499_v10 = vadd.f32 %v9125_v45, %v9069_v1  ;;  %v9080_v55 = vpop.f32.mrf.mxu1 }
 0xf88   : >>> { %v9127_v58 = vpop.f32.mrf.mxu0  ;;  %v9081_v54 = vadd.f32 %v9080_v55, %v9079_v5  ;;  %v6666_v5 = vld [vmem:[%s14458_s27 + $0x30] sm:$0xff] }
 0xf89   : >>> { %v9128_v50 = vadd.f32 %v9127_v58, %v9126_v7  ;;  %v9132_v33 = vpop.f32.mrf.mxu1  ;;  %9279 = vmatmul.mubr.msk.f32.gmra.mxu1 %vm1457_vm2, %v6499_v10  ;;  %v15482_v55 = vld [vmem:[#allocation30_spill] sm:$0xff] }
 0xf8a   : >>> { %v9129_v2 = vpop.f32.mrf.mxu0 }
 0xf8b   : >>> { %v6504_v9 = vadd.f32 %v9128_v50, %v9072_v6  ;;  %v9133_v57 = vpop.f32.mrf.mxu1 }
 0xf8c   : >>> { %v9134_v23 = vadd.f32 %v9133_v57, %v9132_v33  ;;  %v9130_v18 = vpop.f32.mrf.mxu0 }
 0xf8d   : >>> { %v9131_v62 = vadd.f32 %v9130_v18, %v9129_v2  ;;  %v9135_v21 = vpop.f32.mrf.mxu1  ;;  %9281 = vmatprep.mubr.msk.f32.mxu1 %vm1457_vm2, %v6504_v9 }
 0xf8e   : >>> { %v6514_v26 = vadd.f32 %v9134_v23, %v9078_v34 }
 0xf8f   : >>> { %v6509_v17 = vadd.f32 %v9131_v62, %v9075_v11  ;;  %v9136_v40 = vpop.f32.mrf.mxu1 }
 0xf90   : >>> { %v9137_v27 = vadd.f32 %v9136_v40, %v9135_v21 }
 0xf91   : >>> { %9282 = vmatmul.mubr.msk.f32.gmra.mxu1 %vm1457_vm2, %v6509_v17 }
 0xf92   : >>> { %v6519_v37 = vadd.f32 %v9137_v27, %v9081_v54  ;;  %9284 = vmatprep.mubr.msk.f32.mxu1 %vm1457_vm2, %v6514_v26 }
 0xf95   : >>> { %9285 = vmatmul.mubr.msk.f32.gmra.mxu1 %vm1457_vm2, %v6519_v37 }
0x1041   : >>> { %v9277_v30 = vpop.f32.mrf.mxu1 }
0x1042   : >>> { %v6652_v24 = vadd.f32 %v9277_v30, %v15475_v32 }
0x1043   : >>> { %v6612_v46 = vpop.f32.mrf.mxu1 }
0x1044   : >>> { %v6669_v63 = vadd.f32 %v6661_v42, %v6652_v24  ;;  %v6651_v4 = vadd.f32 %v6612_v46, %v15476_v51 }
0x1046   : >>> { %v6685_v20 = vadd.f32 %v8229_v13, %v6669_v63  ;;  %v6668_v49 = vadd.f32 %v6660_v38, %v6651_v4 }
0x1048   : >>> { %6693 = vst.msk [vmem:[%s14458_s27 + $0x8] sm:$0xff] %vm601_vm0, %v6685_v20  ;;  %v6684_v47 = vadd.f32 %v8229_v13, %v6668_v49 }
0x1049   : >>> { %v9280_v28 = vpop.f32.mrf.mxu1 }
0x104a   : >>> { %6692 = vst.msk [vmem:[%s14458_s27] sm:$0xff] %vm601_vm0, %v6684_v47  ;;  %v6654_v56 = vadd.f32 %v9280_v28, %v15477_v36 }
0x104b   : >>> { %v6622_v0 = vpop.f32.mrf.mxu1 }
0x104c   : >>> { %v6671_v44 = vadd.f32 %v6663_v52, %v6654_v56  ;;  %v6653_v29 = vadd.f32 %v6622_v0, %v15478_v14 }
0x104e   : >>> { %v6687_v22 = vadd.f32 %v8229_v13, %v6671_v44  ;;  %v6670_v25 = vadd.f32 %v6662_v15, %v6653_v29 }
0x1050   : >>> { %6695 = vst.msk [vmem:[%s14458_s27 + $0x18] sm:$0xff] %vm601_vm0, %v6687_v22  ;;  %v6686_v60 = vadd.f32 %v8229_v13, %v6670_v25 }
0x1051   : >>> { %v9283_v43 = vpop.f32.mrf.mxu1 }
0x1052   : >>> { %6694 = vst.msk [vmem:[%s14458_s27 + $0x10] sm:$0xff] %vm601_vm0, %v6686_v60  ;;  %v6656_v53 = vadd.f32 %v9283_v43, %v15479_v35 }
0x1053   : >>> { %v6632_v12 = vpop.f32.mrf.mxu1 }
0x1054   : >>> { %v6673_v39 = vadd.f32 %v6665_v59, %v6656_v53  ;;  %v6655_v19 = vadd.f32 %v6632_v12, %v15480_v16 }
0x1055   : >>> { %v9286_v8 = vpop.f32.mrf.mxu1 }
0x1056   : >>> { %v6689_v41 = vadd.f32 %v8229_v13, %v6673_v39  ;;  %v6672_v31 = vadd.f32 %v6664_v3, %v6655_v19  ;;  %v6658_v1 = vadd.f32 %v9286_v8, %v15481_v48 }
0x1057   : >>> { %v6642_v45 = vpop.f32.mrf.mxu1 }
0x1058   : >>> { %6697 = vst.msk [vmem:[%s14458_s27 + $0x28] sm:$0xff] %vm601_vm0, %v6689_v41  ;;  %v6688_v7 = vadd.f32 %v8229_v13, %v6672_v31  ;;  %v6675_v10 = vadd.f32 %v6667_v61, %v6658_v1  ;;  %v6657_v58 = vadd.f32 %v6642_v45, %v15482_v55 }
0x105a   : >>> { %6696 = vst.msk [vmem:[%s14458_s27 + $0x20] sm:$0xff] %vm601_vm0, %v6688_v7  ;;  %v6691_v6 = vadd.f32 %v8229_v13, %v6675_v10  ;;  %v6674_v50 = vadd.f32 %v6666_v5, %v6657_v58  ;;  %1182 = sbr.rel (!%p1180_p5) target bundleno = 597 (0x255), region = 173 }
0x105c   : >>> { %6699 = vst.msk [vmem:[%s14458_s27 + $0x38] sm:$0xff] %vm601_vm0, %v6691_v6  ;;  %v6690_v33 = vadd.f32 %v8229_v13, %v6674_v50 }
0x105e   : >>> { %6698 = vst.msk [vmem:[%s14458_s27 + $0x30] sm:$0xff] %vm601_vm0, %v6690_v33 }
0x105f LB: >>> { %s8230_s28 = sshll.u32 %s10157_s23, 7  ;;  %s6982_s19 = scalar_lea.vmem %s15019_s10, %s10575_s26  ;;  %s10157_s23 = sphi %s14495_s23, %s6705_s23  }
0x1060   : >>> { %s14501_s29 = scalar_lea.vmem [#allocation2], %s8230_s28  ;;  %s8251_s17 = sshll.u32 %s10145_s22, 7 }
0x1061   : >>> { %s14687_s27 = scalar_lea.vmem %s15021_s12, %s8251_s17  ;;  %s6724_s30 = scalar_lea.vmem %s15017_s8, %s10145_s22 }
0x1062   : >>> { %s6726_s18 = scalar_lea.vmem %s15018_s9, %s10145_s22  ;;  %s6987_s24 = scalar_lea.vmem %s15020_s11, %s10145_s22 }
0x1063   : >>> { %s6705_s23 = sadd.s32 1, %s10157_s23  }
0x1064   : >>> { %p6702_p6 = scmp.ge.s32.totalorder %s6705_s23, 4  }
0x1065   : >>> { %v14504_v2 = vld [vmem:[%s14501_s29] sm:$0xff]  ;;  %v14507_v9 = vld [vmem:[%s14501_s29 + $0x10] sm:$0xff]  ;;  %v14510_v57 = vld [vmem:[%s14501_s29 + $0x8] sm:$0xff] }
0x1066   : >>> { %v6728_v23 = vsel %vm601_vm0, %v14504_v2, 0.0  ;;  %v6734_v18 = vsel %vm601_vm0, %v14507_v9, 0.0  ;;  %v14517_v11 = vld [vmem:[%s14501_s29 + $0x18] sm:$0xff]  ;;  %v6731_v62 = vsel %vm601_vm0, %v14510_v57, 0.0  ;;  %v14524_v34 = vld [vmem:[%s14501_s29 + $0x20] sm:$0xff]  ;;  %v14527_v17 = vld [vmem:[%s14501_s29 + $0x28] sm:$0xff] }
0x1067   : >>> { %6729 = vadd.xlane.f32.xlu0 %v6728_v23  ;;  %6735 = vadd.xlane.f32.xlu1 %v6734_v18  ;;  %v6737_v21 = vsel %vm601_vm0, %v14517_v11, 0.0  ;;  %v6740_v40 = vsel %vm601_vm0, %v14524_v34, 0.0  ;;  %v6743_v54 = vsel %vm601_vm0, %v14527_v17, 0.0  ;;  %v14534_v26 = vld [vmem:[%s14501_s29 + $0x30] sm:$0xff]  ;;  %v14537_v27 = vld [vmem:[%s14501_s29 + $0x38] sm:$0xff]  ;;  %v14544_v42 = vld [vmem:[%s14501_s29 + $0x40] sm:$0xff] }
0x1068   : >>> { %v6746_v37 = vsel %vm601_vm0, %v14534_v26, 0.0  ;;  %v6749_v30 = vsel %vm601_vm0, %v14537_v27, 0.0  ;;  %v14547_v32 = vld [vmem:[%s14501_s29 + $0x48] sm:$0xff]  ;;  %v6752_v24 = vsel %vm601_vm0, %v14544_v42, 0.0  ;;  %v14554_v46 = vld [vmem:[%s14501_s29 + $0x50] sm:$0xff]  ;;  %v14557_v38 = vld [vmem:[%s14501_s29 + $0x58] sm:$0xff] }
0x1069   : >>> { %v6755_v13 = vsel %vm601_vm0, %v14547_v32, 0.0  ;;  %v6758_v63 = vsel %vm601_vm0, %v14554_v46, 0.0  ;;  %v6761_v51 = vsel %vm601_vm0, %v14557_v38, 0.0  ;;  %v14564_v4 = vld [vmem:[%s14501_s29 + $0x60] sm:$0xff]  ;;  %v14567_v20 = vld [vmem:[%s14501_s29 + $0x68] sm:$0xff]  ;;  %v14574_v28 = vld [vmem:[%s14501_s29 + $0x70] sm:$0xff] }
0x106a   : >>> { %v6764_v49 = vsel %vm601_vm0, %v14564_v4, 0.0  ;;  %v6767_v47 = vsel %vm601_vm0, %v14567_v20, 0.0  ;;  %v14577_v52 = vld [vmem:[%s14501_s29 + $0x78] sm:$0xff]  ;;  %v6770_v36 = vsel %vm601_vm0, %v14574_v28, 0.0 }
0x106b   : >>> { %6732 = vadd.xlane.f32.xlu0 %v6731_v62  ;;  %6738 = vadd.xlane.f32.xlu1 %v6737_v21  ;;  %v6773_v56 = vsel %vm601_vm0, %v14577_v52, 0.0 }
0x106f   : >>> { %6741 = vadd.xlane.f32.xlu0 %v6740_v40  ;;  %6744 = vadd.xlane.f32.xlu1 %v6743_v54 }
0x1073   : >>> { %6747 = vadd.xlane.f32.xlu0 %v6746_v37  ;;  %6750 = vadd.xlane.f32.xlu1 %v6749_v30 }
0x1077   : >>> { %6753 = vadd.xlane.f32.xlu0 %v6752_v24  ;;  %6756 = vadd.xlane.f32.xlu1 %v6755_v13 }
0x107b   : >>> { %6759 = vadd.xlane.f32.xlu0 %v6758_v63  ;;  %6762 = vadd.xlane.f32.xlu1 %v6761_v51 }
0x107f   : >>> { %6765 = vadd.xlane.f32.xlu0 %v6764_v49  ;;  %6768 = vadd.xlane.f32.xlu1 %v6767_v47 }
0x1083   : >>> { %6771 = vadd.xlane.f32.xlu0 %v6770_v36  ;;  %6774 = vadd.xlane.f32.xlu1 %v6773_v56 }
0x10f0   : >>> { %v6730_v0 = vpop.xlane.xlu0 %6729  ;;  %v6736_v15 = vpop.xlane.xlu1 %6735 }
0x10f1   : >>> { %v6777_v44 = vmul.f32 0.03125, %v6730_v0  ;;  %v6779_v14 = vmul.f32 0.03125, %v6736_v15 }
0x10f3   : >>> { %v14584_v29 = vsub.f32 %v14504_v2, %v6777_v44  ;;  %v14587_v22 = vsub.f32 %v14507_v9, %v6779_v14 }
0x10f4   : >>> { %v6733_v25 = vpop.xlane.xlu0 %6732  ;;  %v6739_v60 = vpop.xlane.xlu1 %6738 }
0x10f5   : >>> { %v6778_v43 = vmul.f32 0.03125, %v6733_v25  ;;  %v6780_v59 = vmul.f32 0.03125, %v6739_v60  ;;  %v6809_v35 = vmul.f32 %v14584_v29, %v14584_v29  ;;  %v6811_v53 = vmul.f32 %v14587_v22, %v14587_v22 }
0x10f7   : >>> { %v14594_v12 = vsub.f32 %v14510_v57, %v6778_v43  ;;  %v14597_v3 = vsub.f32 %v14517_v11, %v6780_v59  ;;  %v6825_v39 = vsel %vm601_vm0, %v6809_v35, 0.0  ;;  %v6831_v8 = vsel %vm601_vm0, %v6811_v53, 0.0 }
0x10f8   : >>> { %6826 = vadd.xlane.f32.xlu0 %v6825_v39  ;;  %v6742_v16 = vpop.xlane.xlu0 %6741  ;;  %v6745_v19 = vpop.xlane.xlu1 %6744 }
0x10f9   : >>> { %v6781_v61 = vmul.f32 0.03125, %v6742_v16  ;;  %v6782_v41 = vmul.f32 0.03125, %v6745_v19  ;;  %v6810_v31 = vmul.f32 %v14594_v12, %v14594_v12  ;;  %v6812_v48 = vmul.f32 %v14597_v3, %v14597_v3 }
0x10fb   : >>> { %v14606_v1 = vsub.f32 %v14524_v34, %v6781_v61  ;;  %v14609_v45 = vsub.f32 %v14527_v17, %v6782_v41  ;;  %v6828_v5 = vsel %vm601_vm0, %v6810_v31, 0.0  ;;  %v6834_v55 = vsel %vm601_vm0, %v6812_v48, 0.0 }
0x10fc   : >>> { %6832 = vadd.xlane.f32.xlu0 %v6831_v8  ;;  %6829 = vadd.xlane.f32.xlu1 %v6828_v5  ;;  %v6748_v7 = vpop.xlane.xlu0 %6747  ;;  %v6751_v10 = vpop.xlane.xlu1 %6750 }
0x10fd   : >>> { %v6783_v58 = vmul.f32 0.03125, %v6748_v7  ;;  %v6784_v6 = vmul.f32 0.03125, %v6751_v10  ;;  %v6813_v50 = vmul.f32 %v14606_v1, %v14606_v1  ;;  %v6814_v33 = vmul.f32 %v14609_v45, %v14609_v45 }
0x10ff   : >>> { %v14618_v23 = vsub.f32 %v14534_v26, %v6783_v58  ;;  %v14621_v18 = vsub.f32 %v14537_v27, %v6784_v6  ;;  %v6837_v62 = vsel %vm601_vm0, %v6813_v50, 0.0  ;;  %v6840_v54 = vsel %vm601_vm0, %v6814_v33, 0.0 }
0x1100   : >>> { %6835 = vadd.xlane.f32.xlu1 %v6834_v55  ;;  %6838 = vadd.xlane.f32.xlu0 %v6837_v62  ;;  %v6754_v21 = vpop.xlane.xlu0 %6753  ;;  %v6757_v40 = vpop.xlane.xlu1 %6756 }
0x1101   : >>> { %v6785_v37 = vmul.f32 0.03125, %v6754_v21  ;;  %v6786_v30 = vmul.f32 0.03125, %v6757_v40  ;;  %v6815_v24 = vmul.f32 %v14618_v23, %v14618_v23  ;;  %v6816_v13 = vmul.f32 %v14621_v18, %v14621_v18 }
0x1103   : >>> { %v14630_v63 = vsub.f32 %v14544_v42, %v6785_v37  ;;  %v14633_v51 = vsub.f32 %v14547_v32, %v6786_v30  ;;  %v6843_v49 = vsel %vm601_vm0, %v6815_v24, 0.0  ;;  %v6846_v56 = vsel %vm601_vm0, %v6816_v13, 0.0  ;;  %v6986_v24 = vld [vmem:[%s6982_s19 + $0x18] sm:$0xff]  ;;  %v6985_v13 = vld [vmem:[%s6982_s19 + $0x10] sm:$0xff] }
0x1104   : >>> { %6841 = vadd.xlane.f32.xlu1 %v6840_v54  ;;  %6844 = vadd.xlane.f32.xlu0 %v6843_v49  ;;  %v6760_v47 = vpop.xlane.xlu0 %6759  ;;  %v6763_v36 = vpop.xlane.xlu1 %6762  ;;  %v6984_v49 = vld [vmem:[%s6982_s19 + $0x8] sm:$0xff] }
0x1105   : >>> { %v6787_v0 = vmul.f32 0.03125, %v6760_v47  ;;  %v6788_v15 = vmul.f32 0.03125, %v6763_v36  ;;  %v6817_v44 = vmul.f32 %v14630_v63, %v14630_v63  ;;  %v6818_v14 = vmul.f32 %v14633_v51, %v14633_v51  ;;  %9287 = vmatprep.subr.mxu0 %v6986_v24  ;;  %v6983_v47 = vld [vmem:[%s6982_s19] sm:$0xff]  ;;  %v14690_v36 = vld [vmem:[%s14687_s27 + $0x78] sm:$0xff]  ;;  %s7222_s19 = scalar_lea.vmem %s15022_s13, %s10145_s22  ;;  %s671_s22 = sadd.s32 (%p6702_p6), 1, %s10145_s22  }
0x1106   : >>> { %9288 = vmatpush3.msra.mxu0 %v6986_v24  ;;  %9415 = vmatprep.subr.mxu1 %v14690_v36  ;;  %p668_p7 = scmp.ge.s32.totalorder (%p6702_p6), %s671_s22, 5  }
0x1107   : >>> { %v14642_v25 = vsub.f32 %v14554_v46, %v6787_v0  ;;  %v14645_v60 = vsub.f32 %v14557_v38, %v6788_v15  ;;  %v6849_v43 = vsel %vm601_vm0, %v6817_v44, 0.0  ;;  %v6852_v53 = vsel %vm601_vm0, %v6818_v14, 0.0  ;;  %9289 = vmatprep.subr.mxu0 %v6985_v13  ;;  %9431 = vmatpush3.msra.mxu1 %v14690_v36  ;;  %v14700_v0 = vld [vmem:[%s14687_s27 + $0x68] sm:$0xff]  ;;  %v14705_v15 = vld [vmem:[%s14687_s27 + $0x60] sm:$0xff]  ;;  %v14710_v44 = vld [vmem:[%s14687_s27 + $0x58] sm:$0xff] }
0x1108   : >>> { %6847 = vadd.xlane.f32.xlu1 %v6846_v56  ;;  %6850 = vadd.xlane.f32.xlu0 %v6849_v43  ;;  %v6766_v59 = vpop.xlane.xlu0 %6765  ;;  %v6769_v35 = vpop.xlane.xlu1 %6768  ;;  %v14695_v56 = vld [vmem:[%s14687_s27 + $0x70] sm:$0xff]  ;;  %v14720_v43 = vld [vmem:[%s14687_s27 + $0x48] sm:$0xff] }
0x1109   : >>> { %v6789_v39 = vmul.f32 0.03125, %v6766_v59  ;;  %v6790_v16 = vmul.f32 0.03125, %v6769_v35  ;;  %v6819_v19 = vmul.f32 %v14642_v25, %v14642_v25  ;;  %v6820_v8 = vmul.f32 %v14645_v60, %v14645_v60  ;;  %9290 = vmatpush3.msra.mxu0 %v6985_v13  ;;  %9416 = vmatprep.subr.mxu1 %v14695_v56  ;;  %v14715_v14 = vld [vmem:[%s14687_s27 + $0x50] sm:$0xff]  ;;  %v14725_v59 = vld [vmem:[%s14687_s27 + $0x40] sm:$0xff]  ;;  %v14730_v35 = vld [vmem:[%s14687_s27 + $0x38] sm:$0xff] }
0x110a   : >>> { %9291 = vmatprep.subr.mxu0 %v6984_v49  ;;  %9432 = vmatpush3.msra.mxu1 %v14695_v56 }
0x110b   : >>> { %v14654_v61 = vsub.f32 %v14564_v4, %v6789_v39  ;;  %v14657_v41 = vsub.f32 %v14567_v20, %v6790_v16  ;;  %v6855_v31 = vsel %vm601_vm0, %v6819_v19, 0.0  ;;  %v6858_v7 = vsel %vm601_vm0, %v6820_v8, 0.0  ;;  %9292 = vmatpush3.msra.mxu0 %v6984_v49  ;;  %9417 = vmatprep.subr.mxu1 %v14700_v0  ;;  %v14740_v39 = vld [vmem:[%s14687_s27 + $0x28] sm:$0xff]  ;;  %v14745_v16 = vld [vmem:[%s14687_s27 + $0x20] sm:$0xff] }
0x110c   : >>> { %6853 = vadd.xlane.f32.xlu1 %v6852_v53  ;;  %6856 = vadd.xlane.f32.xlu0 %v6855_v31  ;;  %v6772_v48 = vpop.xlane.xlu0 %6771  ;;  %v6775_v5 = vpop.xlane.xlu1 %6774  ;;  %v14735_v53 = vld [vmem:[%s14687_s27 + $0x30] sm:$0xff] }
0x110d   : >>> { %v6791_v10 = vmul.f32 0.03125, %v6772_v48  ;;  %v6792_v55 = vmul.f32 0.03125, %v6775_v5  ;;  %v6821_v58 = vmul.f32 %v14654_v61, %v14654_v61  ;;  %v6822_v6 = vmul.f32 %v14657_v41, %v14657_v41  ;;  %9293 = vmatprep.subr.mxu0 %v6983_v47  ;;  %9433 = vmatpush3.msra.mxu1 %v14700_v0 }
0x110e   : >>> { %9294 = vmatpush3.msra.mxu0 %v6983_v47  ;;  %9418 = vmatprep.subr.mxu1 %v14705_v15 }
0x110f   : >>> { %v14666_v50 = vsub.f32 %v14574_v28, %v6791_v10  ;;  %v14669_v33 = vsub.f32 %v14577_v52, %v6792_v55  ;;  %v6861_v62 = vsel %vm601_vm0, %v6821_v58, 0.0  ;;  %v6864_v21 = vsel %vm601_vm0, %v6822_v6, 0.0  ;;  %9319 = vmatprep.subr.mxu0 %v14690_v36  ;;  %9434 = vmatpush3.msra.mxu1 %v14705_v15 }
0x1110   : >>> { %6859 = vadd.xlane.f32.xlu1 %v6858_v7  ;;  %6862 = vadd.xlane.f32.xlu0 %v6861_v62 }
0x1111   : >>> { %v6823_v40 = vmul.f32 %v14666_v50, %v14666_v50  ;;  %v6824_v54 = vmul.f32 %v14669_v33, %v14669_v33  ;;  %9419 = vmatprep.subr.mxu1 %v14710_v44 }
0x1112   : >>> { %9435 = vmatpush3.msra.mxu1 %v14710_v44 }
0x1113   : >>> { %v6867_v37 = vsel %vm601_vm0, %v6823_v40, 0.0  ;;  %v6870_v30 = vsel %vm601_vm0, %v6824_v54, 0.0  ;;  %9420 = vmatprep.subr.mxu1 %v14715_v14 }
0x1114   : >>> { %6865 = vadd.xlane.f32.xlu1 %v6864_v21  ;;  %6868 = vadd.xlane.f32.xlu0 %v6867_v37 }
0x1115   : >>> { %9436 = vmatpush3.msra.mxu1 %v14715_v14 }
0x1116   : >>> { %9421 = vmatprep.subr.mxu1 %v14720_v43 }
0x1117   : >>> { %9437 = vmatpush3.msra.mxu1 %v14720_v43 }
0x1118   : >>> { %6871 = vadd.xlane.f32.xlu1 %v6870_v30  ;;  %9422 = vmatprep.subr.mxu1 %v14725_v59 }
0x1119   : >>> { %9438 = vmatpush3.msra.mxu1 %v14725_v59 }
0x111a   : >>> { %9423 = vmatprep.subr.mxu1 %v14730_v35 }
0x111b   : >>> { %9439 = vmatpush3.msra.mxu1 %v14730_v35 }
0x111c   : >>> { %9424 = vmatprep.subr.mxu1 %v14735_v53 }
0x111d   : >>> { %9440 = vmatpush3.msra.mxu1 %v14735_v53 }
0x111e   : >>> { %9425 = vmatprep.subr.mxu1 %v14740_v39 }
0x111f   : >>> { %9441 = vmatpush3.msra.mxu1 %v14740_v39 }
0x1120   : >>> { %9426 = vmatprep.subr.mxu1 %v14745_v16 }
0x1121   : >>> { %9442 = vmatpush3.msra.mxu1 %v14745_v16 }
0x1181   : >>> { %v6827_v19 = vpop.xlane.xlu0 %6826 }
0x1182   : >>> { %v6873_v8 = vmul.f32 0.03125, %v6827_v19 }
0x1184   : >>> { %v6889_v31 = vadd.f32 1e-05, %v6873_v8 }
0x1185   : >>> { %v6830_v48 = vpop.xlane.xlu1 %6829  ;;  %v6833_v5 = vpop.xlane.xlu0 %6832 }
0x1186   : >>> { %10087 = vrsqrt.f32 %v6889_v31  ;;  %v6874_v7 = vmul.f32 0.03125, %v6830_v48  ;;  %v6875_v10 = vmul.f32 0.03125, %v6833_v5 }
0x1188   : >>> { %v6890_v55 = vadd.f32 1e-05, %v6874_v7  ;;  %v6891_v58 = vadd.f32 1e-05, %v6875_v10  ;;  %v14758_v10 = vld [vmem:[%s6724_s30] ss:$0 sm:$0xff] }
0x1189   : >>> { %v6836_v6 = vpop.xlane.xlu1 %6835  ;;  %v6839_v62 = vpop.xlane.xlu0 %6838 }
0x118a   : >>> { %10089 = vrsqrt.f32 %v6890_v55  ;;  %v6876_v21 = vmul.f32 0.03125, %v6836_v6  ;;  %v6877_v40 = vmul.f32 0.03125, %v6839_v62 }
0x118b   : >>> { %10091 = vrsqrt.f32 %v6891_v58 }
0x118c   : >>> { %v6892_v54 = vadd.f32 1e-05, %v6876_v21  ;;  %v6893_v37 = vadd.f32 1e-05, %v6877_v40  ;;  %v14761_v40 = vld [vmem:[%s6726_s18] ss:$0 sm:$0xff] }
0x118d   : >>> { %v6842_v30 = vpop.xlane.xlu1 %6841  ;;  %v6845_v24 = vpop.xlane.xlu0 %6844 }
0x118e   : >>> { %10093 = vrsqrt.f32 %v6892_v54  ;;  %v6878_v13 = vmul.f32 0.03125, %v6842_v30  ;;  %v6879_v49 = vmul.f32 0.03125, %v6845_v24 }
0x118f   : >>> { %10095 = vrsqrt.f32 %v6893_v37 }
0x1190   : >>> { %v6894_v47 = vadd.f32 1e-05, %v6878_v13  ;;  %v6895_v19 = vadd.f32 1e-05, %v6879_v49 }
0x1191   : >>> { %v6848_v8 = vpop.xlane.xlu1 %6847  ;;  %v6851_v31 = vpop.xlane.xlu0 %6850 }
0x1192   : >>> { %10097 = vrsqrt.f32 %v6894_v47  ;;  %v6880_v48 = vmul.f32 0.03125, %v6848_v8  ;;  %v6881_v5 = vmul.f32 0.03125, %v6851_v31 }
0x1193   : >>> { %v10088_v7 = vpop.eup %10087  ;;  %10099 = vrsqrt.f32 %v6895_v19 }
0x1194   : >>> { %v6896_v55 = vadd.f32 1e-05, %v6880_v48  ;;  %v6897_v58 = vadd.f32 1e-05, %v6881_v5  ;;  %v6921_v6 = vmul.f32 %v10088_v7, %v14584_v29 }
0x1195   : >>> { %v6854_v62 = vpop.xlane.xlu1 %6853  ;;  %v6857_v21 = vpop.xlane.xlu0 %6856 }
0x1196   : >>> { %10101 = vrsqrt.f32 %v6896_v55  ;;  %v6882_v54 = vmul.f32 0.03125, %v6854_v62  ;;  %v6883_v37 = vmul.f32 0.03125, %v6857_v21  ;;  %v6943_v30 = vmul.f32 %v14758_v10, %v6921_v6 }
0x1197   : >>> { %v10090_v24 = vpop.eup %10089  ;;  %10103 = vrsqrt.f32 %v6897_v58 }
0x1198   : >>> { %v10092_v13 = vpop.eup %10091  ;;  %v6898_v49 = vadd.f32 1e-05, %v6882_v54  ;;  %v6899_v47 = vadd.f32 1e-05, %v6883_v37  ;;  %v6965_v19 = vadd.f32 %v14761_v40, %v6943_v30  ;;  %v6922_v8 = vmul.f32 %v10090_v24, %v14594_v12 }
0x1199   : >>> { %v6860_v31 = vpop.xlane.xlu1 %6859  ;;  %v6863_v29 = vpop.xlane.xlu0 %6862  ;;  %v6923_v48 = vmul.f32 %v10092_v13, %v14587_v22 }
0x119a   : >>> { %10105 = vrsqrt.f32 %v6898_v49  ;;  %v6884_v5 = vmul.f32 0.03125, %v6860_v31  ;;  %v6885_v7 = vmul.f32 0.03125, %v6863_v29  ;;  %9295 = vmatprep.mubr.msk.f32.mxu0 %vm601_vm0, %v6965_v19  ;;  %v6944_v55 = vmul.f32 %v14758_v10, %v6922_v8 }
0x119b   : >>> { %v10094_v6 = vpop.eup %10093  ;;  %10107 = vrsqrt.f32 %v6899_v47  ;;  %v6945_v58 = vmul.f32 %v14758_v10, %v6923_v48 }
0x119c   : >>> { %v10096_v62 = vpop.eup %10095  ;;  %v6900_v21 = vadd.f32 1e-05, %v6884_v5  ;;  %v6901_v54 = vadd.f32 1e-05, %v6885_v7  ;;  %v6966_v12 = vadd.f32 %v14761_v40, %v6944_v55  ;;  %v6924_v37 = vmul.f32 %v10094_v6, %v14597_v3 }
0x119d   : >>> { %v6866_v30 = vpop.xlane.xlu1 %6865  ;;  %v6869_v22 = vpop.xlane.xlu0 %6868  ;;  %v6967_v24 = vadd.f32 %v14761_v40, %v6945_v58  ;;  %v6925_v13 = vmul.f32 %v10096_v62, %v14606_v1 }
0x119e   : >>> { %10109 = vrsqrt.f32 %v6900_v21  ;;  %v6886_v49 = vmul.f32 0.03125, %v6866_v30  ;;  %v6887_v19 = vmul.f32 0.03125, %v6869_v22  ;;  %9296 = vmatmul.mubr.msk.f32.vlgmr.msra.gmra.mxu0 %vm601_vm0, %v6966_v12  ;;  %v6946_v47 = vmul.f32 %v14758_v10, %v6924_v37 }
0x119f   : >>> { %v10098_v8 = vpop.eup %10097  ;;  %10111 = vrsqrt.f32 %v6901_v54  ;;  %9298 = vmatprep.mubr.msk.f32.mxu0 %vm601_vm0, %v6967_v24  ;;  %v6947_v31 = vmul.f32 %v14758_v10, %v6925_v13  ;;  %9320 = vmatpush3.msra.mxu0 %v14690_v36 }
0x11a0   : >>> { %v10100_v3 = vpop.eup %10099  ;;  %v6902_v29 = vadd.f32 1e-05, %v6886_v49  ;;  %v6903_v48 = vadd.f32 1e-05, %v6887_v19  ;;  %v6968_v1 = vadd.f32 %v14761_v40, %v6946_v47  ;;  %v6926_v5 = vmul.f32 %v10098_v8, %v14609_v45  ;;  %9321 = vmatprep.subr.mxu0 %v14695_v56 }
0x11a1   : >>> { %v6872_v7 = vpop.xlane.xlu1 %6871  ;;  %v6969_v55 = vadd.f32 %v14761_v40, %v6947_v31  ;;  %v6927_v6 = vmul.f32 %v10100_v3, %v14618_v23  ;;  %9322 = vmatpush3.msra.mxu0 %v14695_v56 }
0x11a2   : >>> { %10113 = vrsqrt.f32 %v6902_v29  ;;  %v6888_v58 = vmul.f32 0.03125, %v6872_v7  ;;  %9299 = vmatmul.mubr.msk.f32.gmra.mxu0 %vm601_vm0, %v6968_v1  ;;  %v6948_v36 = vmul.f32 %v14758_v10, %v6926_v5  ;;  %9323 = vmatprep.subr.mxu0 %v14700_v0 }
0x11a3   : >>> { %v10102_v62 = vpop.eup %10101  ;;  %10115 = vrsqrt.f32 %v6903_v48  ;;  %9301 = vmatprep.mubr.msk.f32.mxu0 %vm601_vm0, %v6969_v55  ;;  %v6949_v45 = vmul.f32 %v14758_v10, %v6927_v6  ;;  %9324 = vmatpush3.msra.mxu0 %v14700_v0 }
0x11a4   : >>> { %v10104_v21 = vpop.eup %10103  ;;  %v6904_v23 = vadd.f32 1e-05, %v6888_v58  ;;  %v6970_v56 = vadd.f32 %v14761_v40, %v6948_v36  ;;  %v6928_v54 = vmul.f32 %v10102_v62, %v14621_v18  ;;  %9325 = vmatprep.subr.mxu0 %v14705_v15 }
0x11a5   : >>> { %v6971_v12 = vadd.f32 %v14761_v40, %v6949_v45  ;;  %v6929_v37 = vmul.f32 %v10104_v21, %v14630_v63  ;;  %9326 = vmatpush3.msra.mxu0 %v14705_v15 }
0x11a6   : >>> { %10117 = vrsqrt.f32 %v6904_v23  ;;  %9302 = vmatmul.mubr.msk.f32.gmra.mxu0 %vm601_vm0, %v6970_v56  ;;  %v6950_v30 = vmul.f32 %v14758_v10, %v6928_v54  ;;  %9327 = vmatprep.subr.mxu0 %v14710_v44 }
0x11a7   : >>> { %v10106_v0 = vpop.eup %10105  ;;  %9304 = vmatprep.mubr.msk.f32.mxu0 %vm601_vm0, %v6971_v12  ;;  %v6951_v18 = vmul.f32 %v14758_v10, %v6929_v37  ;;  %9328 = vmatpush3.msra.mxu0 %v14710_v44 }
0x11a8   : >>> { %v10108_v22 = vpop.eup %10107  ;;  %v6972_v24 = vadd.f32 %v14761_v40, %v6950_v30  ;;  %v6930_v63 = vmul.f32 %v10106_v0, %v14633_v51  ;;  %9329 = vmatprep.subr.mxu0 %v14715_v14 }
0x11a9   : >>> { %v6973_v15 = vadd.f32 %v14761_v40, %v6951_v18  ;;  %v6931_v13 = vmul.f32 %v10108_v22, %v14642_v25  ;;  %9330 = vmatpush3.msra.mxu0 %v14715_v14 }
0x11aa   : >>> { %9305 = vmatmul.mubr.msk.f32.gmra.mxu0 %vm601_vm0, %v6972_v24  ;;  %v6952_v49 = vmul.f32 %v14758_v10, %v6930_v63  ;;  %9331 = vmatprep.subr.mxu0 %v14720_v43 }
0x11ab   : >>> { %v10110_v44 = vpop.eup %10109  ;;  %9307 = vmatprep.mubr.msk.f32.mxu0 %vm601_vm0, %v6973_v15  ;;  %v6953_v19 = vmul.f32 %v14758_v10, %v6931_v13  ;;  %9332 = vmatpush3.msra.mxu0 %v14720_v43 }
0x11ac   : >>> { %v10112_v51 = vpop.eup %10111  ;;  %v6974_v47 = vadd.f32 %v14761_v40, %v6952_v49  ;;  %v6932_v25 = vmul.f32 %v10110_v44, %v14645_v60  ;;  %9333 = vmatprep.subr.mxu0 %v14725_v59 }
0x11ad   : >>> { %v6975_v14 = vadd.f32 %v14761_v40, %v6953_v19  ;;  %v6933_v8 = vmul.f32 %v10112_v51, %v14654_v61  ;;  %9334 = vmatpush3.msra.mxu0 %v14725_v59 }
0x11ae   : >>> { %9308 = vmatmul.mubr.msk.f32.gmra.mxu0 %vm601_vm0, %v6974_v47  ;;  %v6954_v31 = vmul.f32 %v14758_v10, %v6932_v25  ;;  %9335 = vmatprep.subr.mxu0 %v14730_v35 }
0x11af   : >>> { %v10114_v43 = vpop.eup %10113  ;;  %9310 = vmatprep.mubr.msk.f32.mxu0 %vm601_vm0, %v6975_v14  ;;  %v6955_v3 = vmul.f32 %v14758_v10, %v6933_v8  ;;  %9336 = vmatpush3.msra.mxu0 %v14730_v35 }
0x11b0   : >>> { %v10116_v60 = vpop.eup %10115  ;;  %v6976_v29 = vadd.f32 %v14761_v40, %v6954_v31  ;;  %v6934_v61 = vmul.f32 %v10114_v43, %v14657_v41  ;;  %9337 = vmatprep.subr.mxu0 %v14735_v53 }
0x11b1   : >>> { %v6977_v59 = vadd.f32 %v14761_v40, %v6955_v3  ;;  %v6935_v48 = vmul.f32 %v10116_v60, %v14666_v50  ;;  %9338 = vmatpush3.msra.mxu0 %v14735_v53 }
0x11b2   : >>> { %9311 = vmatmul.mubr.msk.f32.gmra.mxu0 %vm601_vm0, %v6976_v29  ;;  %v6956_v1 = vmul.f32 %v14758_v10, %v6934_v61  ;;  %9339 = vmatprep.subr.mxu0 %v14740_v39 }
0x11b3   : >>> { %v10118_v35 = vpop.eup %10117  ;;  %9313 = vmatprep.mubr.msk.f32.mxu0 %vm601_vm0, %v6977_v59  ;;  %v6957_v41 = vmul.f32 %v14758_v10, %v6935_v48  ;;  %9340 = vmatpush3.msra.mxu0 %v14740_v39  ;;  %v7209_v39 = vld [vmem:[%s14687_s27 + $0x18] sm:$0xff] }
0x11b4   : >>> { %v6978_v5 = vadd.f32 %v14761_v40, %v6956_v1  ;;  %v6936_v50 = vmul.f32 %v10118_v35, %v14669_v33  ;;  %9341 = vmatprep.subr.mxu0 %v14745_v16  ;;  %9427 = vmatprep.subr.mxu1 %v7209_v39  ;;  %v7208_v33 = vld [vmem:[%s14687_s27 + $0x10] sm:$0xff] }
0x11b5   : >>> { %v6979_v53 = vadd.f32 %v14761_v40, %v6957_v41  ;;  %9342 = vmatpush3.msra.mxu0 %v14745_v16  ;;  %9443 = vmatpush3.msra.mxu1 %v7209_v39  ;;  %v7207_v16 = vld [vmem:[%s14687_s27 + $0x8] sm:$0xff] }
0x11b6   : >>> { %9314 = vmatmul.mubr.msk.f32.gmra.mxu0 %vm601_vm0, %v6978_v5  ;;  %v6958_v7 = vmul.f32 %v14758_v10, %v6936_v50  ;;  %9343 = vmatprep.subr.mxu0 %v7209_v39  ;;  %v7206_v10 = vld [vmem:[%s14687_s27] sm:$0xff] }
0x11b7   : >>> { %9316 = vmatprep.mubr.msk.f32.mxu0 %vm601_vm0, %v6979_v53  ;;  %9344 = vmatpush3.msra.mxu0 %v7209_v39 }
0x11b8   : >>> { %v6980_v55 = vadd.f32 %v14761_v40, %v6958_v7  ;;  %9345 = vmatprep.subr.mxu0 %v7208_v33  ;;  %9428 = vmatprep.subr.mxu1 %v7208_v33  ;;  %v8234_v40 = vld [vmem:[%s6987_s24] ss:$0 sm:$0xff] }
0x11b9   : >>> { %9346 = vmatpush3.msra.mxu0 %v7208_v33  ;;  %9444 = vmatpush3.msra.mxu1 %v7208_v33 }
0x11ba   : >>> { %9317 = vmatmul.mubr.msk.f32.gmra.mxu0 %vm601_vm0, %v6980_v55  ;;  %9347 = vmatprep.subr.mxu0 %v7207_v16 }
0x11bb   : >>> { %9429 = vmatprep.subr.mxu1 %v7207_v16  ;;  %9348 = vmatpush3.msra.mxu0 %v7207_v16 }
0x11bc   : >>> { %9445 = vmatpush3.msra.mxu1 %v7207_v16  ;;  %9349 = vmatprep.subr.mxu0 %v7206_v10 }
0x11bd   : >>> { %9430 = vmatprep.subr.mxu1 %v7206_v10  ;;  %9350 = vmatpush3.msra.mxu0 %v7206_v10 }
0x11be   : >>> { %9446 = vmatpush3.msra.mxu1 %v7206_v10 }
0x125e   : >>> { %v9297_v6 = vpop.f32.mrf.mxu0 }
0x125f   : >>> { %v7115_v58 = vadd.f32 %v9297_v6, %v8234_v40 }
0x1260   : >>> { %v7109_v36 = vpop.f32.mrf.mxu0 }
0x1261   : >>> { %v7110_v62 = vadd.f32 %v8234_v40, %v7109_v36  ;;  %v7189_v23 = vmax.f32 %v7115_v58, 0.0  ;;  %v8252_v58 = vld [vmem:[%s7222_s19] ss:$0 sm:$0xff] }
0x1262   : >>> { %v9300_v45 = vpop.f32.mrf.mxu0 }
0x1263   : >>> { %v7188_v21 = vmax.f32 %v7110_v62, 0.0  ;;  %v7125_v56 = vadd.f32 %v9300_v45, %v8234_v40 }
0x1264   : >>> { %v7119_v54 = vpop.f32.mrf.mxu0 }
0x1265   : >>> { %v7120_v12 = vadd.f32 %v8234_v40, %v7119_v54  ;;  %9351 = vmatprep.mubr.f32.mxu0 %v7188_v21  ;;  %v7191_v0 = vmax.f32 %v7125_v56, 0.0 }
0x1266   : >>> { %v9303_v37 = vpop.f32.mrf.mxu0  ;;  %9352 = vmatmul.mubr.f32.vlgmr.msra.gmra.mxu0 %v7189_v23 }
0x1267   : >>> { %v7190_v30 = vmax.f32 %v7120_v12, 0.0  ;;  %v7135_v18 = vadd.f32 %v9303_v37, %v8234_v40 }
0x1268   : >>> { %v7129_v22 = vpop.f32.mrf.mxu0 }
0x1269   : >>> { %v7130_v24 = vadd.f32 %v8234_v40, %v7129_v22  ;;  %9354 = vmatprep.mubr.f32.mxu0 %v7190_v30  ;;  %v7193_v13 = vmax.f32 %v7135_v18, 0.0 }
0x126a   : >>> { %v9306_v63 = vpop.f32.mrf.mxu0  ;;  %9355 = vmatmul.mubr.f32.gmra.mxu0 %v7191_v0 }
0x126b   : >>> { %v7192_v15 = vmax.f32 %v7130_v24, 0.0  ;;  %v7145_v49 = vadd.f32 %v9306_v63, %v8234_v40 }
0x126c   : >>> { %v7139_v44 = vpop.f32.mrf.mxu0 }
0x126d   : >>> { %9357 = vmatprep.mubr.f32.mxu0 %v7192_v15  ;;  %v7140_v19 = vadd.f32 %v8234_v40, %v7139_v44  ;;  %v7195_v25 = vmax.f32 %v7145_v49, 0.0 }
0x126e   : >>> { %v9309_v51 = vpop.f32.mrf.mxu0  ;;  %9358 = vmatmul.mubr.f32.gmra.mxu0 %v7193_v13 }
0x126f   : >>> { %v7194_v47 = vmax.f32 %v7140_v19, 0.0  ;;  %v7155_v14 = vadd.f32 %v9309_v51, %v8234_v40 }
0x1270   : >>> { %v7149_v8 = vpop.f32.mrf.mxu0 }
0x1271   : >>> { %v7150_v31 = vadd.f32 %v8234_v40, %v7149_v8  ;;  %9360 = vmatprep.mubr.f32.mxu1 %v7194_v47  ;;  %v7197_v60 = vmax.f32 %v7155_v14, 0.0 }
0x1272   : >>> { %v9312_v43 = vpop.f32.mrf.mxu0  ;;  %9361 = vmatmul.mubr.f32.vlgmr.msra.gmra.mxu1 %v7195_v25 }
0x1273   : >>> { %v7196_v3 = vmax.f32 %v7150_v31, 0.0  ;;  %v7165_v29 = vadd.f32 %v9312_v43, %v8234_v40 }
0x1274   : >>> { %v7159_v61 = vpop.f32.mrf.mxu0 }
0x1275   : >>> { %v7160_v59 = vadd.f32 %v8234_v40, %v7159_v61  ;;  %9363 = vmatprep.mubr.f32.mxu1 %v7196_v3  ;;  %v7199_v35 = vmax.f32 %v7165_v29, 0.0 }
0x1276   : >>> { %v9315_v48 = vpop.f32.mrf.mxu0  ;;  %9364 = vmatmul.mubr.f32.gmra.mxu1 %v7197_v60 }
0x1277   : >>> { %v7198_v1 = vmax.f32 %v7160_v59, 0.0  ;;  %v7175_v41 = vadd.f32 %v9315_v48, %v8234_v40 }
0x1278   : >>> { %v7169_v5 = vpop.f32.mrf.mxu0 }
0x1279   : >>> { %v7170_v50 = vadd.f32 %v8234_v40, %v7169_v5  ;;  %9366 = vmatprep.mubr.f32.mxu1 %v7198_v1  ;;  %v7201_v55 = vmax.f32 %v7175_v41, 0.0 }
0x127a   : >>> { %v9318_v53 = vpop.f32.mrf.mxu0  ;;  %9367 = vmatmul.mubr.f32.gmra.mxu1 %v7199_v35 }
0x127b   : >>> { %v7200_v7 = vmax.f32 %v7170_v50, 0.0  ;;  %v7185_v39 = vadd.f32 %v9318_v53, %v8234_v40 }
0x127c   : >>> { %v7179_v33 = vpop.f32.mrf.mxu0 }
0x127d   : >>> { %v7180_v16 = vadd.f32 %v8234_v40, %v7179_v33  ;;  %9369 = vmatprep.mubr.f32.mxu1 %v7200_v7  ;;  %v7203_v6 = vmax.f32 %v7185_v39, 0.0 }
0x127e   : >>> { %9370 = vmatmul.mubr.f32.gmra.mxu1 %v7201_v55 }
0x127f   : >>> { %v7202_v10 = vmax.f32 %v7180_v16, 0.0 }
0x1281   : >>> { %9372 = vmatprep.mubr.f32.mxu1 %v7202_v10 }
0x1282   : >>> { %9373 = vmatmul.mubr.f32.gmra.mxu1 %v7203_v6 }
0x1326   : >>> { %v9353_v36 = vpop.f32.mrf.mxu0 }
0x1327   : >>> { %v7302_v62 = vadd.f32 %v9353_v36, %v8252_v58 }
0x1328   : >>> { %v7296_v45 = vpop.f32.mrf.mxu0 }
0x1329   : >>> { %v7376_v21 = vadd.f32 %v7302_v62, %v14510_v57  ;;  %v7297_v40 = vadd.f32 %v8252_v58, %v7296_v45 }
0x132a   : >>> { %v9356_v23 = vpop.f32.mrf.mxu0 }
0x132b   : >>> { %7392 = vst.msk [vmem:[%s14501_s29 + $0x8] sm:$0xff] %vm601_vm0, %v7376_v21  ;;  %v7375_v56 = vadd.f32 %v7297_v40, %v14504_v2  ;;  %v7312_v54 = vadd.f32 %v9356_v23, %v8252_v58 }
0x132c   : >>> { %v7306_v12 = vpop.f32.mrf.mxu0 }
0x132d   : >>> { %7391 = vst.msk [vmem:[%s14501_s29] sm:$0xff] %vm601_vm0, %v7375_v56  ;;  %v7378_v37 = vadd.f32 %v7312_v54, %v14517_v11  ;;  %v7307_v30 = vadd.f32 %v8252_v58, %v7306_v12 }
0x132e   : >>> { %v9359_v0 = vpop.f32.mrf.mxu0 }
0x132f   : >>> { %7394 = vst.msk [vmem:[%s14501_s29 + $0x18] sm:$0xff] %vm601_vm0, %v7378_v37  ;;  %v7377_v57 = vadd.f32 %v7307_v30, %v14507_v9  ;;  %v7322_v18 = vadd.f32 %v9359_v0, %v8252_v58 }
0x1330   : >>> { %v7316_v22 = vpop.f32.mrf.mxu0 }
0x1331   : >>> { %7393 = vst.msk [vmem:[%s14501_s29 + $0x10] sm:$0xff] %vm601_vm0, %v7377_v57  ;;  %v7380_v2 = vadd.f32 %v7322_v18, %v14527_v17  ;;  %v7317_v24 = vadd.f32 %v8252_v58, %v7316_v22 }
0x1332   : >>> { %v9362_v63 = vpop.f32.mrf.mxu1 }
0x1333   : >>> { %7396 = vst.msk [vmem:[%s14501_s29 + $0x28] sm:$0xff] %vm601_vm0, %v7380_v2  ;;  %v7379_v11 = vadd.f32 %v7317_v24, %v14524_v34  ;;  %v7332_v15 = vadd.f32 %v9362_v63, %v8252_v58 }
0x1334   : >>> { %v7326_v13 = vpop.f32.mrf.mxu1 }
0x1335   : >>> { %7395 = vst.msk [vmem:[%s14501_s29 + $0x20] sm:$0xff] %vm601_vm0, %v7379_v11  ;;  %v7382_v9 = vadd.f32 %v7332_v15, %v14537_v27  ;;  %v7327_v49 = vadd.f32 %v8252_v58, %v7326_v13 }
0x1336   : >>> { %v9365_v44 = vpop.f32.mrf.mxu1 }
0x1337   : >>> { %7398 = vst.msk [vmem:[%s14501_s29 + $0x38] sm:$0xff] %vm601_vm0, %v7382_v9  ;;  %v7381_v17 = vadd.f32 %v7327_v49, %v14534_v26  ;;  %v7342_v19 = vadd.f32 %v9365_v44, %v8252_v58 }
0x1338   : >>> { %v7336_v51 = vpop.f32.mrf.mxu1 }
0x1339   : >>> { %7397 = vst.msk [vmem:[%s14501_s29 + $0x30] sm:$0xff] %vm601_vm0, %v7381_v17  ;;  %v7384_v34 = vadd.f32 %v7342_v19, %v14547_v32  ;;  %v7337_v47 = vadd.f32 %v8252_v58, %v7336_v51 }
0x133a   : >>> { %v9368_v25 = vpop.f32.mrf.mxu1 }
0x133b   : >>> { %7400 = vst.msk [vmem:[%s14501_s29 + $0x48] sm:$0xff] %vm601_vm0, %v7384_v34  ;;  %v7383_v27 = vadd.f32 %v7337_v47, %v14544_v42  ;;  %v7352_v14 = vadd.f32 %v9368_v25, %v8252_v58 }
0x133c   : >>> { %v7346_v8 = vpop.f32.mrf.mxu1 }
0x133d   : >>> { %7399 = vst.msk [vmem:[%s14501_s29 + $0x40] sm:$0xff] %vm601_vm0, %v7383_v27  ;;  %v7386_v26 = vadd.f32 %v7352_v14, %v14557_v38  ;;  %v7347_v31 = vadd.f32 %v8252_v58, %v7346_v8 }
0x133e   : >>> { %v9371_v43 = vpop.f32.mrf.mxu1 }
0x133f   : >>> { %7402 = vst.msk [vmem:[%s14501_s29 + $0x58] sm:$0xff] %vm601_vm0, %v7386_v26  ;;  %v7385_v32 = vadd.f32 %v7347_v31, %v14554_v46  ;;  %v7362_v3 = vadd.f32 %v9371_v43, %v8252_v58 }
0x1340   : >>> { %v7356_v60 = vpop.f32.mrf.mxu1 }
0x1341   : >>> { %7401 = vst.msk [vmem:[%s14501_s29 + $0x50] sm:$0xff] %vm601_vm0, %v7385_v32  ;;  %v7388_v42 = vadd.f32 %v7362_v3, %v14567_v20  ;;  %v7357_v29 = vadd.f32 %v8252_v58, %v7356_v60 }
0x1342   : >>> { %v9374_v61 = vpop.f32.mrf.mxu1 }
0x1343   : >>> { %7404 = vst.msk [vmem:[%s14501_s29 + $0x68] sm:$0xff] %vm601_vm0, %v7388_v42  ;;  %v7387_v38 = vadd.f32 %v7357_v29, %v14564_v4  ;;  %v7372_v59 = vadd.f32 %v9374_v61, %v8252_v58 }
0x1344   : >>> { %v7366_v48 = vpop.f32.mrf.mxu1 }
0x1345   : >>> { %7403 = vst.msk [vmem:[%s14501_s29 + $0x60] sm:$0xff] %vm601_vm0, %v7387_v38  ;;  %v7390_v1 = vadd.f32 %v7372_v59, %v14577_v52  ;;  %v7367_v46 = vadd.f32 %v8252_v58, %v7366_v48  ;;  %6704 = sbr.rel (!%p6702_p6) target bundleno = 4191 (0x105f), region = 184 }
0x1347   : >>> { %7406 = vst.msk [vmem:[%s14501_s29 + $0x78] sm:$0xff] %vm601_vm0, %v7390_v1  ;;  %v7389_v35 = vadd.f32 %v7367_v46, %v14574_v28 }
0x1349   : >>> { %7405 = vst.msk [vmem:[%s14501_s29 + $0x70] sm:$0xff] %vm601_vm0, %v7389_v35 }
0x134a   : > { %670 = sbr.rel (!%p668_p7) target bundleno = 52 (0x34), region = 195  ;;  %v7430_v4 = vld [vmem:[%s15023_s14 + $0x98] sm:$0xff] (%p668_p7)  ;;  %v7432_v20 = vld [vmem:[%s15023_s14 + $0xa8] sm:$0xff] (%p668_p7)  ;;  %v7429_v28 = vld [vmem:[%s15023_s14 + $0x90] sm:$0xff] (%p668_p7)  ;;  %v10170_v45 = vmov (%p668_p7), 0.0  }
0x134b   : > { %7494 = vmatprep.subr.mxu0 (%p668_p7), %v7430_v4  ;;  %7565 = vmatprep.subr.mxu1 (%p668_p7), %v7432_v20  ;;  %v7431_v52 = vld [vmem:[%s15023_s14 + $0xa0] sm:$0xff] (%p668_p7)  ;;  %v7424_v41 = vld [vmem:[%s15023_s14 + $0x68] sm:$0xff] (%p668_p7)  ;;  %v7426_v5 = vld [vmem:[%s15023_s14 + $0x78] sm:$0xff] (%p668_p7)  ;;  %v10171_v11 = vmov (%p668_p7), 1966171168  }
0x134c   : > { %7495 = vmatpush1.msra.mxu0 (%p668_p7), %v7429_v28  ;;  %7566 = vmatpush1.msra.mxu1 (%p668_p7), %v7431_v52  ;;  %v7423_v50 = vld [vmem:[%s15023_s14 + $0x60] sm:$0xff] (%p668_p7)  ;;  %v7425_v53 = vld [vmem:[%s15023_s14 + $0x70] sm:$0xff] (%p668_p7)  ;;  %v7418_v7 = vld [vmem:[%s15023_s14 + $0x38] sm:$0xff] (%p668_p7)  ;;  %v7693_v15 = vunpack.c.l.s4 (%p668_p7), %v10171_v11  ;;  %v15488_v52 = vlaneseq (%p668_p7) }
0x134d   : > { %7496 = vmatprep.subr.mxu0 (%p668_p7), %v7424_v41  ;;  %7567 = vmatprep.subr.mxu1 (%p668_p7), %v7426_v5  ;;  %v7420_v55 = vld [vmem:[%s15023_s14 + $0x48] sm:$0xff] (%p668_p7)  ;;  %v7417_v39 = vld [vmem:[%s15023_s14 + $0x30] sm:$0xff] (%p668_p7)  ;;  %v7419_v33 = vld [vmem:[%s15023_s14 + $0x40] sm:$0xff] (%p668_p7) }
0x134e   : > { %7497 = vmatpush1.msra.mxu0 (%p668_p7), %v7423_v50  ;;  %7568 = vmatpush1.msra.mxu1 (%p668_p7), %v7425_v53  ;;  %v7412_v16 = vld [vmem:[%s15023_s14 + $0x8] sm:$0xff] (%p668_p7)  ;;  %v7414_v10 = vld [vmem:[%s15023_s14 + $0x18] sm:$0xff] (%p668_p7)  ;;  %v7411_v6 = vld [vmem:[%s15023_s14] sm:$0xff] (%p668_p7)  ;;  %v7694_v25 = vunpack.c.0.s8 (%p668_p7), %v7693_v15  ;;  %vm7732_vm4 = vcmp.lt.s32.totalorder (%p668_p7), %v15488_v52, 768 }
0x134f   : > { %7498 = vmatprep.subr.mxu0 %v7418_v7  ;;  %7569 = vmatprep.subr.mxu1 %v7420_v55  ;;  %v7413_v36 = vld [vmem:[%s15023_s14 + $0x10] sm:$0xff]  ;;  %v7434_v40 = vld [vmem:[%s15023_s14 + $0xb8] sm:$0xff]  ;;  %v7428_v56 = vld [vmem:[%s15023_s14 + $0x88] sm:$0xff] }
0x1350   : > { %v7407_v58 = vld [vmem:[#allocation2] sm:$0x1]  ;;  %7499 = vmatpush1.msra.mxu0 %v7417_v39  ;;  %7570 = vmatpush1.msra.mxu1 %v7419_v33  ;;  %v7433_v23 = vld [vmem:[%s15023_s14 + $0xb0] sm:$0xff]  ;;  %v7422_v12 = vld [vmem:[%s15023_s14 + $0x58] sm:$0xff] }
0x1351   : > { %vm7408_vm3 = vcmp.gt.f32.partialorder %v7407_v58, 0.0  ;;  %v7409_v62 = vmul.f32 0.01, %v7407_v58  ;;  %7500 = vmatprep.subr.mxu0 %v7412_v16  ;;  %7571 = vmatprep.subr.mxu1 %v7414_v10  ;;  %v7427_v54 = vld [vmem:[%s15023_s14 + $0x80] sm:$0xff]  ;;  %v7421_v37 = vld [vmem:[%s15023_s14 + $0x50] sm:$0xff]  ;;  %v7416_v30 = vld [vmem:[%s15023_s14 + $0x28] sm:$0xff] }
0x1352   : > { %7501 = vmatpush1.msra.mxu0 %v7411_v6  ;;  %7534 = vmatprep.mubr.f32.mxu0 %v10170_v45  ;;  %v7415_v0 = vld [vmem:[%s15023_s14 + $0x20] sm:$0xff] }
0x1353   : > { %v7410_v21 = vsel %vm7408_vm3, %v7407_v58, %v7409_v62  ;;  %7572 = vmatpush1.msra.mxu1 %v7413_v36  ;;  %7605 = vmatprep.mubr.f32.mxu1 %v10170_v45  ;;  %v7435_v57 = vld [vmem:[%s15024_s15] sm:$0x3f] }
0x1354   : > { %8253 = vmatmul.mubr.msk.f32.vlgmr.msra.gmra.mxu0 %vm601_vm0, %v7410_v21  ;;  %8254 = vmatmul.mubr.msk.f32.vlgmr.msra.gmra.mxu1 %vm601_vm0, %v7410_v21  ;;  %v15483_v18 = vld [vmem:[#allocation10_spill] sm:$0xff] }
0x1355   : > { %7636 = vmatprep.subr.mxu0 %v7434_v40  ;;  %7676 = vmatprep.mubr.f32.mxu0 %v10170_v45  ;;  %v15484_v22 = vsub.s32 0, %v15483_v18  ;;  %v15485_v24 = vsub.s32 2, %v15483_v18  ;;  %v15486_v13 = vsub.s32 1, %v15483_v18  ;;  %v15487_v49 = vsub.s32 3, %v15483_v18 }
0x1356   : > { %7637 = vmatpush1.msra.mxu0 %v7433_v23  ;;  %v7455_v26 = vsub.s32 4, %v15483_v18  ;;  %v7459_v31 = vsub.s32 5, %v15483_v18  ;;  %v7697_v32 = vsub.s32 %v7694_v25, %v15483_v18 }
0x1357   : > { %7638 = vmatprep.subr.mxu0 %v7428_v56  ;;  %v7440_v2 = vrot.slane %v7435_v57, %v15484_v22  ;;  %v7448_v63 = vrot.slane %v7435_v57, %v15485_v24  ;;  %v7444_v9 = vrot.slane %v7435_v57, %v15486_v13  ;;  %v7452_v44 = vrot.slane %v7435_v57, %v15487_v49 }
0x1358   : > { %7639 = vmatpush1.msra.mxu0 %v7427_v54  ;;  %v7456_v60 = vrot.slane %v7435_v57, %v7455_v26  ;;  %v7460_v42 = vrot.slane %v7435_v57, %v7459_v31 }
0x1359   : > { %7640 = vmatprep.subr.mxu0 %v7422_v12 }
0x135a   : > { %7641 = vmatpush1.msra.mxu0 %v7421_v37 }
0x135b   : > { %7642 = vmatprep.subr.mxu0 %v7416_v30 }
0x135c   : > { %7643 = vmatpush1.msra.mxu0 %v7415_v0 }
0x135d   : > { %8255 = vmatmul.mubr.msk.f32.vlgmr.msra.gmra.mxu0 %vm601_vm0, %v7410_v21 }
0x1414   : > { %v7536_v17 = vpop.f32.mrf.mxu0  ;;  %v7607_v19 = vpop.f32.mrf.mxu1 }
0x1415   : > { %v7537_v51 = vadd.f32 %v7536_v17, %v7440_v2  ;;  %v7608_v34 = vadd.f32 %v7607_v19, %v7448_v63 }
0x1416   : > { %v7538_v47 = vpop.f32.mrf.mxu0  ;;  %v7609_v27 = vpop.f32.mrf.mxu1 }
0x1417   : > { %v7539_v14 = vadd.f32 %v7538_v47, %v7444_v9  ;;  %v7610_v8 = vadd.f32 %v7609_v27, %v7452_v44 }
0x1419   : > { %v7689_v43 = vcombine.low %v7537_v51, %v7539_v14  ;;  %v7690_v3 = vcombine.low %v7608_v34, %v7610_v8 }
0x141b   : > { %v7698_v61 = vrot.slane %v7689_v43, %v7697_v32  ;;  %v7705_v38 = vrot.slane %v7690_v3, %v7697_v32 }
0x141d   : > { %v7678_v29 = vpop.f32.mrf.mxu0  ;;  %v7713_v46 = vcombine.low %v7698_v61, %v7705_v38 }
0x141e   : > { %v7679_v48 = vadd.f32 %v7678_v29, %v7456_v60 }
0x141f   : > { %v7680_v59 = vpop.f32.mrf.mxu0  ;;  %v7720_v20 = vrot.slane %v7713_v46, %v7697_v32 }
0x1420   : > { %v7681_v1 = vadd.f32 %v7680_v59, %v7460_v42 }
0x1422   : > { %v7691_v35 = vcombine.low %v7679_v48, %v7681_v1 }
0x1424   : > { %v7712_v4 = vrot.slane %v7691_v35, %v7697_v32 }
0x1426   : > { %v7727_v28 = vrot.slane %v7712_v4, %v7697_v32 }
0x1428   : > { %v7728_v41 = vcombine.low %v7720_v20, %v7727_v28 }
0x142a   : > { %7734 = vst.msk [vmem:[%s10287_s20] sm:$0x3f] %vm7732_vm4, %v7728_v41 }
0x142b PF: > { %s26_s21 = sadd.s32 1, %s10141_s21  }
0x142c   : > { %p23_p8 = scmp.ge.s32.totalorder %s26_s21, 4  }
0x142e   :  { %25 = sbr.rel (!%p23_p8) target bundleno = 2 (0x2), region = 206 }

</bundles_post_ra>
